<compile_context>
chip_gen: v7x
topology: tpu7x:2x2x1
jax: 0.10.0
libtpu: 0.0.40
codegen_flags: <defaults>
</compile_context>

<pallas_src>
import jax
import jax.numpy as jnp
from jax.experimental import pallas as pl
from jax.experimental.pallas import tpu as pltpu


# ---------------------------------------------------------------------------
# Static geometry (module spec: 3 -> 16 -> 32 -> 1, 16x16 spatial, pad 1).
# ---------------------------------------------------------------------------
H = W = 16
HP = WP = 18                         # zero-padded spatial dims
GRID_FLAT = HP * WP                  # 324 lanes of real padded grid per image
SEG = 512                            # lanes reserved per image (mult. of 128)
L = H * WP                           # 288: compute lanes that map to outputs
INT_OFF = WP + 1                     # 19: padded-grid offset of pixel (0, 0)
TAP_OFFS = tuple(dy * WP + dx for dy in range(3) for dx in range(3))  # 0..38
C0, C0P, C1, C2 = 3, 8, 16, 32       # channels (C0 padded to 8 for alignment)
NEG_TAPS = sum(1 for off in TAP_OFFS if off < INT_OFF)                # 4


# ---------------------------------------------------------------------------
# Fused kernel: B_TILE images per grid step, everything VMEM-resident.
# ---------------------------------------------------------------------------
def _csfd_kernel(x_ref, w1_ref, b1_ref, w2_ref, b2_ref, w3_ref, b3_ref,
                 o_ref, x1stk_ref, y1_ref, y1stk_ref):
    CW = x_ref.shape[1]              # B_TILE * SEG compute lanes
    B = o_ref.shape[0]               # images in this step

    # Lane validity: within each 512-lane image segment, lane q maps to output
    # pixel (q // 18, q % 18); only q < 288 with column < 16 are real outputs.
    q = jax.lax.broadcasted_iota(jnp.int32, (1, CW), 1) % SEG
    valid = (q < L) & ((q % WP) < W)

    # ---- conv1: 3 -> 16, 3x3, pad 1.  Stack the 9 taps on the contraction
    # axis (shift-on-store into VMEM scratch) -> ONE bf16 MXU matmul.
    for t, off in enumerate(TAP_OFFS):
        r0 = t * C0P
        if off == 0:
            x1stk_ref[r0:r0 + C0P, :] = x_ref[...]
        else:
            # Stale tail lanes [CW-off, CW) only feed non-output lanes.
            x1stk_ref[r0:r0 + C0P, :CW - off] = x_ref[:, off:]
    acc1 = jnp.dot(w1_ref[...], x1stk_ref[...],
                   preferred_element_type=jnp.float32)          # (16, CW) f32
    y1 = jnp.maximum(acc1 + b1_ref[...], 0.0)
    # Mask garbage lanes to zero: they are conv2's zero padding.
    y1_ref[...] = jnp.where(valid, y1, 0.0).astype(jnp.bfloat16)

    # ---- conv2: 16 -> 32, 3x3, pad 1.  Same tap stacking; relative offsets
    # are off - 19 in [-19, 19].  Lanes [0, 19) of the 4 negative-offset tap
    # blocks are "above the top border" reads for the first image's row 0;
    # they must read zero and are never covered by the shifted stores, so
    # re-zero them every step (4 x 1 vreg -- negligible, megacore-safe).
    y1stk_ref[0:NEG_TAPS * C1, 0:128] = jnp.zeros((NEG_TAPS * C1, 128),
                                                  jnp.bfloat16)
    for t, off in enumerate(TAP_OFFS):
        d = off - INT_OFF
        r0 = t * C1
        if d == 0:
            y1stk_ref[r0:r0 + C1, :] = y1_ref[...]
        elif d > 0:
            y1stk_ref[r0:r0 + C1, :CW - d] = y1_ref[:, d:]
        else:
            s = -d
            y1stk_ref[r0:r0 + C1, s:] = y1_ref[:, :CW - s]
    acc2 = jnp.dot(w2_ref[...], y1stk_ref[...],
                   preferred_element_type=jnp.float32)          # (32, CW) f32
    y2 = jnp.maximum(acc2 + b2_ref[...], 0.0)

    # ---- conv3: 32 -> 1, 1x1 as a VPU channel-weighted sum (f32), then
    # lane-dense per-image output rows (512 lanes = 4 full vregs each).
    out = jnp.sum(y2 * w3_ref[...], axis=0, keepdims=True) + b3_ref[0, 0]
    for i in range(B):
        o_ref[i:i + 1, :] = out[:, i * SEG:(i + 1) * SEG]


# ---------------------------------------------------------------------------
# Batch-tile choice: >= 2 grid steps when possible (v7x has 2 TensorCores and
# the parallel batch axis is what shards across them); cap at 32 images per
# step (~4-6 MiB of VMEM incl. the tap-stacked scratch -> fits every gen).
# ---------------------------------------------------------------------------
def _pick_batch_tile(n):
    if n <= 8:
        return 8
    half = -(-n // 2)
    b = min(32, half)
    return -(-b // 8) * 8


# ---------------------------------------------------------------------------
# Forward pass (NCHW in, NCHW out), matching the PyTorch CSFD module.
# ---------------------------------------------------------------------------
def csfd_forward(x_nchw, params, batch_tile=None):
    N = x_nchw.shape[0]
    B = int(batch_tile) if batch_tile else _pick_batch_tile(N)
    G = pl.cdiv(N, B)
    n_pad = G * B
    CW = B * SEG

    # Channel-major, zero-padded lane-slab input: (8, n_pad*512) bf16.
    xp = jnp.pad(x_nchw.astype(jnp.float32),
                 ((0, n_pad - N), (0, 0), (1, 1), (1, 1)))       # (n,3,18,18)
    xf = xp.reshape(n_pad, C0, GRID_FLAT)
    xf = jnp.pad(xf, ((0, 0), (0, C0P - C0), (0, SEG - GRID_FLAT)))
    xf = jnp.transpose(xf, (1, 0, 2)).reshape(C0P, n_pad * SEG)
    xf = xf.astype(jnp.bfloat16)

    # Tap-stacked weights: contraction axis = 9 taps x (padded) Cin, bf16.
    w1s = jnp.transpose(params["w1"].reshape(C1, C0, 9), (0, 2, 1))  # (16,9,3)
    w1s = jnp.pad(w1s, ((0, 0), (0, 0), (0, C0P - C0)))
    w1s = w1s.reshape(C1, 9 * C0P).astype(jnp.bfloat16)              # (16,72)
    w2s = jnp.transpose(params["w2"].reshape(C2, C1, 9), (0, 2, 1))
    w2s = w2s.reshape(C2, 9 * C1).astype(jnp.bfloat16)               # (32,144)
    b1 = params["b1"].reshape(C1, 1).astype(jnp.float32)
    b2 = params["b2"].reshape(C2, 1).astype(jnp.float32)
    w3 = params["w3"].reshape(1, C2).astype(jnp.float32).T           # (32,1)
    b3 = params["b3"].reshape(1, 1).astype(jnp.float32)

    flops = 2 * n_pad * H * W * (C1 * 9 * C0 + C2 * 9 * C1 + C2)
    bytes_accessed = (xf.size * 2 + n_pad * SEG * 4
                      + w1s.size * 2 + w2s.size * 2
                      + (b1.size + b2.size + w3.size + b3.size) * 4)

    out_flat = pl.pallas_call(
        _csfd_kernel,
        out_shape=jax.ShapeDtypeStruct((n_pad, SEG), jnp.float32),
        grid=(G,),
        in_specs=[
            pl.BlockSpec((C0P, CW), lambda n: (0, n)),
            pl.BlockSpec((C1, 9 * C0P), lambda n: (0, 0)),
            pl.BlockSpec((C1, 1), lambda n: (0, 0)),
            pl.BlockSpec((C2, 9 * C1), lambda n: (0, 0)),
            pl.BlockSpec((C2, 1), lambda n: (0, 0)),
            pl.BlockSpec((C2, 1), lambda n: (0, 0)),
            pl.BlockSpec(memory_space=pltpu.MemorySpace.SMEM),   # scalar b3
        ],
        out_specs=pl.BlockSpec((B, SEG), lambda n: (n, 0)),
        scratch_shapes=[
            pltpu.VMEM((9 * C0P, CW), jnp.bfloat16),   # tap-stacked conv1 in
            pltpu.VMEM((C1, CW), jnp.bfloat16),        # masked conv1 output
            pltpu.VMEM((9 * C1, CW), jnp.bfloat16),    # tap-stacked conv2 in
        ],
        compiler_params=pltpu.CompilerParams(
            dimension_semantics=("parallel",),
            vmem_limit_bytes=48 * 1024 * 1024),
        cost_estimate=pl.CostEstimate(flops=flops, transcendentals=0,
                                      bytes_accessed=bytes_accessed),
    )(xf, w1s, b1, w2s, b2, w3, b3)

    # (n_pad, 512) -> keep the 288 compute lanes -> (N, 16, 18) -> drop the 2
    # padded columns per row -> NCHW out.
    y = out_flat[:N, :L].reshape(N, H, WP)[:, :, :W]
    return y[:, None, :, :]


# ---------------------------------------------------------------------------
# Pure-JAX reference (lax.conv) for correctness check.
# ---------------------------------------------------------------------------
def csfd_reference(x_nchw, params):
    dn = ("NCHW", "OIHW", "NCHW")
    y = jax.lax.conv_general_dilated(x_nchw, params["w1"], (1, 1), "SAME",
                                     dimension_numbers=dn)
    y = jax.nn.relu(y + params["b1"].reshape(1, -1, 1, 1))
    y = jax.lax.conv_general_dilated(y, params["w2"], (1, 1), "SAME",
                                     dimension_numbers=dn)
    y = jax.nn.relu(y + params["b2"].reshape(1, -1, 1, 1))
    y = jax.lax.conv_general_dilated(y, params["w3"], (1, 1), "VALID",
                                     dimension_numbers=dn)
    return y + params["b3"].reshape(1, -1, 1, 1)


if __name__ == "__main__":
    key = jax.random.PRNGKey(0)
    k_x, k1, k2, k3, kb1, kb2, kb3 = jax.random.split(key, 7)

    # Deterministic synthetic parameters (shapes from the module __init__).
    params = {
        "w1": 0.1 * jax.random.normal(k1, (16, 3, 3, 3), jnp.float32),
        "b1": 0.1 * jax.random.normal(kb1, (16,), jnp.float32),
        "w2": 0.1 * jax.random.normal(k2, (32, 16, 3, 3), jnp.float32),
        "b2": 0.1 * jax.random.normal(kb2, (32,), jnp.float32),
        "w3": 0.1 * jax.random.normal(k3, (1, 32, 1, 1), jnp.float32),
        "b3": 0.1 * jax.random.normal(kb3, (1,), jnp.float32),
    }

    # Small input consistent with the module: batch=2, channels=3, spatial=16.
    x = jax.random.normal(k_x, (2, 3, 16, 16), jnp.float32)

    out = jax.jit(csfd_forward)(x, params)
    out = jax.block_until_ready(out)

    ref = csfd_reference(x, params)
    assert out.shape == (2, 1, 16, 16), out.shape
    max_err = float(jnp.max(jnp.abs(out - ref)))
    # bf16 MXU operands with f32 accumulation: tolerance loosened accordingly.
    assert jnp.allclose(out, ref, atol=3e-2, rtol=3e-2), max_err

    print("KERNEL_OK")
</pallas_src>

<mosaic_0001>
module attributes {stable_mosaic.version = 11 : i64} {
  func.func @_csfd_kernel(%arg0: i32, %arg1: memref<8x4096xbf16, #tpu.memory_space<vmem>>, %arg2: memref<16x72xbf16, #tpu.memory_space<vmem>>, %arg3: memref<16x1xf32, #tpu.memory_space<vmem>>, %arg4: memref<32x144xbf16, #tpu.memory_space<vmem>>, %arg5: memref<32x1xf32, #tpu.memory_space<vmem>>, %arg6: memref<32x1xf32, #tpu.memory_space<vmem>>, %arg7: memref<1x1xf32, #tpu.memory_space<smem>>, %arg8: memref<8x512xf32, #tpu.memory_space<vmem>>, %arg9: memref<72x4096xbf16, #tpu.memory_space<vmem>>, %arg10: memref<16x4096xbf16, #tpu.memory_space<vmem>>, %arg11: memref<144x4096xbf16, #tpu.memory_space<vmem>>) attributes {dimension_semantics = [#tpu.dimension_semantics<parallel>], iteration_bounds = array<i64: 1>, scalar_prefetch = 0 : i64, scratch_operands = 3 : i64, tpu.core_type = #tpu.core_type<tc>, window_params = [{transform_indices = @transform_0, window_bounds = array<i64: 8, 4096>}, {pipeline_mode = #tpu.pipeline_mode<synchronous>, transform_indices = @transform_1, window_bounds = array<i64: 16, 72>}, {pipeline_mode = #tpu.pipeline_mode<synchronous>, transform_indices = @transform_2, window_bounds = array<i64: 16, 1>}, {pipeline_mode = #tpu.pipeline_mode<synchronous>, transform_indices = @transform_3, window_bounds = array<i64: 32, 144>}, {pipeline_mode = #tpu.pipeline_mode<synchronous>, transform_indices = @transform_4, window_bounds = array<i64: 32, 1>}, {pipeline_mode = #tpu.pipeline_mode<synchronous>, transform_indices = @transform_5, window_bounds = array<i64: 32, 1>}, {transform_indices = @transform_6, window_bounds = array<i64: 1, 1>}, {transform_indices = @transform_7, window_bounds = array<i64: 8, 512>}]} {
    %0 = tpu.iota {dimensions = array<i32: 1>} : vector<1x4096xi32>
    %c512_i32 = arith.constant 512 : i32
    %c0_i32 = arith.constant 0 : i32
    %1 = arith.cmpi eq, %c512_i32, %c0_i32 : i32
    %c1_i32 = arith.constant 1 : i32
    %2 = arith.select %1, %c1_i32, %c512_i32 : i32
    %3 = vector.broadcast %2 : i32 to vector<1x4096xi32>
    %4 = arith.remsi %0, %3 : vector<1x4096xi32>
    %c0_i32_0 = arith.constant 0 : i32
    %5 = vector.broadcast %c0_i32_0 : i32 to vector<1x4096xi32>
    %6 = arith.cmpi ne, %4, %5 : vector<1x4096xi32>
    %c0_i32_1 = arith.constant 0 : i32
    %7 = vector.broadcast %c0_i32_1 : i32 to vector<1x4096xi32>
    %8 = arith.cmpi slt, %4, %7 : vector<1x4096xi32>
    %c0_i32_2 = arith.constant 0 : i32
    %9 = arith.cmpi slt, %2, %c0_i32_2 : i32
    %10 = vector.broadcast %9 : i1 to vector<1x4096xi1>
    %11 = vector.broadcast %10 : vector<1x4096xi1> to vector<1x4096xi1>
    %12 = arith.xori %8, %11 : vector<1x4096xi1>
    %13 = arith.andi %12, %6 : vector<1x4096xi1>
    %14 = vector.broadcast %2 : i32 to vector<1x4096xi32>
    %15 = arith.addi %4, %14 : vector<1x4096xi32>
    %16 = arith.select %13, %15, %4 : vector<1x4096xi1>, vector<1x4096xi32>
    %c288_i32 = arith.constant 288 : i32
    %17 = vector.broadcast %c288_i32 : i32 to vector<1x4096xi32>
    %18 = arith.cmpi slt, %16, %17 : vector<1x4096xi32>
    %c18_i32 = arith.constant 18 : i32
    %c0_i32_3 = arith.constant 0 : i32
    %19 = arith.cmpi eq, %c18_i32, %c0_i32_3 : i32
    %c1_i32_4 = arith.constant 1 : i32
    %20 = arith.select %19, %c1_i32_4, %c18_i32 : i32
    %21 = vector.broadcast %20 : i32 to vector<1x4096xi32>
    %22 = arith.remsi %16, %21 : vector<1x4096xi32>
    %c0_i32_5 = arith.constant 0 : i32
    %23 = vector.broadcast %c0_i32_5 : i32 to vector<1x4096xi32>
    %24 = arith.cmpi ne, %22, %23 : vector<1x4096xi32>
    %c0_i32_6 = arith.constant 0 : i32
    %25 = vector.broadcast %c0_i32_6 : i32 to vector<1x4096xi32>
    %26 = arith.cmpi slt, %22, %25 : vector<1x4096xi32>
    %c0_i32_7 = arith.constant 0 : i32
    %27 = arith.cmpi slt, %20, %c0_i32_7 : i32
    %28 = vector.broadcast %27 : i1 to vector<1x4096xi1>
    %29 = vector.broadcast %28 : vector<1x4096xi1> to vector<1x4096xi1>
    %30 = arith.xori %26, %29 : vector<1x4096xi1>
    %31 = arith.andi %30, %24 : vector<1x4096xi1>
    %32 = vector.broadcast %20 : i32 to vector<1x4096xi32>
    %33 = arith.addi %22, %32 : vector<1x4096xi32>
    %34 = arith.select %31, %33, %22 : vector<1x4096xi1>, vector<1x4096xi32>
    %c16_i32 = arith.constant 16 : i32
    %35 = vector.broadcast %c16_i32 : i32 to vector<1x4096xi32>
    %36 = arith.cmpi slt, %34, %35 : vector<1x4096xi32>
    %37 = arith.andi %18, %36 : vector<1x4096xi1>
    %c0 = arith.constant 0 : index
    %c0_8 = arith.constant 0 : index
    %38 = vector.load %arg1[%c0, %c0_8] : memref<8x4096xbf16, #tpu.memory_space<vmem>>, vector<8x4096xbf16>
    %c0_9 = arith.constant 0 : index
    %c0_10 = arith.constant 0 : index
    %39 = vector.load %arg9[%c0_9, %c0_10] : memref<72x4096xbf16, #tpu.memory_space<vmem>>, vector<8x4096xbf16>
    tpu.vector_store %arg9[%c0_9, %c0_10], %38 {strides = array<i32>} : memref<72x4096xbf16, #tpu.memory_space<vmem>>, vector<8x4096xbf16>,
    %c0_11 = arith.constant 0 : index
    %c1 = arith.constant 1 : index
    %40 = vector.load %arg1[%c0_11, %c1] : memref<8x4096xbf16, #tpu.memory_space<vmem>>, vector<8x4095xbf16>
    %c8 = arith.constant 8 : index
    %c0_12 = arith.constant 0 : index
    %41 = vector.load %arg9[%c8, %c0_12] : memref<72x4096xbf16, #tpu.memory_space<vmem>>, vector<8x4095xbf16>
    tpu.vector_store %arg9[%c8, %c0_12], %40 {strides = array<i32>} : memref<72x4096xbf16, #tpu.memory_space<vmem>>, vector<8x4095xbf16>,
    %c0_13 = arith.constant 0 : index
    %c2 = arith.constant 2 : index
    %42 = vector.load %arg1[%c0_13, %c2] : memref<8x4096xbf16, #tpu.memory_space<vmem>>, vector<8x4094xbf16>
    %c16 = arith.constant 16 : index
    %c0_14 = arith.constant 0 : index
    %43 = vector.load %arg9[%c16, %c0_14] : memref<72x4096xbf16, #tpu.memory_space<vmem>>, vector<8x4094xbf16>
    tpu.vector_store %arg9[%c16, %c0_14], %42 {strides = array<i32>} : memref<72x4096xbf16, #tpu.memory_space<vmem>>, vector<8x4094xbf16>,
    %c0_15 = arith.constant 0 : index
    %c18 = arith.constant 18 : index
    %44 = vector.load %arg1[%c0_15, %c18] : memref<8x4096xbf16, #tpu.memory_space<vmem>>, vector<8x4078xbf16>
    %c24 = arith.constant 24 : index
    %c0_16 = arith.constant 0 : index
    %45 = vector.load %arg9[%c24, %c0_16] : memref<72x4096xbf16, #tpu.memory_space<vmem>>, vector<8x4078xbf16>
    tpu.vector_store %arg9[%c24, %c0_16], %44 {strides = array<i32>} : memref<72x4096xbf16, #tpu.memory_space<vmem>>, vector<8x4078xbf16>,
    %c0_17 = arith.constant 0 : index
    %c19 = arith.constant 19 : index
    %46 = vector.load %arg1[%c0_17, %c19] : memref<8x4096xbf16, #tpu.memory_space<vmem>>, vector<8x4077xbf16>
    %c32 = arith.constant 32 : index
    %c0_18 = arith.constant 0 : index
    %47 = vector.load %arg9[%c32, %c0_18] : memref<72x4096xbf16, #tpu.memory_space<vmem>>, vector<8x4077xbf16>
    tpu.vector_store %arg9[%c32, %c0_18], %46 {strides = array<i32>} : memref<72x4096xbf16, #tpu.memory_space<vmem>>, vector<8x4077xbf16>,
    %c0_19 = arith.constant 0 : index
    %c20 = arith.constant 20 : index
    %48 = vector.load %arg1[%c0_19, %c20] : memref<8x4096xbf16, #tpu.memory_space<vmem>>, vector<8x4076xbf16>
    %c40 = arith.constant 40 : index
    %c0_20 = arith.constant 0 : index
    %49 = vector.load %arg9[%c40, %c0_20] : memref<72x4096xbf16, #tpu.memory_space<vmem>>, vector<8x4076xbf16>
    tpu.vector_store %arg9[%c40, %c0_20], %48 {strides = array<i32>} : memref<72x4096xbf16, #tpu.memory_space<vmem>>, vector<8x4076xbf16>,
    %c0_21 = arith.constant 0 : index
    %c36 = arith.constant 36 : index
    %50 = vector.load %arg1[%c0_21, %c36] : memref<8x4096xbf16, #tpu.memory_space<vmem>>, vector<8x4060xbf16>
    %c48 = arith.constant 48 : index
    %c0_22 = arith.constant 0 : index
    %51 = vector.load %arg9[%c48, %c0_22] : memref<72x4096xbf16, #tpu.memory_space<vmem>>, vector<8x4060xbf16>
    tpu.vector_store %arg9[%c48, %c0_22], %50 {strides = array<i32>} : memref<72x4096xbf16, #tpu.memory_space<vmem>>, vector<8x4060xbf16>,
    %c0_23 = arith.constant 0 : index
    %c37 = arith.constant 37 : index
    %52 = vector.load %arg1[%c0_23, %c37] : memref<8x4096xbf16, #tpu.memory_space<vmem>>, vector<8x4059xbf16>
    %c56 = arith.constant 56 : index
    %c0_24 = arith.constant 0 : index
    %53 = vector.load %arg9[%c56, %c0_24] : memref<72x4096xbf16, #tpu.memory_space<vmem>>, vector<8x4059xbf16>
    tpu.vector_store %arg9[%c56, %c0_24], %52 {strides = array<i32>} : memref<72x4096xbf16, #tpu.memory_space<vmem>>, vector<8x4059xbf16>,
    %c0_25 = arith.constant 0 : index
    %c38 = arith.constant 38 : index
    %54 = vector.load %arg1[%c0_25, %c38] : memref<8x4096xbf16, #tpu.memory_space<vmem>>, vector<8x4058xbf16>
    %c64 = arith.constant 64 : index
    %c0_26 = arith.constant 0 : index
    %55 = vector.load %arg9[%c64, %c0_26] : memref<72x4096xbf16, #tpu.memory_space<vmem>>, vector<8x4058xbf16>
    tpu.vector_store %arg9[%c64, %c0_26], %54 {strides = array<i32>} : memref<72x4096xbf16, #tpu.memory_space<vmem>>, vector<8x4058xbf16>,
    %c0_27 = arith.constant 0 : index
    %c0_28 = arith.constant 0 : index
    %56 = vector.load %arg2[%c0_27, %c0_28] : memref<16x72xbf16, #tpu.memory_space<vmem>>, vector<16x72xbf16>
    %c0_29 = arith.constant 0 : index
    %c0_30 = arith.constant 0 : index
    %57 = vector.load %arg9[%c0_29, %c0_30] : memref<72x4096xbf16, #tpu.memory_space<vmem>>, vector<72x4096xbf16>
    %cst = arith.constant dense<0.000000e+00> : vector<16x4096xf32>
    %58 = tpu.matmul %56, %57, %cst {dimension_numbers = #tpu.dot_dimension_numbers<[1], [0], [0], [1], [0, 0, 1, 1], [], []>} : vector<16x72xbf16>, vector<72x4096xbf16>, vector<16x4096xf32> -> vector<16x4096xf32>
    %c0_31 = arith.constant 0 : index
    %c0_32 = arith.constant 0 : index
    %59 = vector.load %arg3[%c0_31, %c0_32] : memref<16x1xf32, #tpu.memory_space<vmem>>, vector<16x1xf32>
    %60 = vector.broadcast %59 : vector<16x1xf32> to vector<16x4096xf32>
    %61 = arith.addf %58, %60 : vector<16x4096xf32>
    %cst_33 = arith.constant 0.000000e+00 : f32
    %62 = vector.broadcast %cst_33 : f32 to vector<16x4096xf32>
    %63 = arith.maximumf %61, %62 : vector<16x4096xf32>
    %cst_34 = arith.constant 0.000000e+00 : f32
    %64 = vector.shape_cast %37 : vector<1x4096xi1> to vector<1x4096xi1>
    %65 = vector.broadcast %64 : vector<1x4096xi1> to vector<16x4096xi1>
    %66 = vector.broadcast %cst_34 : f32 to vector<16x4096xf32>
    %67 = arith.select %65, %63, %66 : vector<16x4096xi1>, vector<16x4096xf32>
    %68 = arith.truncf %67 : vector<16x4096xf32> to vector<16x4096xbf16>
    %c0_35 = arith.constant 0 : index
    %c0_36 = arith.constant 0 : index
    %69 = vector.load %arg10[%c0_35, %c0_36] : memref<16x4096xbf16, #tpu.memory_space<vmem>>, vector<16x4096xbf16>
    tpu.vector_store %arg10[%c0_35, %c0_36], %68 {strides = array<i32>} : memref<16x4096xbf16, #tpu.memory_space<vmem>>, vector<16x4096xbf16>,
    %cst_37 = arith.constant 0.000000e+00 : bf16
    %70 = vector.broadcast %cst_37 : bf16 to vector<64x128xbf16>
    %c0_38 = arith.constant 0 : index
    %c0_39 = arith.constant 0 : index
    %71 = vector.load %arg11[%c0_38, %c0_39] : memref<144x4096xbf16, #tpu.memory_space<vmem>>, vector<64x128xbf16>
    tpu.vector_store %arg11[%c0_38, %c0_39], %70 {strides = array<i32>} : memref<144x4096xbf16, #tpu.memory_space<vmem>>, vector<64x128xbf16>,
    %c0_40 = arith.constant 0 : index
    %c0_41 = arith.constant 0 : index
    %72 = vector.load %arg10[%c0_40, %c0_41] : memref<16x4096xbf16, #tpu.memory_space<vmem>>, vector<16x4077xbf16>
    %c0_42 = arith.constant 0 : index
    %c19_43 = arith.constant 19 : index
    %73 = vector.load %arg11[%c0_42, %c19_43] : memref<144x4096xbf16, #tpu.memory_space<vmem>>, vector<16x4077xbf16>
    tpu.vector_store %arg11[%c0_42, %c19_43], %72 {strides = array<i32>} : memref<144x4096xbf16, #tpu.memory_space<vmem>>, vector<16x4077xbf16>,
    %c0_44 = arith.constant 0 : index
    %c0_45 = arith.constant 0 : index
    %74 = vector.load %arg10[%c0_44, %c0_45] : memref<16x4096xbf16, #tpu.memory_space<vmem>>, vector<16x4078xbf16>
    %c16_46 = arith.constant 16 : index
    %c18_47 = arith.constant 18 : index
    %75 = vector.load %arg11[%c16_46, %c18_47] : memref<144x4096xbf16, #tpu.memory_space<vmem>>, vector<16x4078xbf16>
    tpu.vector_store %arg11[%c16_46, %c18_47], %74 {strides = array<i32>} : memref<144x4096xbf16, #tpu.memory_space<vmem>>, vector<16x4078xbf16>,
    %c0_48 = arith.constant 0 : index
    %c0_49 = arith.constant 0 : index
    %76 = vector.load %arg10[%c0_48, %c0_49] : memref<16x4096xbf16, #tpu.memory_space<vmem>>, vector<16x4079xbf16>
    %c32_50 = arith.constant 32 : index
    %c17 = arith.constant 17 : index
    %77 = vector.load %arg11[%c32_50, %c17] : memref<144x4096xbf16, #tpu.memory_space<vmem>>, vector<16x4079xbf16>
    tpu.vector_store %arg11[%c32_50, %c17], %76 {strides = array<i32>} : memref<144x4096xbf16, #tpu.memory_space<vmem>>, vector<16x4079xbf16>,
    %c0_51 = arith.constant 0 : index
    %c0_52 = arith.constant 0 : index
    %78 = vector.load %arg10[%c0_51, %c0_52] : memref<16x4096xbf16, #tpu.memory_space<vmem>>, vector<16x4095xbf16>
    %c48_53 = arith.constant 48 : index
    %c1_54 = arith.constant 1 : index
    %79 = vector.load %arg11[%c48_53, %c1_54] : memref<144x4096xbf16, #tpu.memory_space<vmem>>, vector<16x4095xbf16>
    tpu.vector_store %arg11[%c48_53, %c1_54], %78 {strides = array<i32>} : memref<144x4096xbf16, #tpu.memory_space<vmem>>, vector<16x4095xbf16>,
    %c0_55 = arith.constant 0 : index
    %c0_56 = arith.constant 0 : index
    %80 = vector.load %arg10[%c0_55, %c0_56] : memref<16x4096xbf16, #tpu.memory_space<vmem>>, vector<16x4096xbf16>
    %c64_57 = arith.constant 64 : index
    %c0_58 = arith.constant 0 : index
    %81 = vector.load %arg11[%c64_57, %c0_58] : memref<144x4096xbf16, #tpu.memory_space<vmem>>, vector<16x4096xbf16>
    tpu.vector_store %arg11[%c64_57, %c0_58], %80 {strides = array<i32>} : memref<144x4096xbf16, #tpu.memory_space<vmem>>, vector<16x4096xbf16>,
    %c0_59 = arith.constant 0 : index
    %c1_60 = arith.constant 1 : index
    %82 = vector.load %arg10[%c0_59, %c1_60] : memref<16x4096xbf16, #tpu.memory_space<vmem>>, vector<16x4095xbf16>
    %c80 = arith.constant 80 : index
    %c0_61 = arith.constant 0 : index
    %83 = vector.load %arg11[%c80, %c0_61] : memref<144x4096xbf16, #tpu.memory_space<vmem>>, vector<16x4095xbf16>
    tpu.vector_store %arg11[%c80, %c0_61], %82 {strides = array<i32>} : memref<144x4096xbf16, #tpu.memory_space<vmem>>, vector<16x4095xbf16>,
    %c0_62 = arith.constant 0 : index
    %c17_63 = arith.constant 17 : index
    %84 = vector.load %arg10[%c0_62, %c17_63] : memref<16x4096xbf16, #tpu.memory_space<vmem>>, vector<16x4079xbf16>
    %c96 = arith.constant 96 : index
    %c0_64 = arith.constant 0 : index
    %85 = vector.load %arg11[%c96, %c0_64] : memref<144x4096xbf16, #tpu.memory_space<vmem>>, vector<16x4079xbf16>
    tpu.vector_store %arg11[%c96, %c0_64], %84 {strides = array<i32>} : memref<144x4096xbf16, #tpu.memory_space<vmem>>, vector<16x4079xbf16>,
    %c0_65 = arith.constant 0 : index
    %c18_66 = arith.constant 18 : index
    %86 = vector.load %arg10[%c0_65, %c18_66] : memref<16x4096xbf16, #tpu.memory_space<vmem>>, vector<16x4078xbf16>
    %c112 = arith.constant 112 : index
    %c0_67 = arith.constant 0 : index
    %87 = vector.load %arg11[%c112, %c0_67] : memref<144x4096xbf16, #tpu.memory_space<vmem>>, vector<16x4078xbf16>
    tpu.vector_store %arg11[%c112, %c0_67], %86 {strides = array<i32>} : memref<144x4096xbf16, #tpu.memory_space<vmem>>, vector<16x4078xbf16>,
    %c0_68 = arith.constant 0 : index
    %c19_69 = arith.constant 19 : index
    %88 = vector.load %arg10[%c0_68, %c19_69] : memref<16x4096xbf16, #tpu.memory_space<vmem>>, vector<16x4077xbf16>
    %c128 = arith.constant 128 : index
    %c0_70 = arith.constant 0 : index
    %89 = vector.load %arg11[%c128, %c0_70] : memref<144x4096xbf16, #tpu.memory_space<vmem>>, vector<16x4077xbf16>
    tpu.vector_store %arg11[%c128, %c0_70], %88 {strides = array<i32>} : memref<144x4096xbf16, #tpu.memory_space<vmem>>, vector<16x4077xbf16>,
    %c0_71 = arith.constant 0 : index
    %c0_72 = arith.constant 0 : index
    %90 = vector.load %arg4[%c0_71, %c0_72] : memref<32x144xbf16, #tpu.memory_space<vmem>>, vector<32x144xbf16>
    %c0_73 = arith.constant 0 : index
    %c0_74 = arith.constant 0 : index
    %91 = vector.load %arg11[%c0_73, %c0_74] : memref<144x4096xbf16, #tpu.memory_space<vmem>>, vector<144x4096xbf16>
    %cst_75 = arith.constant dense<0.000000e+00> : vector<32x4096xf32>
    %92 = tpu.matmul %90, %91, %cst_75 {dimension_numbers = #tpu.dot_dimension_numbers<[1], [0], [0], [1], [0, 0, 1, 1], [], []>} : vector<32x144xbf16>, vector<144x4096xbf16>, vector<32x4096xf32> -> vector<32x4096xf32>
    %c0_76 = arith.constant 0 : index
    %c0_77 = arith.constant 0 : index
    %93 = vector.load %arg5[%c0_76, %c0_77] : memref<32x1xf32, #tpu.memory_space<vmem>>, vector<32x1xf32>
    %94 = vector.broadcast %93 : vector<32x1xf32> to vector<32x4096xf32>
    %95 = arith.addf %92, %94 : vector<32x4096xf32>
    %cst_78 = arith.constant 0.000000e+00 : f32
    %96 = vector.broadcast %cst_78 : f32 to vector<32x4096xf32>
    %97 = arith.maximumf %95, %96 : vector<32x4096xf32>
    %c0_79 = arith.constant 0 : index
    %c0_80 = arith.constant 0 : index
    %98 = vector.load %arg6[%c0_79, %c0_80] : memref<32x1xf32, #tpu.memory_space<vmem>>, vector<32x1xf32>
    %99 = vector.broadcast %98 : vector<32x1xf32> to vector<32x4096xf32>
    %100 = arith.mulf %97, %99 : vector<32x4096xf32>
    %cst_81 = arith.constant dense<0.000000e+00> : vector<4096xf32>
    %101 = vector.multi_reduction <add>, %100, %cst_81 [0] : vector<32x4096xf32> to vector<4096xf32>
    %102 = vector.shape_cast %101 : vector<4096xf32> to vector<1x4096xf32>
    %c0_82 = arith.constant 0 : index
    %c0_83 = arith.constant 0 : index
    %103 = memref.load %arg7[%c0_82, %c0_83] : memref<1x1xf32, #tpu.memory_space<smem>>
    %104 = vector.broadcast %103 : f32 to vector<1x4096xf32>
    %105 = arith.addf %102, %104 : vector<1x4096xf32>
    %106 = vector.extract_strided_slice %105 {offsets = [0, 0], sizes = [1, 512], strides = [1, 1]} : vector<1x4096xf32> to vector<1x512xf32>
    %c0_84 = arith.constant 0 : index
    %c0_85 = arith.constant 0 : index
    %107 = vector.load %arg8[%c0_84, %c0_85] : memref<8x512xf32, #tpu.memory_space<vmem>>, vector<1x512xf32>
    tpu.vector_store %arg8[%c0_84, %c0_85], %106 {strides = array<i32>} : memref<8x512xf32, #tpu.memory_space<vmem>>, vector<1x512xf32>,
    %108 = vector.extract_strided_slice %105 {offsets = [0, 512], sizes = [1, 512], strides = [1, 1]} : vector<1x4096xf32> to vector<1x512xf32>
    %c1_86 = arith.constant 1 : index
    %c0_87 = arith.constant 0 : index
    %109 = vector.load %arg8[%c1_86, %c0_87] : memref<8x512xf32, #tpu.memory_space<vmem>>, vector<1x512xf32>
    tpu.vector_store %arg8[%c1_86, %c0_87], %108 {strides = array<i32>} : memref<8x512xf32, #tpu.memory_space<vmem>>, vector<1x512xf32>,
    %110 = vector.extract_strided_slice %105 {offsets = [0, 1024], sizes = [1, 512], strides = [1, 1]} : vector<1x4096xf32> to vector<1x512xf32>
    %c2_88 = arith.constant 2 : index
    %c0_89 = arith.constant 0 : index
    %111 = vector.load %arg8[%c2_88, %c0_89] : memref<8x512xf32, #tpu.memory_space<vmem>>, vector<1x512xf32>
    tpu.vector_store %arg8[%c2_88, %c0_89], %110 {strides = array<i32>} : memref<8x512xf32, #tpu.memory_space<vmem>>, vector<1x512xf32>,
    %112 = vector.extract_strided_slice %105 {offsets = [0, 1536], sizes = [1, 512], strides = [1, 1]} : vector<1x4096xf32> to vector<1x512xf32>
    %c3 = arith.constant 3 : index
    %c0_90 = arith.constant 0 : index
    %113 = vector.load %arg8[%c3, %c0_90] : memref<8x512xf32, #tpu.memory_space<vmem>>, vector<1x512xf32>
    tpu.vector_store %arg8[%c3, %c0_90], %112 {strides = array<i32>} : memref<8x512xf32, #tpu.memory_space<vmem>>, vector<1x512xf32>,
    %114 = vector.extract_strided_slice %105 {offsets = [0, 2048], sizes = [1, 512], strides = [1, 1]} : vector<1x4096xf32> to vector<1x512xf32>
    %c4 = arith.constant 4 : index
    %c0_91 = arith.constant 0 : index
    %115 = vector.load %arg8[%c4, %c0_91] : memref<8x512xf32, #tpu.memory_space<vmem>>, vector<1x512xf32>
    tpu.vector_store %arg8[%c4, %c0_91], %114 {strides = array<i32>} : memref<8x512xf32, #tpu.memory_space<vmem>>, vector<1x512xf32>,
    %116 = vector.extract_strided_slice %105 {offsets = [0, 2560], sizes = [1, 512], strides = [1, 1]} : vector<1x4096xf32> to vector<1x512xf32>
    %c5 = arith.constant 5 : index
    %c0_92 = arith.constant 0 : index
    %117 = vector.load %arg8[%c5, %c0_92] : memref<8x512xf32, #tpu.memory_space<vmem>>, vector<1x512xf32>
    tpu.vector_store %arg8[%c5, %c0_92], %116 {strides = array<i32>} : memref<8x512xf32, #tpu.memory_space<vmem>>, vector<1x512xf32>,
    %118 = vector.extract_strided_slice %105 {offsets = [0, 3072], sizes = [1, 512], strides = [1, 1]} : vector<1x4096xf32> to vector<1x512xf32>
    %c6 = arith.constant 6 : index
    %c0_93 = arith.constant 0 : index
    %119 = vector.load %arg8[%c6, %c0_93] : memref<8x512xf32, #tpu.memory_space<vmem>>, vector<1x512xf32>
    tpu.vector_store %arg8[%c6, %c0_93], %118 {strides = array<i32>} : memref<8x512xf32, #tpu.memory_space<vmem>>, vector<1x512xf32>,
    %120 = vector.extract_strided_slice %105 {offsets = [0, 3584], sizes = [1, 512], strides = [1, 1]} : vector<1x4096xf32> to vector<1x512xf32>
    %c7 = arith.constant 7 : index
    %c0_94 = arith.constant 0 : index
    %121 = vector.load %arg8[%c7, %c0_94] : memref<8x512xf32, #tpu.memory_space<vmem>>, vector<1x512xf32>
    tpu.vector_store %arg8[%c7, %c0_94], %120 {strides = array<i32>} : memref<8x512xf32, #tpu.memory_space<vmem>>, vector<1x512xf32>,
    return
  }
  func.func @transform_0(%arg0: i32) -> (i32, i32) {
    %c0_i32 = arith.constant 0 : i32
    %c0_i32_0 = arith.constant 0 : i32
    return %c0_i32, %arg0 : i32, i32
  }
  func.func @transform_1(%arg0: i32) -> (i32, i32) {
    %c0_i32 = arith.constant 0 : i32
    %c0_i32_0 = arith.constant 0 : i32
    %c0_i32_1 = arith.constant 0 : i32
    return %c0_i32, %c0_i32_0 : i32, i32
  }
  func.func @transform_2(%arg0: i32) -> (i32, i32) {
    %c0_i32 = arith.constant 0 : i32
    %c0_i32_0 = arith.constant 0 : i32
    %c0_i32_1 = arith.constant 0 : i32
    return %c0_i32, %c0_i32_0 : i32, i32
  }
  func.func @transform_3(%arg0: i32) -> (i32, i32) {
    %c0_i32 = arith.constant 0 : i32
    %c0_i32_0 = arith.constant 0 : i32
    %c0_i32_1 = arith.constant 0 : i32
    return %c0_i32, %c0_i32_0 : i32, i32
  }
  func.func @transform_4(%arg0: i32) -> (i32, i32) {
    %c0_i32 = arith.constant 0 : i32
    %c0_i32_0 = arith.constant 0 : i32
    %c0_i32_1 = arith.constant 0 : i32
    return %c0_i32, %c0_i32_0 : i32, i32
  }
  func.func @transform_5(%arg0: i32) -> (i32, i32) {
    %c0_i32 = arith.constant 0 : i32
    %c0_i32_0 = arith.constant 0 : i32
    %c0_i32_1 = arith.constant 0 : i32
    return %c0_i32, %c0_i32_0 : i32, i32
  }
  func.func @transform_6(%arg0: i32) -> (i32, i32) {
    %c0_i32 = arith.constant 0 : i32
    %c0_i32_0 = arith.constant 0 : i32
    %c0_i32_1 = arith.constant 0 : i32
    return %c0_i32, %c0_i32_0 : i32, i32
  }
  func.func @transform_7(%arg0: i32) -> (i32, i32) {
    %c0_i32 = arith.constant 0 : i32
    %c0_i32_0 = arith.constant 0 : i32
    return %arg0, %c0_i32 : i32, i32
  }
}

</mosaic_0001>

<bundles_post_ra>
// kernel: csfd_forward.1
= control target key start
LH: loop header
LB: loop body
LE: loop exit
PB: predicated region body
PF: predicated region fallthrough
CT: control target
= control target key end

     0   :  { %s8453_s30 = smov 127   ;;  %s8454_s10 = smov 126   ;;  %v8461_v4 = vmov 0   ;;  %vm1165_vm0 = vcmask 1043456   ;;  %vm13130_vm1 = vcmask 1039360   ;;  %vm1314_vm2 = vcmask 1031168   ;;  %s13121_s0 = inlined_call_operand.vmem [shape: bf16[8,4096], index: 0, kind: input, shape index: {}]   ;;  %s13122_s1 = inlined_call_operand.vmem [shape: bf16[16,72], index: 1, kind: input, shape index: {}]   ;;  %s13123_s2 = inlined_call_operand.vmem [shape: f32[16,1], index: 2, kind: input, shape index: {}]   ;;  %s13124_s3 = inlined_call_operand.vmem [shape: bf16[32,144], index: 3, kind: input, shape index: {}]   ;;  %s13125_s4 = inlined_call_operand.vmem [shape: f32[32,1], index: 4, kind: input, shape index: {}]   ;;  %s13126_s5 = inlined_call_operand.vmem [shape: f32[32,1], index: 5, kind: input, shape index: {}]   ;;  %s13127_s6 = inlined_call_operand.<no memory space> [shape: f32[1,1], index: 6, kind: input, shape index: {}]   ;;  %s13128_s7 = inlined_call_operand.vmem [shape: f32[8,512], index: 7, kind: output, shape index: {}]  }
   0x1   :  { %v8512_v0 = vld [vmem:[%s13121_s0 + $0x10] sm:$0xff]  ;;  %v8517_v1 = vld [vmem:[%s13121_s0] sm:$0xff]  ;;  %v8522_v2 = vld [vmem:[%s13121_s0 + $0x8] sm:$0xff]  ;;  %s8455_s11 = smov 110   ;;  %s8456_s12 = smov 109   ;;  %3270 = vmatprep.mubr.bf16.mxu0 %v8461_v4  ;;  %4182 = vst [vmem:[#allocation4] sm:$0xff] %v8461_v4  ;;  %3313 = vmatprep.mubr.bf16.mxu1 %v8461_v4 }
   0x2   :  { %1121 = vrot.lane.b32.xlu1 %v8512_v0, %s8453_s30  ;;  %1117 = vrot.lane.b32.xlu0 %v8517_v1, %s8453_s30  ;;  %v8531_v3 = vld [vmem:[%s13121_s0 + $0x18] sm:$0xff]  ;;  %s8457_s13 = smov 108   ;;  %s8458_s14 = smov 92   ;;  %4183 = vst [vmem:[#allocation4 + $0x100] sm:$0xff] %v8461_v4  ;;  %4184 = vst [vmem:[#allocation4 + $0x200] sm:$0xff] %v8461_v4  ;;  %v1089_v5 = vld [vmem:[%s13121_s0 + $0x20] sm:$0xff] }
   0x3   :  { %s8459_s15 = smov 91   ;;  %s8460_s16 = smov 90   ;;  %4185 = vst [vmem:[#allocation4 + $0x300] sm:$0xff] %v8461_v4  ;;  %8401 = vset.pattern.permute.xlu1 %v8461_v4  ;;  %8402 = vset.pattern.permute.xlu0 %v8461_v4  ;;  %v8611_v6 = vld [vmem:[%s13121_s0 + $0x20] sm:$0xff]  ;;  %v1238_v7 = vld [vmem:[%s13121_s0 + $0x28] sm:$0xff]  ;;  %v1091_v9 = vld [vmem:[%s13121_s0 + $0x30] sm:$0xff] }
   0x4   :  { %v8625_v8 = vld [vmem:[%s13121_s0 + $0x28] sm:$0xff]  ;;  %v8643_v10 = vld [vmem:[%s13121_s0 + $0x30] sm:$0xff]  ;;  %v1240_v11 = vld [vmem:[%s13121_s0 + $0x38] sm:$0xff]  ;;  %vm13129_vm3 = vcmask 900096   ;;  %vm1606_vm4 = vcmask 891904   ;;  %vm1752_vm5 = vcmask 883712  }
   0x5   :  { %v1060_v14 = vld [vmem:[%s13121_s0 + $0x38] sm:$0xff]  ;;  %v8671_v23 = vld [vmem:[%s13121_s0 + $0x40] sm:$0xff]  ;;  %vm1898_vm6 = vcmask 752640   ;;  %vm2044_vm7 = vcmask 744448   ;;  %vm13132_vm8 = vcmask 736256   ;;  %vm13131_vm9 = vcmask 588800  }
   0x6   :  { %1265 = vrot.lane.b32.xlu1 %v8517_v1, %s8454_s10  ;;  %1119 = vrot.lane.b32.xlu0 %v8522_v2, %s8453_s30  ;;  %1076 = vst [vmem:[#allocation2 + $0x38] sm:$0xff] %v1060_v14  ;;  %v1061_v57 = vld [vmem:[%s13121_s0 + $0x40] sm:$0xff]  ;;  %vm1376_vm10 = vcmask 1031172   ;;  %vm1230_vm11 = vcmask 1039364   ;;  %vm1522_vm14 = vcmask 900100  }
   0x7   :  { %1077 = vst [vmem:[#allocation2 + $0x40] sm:$0xff] %v1061_v57  ;;  %vm9947_vm12 = vmor %vm1376_vm10, %vm1165_vm0 }
   0x8   :  { %vm9956_vm13 = vmor %vm1230_vm11, %vm1165_vm0 }
   0x9   :  { %vm1523_vm15 = vmor %vm1522_vm14, %vm1165_vm0 }
   0xa   :  { %1411 = vrot.lane.b32.xlu1 %v8517_v1, %s8455_s11  ;;  %1267 = vrot.lane.b32.xlu0 %v8522_v2, %s8454_s10 }
   0xe   :  { %1269 = vrot.lane.b32.xlu1 %v8512_v0, %s8454_s10  ;;  %1413 = vrot.lane.b32.xlu0 %v8522_v2, %s8455_s11 }
  0x12   :  { %1557 = vrot.lane.b32.xlu1 %v8517_v1, %s8456_s12  ;;  %1415 = vrot.lane.b32.xlu0 %v8512_v0, %s8455_s11 }
  0x16   :  { %1703 = vrot.lane.b32.xlu1 %v8517_v1, %s8457_s13  ;;  %1559 = vrot.lane.b32.xlu0 %v8522_v2, %s8456_s12 }
  0x1a   :  { %1561 = vrot.lane.b32.xlu1 %v8512_v0, %s8456_s12  ;;  %1705 = vrot.lane.b32.xlu0 %v8522_v2, %s8457_s13 }
  0x1e   :  { %1849 = vrot.lane.b32.xlu1 %v8517_v1, %s8458_s14  ;;  %1707 = vrot.lane.b32.xlu0 %v8512_v0, %s8457_s13 }
  0x22   :  { %1995 = vrot.lane.b32.xlu1 %v8517_v1, %s8459_s15  ;;  %1851 = vrot.lane.b32.xlu0 %v8522_v2, %s8458_s14 }
  0x26   :  { %1853 = vrot.lane.b32.xlu1 %v8512_v0, %s8458_s14  ;;  %1997 = vrot.lane.b32.xlu0 %v8522_v2, %s8459_s15 }
  0x2a   :  { %2141 = vrot.lane.b32.xlu1 %v8517_v1, %s8460_s16  ;;  %1999 = vrot.lane.b32.xlu0 %v8512_v0, %s8459_s15 }
  0x2e   :  { %2145 = vrot.lane.b32.xlu1 %v8512_v0, %s8460_s16  ;;  %2143 = vrot.lane.b32.xlu0 %v8522_v2, %s8460_s16 }
  0x32   :  { %1271 = vrot.lane.b32.xlu1 %v8531_v3, %s8454_s10  ;;  %1123 = vrot.lane.b32.xlu0 %v8531_v3, %s8453_s30 }
  0x36   :  { %1563 = vrot.lane.b32.xlu1 %v8531_v3, %s8456_s12  ;;  %1417 = vrot.lane.b32.xlu0 %v8531_v3, %s8455_s11 }
  0x3a   :  { %1855 = vrot.lane.b32.xlu1 %v8531_v3, %s8458_s14  ;;  %1709 = vrot.lane.b32.xlu0 %v8531_v3, %s8457_s13 }
  0x3e   :  { %1125 = vrot.lane.b32.xlu1 %v1089_v5, %s8453_s30  ;;  %2001 = vrot.lane.b32.xlu0 %v8531_v3, %s8459_s15 }
  0x42   :  { %1273 = vrot.lane.b32.xlu1 %v1089_v5, %s8454_s10  ;;  %2147 = vrot.lane.b32.xlu0 %v8531_v3, %s8460_s16 }
  0x46   :  { %1565 = vrot.lane.b32.xlu1 %v1089_v5, %s8456_s12  ;;  %1419 = vrot.lane.b32.xlu0 %v1089_v5, %s8455_s11 }
  0x4a   :  { %1857 = vrot.lane.b32.xlu1 %v1089_v5, %s8458_s14  ;;  %1711 = vrot.lane.b32.xlu0 %v1089_v5, %s8457_s13 }
  0x4e   :  { %2149 = vrot.lane.b32.xlu1 %v1089_v5, %s8460_s16  ;;  %2003 = vrot.lane.b32.xlu0 %v1089_v5, %s8459_s15 }
  0x52   :  { %1275 = vrot.lane.b32.xlu1 %v1238_v7, %s8454_s10  ;;  %1127 = vrot.lane.b32.xlu0 %v1238_v7, %s8453_s30 }
  0x56   :  { %1567 = vrot.lane.b32.xlu1 %v1238_v7, %s8456_s12  ;;  %1421 = vrot.lane.b32.xlu0 %v1238_v7, %s8455_s11 }
  0x5a   :  { %1859 = vrot.lane.b32.xlu1 %v1238_v7, %s8458_s14  ;;  %1713 = vrot.lane.b32.xlu0 %v1238_v7, %s8457_s13 }
  0x5e   :  { %1129 = vrot.lane.b32.xlu1 %v1091_v9, %s8453_s30  ;;  %2005 = vrot.lane.b32.xlu0 %v1238_v7, %s8459_s15 }
  0x62   :  { %1277 = vrot.lane.b32.xlu1 %v1091_v9, %s8454_s10  ;;  %2151 = vrot.lane.b32.xlu0 %v1238_v7, %s8460_s16  ;;  %v1242_v7 = vld [vmem:[%s13121_s0 + $0x48] sm:$0xff] }
  0x66   :  { %1569 = vrot.lane.b32.xlu1 %v1091_v9, %s8456_s12  ;;  %1423 = vrot.lane.b32.xlu0 %v1091_v9, %s8455_s11 }
  0x6a   :  { %1861 = vrot.lane.b32.xlu1 %v1091_v9, %s8458_s14  ;;  %1715 = vrot.lane.b32.xlu0 %v1091_v9, %s8457_s13 }
  0x6e   :  { %2153 = vrot.lane.b32.xlu1 %v1091_v9, %s8460_s16  ;;  %2007 = vrot.lane.b32.xlu0 %v1091_v9, %s8459_s15 }
  0x72   :  { %1279 = vrot.lane.b32.xlu1 %v1240_v11, %s8454_s10  ;;  %1131 = vrot.lane.b32.xlu0 %v1240_v11, %s8453_s30 }
  0x74   :  { %v8654_v12 = vpop.permute.xlu1 %1121  ;;  %v1118_v13 = vpop.permute.xlu0 %1117 }
  0x75   :  { %v1151_v15 = vrot.slane %v8654_v12, 4  ;;  %v1149_v18 = vrot.slane %v1118_v13, 4 }
  0x76   :  { %1571 = vrot.lane.b32.xlu1 %v1240_v11, %s8456_s12  ;;  %1425 = vrot.lane.b32.xlu0 %v1240_v11, %s8455_s11 }
  0x78   :  { %v1266_v16 = vpop.permute.xlu1 %1265  ;;  %v1120_v17 = vpop.permute.xlu0 %1119 }
  0x79   :  { %v1150_v19 = vrot.slane %v1120_v17, 4  ;;  %v1297_v20 = vrot.slane %v1266_v16, 4 }
  0x7a   :  { %1863 = vrot.lane.b32.xlu1 %v1240_v11, %s8458_s14  ;;  %1717 = vrot.lane.b32.xlu0 %v1240_v11, %s8457_s13 }
  0x7b   :  { %v1166_v21 = vsel %vm1165_vm0, %v1149_v18, %v1150_v19  ;;  %v1169_v22 = vsel %vm1165_vm0, %v1150_v19, %v1151_v15 }
  0x7c   :  { %v1168_v24 = vsel %vm13130_vm1, %v1118_v13, %v1166_v21  ;;  %v1170_v25 = vsel %vm13130_vm1, %v1120_v17, %v1169_v22  ;;  %v1412_v26 = vpop.permute.xlu1 %1411  ;;  %v1268_v27 = vpop.permute.xlu0 %1267 }
  0x7d   :  { %v1298_v28 = vrot.slane %v1268_v27, 4  ;;  %v8103_v29 = vcombine.high %v8517_v1, %v1168_v24  ;;  %v8105_v30 = vcombine.high %v8522_v2, %v1170_v25  ;;  %v8102_v31 = vcombine.low %v8517_v1, %v1168_v24 }
  0x7e   :  { %1133 = vrot.lane.b32.xlu1 %v8671_v23, %s8453_s30  ;;  %2009 = vrot.lane.b32.xlu0 %v1240_v11, %s8459_s15  ;;  %v8104_v32 = vcombine.low %v8522_v2, %v1170_v25  ;;  %v1443_v33 = vrot.slane %v1412_v26, 4 }
  0x7f   :  { %v1313_v34 = vsel %vm1165_vm0, %v1297_v20, %v1298_v28  ;;  %3238 = vmatprep.subr.bf16.mxu0 %v8103_v29  ;;  %3281 = vmatprep.subr.bf16.mxu1 %v8105_v30 }
  0x80   :  { %v1315_v35 = vsel %vm1314_vm2, %v1266_v16, %v1313_v34  ;;  %v8684_v36 = vpop.permute.xlu1 %1269  ;;  %v1414_v37 = vpop.permute.xlu0 %1413  ;;  %3239 = vmatpush1.bf16.msra.mxu0 %v8102_v31  ;;  %3282 = vmatpush1.bf16.msra.mxu1 %v8104_v32 }
  0x81   :  { %v1299_v38 = vrot.slane %v8684_v36, 4  ;;  %v1444_v39 = vrot.slane %v1414_v37, 4 }
  0x82   :  { %1281 = vrot.lane.b32.xlu1 %v8671_v23, %s8454_s10  ;;  %2155 = vrot.lane.b32.xlu0 %v1240_v11, %s8460_s16 }
  0x83   :  { %v1316_v40 = vsel %vm1165_vm0, %v1298_v28, %v1299_v38  ;;  %v1459_v41 = vsel %vm1165_vm0, %v1443_v33, %v1444_v39 }
  0x84   :  { %v1317_v42 = vsel %vm1314_vm2, %v1268_v27, %v1316_v40  ;;  %v1461_v43 = vsel %vm13129_vm3, %v1412_v26, %v1459_v41  ;;  %v1558_v44 = vpop.permute.xlu1 %1557  ;;  %v8696_v45 = vpop.permute.xlu0 %1415  ;;  %v1062_v27 = vld [vmem:[%s13121_s0 + $0x48] sm:$0xff] }
  0x85   :  { %v1445_v46 = vrot.slane %v8696_v45, 4  ;;  %v8135_v47 = vcombine.high %v1315_v35, %v1461_v43  ;;  %v8134_v48 = vcombine.low %v1315_v35, %v1461_v43  ;;  %v1589_v49 = vrot.slane %v1558_v44, 4  ;;  %1078 = vst [vmem:[#allocation2 + $0x48] sm:$0xff] %v1062_v27  ;;  %v1063_v27 = vld [vmem:[%s13121_s0 + $0x50] sm:$0xff] }
  0x86   :  { %1573 = vrot.lane.b32.xlu1 %v8671_v23, %s8456_s12  ;;  %1427 = vrot.lane.b32.xlu0 %v8671_v23, %s8455_s11  ;;  %1079 = vst [vmem:[#allocation2 + $0x50] sm:$0xff] %v1063_v27 }
  0x87   :  { %v1462_v50 = vsel %vm1165_vm0, %v1444_v39, %v1445_v46  ;;  %3240 = vmatprep.subr.bf16.mxu0 %v8135_v47  ;;  %v8760_v39 = vld [vmem:[%s13121_s0 + $0x50] sm:$0xff] }
  0x88   :  { %v1463_v51 = vsel %vm13129_vm3, %v1414_v37, %v1462_v50  ;;  %v1704_v52 = vpop.permute.xlu1 %1703  ;;  %v1560_v53 = vpop.permute.xlu0 %1559  ;;  %3241 = vmatpush1.bf16.msra.mxu0 %v8134_v48 }
  0x89   :  { %v1590_v54 = vrot.slane %v1560_v53, 4  ;;  %v8137_v55 = vcombine.high %v1317_v42, %v1463_v51  ;;  %v8136_v56 = vcombine.low %v1317_v42, %v1463_v51  ;;  %v1735_v58 = vrot.slane %v1704_v52, 4 }
  0x8a   :  { %1865 = vrot.lane.b32.xlu1 %v8671_v23, %s8458_s14  ;;  %1719 = vrot.lane.b32.xlu0 %v8671_v23, %s8457_s13 }
  0x8b   :  { %v1605_v59 = vsel %vm1165_vm0, %v1589_v49, %v1590_v54  ;;  %3283 = vmatprep.subr.bf16.mxu1 %v8137_v55 }
  0x8c   :  { %v1607_v60 = vsel %vm1606_vm4, %v1558_v44, %v1605_v59  ;;  %v8716_v61 = vpop.permute.xlu1 %1561  ;;  %v1706_v62 = vpop.permute.xlu0 %1705  ;;  %3284 = vmatpush1.bf16.msra.mxu1 %v8136_v56 }
  0x8d   :  { %v1591_v63 = vrot.slane %v8716_v61, 4  ;;  %v1736_v1 = vrot.slane %v1706_v62, 4 }
  0x8e   :  { %2157 = vrot.lane.b32.xlu1 %v8671_v23, %s8460_s16  ;;  %2011 = vrot.lane.b32.xlu0 %v8671_v23, %s8459_s15 }
  0x8f   :  { %v1608_v2 = vsel %vm1165_vm0, %v1590_v54, %v1591_v63  ;;  %v1751_v5 = vsel %vm1165_vm0, %v1735_v58, %v1736_v1 }
  0x90   :  { %v1609_v9 = vsel %vm1606_vm4, %v1560_v53, %v1608_v2  ;;  %v1753_v11 = vsel %vm1752_vm5, %v1704_v52, %v1751_v5  ;;  %v1850_v13 = vpop.permute.xlu1 %1849  ;;  %v8732_v14 = vpop.permute.xlu0 %1707 }
  0x91   :  { %v1737_v16 = vrot.slane %v8732_v14, 4  ;;  %v8167_v17 = vcombine.high %v1607_v60, %v1753_v11  ;;  %v8166_v18 = vcombine.low %v1607_v60, %v1753_v11  ;;  %v1881_v19 = vrot.slane %v1850_v13, 4 }
  0x92   :  { %1283 = vrot.lane.b32.xlu1 %v1242_v7, %s8454_s10  ;;  %1135 = vrot.lane.b32.xlu0 %v1242_v7, %s8453_s30 }
  0x93   :  { %v1754_v20 = vsel %vm1165_vm0, %v1736_v1, %v1737_v16  ;;  %3242 = vmatprep.subr.bf16.mxu0 %v8167_v17 }
  0x94   :  { %v1755_v21 = vsel %vm1752_vm5, %v1706_v62, %v1754_v20  ;;  %v1996_v22 = vpop.permute.xlu1 %1995  ;;  %v1852_v23 = vpop.permute.xlu0 %1851  ;;  %3243 = vmatpush1.bf16.msra.mxu0 %v8166_v18 }
  0x95   :  { %v1882_v24 = vrot.slane %v1852_v23, 4  ;;  %v8169_v25 = vcombine.high %v1609_v9, %v1755_v21  ;;  %v8168_v26 = vcombine.low %v1609_v9, %v1755_v21  ;;  %v2027_v28 = vrot.slane %v1996_v22, 4 }
  0x96   :  { %1575 = vrot.lane.b32.xlu1 %v1242_v7, %s8456_s12  ;;  %1429 = vrot.lane.b32.xlu0 %v1242_v7, %s8455_s11 }
  0x97   :  { %v1897_v29 = vsel %vm1165_vm0, %v1881_v19, %v1882_v24  ;;  %3285 = vmatprep.subr.bf16.mxu1 %v8169_v25 }
  0x98   :  { %v1899_v30 = vsel %vm1898_vm6, %v1850_v13, %v1897_v29  ;;  %v8748_v31 = vpop.permute.xlu1 %1853  ;;  %v1998_v32 = vpop.permute.xlu0 %1997  ;;  %3286 = vmatpush1.bf16.msra.mxu1 %v8168_v26 }
  0x99   :  { %v1883_v33 = vrot.slane %v8748_v31, 4  ;;  %v2028_v34 = vrot.slane %v1998_v32, 4 }
  0x9a   :  { %1867 = vrot.lane.b32.xlu1 %v1242_v7, %s8458_s14  ;;  %1721 = vrot.lane.b32.xlu0 %v1242_v7, %s8457_s13 }
  0x9b   :  { %v1900_v35 = vsel %vm1165_vm0, %v1882_v24, %v1883_v33  ;;  %v2043_v37 = vsel %vm1165_vm0, %v2027_v28, %v2028_v34 }
  0x9c   :  { %v1901_v40 = vsel %vm1898_vm6, %v1852_v23, %v1900_v35  ;;  %v2045_v41 = vsel %vm2044_vm7, %v1996_v22, %v2043_v37  ;;  %v2142_v42 = vpop.permute.xlu1 %2141  ;;  %v8764_v43 = vpop.permute.xlu0 %1999 }
  0x9d   :  { %v2029_v44 = vrot.slane %v8764_v43, 4  ;;  %v8199_v47 = vcombine.high %v1899_v30, %v2045_v41  ;;  %v8198_v48 = vcombine.low %v1899_v30, %v2045_v41  ;;  %v2173_v49 = vrot.slane %v2142_v42, 4 }
  0x9e   :  { %1137 = vrot.lane.b32.xlu1 %v8760_v39, %s8453_s30  ;;  %2013 = vrot.lane.b32.xlu0 %v1242_v7, %s8459_s15 }
  0x9f   :  { %v2046_v50 = vsel %vm1165_vm0, %v2028_v34, %v2029_v44  ;;  %3244 = vmatprep.subr.bf16.mxu0 %v8199_v47 }
  0xa0   :  { %v2047_v51 = vsel %vm2044_vm7, %v1998_v32, %v2046_v50  ;;  %v8774_v52 = vpop.permute.xlu1 %2145  ;;  %v2144_v53 = vpop.permute.xlu0 %2143  ;;  %3245 = vmatpush1.bf16.msra.mxu0 %v8198_v48 }
  0xa1   :  { %v2175_v54 = vrot.slane %v8774_v52, 4  ;;  %v2174_v55 = vrot.slane %v2144_v53, 4  ;;  %v8201_v56 = vcombine.high %v1901_v40, %v2047_v51  ;;  %v8200_v57 = vcombine.low %v1901_v40, %v2047_v51  ;;  %v8876_v40 = vld [vmem:[%s13121_s0 + $0x58] sm:$0xff] }
  0xa2   :  { %1285 = vrot.lane.b32.xlu1 %v8760_v39, %s8454_s10  ;;  %2159 = vrot.lane.b32.xlu0 %v1242_v7, %s8460_s16 }
  0xa3   :  { %v2189_v58 = vsel %vm1165_vm0, %v2173_v49, %v2174_v55  ;;  %v2192_v59 = vsel %vm1165_vm0, %v2174_v55, %v2175_v54  ;;  %3287 = vmatprep.subr.bf16.mxu1 %v8201_v56 }
  0xa4   :  { %v2191_v60 = vsel %vm13132_vm8, %v2142_v42, %v2189_v58  ;;  %v2193_v62 = vsel %vm13132_vm8, %v2144_v53, %v2192_v59  ;;  %v8786_v1 = vpop.permute.xlu1 %1271  ;;  %v8788_v2 = vpop.permute.xlu0 %1123  ;;  %3288 = vmatpush1.bf16.msra.mxu1 %v8200_v57 }
  0xa5   :  { %v1300_v5 = vrot.slane %v8786_v1, 4  ;;  %v1152_v7 = vrot.slane %v8788_v2, 4  ;;  %v8231_v9 = vcombine.high %v2191_v60, %v2191_v60  ;;  %v8233_v11 = vcombine.high %v2193_v62, %v2193_v62 }
  0xa6   :  { %1577 = vrot.lane.b32.xlu1 %v8760_v39, %s8456_s12  ;;  %1431 = vrot.lane.b32.xlu0 %v8760_v39, %s8455_s11  ;;  %v8230_v13 = vcombine.low %v2191_v60, %v2191_v60  ;;  %v8232_v17 = vcombine.low %v2193_v62, %v2193_v62 }
  0xa7   :  { %v1318_v18 = vsel %vm1165_vm0, %v1299_v38, %v1300_v5  ;;  %v1171_v19 = vsel %vm1165_vm0, %v1151_v15, %v1152_v7  ;;  %8262 = vmatprep.subr.msk.bf16.mxu0 %vm1165_vm0, %v8231_v9  ;;  %8264 = vmatprep.subr.msk.bf16.mxu1 %vm1165_vm0, %v8233_v11  ;;  %v8821_v15 = vld [vmem:[%s13122_s1] sm:$0xff]  }
  0xa8   :  { %v1319_v20 = vsel %vm1314_vm2, %v8684_v36, %v1318_v18  ;;  %v1172_v21 = vsel %vm13130_vm1, %v8654_v12, %v1171_v19  ;;  %v8812_v22 = vpop.permute.xlu1 %1563  ;;  %v8814_v38 = vpop.permute.xlu0 %1417  ;;  %v3143_v23 = vsel %vm1165_vm0, %v8230_v13, 0  ;;  %v3149_v24 = vsel %vm1165_vm0, %v8232_v17, 0  ;;  %v8957_v18 = vld [vmem:[%s13121_s0 + $0x60] sm:$0xff] }
  0xa9   :  { %v1592_v25 = vrot.slane %v8812_v22, 4  ;;  %v1446_v36 = vrot.slane %v8814_v38, 4  ;;  %3247 = vmatpush1.bf16.msra.mxu0 %v3143_v23  ;;  %3290 = vmatpush1.bf16.msra.mxu1 %v3149_v24  ;;  %v8106_v12 = vcombine.low %v8512_v0, %v1172_v21  ;;  %v8107_v26 = vcombine.high %v8512_v0, %v1172_v21 }
  0xaa   :  { %1869 = vrot.lane.b32.xlu1 %v8760_v39, %s8458_s14  ;;  %1723 = vrot.lane.b32.xlu0 %v8760_v39, %s8457_s13 }
  0xab   :  { %v1610_v28 = vsel %vm1165_vm0, %v1591_v63, %v1592_v25  ;;  %v1464_v0 = vsel %vm1165_vm0, %v1445_v46, %v1446_v36  ;;  %3324 = vmatprep.subr.bf16.mxu0 %v8107_v26 }
  0xac   :  { %v1611_v29 = vsel %vm1606_vm4, %v8716_v61, %v1610_v28  ;;  %v1465_v30 = vsel %vm13129_vm3, %v8696_v45, %v1464_v0  ;;  %v8848_v32 = vpop.permute.xlu1 %1855  ;;  %v8850_v34 = vpop.permute.xlu0 %1709  ;;  %8263 = vmatmul.mubr.msk.bf16.vlgmr.msra.gmra.mrb[0].mxu0 %vm13131_vm9, %v8821_v15  ;;  %8265 = vmatmul.mubr.msk.bf16.vlgmr.msra.gmra.mrb[0].mxu1 %vm13131_vm9, %v8821_v15 }
  0xad   :  { %v1884_v63 = vrot.slane %v8848_v32, 4  ;;  %v1738_v46 = vrot.slane %v8850_v34, 4  ;;  %3325 = vmatpush1.bf16.msra.mxu0 %v8106_v12  ;;  %v8138_v35 = vcombine.low %v1319_v20, %v1465_v30  ;;  %v8139_v61 = vcombine.high %v1319_v20, %v1465_v30  ;;  %3356 = vmatprep.mubr.bf16.mxu0 %v8461_v4 }
  0xae   :  { %2161 = vrot.lane.b32.xlu1 %v8760_v39, %s8460_s16  ;;  %2015 = vrot.lane.b32.xlu0 %v8760_v39, %s8459_s15 }
  0xaf   :  { %v1902_v45 = vsel %vm1165_vm0, %v1883_v33, %v1884_v63  ;;  %v1756_v37 = vsel %vm1165_vm0, %v1737_v16, %v1738_v46  ;;  %3326 = vmatprep.subr.bf16.mxu0 %v8139_v61  ;;  %3399 = vmatprep.mubr.bf16.mxu1 %v8461_v4 }
  0xb0   :  { %v1903_v39 = vsel %vm1898_vm6, %v8748_v31, %v1902_v45  ;;  %v1757_v33 = vsel %vm1752_vm5, %v8732_v14, %v1756_v37  ;;  %v8883_v41 = vpop.permute.xlu1 %1125  ;;  %v8885_v42 = vpop.permute.xlu0 %2001 }
  0xb1   :  { %v1153_v16 = vrot.slane %v8883_v41, 4  ;;  %v2030_v47 = vrot.slane %v8885_v42, 4  ;;  %3327 = vmatpush1.bf16.msra.mxu0 %v8138_v35  ;;  %v8170_v48 = vcombine.low %v1611_v29, %v1757_v33  ;;  %v8171_v49 = vcombine.high %v1611_v29, %v1757_v33 }
  0xb2   :  { %1287 = vrot.lane.b32.xlu1 %v8876_v40, %s8454_s10  ;;  %1139 = vrot.lane.b32.xlu0 %v8876_v40, %s8453_s30 }
  0xb3   :  { %v1173_v14 = vsel %vm1165_vm0, %v1152_v7, %v1153_v16  ;;  %v2048_v31 = vsel %vm1165_vm0, %v2029_v44, %v2030_v47  ;;  %3328 = vmatprep.subr.bf16.mxu0 %v8171_v49  ;;  %v1064_v44 = vld [vmem:[%s13121_s0 + $0x58] sm:$0xff] }
  0xb4   :  { %v1174_v50 = vsel %vm13130_vm1, %v8788_v2, %v1173_v14  ;;  %v2049_v51 = vsel %vm2044_vm7, %v8764_v43, %v2048_v31  ;;  %v8907_v53 = vpop.permute.xlu1 %1273  ;;  %v8909_v55 = vpop.permute.xlu0 %2147  ;;  %1080 = vst [vmem:[#allocation2 + $0x58] sm:$0xff] %v1064_v44 }
  0xb5   :  { %v1301_v56 = vrot.slane %v8907_v53, 4  ;;  %v2176_v57 = vrot.slane %v8909_v55, 4  ;;  %3329 = vmatpush1.bf16.msra.mxu0 %v8170_v48  ;;  %v8202_v58 = vcombine.low %v1903_v39, %v2049_v51  ;;  %v8203_v59 = vcombine.high %v1903_v39, %v2049_v51 }
  0xb6   :  { %1579 = vrot.lane.b32.xlu1 %v8876_v40, %s8456_s12  ;;  %1433 = vrot.lane.b32.xlu0 %v8876_v40, %s8455_s11  ;;  %v8108_v43 = vcombine.low %v8531_v3, %v1174_v50  ;;  %v8109_v60 = vcombine.high %v8531_v3, %v1174_v50 }
  0xb7   :  { %v1320_v62 = vsel %vm1165_vm0, %v1300_v5, %v1301_v56  ;;  %v2194_v2 = vsel %vm1165_vm0, %v2175_v54, %v2176_v57  ;;  %3330 = vmatprep.subr.bf16.mxu0 %v8203_v59 }
  0xb8   :  { %v1321_v7 = vsel %vm1314_vm2, %v8786_v1, %v1320_v62  ;;  %v2195_v9 = vsel %vm13132_vm8, %v8774_v52, %v2194_v2  ;;  %v8934_v11 = vpop.permute.xlu1 %1565  ;;  %v8936_v3 = vpop.permute.xlu0 %1419  ;;  %3367 = vmatprep.subr.bf16.mxu1 %v8109_v60 }
  0xb9   :  { %v1593_v13 = vrot.slane %v8934_v11, 4  ;;  %v1447_v5 = vrot.slane %v8936_v3, 4  ;;  %3331 = vmatpush1.bf16.msra.mxu0 %v8202_v58  ;;  %3368 = vmatpush1.bf16.msra.mxu1 %v8108_v43  ;;  %v8235_v17 = vcombine.high %v2195_v9, %v2195_v9  ;;  %v8234_v54 = vcombine.low %v2195_v9, %v2195_v9 }
  0xba   :  { %1871 = vrot.lane.b32.xlu1 %v8876_v40, %s8458_s14  ;;  %1725 = vrot.lane.b32.xlu0 %v8876_v40, %s8457_s13 }
  0xbb   :  { %v1612_v52 = vsel %vm1165_vm0, %v1592_v25, %v1593_v13  ;;  %v1466_v1 = vsel %vm1165_vm0, %v1446_v36, %v1447_v5  ;;  %8266 = vmatprep.subr.msk.bf16.mxu0 %vm1165_vm0, %v8235_v17  ;;  %v3155_v19 = vsel %vm1165_vm0, %v8234_v54, 0  ;;  %v9090_v17 = vld [vmem:[%s13121_s0 + $0x68] sm:$0xff] }
  0xbc   :  { %v1613_v20 = vsel %vm1606_vm4, %v8812_v22, %v1612_v52  ;;  %v1467_v21 = vsel %vm13129_vm3, %v8814_v38, %v1466_v1  ;;  %v8965_v23 = vpop.permute.xlu1 %1857  ;;  %v8967_v24 = vpop.permute.xlu0 %1711 }
  0xbd   :  { %v1885_v25 = vrot.slane %v8965_v23, 4  ;;  %v1739_v36 = vrot.slane %v8967_v24, 4  ;;  %3333 = vmatpush1.bf16.msra.mxu0 %v3155_v19  ;;  %v8140_v12 = vcombine.low %v1321_v7, %v1467_v21  ;;  %v8141_v26 = vcombine.high %v1321_v7, %v1467_v21 }
  0xbe   :  { %1141 = vrot.lane.b32.xlu1 %v8957_v18, %s8453_s30  ;;  %2017 = vrot.lane.b32.xlu0 %v8876_v40, %s8459_s15 }
  0xbf   :  { %v1904_v22 = vsel %vm1165_vm0, %v1884_v63, %v1885_v25  ;;  %v1758_v38 = vsel %vm1165_vm0, %v1738_v46, %v1739_v36  ;;  %3369 = vmatprep.subr.bf16.mxu1 %v8141_v26 }
  0xc0   :  { %v1905_v27 = vsel %vm1898_vm6, %v8848_v32, %v1904_v22  ;;  %v1759_v28 = vsel %vm1752_vm5, %v8850_v34, %v1758_v38  ;;  %v8989_v0 = vpop.permute.xlu1 %2149  ;;  %v8991_v29 = vpop.permute.xlu0 %2003  ;;  %8267 = vmatmul.mubr.msk.bf16.vlgmr.msra.gmra.mrb[4].mxu0 %vm13131_vm9, %v8821_v15  ;;  %3370 = vmatpush1.bf16.msra.mxu1 %v8140_v12 }
  0xc1   :  { %v2177_v30 = vrot.slane %v8989_v0, 4  ;;  %v2031_v63 = vrot.slane %v8991_v29, 4  ;;  %v8172_v46 = vcombine.low %v1613_v20, %v1759_v28  ;;  %v8173_v35 = vcombine.high %v1613_v20, %v1759_v28  ;;  %3442 = vmatprep.mubr.bf16.mxu0 %v8461_v4 }
  0xc2   :  { %1289 = vrot.lane.b32.xlu1 %v8957_v18, %s8454_s10  ;;  %2163 = vrot.lane.b32.xlu0 %v8876_v40, %s8460_s16 }
  0xc3   :  { %v2196_v32 = vsel %vm1165_vm0, %v2176_v57, %v2177_v30  ;;  %v2050_v34 = vsel %vm1165_vm0, %v2030_v47, %v2031_v63  ;;  %3371 = vmatprep.subr.bf16.mxu1 %v8173_v35 }
  0xc4   :  { %v2197_v61 = vsel %vm13132_vm8, %v8909_v55, %v2196_v32  ;;  %v2051_v45 = vsel %vm2044_vm7, %v8885_v42, %v2050_v34  ;;  %v9014_v37 = vpop.permute.xlu1 %1275  ;;  %v9016_v40 = vpop.permute.xlu0 %1127  ;;  %3372 = vmatpush1.bf16.msra.mxu1 %v8172_v46 }
  0xc5   :  { %v1302_v39 = vrot.slane %v9014_v37, 4  ;;  %v1154_v33 = vrot.slane %v9016_v40, 4  ;;  %v8204_v48 = vcombine.low %v1905_v27, %v2051_v45  ;;  %v8205_v49 = vcombine.high %v1905_v27, %v2051_v45 }
  0xc6   :  { %1581 = vrot.lane.b32.xlu1 %v8957_v18, %s8456_s12  ;;  %1435 = vrot.lane.b32.xlu0 %v8957_v18, %s8455_s11  ;;  %v8237_v14 = vcombine.high %v2197_v61, %v2197_v61  ;;  %v8236_v31 = vcombine.low %v2197_v61, %v2197_v61 }
  0xc7   :  { %v1322_v42 = vsel %vm1165_vm0, %v1301_v56, %v1302_v39  ;;  %v1175_v47 = vsel %vm1165_vm0, %v1153_v16, %v1154_v33  ;;  %3373 = vmatprep.subr.bf16.mxu1 %v8205_v49  ;;  %v9172_v49 = vld [vmem:[%s13121_s0 + $0x70] sm:$0xff] }
  0xc8   :  { %v1323_v50 = vsel %vm1314_vm2, %v8907_v53, %v1322_v42  ;;  %v1176_v51 = vsel %vm13130_vm1, %v8883_v41, %v1175_v47  ;;  %v9036_v55 = vpop.permute.xlu1 %1567  ;;  %v9038_v57 = vpop.permute.xlu0 %1421  ;;  %3374 = vmatpush1.bf16.msra.mxu1 %v8204_v48  ;;  %v1065_v53 = vld [vmem:[%s13121_s0 + $0x60] sm:$0xff]  ;;  %v3161_v44 = vsel %vm1165_vm0, %v8236_v31, 0  ;;  %v8462_v48 = vmov 0.0|0.0  }
  0xc9   :  { %v1594_v56 = vrot.slane %v9036_v55, 4  ;;  %v1448_v58 = vrot.slane %v9038_v57, 4  ;;  %8268 = vmatprep.subr.msk.bf16.mxu1 %vm1165_vm0, %v8237_v14  ;;  %v8110_v16 = vcombine.low %v8611_v6, %v1176_v51  ;;  %v8111_v59 = vcombine.high %v8611_v6, %v1176_v51  ;;  %1081 = vst [vmem:[#allocation2 + $0x60] sm:$0xff] %v1065_v53  ;;  %5121 = vst [vmem:[#allocation4 + $0x418] sm:$0xff] %v8462_v48 }
  0xca   :  { %1873 = vrot.lane.b32.xlu1 %v8957_v18, %s8458_s14  ;;  %1727 = vrot.lane.b32.xlu0 %v8957_v18, %s8457_s13 }
  0xcb   :  { %v1614_v41 = vsel %vm1165_vm0, %v1593_v13, %v1594_v56  ;;  %v1468_v6 = vsel %vm1165_vm0, %v1447_v5, %v1448_v58  ;;  %3410 = vmatprep.subr.bf16.mxu0 %v8111_v59 }
  0xcc   :  { %v1615_v43 = vsel %vm1606_vm4, %v8934_v11, %v1614_v41  ;;  %v1469_v60 = vsel %vm13129_vm3, %v8936_v3, %v1468_v6  ;;  %v9067_v62 = vpop.permute.xlu1 %1859  ;;  %v9069_v2 = vpop.permute.xlu0 %1713  ;;  %3376 = vmatpush1.bf16.msra.mxu1 %v3161_v44  ;;  %3411 = vmatpush1.bf16.msra.mxu0 %v8110_v16  ;;  %v9210_v44 = vld [vmem:[#allocation4] sm:$0xff] }
  0xcd   :  { %v1886_v7 = vrot.slane %v9067_v62, 4  ;;  %v1740_v9 = vrot.slane %v9069_v2, 4  ;;  %v8142_v13 = vcombine.low %v1323_v50, %v1469_v60  ;;  %v8143_v5 = vcombine.high %v1323_v50, %v1469_v60 }
  0xce   :  { %2165 = vrot.lane.b32.xlu1 %v8957_v18, %s8460_s16  ;;  %2019 = vrot.lane.b32.xlu0 %v8957_v18, %s8459_s15 }
  0xcf   :  { %v1906_v11 = vsel %vm1165_vm0, %v1885_v25, %v1886_v7  ;;  %v1760_v3 = vsel %vm1165_vm0, %v1739_v36, %v1740_v9  ;;  %8269 = vmatmul.mubr.msk.bf16.vlgmr.msra.gmra.mrb[4].mxu1 %vm13131_vm9, %v8821_v15  ;;  %3412 = vmatprep.subr.bf16.mxu0 %v8143_v5 }
  0xd0   :  { %v1907_v54 = vsel %vm1898_vm6, %v8965_v23, %v1906_v11  ;;  %v1761_v52 = vsel %vm1752_vm5, %v8967_v24, %v1760_v3  ;;  %v9098_v1 = vpop.permute.xlu1 %1129  ;;  %v9100_v18 = vpop.permute.xlu0 %2005  ;;  %3413 = vmatpush1.bf16.msra.mxu0 %v8142_v13  ;;  %3485 = vmatprep.mubr.bf16.mxu1 %v8461_v4 }
  0xd1   :  { %v1155_v19 = vrot.slane %v9098_v1, 4  ;;  %v2032_v20 = vrot.slane %v9100_v18, 4  ;;  %v8174_v21 = vcombine.low %v1615_v43, %v1761_v52  ;;  %v8175_v25 = vcombine.high %v1615_v43, %v1761_v52 }
  0xd2   :  { %1291 = vrot.lane.b32.xlu1 %v9090_v17, %s8454_s10  ;;  %1143 = vrot.lane.b32.xlu0 %v9090_v17, %s8453_s30 }
  0xd3   :  { %v1177_v23 = vsel %vm1165_vm0, %v1154_v33, %v1155_v19  ;;  %v2052_v4 = vsel %vm1165_vm0, %v2031_v63, %v2032_v20  ;;  %3414 = vmatprep.subr.bf16.mxu0 %v8175_v25  ;;  %v1066_v63 = vld [vmem:[%s13121_s0 + $0x68] sm:$0xff] }
  0xd4   :  { %v1178_v24 = vsel %vm13130_vm1, %v9016_v40, %v1177_v23  ;;  %v2053_v36 = vsel %vm2044_vm7, %v8991_v29, %v2052_v4  ;;  %v9121_v12 = vpop.permute.xlu1 %1277  ;;  %v9123_v26 = vpop.permute.xlu0 %2151  ;;  %3415 = vmatpush1.bf16.msra.mxu0 %v8174_v21  ;;  %1082 = vst [vmem:[#allocation2 + $0x68] sm:$0xff] %v1066_v63 }
  0xd5   :  { %v1303_v22 = vrot.slane %v9121_v12, 4  ;;  %v2178_v38 = vrot.slane %v9123_v26, 4  ;;  %v8206_v27 = vcombine.low %v1907_v54, %v2053_v36  ;;  %v8207_v28 = vcombine.high %v1907_v54, %v2053_v36 }
  0xd6   :  { %1583 = vrot.lane.b32.xlu1 %v9090_v17, %s8456_s12  ;;  %1437 = vrot.lane.b32.xlu0 %v9090_v17, %s8455_s11  ;;  %v8112_v29 = vcombine.low %v8625_v8, %v1178_v24  ;;  %v8113_v46 = vcombine.high %v8625_v8, %v1178_v24 }
  0xd7   :  { %v1324_v35 = vsel %vm1165_vm0, %v1302_v39, %v1303_v22  ;;  %v2198_v32 = vsel %vm1165_vm0, %v2177_v30, %v2178_v38  ;;  %3416 = vmatprep.subr.bf16.mxu0 %v8207_v28 }
  0xd8   :  { %v1325_v34 = vsel %vm1314_vm2, %v9014_v37, %v1324_v35  ;;  %v2199_v61 = vsel %vm13132_vm8, %v8989_v0, %v2198_v32  ;;  %v9148_v45 = vpop.permute.xlu1 %1569  ;;  %v9150_v8 = vpop.permute.xlu0 %1423  ;;  %3453 = vmatprep.subr.bf16.mxu1 %v8113_v46  ;;  %3417 = vmatpush1.bf16.msra.mxu0 %v8206_v27 }
  0xd9   :  { %v1595_v40 = vrot.slane %v9148_v45, 4  ;;  %v1449_v39 = vrot.slane %v9150_v8, 4  ;;  %3454 = vmatpush1.bf16.msra.mxu1 %v8112_v29  ;;  %v8239_v33 = vcombine.high %v2199_v61, %v2199_v61  ;;  %v8238_v30 = vcombine.low %v2199_v61, %v2199_v61 }
  0xda   :  { %1875 = vrot.lane.b32.xlu1 %v9090_v17, %s8458_s14  ;;  %1729 = vrot.lane.b32.xlu0 %v9090_v17, %s8457_s13 }
  0xdb   :  { %v1616_v0 = vsel %vm1165_vm0, %v1594_v56, %v1595_v40  ;;  %v1470_v37 = vsel %vm1165_vm0, %v1448_v58, %v1449_v39  ;;  %8270 = vmatprep.subr.msk.bf16.mxu0 %vm1165_vm0, %v8239_v33  ;;  %v3167_v42 = vsel %vm1165_vm0, %v8238_v30, 0 }
  0xdc   :  { %v1617_v47 = vsel %vm1606_vm4, %v9036_v55, %v1616_v0  ;;  %v1471_v14 = vsel %vm13129_vm3, %v9038_v57, %v1470_v37  ;;  %v9180_v31 = vpop.permute.xlu1 %1861  ;;  %v9182_v50 = vpop.permute.xlu0 %1715  ;;  %3419 = vmatpush1.bf16.msra.mxu0 %v3167_v42 }
  0xdd   :  { %v1887_v51 = vrot.slane %v9180_v31, 4  ;;  %v1741_v56 = vrot.slane %v9182_v50, 4  ;;  %v8144_v58 = vcombine.low %v1325_v34, %v1471_v14  ;;  %v8145_v16 = vcombine.high %v1325_v34, %v1471_v14 }
  0xde   :  { %1145 = vrot.lane.b32.xlu1 %v9172_v49, %s8453_s30  ;;  %2021 = vrot.lane.b32.xlu0 %v9090_v17, %s8459_s15 }
  0xdf   :  { %v1908_v55 = vsel %vm1165_vm0, %v1886_v7, %v1887_v51  ;;  %v1762_v57 = vsel %vm1165_vm0, %v1740_v9, %v1741_v56  ;;  %8271 = vmatmul.mubr.msk.bf16.vlgmr.msra.gmra.mrb[8].mxu0 %vm13131_vm9, %v8821_v15  ;;  %3455 = vmatprep.subr.bf16.mxu1 %v8145_v16 }
  0xe0   :  { %v1909_v59 = vsel %vm1898_vm6, %v9067_v62, %v1908_v55  ;;  %v1763_v53 = vsel %vm1752_vm5, %v9069_v2, %v1762_v57  ;;  %v9206_v41 = vpop.permute.xlu1 %2153  ;;  %v9208_v6 = vpop.permute.xlu0 %2007  ;;  %3456 = vmatpush1.bf16.msra.mxu1 %v8144_v58  ;;  %3528 = vmatprep.mubr.bf16.mxu0 %v9210_v44  ;;  %v1068_v57 = vld [vmem:[%s13121_s0 + $0x78] sm:$0xff] }
  0xe1   :  { %v2179_v43 = vrot.slane %v9206_v41, 4  ;;  %v2033_v60 = vrot.slane %v9208_v6, 4  ;;  %v8176_v7 = vcombine.low %v1617_v47, %v1763_v53  ;;  %v8177_v9 = vcombine.high %v1617_v47, %v1763_v53  ;;  %1084 = vst [vmem:[#allocation2 + $0x78] sm:$0xff] %v1068_v57 }
  0xe2   :  { %1293 = vrot.lane.b32.xlu1 %v9172_v49, %s8454_s10  ;;  %2167 = vrot.lane.b32.xlu0 %v9090_v17, %s8460_s16 }
  0xe3   :  { %v2200_v62 = vsel %vm1165_vm0, %v2178_v38, %v2179_v43  ;;  %v2054_v2 = vsel %vm1165_vm0, %v2032_v20, %v2033_v60  ;;  %3457 = vmatprep.subr.bf16.mxu1 %v8177_v9 }
  0xe4   :  { %v2201_v13 = vsel %vm13132_vm8, %v9123_v26, %v2200_v62  ;;  %v2055_v5 = vsel %vm2044_vm7, %v9100_v18, %v2054_v2  ;;  %v9231_v11 = vpop.permute.xlu1 %1279  ;;  %v9233_v3 = vpop.permute.xlu0 %1131  ;;  %3458 = vmatpush1.bf16.msra.mxu1 %v8176_v7 }
  0xe5   :  { %v1304_v17 = vrot.slane %v9231_v11, 4  ;;  %v1156_v54 = vrot.slane %v9233_v3, 4  ;;  %v8208_v52 = vcombine.low %v1909_v59, %v2055_v5  ;;  %v8209_v21 = vcombine.high %v1909_v59, %v2055_v5  ;;  %v2402_v5 = vld [vmem:[%s13123_s2 + $0x8] sm:$0xff] }
  0xe6   :  { %1585 = vrot.lane.b32.xlu1 %v9172_v49, %s8456_s12  ;;  %1439 = vrot.lane.b32.xlu0 %v9172_v49, %s8455_s11  ;;  %v8241_v25 = vcombine.high %v2201_v13, %v2201_v13  ;;  %v8240_v23 = vcombine.low %v2201_v13, %v2201_v13 }
  0xe7   :  { %v1326_v18 = vsel %vm1165_vm0, %v1303_v22, %v1304_v17  ;;  %v1179_v20 = vsel %vm1165_vm0, %v1155_v19, %v1156_v54  ;;  %3459 = vmatprep.subr.bf16.mxu1 %v8209_v21 }
  0xe8   :  { %v1327_v4 = vsel %vm1314_vm2, %v9121_v12, %v1326_v18  ;;  %v1180_v24 = vsel %vm13130_vm1, %v9098_v1, %v1179_v20  ;;  %v9253_v36 = vpop.permute.xlu1 %1571  ;;  %v9255_v26 = vpop.permute.xlu0 %1425  ;;  %3460 = vmatpush1.bf16.msra.mxu1 %v8208_v52  ;;  %v1067_v12 = vld [vmem:[%s13121_s0 + $0x70] sm:$0xff]  ;;  %v3173_v28 = vsel %vm1165_vm0, %v8240_v23, 0 }
  0xe9   :  { %v1596_v22 = vrot.slane %v9253_v36, 4  ;;  %v1450_v38 = vrot.slane %v9255_v26, 4  ;;  %8272 = vmatprep.subr.msk.bf16.mxu1 %vm1165_vm0, %v8241_v25  ;;  %v8114_v19 = vcombine.low %v8643_v10, %v1180_v24  ;;  %v8115_v27 = vcombine.high %v8643_v10, %v1180_v24  ;;  %1083 = vst [vmem:[#allocation2 + $0x70] sm:$0xff] %v1067_v12 }
  0xea   :  { %1877 = vrot.lane.b32.xlu1 %v9172_v49, %s8458_s14  ;;  %1731 = vrot.lane.b32.xlu0 %v9172_v49, %s8457_s13 }
  0xeb   :  { %v1618_v1 = vsel %vm1165_vm0, %v1595_v40, %v1596_v22  ;;  %v1472_v10 = vsel %vm1165_vm0, %v1449_v39, %v1450_v38  ;;  %3496 = vmatprep.subr.bf16.mxu0 %v8115_v27  ;;  %v9307_v39 = vld [vmem:[%s13121_s0 + $0x78] sm:$0xff] }
  0xec   :  { %v1619_v63 = vsel %vm1606_vm4, %v9148_v45, %v1618_v1  ;;  %v1473_v29 = vsel %vm13129_vm3, %v9150_v8, %v1472_v10  ;;  %v9284_v46 = vpop.permute.xlu1 %1863  ;;  %v9286_v35 = vpop.permute.xlu0 %1717  ;;  %3462 = vmatpush1.bf16.msra.mxu1 %v3173_v28  ;;  %3497 = vmatpush1.bf16.msra.mxu0 %v8114_v19 }
  0xed   :  { %v1888_v32 = vrot.slane %v9284_v46, 4  ;;  %v1742_v34 = vrot.slane %v9286_v35, 4  ;;  %v8146_v61 = vcombine.low %v1327_v4, %v1473_v29  ;;  %v8147_v40 = vcombine.high %v1327_v4, %v1473_v29 }
  0xee   :  { %2169 = vrot.lane.b32.xlu1 %v9172_v49, %s8460_s16  ;;  %2023 = vrot.lane.b32.xlu0 %v9172_v49, %s8459_s15 }
  0xef   :  { %v1910_v45 = vsel %vm1165_vm0, %v1887_v51, %v1888_v32  ;;  %v1764_v8 = vsel %vm1165_vm0, %v1741_v56, %v1742_v34  ;;  %8273 = vmatmul.mubr.msk.bf16.vlgmr.msra.gmra.mrb[8].mxu1 %vm13131_vm9, %v8821_v15  ;;  %3498 = vmatprep.subr.bf16.mxu0 %v8147_v40  ;;  %v2401_v51 = vld [vmem:[%s13123_s2] sm:$0xff]  ;;  %s8463_s2 = smov 19  }
  0xf0   :  { %v1911_v33 = vsel %vm1898_vm6, %v9180_v31, %v1910_v45  ;;  %v1765_v30 = vsel %vm1752_vm5, %v9182_v50, %v1764_v8  ;;  %v9315_v0 = vpop.permute.xlu1 %1133  ;;  %v9317_v37 = vpop.permute.xlu0 %2009  ;;  %3499 = vmatpush1.bf16.msra.mxu0 %v8146_v61  ;;  %3571 = vmatprep.mubr.bf16.mxu1 %v9210_v44 }
  0xf1   :  { %v1157_v49 = vrot.slane %v9315_v0, 4  ;;  %v2034_v42 = vrot.slane %v9317_v37, 4  ;;  %v8178_v47 = vcombine.low %v1619_v63, %v1765_v30  ;;  %v8179_v14 = vcombine.high %v1619_v63, %v1765_v30 }
  0xf2   :  { %1295 = vrot.lane.b32.xlu1 %v9307_v39, %s8454_s10  ;;  %1147 = vrot.lane.b32.xlu0 %v9307_v39, %s8453_s30 }
  0xf3   :  { %v1181_v31 = vsel %vm1165_vm0, %v1156_v54, %v1157_v49  ;;  %v2056_v50 = vsel %vm1165_vm0, %v2033_v60, %v2034_v42  ;;  %3500 = vmatprep.subr.bf16.mxu0 %v8179_v14 }
  0xf4   :  { %v1182_v56 = vsel %vm13130_vm1, %v9233_v3, %v1181_v31  ;;  %v2057_v58 = vsel %vm2044_vm7, %v9208_v6, %v2056_v50  ;;  %v9341_v16 = vpop.permute.xlu1 %1281  ;;  %v9343_v55 = vpop.permute.xlu0 %2155  ;;  %3501 = vmatpush1.bf16.msra.mxu0 %v8178_v47  ;;  %v8413_v6 = vld [vmem:[#allocation2 + $0x38] sm:$0xff] }
  0xf5   :  { %v1305_v59 = vrot.slane %v9341_v16, 4  ;;  %v2180_v53 = vrot.slane %v9343_v55, 4  ;;  %v8210_v60 = vcombine.low %v1911_v33, %v2057_v58  ;;  %v8211_v7 = vcombine.high %v1911_v33, %v2057_v58 }
  0xf6   :  { %2405 = vperm.xlu1 %8401, %v2401_v51   ;;  %1441 = vrot.lane.b32.xlu0 %v9307_v39, %s8455_s11  ;;  %v8116_v9 = vcombine.low %v8413_v6, %v1182_v56  ;;  %v8117_v62 = vcombine.high %v8413_v6, %v1182_v56 }
  0xf7   :  { %v1328_v2 = vsel %vm1165_vm0, %v1304_v17, %v1305_v59  ;;  %v2202_v13 = vsel %vm1165_vm0, %v2179_v43, %v2180_v53  ;;  %3502 = vmatprep.subr.bf16.mxu0 %v8211_v7 }
  0xf8   :  { %v1329_v3 = vsel %vm1314_vm2, %v9231_v11, %v1328_v2  ;;  %v2203_v54 = vsel %vm13132_vm8, %v9206_v41, %v2202_v13  ;;  %v9367_v52 = vpop.permute.xlu1 %1573  ;;  %v9369_v21 = vpop.permute.xlu0 %1427  ;;  %3539 = vmatprep.subr.bf16.mxu1 %v8117_v62  ;;  %3503 = vmatpush1.bf16.msra.mxu0 %v8210_v60 }
  0xf9   :  { %v1597_v17 = vrot.slane %v9367_v52, 4  ;;  %v1451_v43 = vrot.slane %v9369_v21, 4  ;;  %3540 = vmatpush1.bf16.msra.mxu1 %v8116_v9  ;;  %v8243_v18 = vcombine.high %v2203_v54, %v2203_v54  ;;  %v8242_v20 = vcombine.low %v2203_v54, %v2203_v54 }
  0xfa   :  { %2410 = vperm.xlu0 %8402, %v2402_v5   ;;  %1587 = vrot.lane.b32.xlu1 %v9307_v39, %s8456_s12 }
  0xfb   :  { %v1620_v41 = vsel %vm1165_vm0, %v1596_v22, %v1597_v17  ;;  %v1474_v11 = vsel %vm1165_vm0, %v1450_v38, %v1451_v43  ;;  %8274 = vmatprep.subr.msk.bf16.mxu0 %vm1165_vm0, %v8243_v18  ;;  %v3179_v25 = vsel %vm1165_vm0, %v8242_v20, 0 }
  0xfc   :  { %v1621_v23 = vsel %vm1606_vm4, %v9253_v36, %v1620_v41  ;;  %v1475_v4 = vsel %vm13129_vm3, %v9255_v26, %v1474_v11  ;;  %v9391_v24 = vpop.permute.xlu1 %1865  ;;  %v9393_v19 = vpop.permute.xlu0 %1719  ;;  %3505 = vmatpush1.bf16.msra.mxu0 %v3179_v25 }
  0xfd   :  { %v1889_v22 = vrot.slane %v9391_v24, 4  ;;  %v1743_v27 = vrot.slane %v9393_v19, 4  ;;  %v8148_v38 = vcombine.low %v1329_v3, %v1475_v4  ;;  %v8149_v12 = vcombine.high %v1329_v3, %v1475_v4 }
  0xfe   :  { %1733 = vrot.lane.b32.xlu1 %v9307_v39, %s8457_s13  ;;  %1879 = vrot.lane.b32.xlu0 %v9307_v39, %s8458_s14  ;;  %s8464_s13 = smov 18   ;;  %s8465_s14 = smov 17  }
  0xff   :  { %v1912_v36 = vsel %vm1165_vm0, %v1888_v32, %v1889_v22  ;;  %v1766_v26 = vsel %vm1165_vm0, %v1742_v34, %v1743_v27  ;;  %8275 = vmatmul.mubr.msk.bf16.vlgmr.msra.gmra.mrb[12].mxu0 %vm13131_vm9, %v8821_v15  ;;  %3541 = vmatprep.subr.bf16.mxu1 %v8149_v12 }
 0x100   :  { %v1913_v1 = vsel %vm1898_vm6, %v9284_v46, %v1912_v36  ;;  %v1767_v10 = vsel %vm1752_vm5, %v9286_v35, %v1766_v26  ;;  %v9417_v28 = vpop.permute.xlu1 %2157  ;;  %v9419_v63 = vpop.permute.xlu0 %2011  ;;  %3542 = vmatpush1.bf16.msra.mxu1 %v8148_v38  ;;  %3614 = vmatprep.mubr.bf16.mxu0 %v9210_v44 }
 0x101   :  { %v2181_v29 = vrot.slane %v9417_v28, 4  ;;  %v2035_v32 = vrot.slane %v9419_v63, 4  ;;  %v8180_v34 = vcombine.low %v1621_v23, %v1767_v10  ;;  %v8181_v61 = vcombine.high %v1621_v23, %v1767_v10 }
 0x102   :  { %2025 = vrot.lane.b32.xlu1 %v9307_v39, %s8459_s15  ;;  %2171 = vrot.lane.b32.xlu0 %v9307_v39, %s8460_s16  ;;  %s8466_s15 = smov 1   ;;  %s8467_s16 = smov 111  }
 0x103   :  { %v2204_v46 = vsel %vm1165_vm0, %v2180_v53, %v2181_v29  ;;  %v2058_v35 = vsel %vm1165_vm0, %v2034_v42, %v2035_v32  ;;  %3543 = vmatprep.subr.bf16.mxu1 %v8181_v61 }
 0x104   :  { %v2205_v40 = vsel %vm13132_vm8, %v9343_v55, %v2204_v46  ;;  %v2059_v45 = vsel %vm2044_vm7, %v9317_v37, %v2058_v35  ;;  %v9440_v8 = vpop.permute.xlu1 %1283  ;;  %v9442_v39 = vpop.permute.xlu0 %1135  ;;  %3544 = vmatpush1.bf16.msra.mxu1 %v8180_v34 }
 0x105   :  { %v1306_v33 = vrot.slane %v9440_v8, 4  ;;  %v1158_v30 = vrot.slane %v9442_v39, 4  ;;  %v8212_v47 = vcombine.low %v1913_v1, %v2059_v45  ;;  %v8213_v14 = vcombine.high %v1913_v1, %v2059_v45  ;;  %v8415_v1 = vld [vmem:[#allocation2 + $0x48] sm:$0xff] }
 0x106   :  { %4256 = vrot.lane.b32.xlu0 %v8462_v48, %s8463_s2  ;;  %5220 = vrot.lane.b32.xlu1 %v8462_v48, %s8453_s30  ;;  %v8245_v31 = vcombine.high %v2205_v40, %v2205_v40  ;;  %v8244_v50 = vcombine.low %v2205_v40, %v2205_v40 }
 0x107   :  { %v1330_v37 = vsel %vm1165_vm0, %v1305_v59, %v1306_v33  ;;  %v1183_v42 = vsel %vm1165_vm0, %v1157_v49, %v1158_v30  ;;  %3545 = vmatprep.subr.bf16.mxu1 %v8213_v14  ;;  %v8414_v49 = vld [vmem:[#allocation2 + $0x40] sm:$0xff] }
 0x108   :  { %v1331_v51 = vsel %vm1314_vm2, %v9341_v16, %v1330_v37  ;;  %v1184_v56 = vsel %vm13130_vm1, %v9315_v0, %v1183_v42  ;;  %v9462_v58 = vpop.permute.xlu1 %1575  ;;  %v9464_v55 = vpop.permute.xlu0 %1429  ;;  %3546 = vmatpush1.bf16.msra.mxu1 %v8212_v47  ;;  %v3185_v7 = vsel %vm1165_vm0, %v8244_v50, 0 }
 0x109   :  { %v1598_v57 = vrot.slane %v9462_v58, 4  ;;  %v1452_v59 = vrot.slane %v9464_v55, 4  ;;  %8276 = vmatprep.subr.msk.bf16.mxu1 %vm1165_vm0, %v8245_v31  ;;  %v8118_v53 = vcombine.low %v8414_v49, %v1184_v56  ;;  %v8119_v60 = vcombine.high %v8414_v49, %v1184_v56 }
 0x10a   :  { %4481 = vrot.lane.b32.xlu0 %v8462_v48, %s8464_s13  ;;  %5669 = vrot.lane.b32.xlu1 %v8462_v48, %s8455_s11 }
 0x10b   :  { %v1622_v0 = vsel %vm1165_vm0, %v1597_v17, %v1598_v57  ;;  %v1476_v16 = vsel %vm1165_vm0, %v1451_v43, %v1452_v59  ;;  %3582 = vmatprep.subr.bf16.mxu0 %v8119_v60 }
 0x10c   :  { %v1623_v6 = vsel %vm1606_vm4, %v9367_v52, %v1622_v0  ;;  %v1477_v9 = vsel %vm13129_vm3, %v9369_v21, %v1476_v16  ;;  %v9488_v62 = vpop.permute.xlu1 %1867  ;;  %v9490_v2 = vpop.permute.xlu0 %1721  ;;  %3548 = vmatpush1.bf16.msra.mxu1 %v3185_v7  ;;  %3583 = vmatpush1.bf16.msra.mxu0 %v8118_v53 }
 0x10d   :  { %v1890_v13 = vrot.slane %v9488_v62, 4  ;;  %v1744_v5 = vrot.slane %v9490_v2, 4  ;;  %v8150_v3 = vcombine.low %v1331_v51, %v1477_v9  ;;  %v8151_v54 = vcombine.high %v1331_v51, %v1477_v9 }
 0x10e   :  { %4706 = vrot.lane.b32.xlu0 %v8462_v48, %s8465_s14  ;;  %5228 = vrot.lane.b32.xlu1 %v8462_v48, %s8453_s30 }
 0x10f   :  { %v1914_v52 = vsel %vm1165_vm0, %v1889_v22, %v1890_v13  ;;  %v1768_v21 = vsel %vm1165_vm0, %v1743_v27, %v1744_v5  ;;  %8277 = vmatmul.mubr.msk.bf16.vlgmr.msra.gmra.mrb[12].mxu1 %vm13131_vm9, %v8821_v15  ;;  %3584 = vmatprep.subr.bf16.mxu0 %v8151_v54 }
 0x110   :  { %v1915_v17 = vsel %vm1898_vm6, %v9391_v24, %v1914_v52  ;;  %v1769_v43 = vsel %vm1752_vm5, %v9393_v19, %v1768_v21  ;;  %v9514_v18 = vpop.permute.xlu1 %1137  ;;  %v9516_v20 = vpop.permute.xlu0 %2013  ;;  %3585 = vmatpush1.bf16.msra.mxu0 %v8150_v3  ;;  %3657 = vmatprep.mubr.bf16.mxu1 %v9210_v44 }
 0x111   :  { %v1159_v41 = vrot.slane %v9514_v18, 4  ;;  %v2036_v11 = vrot.slane %v9516_v20, 4  ;;  %v8182_v25 = vcombine.low %v1623_v6, %v1769_v43  ;;  %v8183_v15 = vcombine.high %v1623_v6, %v1769_v43 }
 0x112   :  { %4931 = vrot.lane.b32.xlu0 %v8462_v48, %s8466_s15  ;;  %5452 = vrot.lane.b32.xlu1 %v8462_v48, %s8467_s16 }
 0x113   :  { %v1185_v23 = vsel %vm1165_vm0, %v1158_v30, %v1159_v41  ;;  %v2060_v4 = vsel %vm1165_vm0, %v2035_v32, %v2036_v11  ;;  %3586 = vmatprep.subr.bf16.mxu0 %v8183_v15 }
 0x114   :  { %v1186_v24 = vsel %vm13130_vm1, %v9442_v39, %v1185_v23  ;;  %v2061_v19 = vsel %vm2044_vm7, %v9419_v63, %v2060_v4  ;;  %v9537_v22 = vpop.permute.xlu1 %1285  ;;  %v2160_v27 = vpop.permute.xlu0 %2159  ;;  %3587 = vmatpush1.bf16.msra.mxu0 %v8182_v25 }
 0x115   :  { %v1307_v38 = vrot.slane %v9537_v22, 4  ;;  %v2182_v12 = vrot.slane %v2160_v27, 4  ;;  %v8214_v36 = vcombine.low %v1915_v17, %v2061_v19  ;;  %v8215_v26 = vcombine.high %v1915_v17, %v2061_v19 }
 0x116   :  { %v8120_v10 = vcombine.low %v8415_v1, %v1186_v24  ;;  %v8121_v34 = vcombine.high %v8415_v1, %v1186_v24  ;;  %5444 = vrot.lane.b32.xlu0 %v8462_v48, %s8467_s16  ;;  %5677 = vrot.lane.b32.xlu1 %v8462_v48, %s8455_s11 }
 0x117   :  { %v1332_v63 = vsel %vm1165_vm0, %v1306_v33, %v1307_v38  ;;  %v2206_v32 = vsel %vm1165_vm0, %v2181_v29, %v2182_v12  ;;  %3588 = vmatprep.subr.bf16.mxu0 %v8215_v26 }
 0x118   :  { %v1333_v61 = vsel %vm1314_vm2, %v9440_v8, %v1332_v63  ;;  %v2207_v46 = vsel %vm13132_vm8, %v9417_v28, %v2206_v32  ;;  %v9556_v35 = vpop.permute.xlu1 %1577  ;;  %v9558_v40 = vpop.permute.xlu0 %1431  ;;  %3625 = vmatprep.subr.bf16.mxu1 %v8121_v34  ;;  %3589 = vmatpush1.bf16.msra.mxu0 %v8214_v36 }
 0x119   :  { %v1599_v45 = vrot.slane %v9556_v35, 4  ;;  %v1453_v39 = vrot.slane %v9558_v40, 4  ;;  %3626 = vmatpush1.bf16.msra.mxu1 %v8120_v10  ;;  %v8247_v33 = vcombine.high %v2207_v46, %v2207_v46  ;;  %v8246_v29 = vcombine.low %v2207_v46, %v2207_v46 }
 0x11a   :  { %5893 = vrot.lane.b32.xlu0 %v8462_v48, %s8456_s12  ;;  %5901 = vrot.lane.b32.xlu1 %v8462_v48, %s8456_s12 }
 0x11b   :  { %v1624_v28 = vsel %vm1165_vm0, %v1598_v57, %v1599_v45  ;;  %v1478_v8 = vsel %vm1165_vm0, %v1452_v59, %v1453_v39  ;;  %8278 = vmatprep.subr.msk.bf16.mxu0 %vm1165_vm0, %v8247_v33  ;;  %v3191_v30 = vsel %vm1165_vm0, %v8246_v29, 0  ;;  %v9603_v57 = vld [vmem:[%s13122_s1] sm:$0xff]  }
 0x11c   :  { %v1625_v47 = vsel %vm1606_vm4, %v9462_v58, %v1624_v28  ;;  %v1479_v14 = vsel %vm13129_vm3, %v9464_v55, %v1478_v8  ;;  %v9582_v37 = vpop.permute.xlu1 %1869  ;;  %v9584_v42 = vpop.permute.xlu0 %1723  ;;  %3591 = vmatpush1.bf16.msra.mxu0 %v3191_v30 }
 0x11d   :  { %v1891_v31 = vrot.slane %v9582_v37, 4  ;;  %v1745_v50 = vrot.slane %v9584_v42, 4  ;;  %v8152_v51 = vcombine.low %v1333_v61, %v1479_v14  ;;  %v8153_v56 = vcombine.high %v1333_v61, %v1479_v14 }
 0x11e   :  { %4264 = vrot.lane.b32.xlu0 %v8462_v48, %s8463_s2 }
 0x11f   :  { %v1916_v58 = vsel %vm1165_vm0, %v1890_v13, %v1891_v31  ;;  %v1770_v55 = vsel %vm1165_vm0, %v1744_v5, %v1745_v50  ;;  %8279 = vmatmul.mubr.msk.bf16.vlgmr.msra.gmra.mrb[16].mxu0 %vm13131_vm9, %v9603_v57  ;;  %3627 = vmatprep.subr.bf16.mxu1 %v8153_v56 }
 0x120   :  { %v1917_v59 = vsel %vm1898_vm6, %v9488_v62, %v1916_v58  ;;  %v1771_v49 = vsel %vm1752_vm5, %v9490_v2, %v1770_v55  ;;  %v9611_v53 = vpop.permute.xlu1 %2161  ;;  %v9613_v60 = vpop.permute.xlu0 %2015  ;;  %3628 = vmatpush1.bf16.msra.mxu1 %v8152_v51  ;;  %3700 = vmatprep.mubr.bf16.mxu0 %v9210_v44 }
 0x121   :  { %v2183_v0 = vrot.slane %v9611_v53, 4  ;;  %v2037_v16 = vrot.slane %v9613_v60, 4  ;;  %v8184_v7 = vcombine.low %v1625_v47, %v1771_v49  ;;  %v8185_v6 = vcombine.high %v1625_v47, %v1771_v49 }
 0x122   :  { %4489 = vrot.lane.b32.xlu0 %v8462_v48, %s8464_s13 }
 0x123   :  { %v2208_v9 = vsel %vm1165_vm0, %v2182_v12, %v2183_v0  ;;  %v2062_v62 = vsel %vm1165_vm0, %v2036_v11, %v2037_v16  ;;  %3629 = vmatprep.subr.bf16.mxu1 %v8185_v6 }
 0x124   :  { %v2209_v2 = vsel %vm13132_vm8, %v2160_v27, %v2208_v9  ;;  %v2063_v13 = vsel %vm2044_vm7, %v9516_v20, %v2062_v62  ;;  %v9631_v5 = vpop.permute.xlu1 %1287  ;;  %v1140_v3 = vpop.permute.xlu0 %1139  ;;  %3630 = vmatpush1.bf16.msra.mxu1 %v8184_v7 }
 0x125   :  { %v1308_v54 = vrot.slane %v9631_v5, 4  ;;  %v1160_v52 = vrot.slane %v1140_v3, 4  ;;  %v8216_v21 = vcombine.low %v1917_v59, %v2063_v13  ;;  %v8217_v17 = vcombine.high %v1917_v59, %v2063_v13  ;;  %v8418_v59 = vld [vmem:[#allocation2 + $0x58] sm:$0xff] }
 0x126   :  { %4714 = vrot.lane.b32.xlu0 %v8462_v48, %s8465_s14  ;;  %v8249_v11 = vcombine.high %v2209_v2, %v2209_v2  ;;  %v8248_v25 = vcombine.low %v2209_v2, %v2209_v2 }
 0x127   :  { %v1334_v43 = vsel %vm1165_vm0, %v1307_v38, %v1308_v54  ;;  %v1187_v20 = vsel %vm1165_vm0, %v1159_v41, %v1160_v52  ;;  %3631 = vmatprep.subr.bf16.mxu1 %v8217_v17  ;;  %v8417_v41 = vld [vmem:[#allocation2 + $0x50] sm:$0xff] }
 0x128   :  { %v1335_v15 = vsel %vm1314_vm2, %v9537_v22, %v1334_v43  ;;  %v1188_v23 = vsel %vm13130_vm1, %v9514_v18, %v1187_v20  ;;  %v9648_v4 = vpop.permute.xlu1 %1579  ;;  %v9650_v24 = vpop.permute.xlu0 %1433  ;;  %3632 = vmatpush1.bf16.msra.mxu1 %v8216_v21  ;;  %v3197_v36 = vsel %vm1165_vm0, %v8248_v25, 0 }
 0x129   :  { %v1600_v19 = vrot.slane %v9648_v4, 4  ;;  %v1454_v27 = vrot.slane %v9650_v24, 4  ;;  %8280 = vmatprep.subr.msk.bf16.mxu1 %vm1165_vm0, %v8249_v11  ;;  %v8122_v38 = vcombine.low %v8417_v41, %v1188_v23  ;;  %v8123_v12 = vcombine.high %v8417_v41, %v1188_v23 }
 0x12a   :  { %4939 = vrot.lane.b32.xlu0 %v8462_v48, %s8466_s15 }
 0x12b   :  { %v1626_v18 = vsel %vm1165_vm0, %v1599_v45, %v1600_v19  ;;  %v1480_v22 = vsel %vm1165_vm0, %v1453_v39, %v1454_v27  ;;  %3668 = vmatprep.subr.bf16.mxu0 %v8123_v12 }
 0x12c   :  { %v1627_v26 = vsel %vm1606_vm4, %v9556_v35, %v1626_v18  ;;  %v1481_v1 = vsel %vm13129_vm3, %v9558_v40, %v1480_v22  ;;  %v9672_v10 = vpop.permute.xlu1 %1871  ;;  %v9674_v34 = vpop.permute.xlu0 %1725  ;;  %3634 = vmatpush1.bf16.msra.mxu1 %v3197_v36  ;;  %3669 = vmatpush1.bf16.msra.mxu0 %v8122_v38 }
 0x12d   :  { %v1892_v63 = vrot.slane %v9672_v10, 4  ;;  %v1746_v32 = vrot.slane %v9674_v34, 4  ;;  %v8154_v61 = vcombine.low %v1335_v15, %v1481_v1  ;;  %v8155_v46 = vcombine.high %v1335_v15, %v1481_v1 }
 0x12e   :  { %4272 = vrot.lane.b32.xlu0 %v8462_v48, %s8463_s2 }
 0x12f   :  { %v1918_v35 = vsel %vm1165_vm0, %v1891_v31, %v1892_v63  ;;  %v1772_v40 = vsel %vm1165_vm0, %v1745_v50, %v1746_v32  ;;  %8281 = vmatmul.mubr.msk.bf16.vlgmr.msra.gmra.mrb[16].mxu1 %vm13131_vm9, %v9603_v57  ;;  %3670 = vmatprep.subr.bf16.mxu0 %v8155_v46 }
 0x130   :  { %v1919_v45 = vsel %vm1898_vm6, %v9582_v37, %v1918_v35  ;;  %v1773_v39 = vsel %vm1752_vm5, %v9584_v42, %v1772_v40  ;;  %v9696_v33 = vpop.permute.xlu1 %1141  ;;  %v9698_v29 = vpop.permute.xlu0 %2017  ;;  %3671 = vmatpush1.bf16.msra.mxu0 %v8154_v61  ;;  %3743 = vmatprep.mubr.bf16.mxu1 %v9210_v44 }
 0x131   :  { %v1161_v28 = vrot.slane %v9696_v33, 4  ;;  %v2038_v8 = vrot.slane %v9698_v29, 4  ;;  %v8186_v30 = vcombine.low %v1627_v26, %v1773_v39  ;;  %v8187_v47 = vcombine.high %v1627_v26, %v1773_v39 }
 0x132   :  { %4497 = vrot.lane.b32.xlu0 %v8462_v48, %s8464_s13 }
 0x133   :  { %v1189_v14 = vsel %vm1165_vm0, %v1160_v52, %v1161_v28  ;;  %v2064_v37 = vsel %vm1165_vm0, %v2037_v16, %v2038_v8  ;;  %3672 = vmatprep.subr.bf16.mxu0 %v8187_v47 }
 0x134   :  { %v1190_v42 = vsel %vm13130_vm1, %v1140_v3, %v1189_v14  ;;  %v2065_v31 = vsel %vm2044_vm7, %v9613_v60, %v2064_v37  ;;  %v9714_v50 = vpop.permute.xlu1 %1289  ;;  %v2164_v51 = vpop.permute.xlu0 %2163  ;;  %3673 = vmatpush1.bf16.msra.mxu0 %v8186_v30 }
 0x135   :  { %v1309_v48 = vrot.slane %v9714_v50, 4  ;;  %v2184_v56 = vrot.slane %v2164_v51, 4  ;;  %v8218_v58 = vcombine.low %v1919_v45, %v2065_v31  ;;  %v8219_v55 = vcombine.high %v1919_v45, %v2065_v31 }
 0x136   :  { %v8124_v49 = vcombine.low %v8418_v59, %v1190_v42  ;;  %v8125_v7 = vcombine.high %v8418_v59, %v1190_v42 }
 0x137   :  { %v1336_v16 = vsel %vm1165_vm0, %v1308_v54, %v1309_v48  ;;  %v2210_v60 = vsel %vm1165_vm0, %v2183_v0, %v2184_v56  ;;  %3674 = vmatprep.subr.bf16.mxu0 %v8219_v55 }
 0x138   :  { %v1337_v6 = vsel %vm1314_vm2, %v9631_v5, %v1336_v16  ;;  %v2211_v9 = vsel %vm13132_vm8, %v9611_v53, %v2210_v60  ;;  %v9727_v62 = vpop.permute.xlu1 %1581  ;;  %v9729_v2 = vpop.permute.xlu0 %1435  ;;  %3711 = vmatprep.subr.bf16.mxu1 %v8125_v7  ;;  %3675 = vmatpush1.bf16.msra.mxu0 %v8218_v58 }
 0x139   :  { %v1601_v13 = vrot.slane %v9727_v62, 4  ;;  %v1455_v3 = vrot.slane %v9729_v2, 4  ;;  %3712 = vmatpush1.bf16.msra.mxu1 %v8124_v49  ;;  %v8251_v54 = vcombine.high %v2211_v9, %v2211_v9  ;;  %v8250_v0 = vcombine.low %v2211_v9, %v2211_v9 }
 0x13b   :  { %v1628_v5 = vsel %vm1165_vm0, %v1600_v19, %v1601_v13  ;;  %v1482_v53 = vsel %vm1165_vm0, %v1454_v27, %v1455_v3  ;;  %8282 = vmatprep.subr.msk.bf16.mxu0 %vm1165_vm0, %v8251_v54  ;;  %v3203_v52 = vsel %vm1165_vm0, %v8250_v0, 0 }
 0x13c   :  { %v1629_v21 = vsel %vm1606_vm4, %v9648_v4, %v1628_v5  ;;  %v1483_v17 = vsel %vm13129_vm3, %v9650_v24, %v1482_v53  ;;  %v9745_v43 = vpop.permute.xlu1 %1873  ;;  %v9747_v20 = vpop.permute.xlu0 %1727  ;;  %3677 = vmatpush1.bf16.msra.mxu0 %v3203_v52 }
 0x13d   :  { %v1893_v11 = vrot.slane %v9745_v43, 4  ;;  %v1747_v25 = vrot.slane %v9747_v20, 4  ;;  %v8156_v15 = vcombine.low %v1337_v6, %v1483_v17  ;;  %v8157_v23 = vcombine.high %v1337_v6, %v1483_v17 }
 0x13f   :  { %v1920_v19 = vsel %vm1165_vm0, %v1892_v63, %v1893_v11  ;;  %v1774_v4 = vsel %vm1165_vm0, %v1746_v32, %v1747_v25  ;;  %8283 = vmatmul.mubr.msk.bf16.vlgmr.msra.gmra.mrb[20].mxu0 %vm13131_vm9, %v9603_v57  ;;  %3713 = vmatprep.subr.bf16.mxu1 %v8157_v23 }
 0x140   :  { %v1921_v24 = vsel %vm1898_vm6, %v9672_v10, %v1920_v19  ;;  %v1775_v27 = vsel %vm1752_vm5, %v9674_v34, %v1774_v4  ;;  %v9763_v41 = vpop.permute.xlu1 %2165  ;;  %v9765_v38 = vpop.permute.xlu0 %2019  ;;  %3714 = vmatpush1.bf16.msra.mxu1 %v8156_v15  ;;  %3786 = vmatprep.mubr.bf16.mxu0 %v9210_v44 }
 0x141   :  { %v2185_v12 = vrot.slane %v9763_v41, 4  ;;  %v2039_v18 = vrot.slane %v9765_v38, 4  ;;  %v8188_v22 = vcombine.low %v1629_v21, %v1775_v27  ;;  %v8189_v36 = vcombine.high %v1629_v21, %v1775_v27  ;;  %v8420_v27 = vld [vmem:[#allocation2 + $0x68] sm:$0xff] }
 0x143   :  { %v2212_v26 = vsel %vm1165_vm0, %v2184_v56, %v2185_v12  ;;  %v2066_v1 = vsel %vm1165_vm0, %v2038_v8, %v2039_v18  ;;  %3715 = vmatprep.subr.bf16.mxu1 %v8189_v36 }
 0x144   :  { %v2213_v10 = vsel %vm13132_vm8, %v2164_v51, %v2212_v26  ;;  %v2067_v34 = vsel %vm2044_vm7, %v9698_v29, %v2066_v1  ;;  %v9777_v63 = vpop.permute.xlu1 %1291  ;;  %v1144_v32 = vpop.permute.xlu0 %1143  ;;  %3716 = vmatpush1.bf16.msra.mxu1 %v8188_v22 }
 0x145   :  { %v1310_v61 = vrot.slane %v9777_v63, 4  ;;  %v1162_v46 = vrot.slane %v1144_v32, 4  ;;  %v8220_v35 = vcombine.low %v1921_v24, %v2067_v34  ;;  %v8221_v40 = vcombine.high %v1921_v24, %v2067_v34 }
 0x146   :  { %v8253_v8 = vcombine.high %v2213_v10, %v2213_v10  ;;  %v8252_v29 = vcombine.low %v2213_v10, %v2213_v10 }
 0x147   :  { %v1338_v45 = vsel %vm1165_vm0, %v1309_v48, %v1310_v61  ;;  %v1191_v39 = vsel %vm1165_vm0, %v1161_v28, %v1162_v46  ;;  %3717 = vmatprep.subr.bf16.mxu1 %v8221_v40  ;;  %v8419_v28 = vld [vmem:[#allocation2 + $0x60] sm:$0xff] }
 0x148   :  { %v1339_v30 = vsel %vm1314_vm2, %v9714_v50, %v1338_v45  ;;  %v1192_v47 = vsel %vm13130_vm1, %v9696_v33, %v1191_v39  ;;  %v9790_v14 = vpop.permute.xlu1 %1583  ;;  %v9792_v37 = vpop.permute.xlu0 %1437  ;;  %3718 = vmatpush1.bf16.msra.mxu1 %v8220_v35  ;;  %v3209_v56 = vsel %vm1165_vm0, %v8252_v29, 0 }
 0x149   :  { %v1602_v42 = vrot.slane %v9790_v14, 4  ;;  %v1456_v31 = vrot.slane %v9792_v37, 4  ;;  %8284 = vmatprep.subr.msk.bf16.mxu1 %vm1165_vm0, %v8253_v8  ;;  %v8126_v51 = vcombine.low %v8419_v28, %v1192_v47  ;;  %v8127_v48 = vcombine.high %v8419_v28, %v1192_v47 }
 0x14b   :  { %v1630_v50 = vsel %vm1165_vm0, %v1601_v13, %v1602_v42  ;;  %v1484_v33 = vsel %vm1165_vm0, %v1455_v3, %v1456_v31  ;;  %3754 = vmatprep.subr.bf16.mxu0 %v8127_v48 }
 0x14c   :  { %v1631_v58 = vsel %vm1606_vm4, %v9727_v62, %v1630_v50  ;;  %v1485_v55 = vsel %vm13129_vm3, %v9729_v2, %v1484_v33  ;;  %v9808_v59 = vpop.permute.xlu1 %1875  ;;  %v9810_v49 = vpop.permute.xlu0 %1729  ;;  %3720 = vmatpush1.bf16.msra.mxu1 %v3209_v56  ;;  %3755 = vmatpush1.bf16.msra.mxu0 %v8126_v51  ;;  %v13133_v2 = vlaneseq }
 0x14d   :  { %v1894_v7 = vrot.slane %v9808_v59, 4  ;;  %v1748_v16 = vrot.slane %v9810_v49, 4  ;;  %v8158_v60 = vcombine.low %v1339_v30, %v1485_v55  ;;  %v8159_v6 = vcombine.high %v1339_v30, %v1485_v55 }
 0x14f   :  { %v1922_v9 = vsel %vm1165_vm0, %v1893_v11, %v1894_v7  ;;  %v1776_v62 = vsel %vm1165_vm0, %v1747_v25, %v1748_v16  ;;  %8285 = vmatmul.mubr.msk.bf16.vlgmr.msra.gmra.mrb[20].mxu1 %vm13131_vm9, %v9603_v57  ;;  %3756 = vmatprep.subr.bf16.mxu0 %v8159_v6 }
 0x150   :  { %v1923_v13 = vsel %vm1898_vm6, %v9745_v43, %v1922_v9  ;;  %v1777_v3 = vsel %vm1752_vm5, %v9747_v20, %v1776_v62  ;;  %v9826_v54 = vpop.permute.xlu1 %1145  ;;  %v9828_v0 = vpop.permute.xlu0 %2021  ;;  %3757 = vmatpush1.bf16.msra.mxu0 %v8158_v60  ;;  %3829 = vmatprep.mubr.bf16.mxu1 %v9210_v44  ;;  %v9840_v20 = vand.u32 127, %v13133_v2  ;;  %v9928_v9 = vld [vmem:[#allocation4] sm:$0xff] }
 0x151   :  { %v1163_v5 = vrot.slane %v9826_v54, 4  ;;  %v2040_v53 = vrot.slane %v9828_v0, 4  ;;  %v8190_v52 = vcombine.low %v1631_v58, %v1777_v3  ;;  %v8191_v21 = vcombine.high %v1631_v58, %v1777_v3 }
 0x152   :  { %v31_v26 = vadd.s32 256, %v9840_v20  ;;  %v9871_v40 = vand.u32 511, %v9840_v20 }
 0x153   :  { %v1193_v17 = vsel %vm1165_vm0, %v1162_v46, %v1163_v5  ;;  %v2068_v43 = vsel %vm1165_vm0, %v2039_v18, %v2040_v53  ;;  %3758 = vmatprep.subr.bf16.mxu0 %v8191_v21 }
 0x154   :  { %v1194_v44 = vsel %vm13130_vm1, %v1144_v32, %v1193_v17  ;;  %v2069_v11 = vsel %vm2044_vm7, %v9765_v38, %v2068_v43  ;;  %v9845_v25 = vpop.permute.xlu1 %1293  ;;  %v9847_v15 = vpop.permute.xlu0 %2167  ;;  %3759 = vmatpush1.bf16.msra.mxu0 %v8190_v52  ;;  %v9885_v39 = vand.u32 511, %v31_v26 }
 0x155   :  { %v1311_v23 = vrot.slane %v9845_v25, 4  ;;  %v2186_v19 = vrot.slane %v9847_v15, 4  ;;  %v8222_v4 = vcombine.low %v1923_v13, %v2069_v11  ;;  %v8223_v24 = vcombine.high %v1923_v13, %v2069_v11 }
 0x156   :  { %v8128_v18 = vcombine.low %v8420_v27, %v1194_v44  ;;  %v8129_v22 = vcombine.high %v8420_v27, %v1194_v44  ;;  %v9899_v50 = vmul.u32.u64.low 3817748708, %v9871_v40  ;;  %v9900_v33 = vmul.u32.u64.high 3817748708, %v9871_v40, %v9899_v50 }
 0x157   :  { %v1340_v38 = vsel %vm1165_vm0, %v1310_v61, %v1311_v23  ;;  %v2214_v36 = vsel %vm1165_vm0, %v2185_v12, %v2186_v19  ;;  %3760 = vmatprep.subr.bf16.mxu0 %v8223_v24  ;;  %v9915_v56 = vmul.u32.u64.low 3817748708, %v9885_v39  ;;  %v9916_v58 = vmul.u32.u64.high 3817748708, %v9885_v39, %v9915_v56 }
 0x158   :  { %v1341_v1 = vsel %vm1314_vm2, %v9777_v63, %v1340_v38  ;;  %v2215_v10 = vsel %vm13132_vm8, %v9763_v41, %v2214_v36  ;;  %v9864_v34 = vpop.permute.xlu1 %1585  ;;  %v9866_v32 = vpop.permute.xlu0 %1439  ;;  %3797 = vmatprep.subr.bf16.mxu1 %v8129_v22  ;;  %3761 = vmatpush1.bf16.msra.mxu0 %v8222_v4 }
 0x159   :  { %v1603_v61 = vrot.slane %v9864_v34, 4  ;;  %v1457_v46 = vrot.slane %v9866_v32, 4  ;;  %3798 = vmatpush1.bf16.msra.mxu1 %v8128_v18  ;;  %v8255_v12 = vcombine.high %v2215_v10, %v2215_v10  ;;  %v8254_v35 = vcombine.low %v2215_v10, %v2215_v10 }
 0x15b   :  { %v1632_v41 = vsel %vm1165_vm0, %v1602_v42, %v1603_v61  ;;  %v1486_v63 = vsel %vm1165_vm0, %v1456_v31, %v1457_v46  ;;  %8286 = vmatprep.subr.msk.bf16.mxu0 %vm1165_vm0, %v8255_v12  ;;  %v3215_v45 = vsel %vm1165_vm0, %v8254_v35, 0  ;;  %v30_v42 = vadd.s32 128, %v9840_v20 }
 0x15c   :  { %v1633_v8 = vsel %vm1606_vm4, %v9790_v14, %v1632_v41  ;;  %v1487_v29 = vsel %vm13129_vm3, %v9792_v37, %v1486_v63  ;;  %v9891_v30 = vpop.permute.xlu1 %1877  ;;  %v9893_v47 = vpop.permute.xlu0 %1731  ;;  %3763 = vmatpush1.bf16.msra.mxu0 %v3215_v45  ;;  %v483_v35 = vshrl.u32 %v9900_v33, 4  ;;  %v505_v45 = vshrl.u32 %v9916_v58, 4  ;;  %v8423_v58 = vld [vmem:[#allocation2 + $0x78] sm:$0xff] }
 0x15d   :  { %v1895_v31 = vrot.slane %v9891_v30, 4  ;;  %v1749_v28 = vrot.slane %v9893_v47, 4  ;;  %v8160_v51 = vcombine.low %v1341_v1, %v1487_v29  ;;  %v8161_v48 = vcombine.high %v1341_v1, %v1487_v29 }
 0x15f   :  { %v1924_v14 = vsel %vm1165_vm0, %v1894_v7, %v1895_v31  ;;  %v1778_v37 = vsel %vm1165_vm0, %v1748_v16, %v1749_v28  ;;  %8287 = vmatmul.mubr.msk.bf16.vlgmr.msra.gmra.mrb[24].mxu0 %vm13131_vm9, %v9603_v57  ;;  %3799 = vmatprep.subr.bf16.mxu1 %v8161_v48  ;;  %v9926_v16 = vand.u32 511, %v30_v42  ;;  %v33_v42 = vadd.s32 512, %v9840_v20 }
 0x160   :  { %v1925_v55 = vsel %vm1898_vm6, %v9808_v59, %v1924_v14  ;;  %v1779_v7 = vsel %vm1752_vm5, %v9810_v49, %v1778_v37  ;;  %v9922_v60 = vpop.permute.xlu1 %2169  ;;  %v9924_v6 = vpop.permute.xlu0 %2023  ;;  %3800 = vmatpush1.bf16.msra.mxu1 %v8160_v51  ;;  %3872 = vmatprep.mubr.bf16.mxu0 %v9928_v9  ;;  %v484_v48 = vmul.u32 18, %v483_v35  ;;  %v506_v14 = vmul.u32 18, %v505_v45 }
 0x161   :  { %v2187_v62 = vrot.slane %v9922_v60, 4  ;;  %v2041_v13 = vrot.slane %v9924_v6, 4  ;;  %v8192_v59 = vcombine.low %v1633_v8, %v1779_v7  ;;  %v8193_v3 = vcombine.high %v1633_v8, %v1779_v7 }
 0x162   :  { %v9992_v56 = vand.u32 511, %v33_v42  ;;  %v485_v7 = vsub.s32 %v9871_v40, %v484_v48 }
 0x163   :  { %v2216_v49 = vsel %vm1165_vm0, %v2186_v19, %v2187_v62  ;;  %v2070_v52 = vsel %vm1165_vm0, %v2040_v53, %v2041_v13  ;;  %3801 = vmatprep.subr.bf16.mxu1 %v8193_v3  ;;  %v9952_v19 = vmul.u32.u64.low 3817748708, %v9926_v16  ;;  %v9953_v4 = vmul.u32.u64.high 3817748708, %v9926_v16, %v9952_v19 }
 0x164   :  { %v2217_v21 = vsel %vm13132_vm8, %v9847_v15, %v2216_v49  ;;  %v2071_v17 = vsel %vm2044_vm7, %v9828_v0, %v2070_v52  ;;  %v1296_v44 = vpop.permute.xlu1 %1295  ;;  %v1148_v11 = vpop.permute.xlu0 %1147  ;;  %3802 = vmatpush1.bf16.msra.mxu1 %v8192_v59  ;;  %v507_v3 = vsub.s32 %v9885_v39, %v506_v14  ;;  %v34_v52 = vadd.s32 640, %v9840_v20 }
 0x165   :  { %v1312_v53 = vrot.slane %v1296_v44, 4  ;;  %v1164_v0 = vrot.slane %v1148_v11, 4  ;;  %v8224_v24 = vcombine.low %v1925_v55, %v2071_v17  ;;  %v8225_v27 = vcombine.high %v1925_v55, %v2071_v17 }
 0x166   :  { %v8257_v18 = vcombine.high %v2217_v21, %v2217_v21  ;;  %v8256_v22 = vcombine.low %v2217_v21, %v2217_v21  ;;  %v494_v37 = vshrl.u32 %v9953_v4, 4  ;;  %vm861_vm10 = vcmp.lt.s32.totalorder %v485_v7, 0 }
 0x167   :  { %v1342_v38 = vsel %vm1165_vm0, %v1311_v23, %v1312_v53  ;;  %v1344_v36 = vsel %vm1314_vm2, %v1296_v44, %v1312_v53  ;;  %v1195_v26 = vsel %vm1165_vm0, %v1163_v5, %v1164_v0  ;;  %v1197_v1 = vsel %vm13130_vm1, %v1148_v11, %v1164_v0  ;;  %3803 = vmatprep.subr.bf16.mxu1 %v8225_v27 }
 0x168   :  { %v1343_v10 = vsel %vm1314_vm2, %v9845_v25, %v1342_v38  ;;  %1378 = vst.msk [vmem:[#allocation2 + $0x178] sm:$0xff] %vm9947_vm12, %v1344_v36  ;;  %v1196_v12 = vsel %vm13130_vm1, %v9826_v54, %v1195_v26  ;;  %v1442_v23 = vpop.permute.xlu0 %1441  ;;  %3804 = vmatpush1.bf16.msra.mxu1 %v8224_v24  ;;  %v8422_v25 = vld [vmem:[#allocation2 + $0x70] sm:$0xff]  ;;  %v3221_v29 = vsel %vm1165_vm0, %v8256_v22, 0  ;;  %v495_v49 = vmul.u32 18, %v494_v37 }
 0x169   :  { %1232 = vst.msk [vmem:[#allocation2 + $0xf8] sm:$0xff] %vm9956_vm13, %v1197_v1  ;;  %v1458_v5 = vrot.slane %v1442_v23, 4  ;;  %8288 = vmatprep.subr.msk.bf16.mxu1 %vm1165_vm0, %v8257_v18  ;;  %v8130_v41 = vcombine.low %v8422_v25, %v1196_v12  ;;  %v8131_v63 = vcombine.high %v8422_v25, %v1196_v12  ;;  %vm829_vm2 = vcmp.ne.s32.totalorder %v485_v7, 0 }
 0x16a   :  { %v9999_v21 = vmul.u32.u64.low 3817748708, %v9992_v56  ;;  %v10000_v17 = vmul.u32.u64.high 3817748708, %v9992_v56, %v9999_v21  ;;  %vm831_vm11 = vcmp.ne.s32.totalorder %v507_v3, 0  ;;  %vm863_vm12 = vcmp.lt.s32.totalorder %v507_v3, 0  ;;  %vm10009_vm14 = vmand %vm861_vm10, %vm829_vm2 }
 0x16b   :  { %v1488_v54 = vsel %vm1165_vm0, %v1457_v46, %v1458_v5  ;;  %v1490_v8 = vsel %vm13129_vm3, %v1442_v23, %v1458_v5  ;;  %3840 = vmatprep.subr.bf16.mxu0 %v8131_v63  ;;  %v925_v11 = vadd.s32 18, %v485_v7  ;;  %v10007_v19 = vand.u32 511, %v34_v52 }
 0x16c   :  { %v1489_v51 = vsel %vm13129_vm3, %v9866_v32, %v1488_v54  ;;  %1524 = vst.msk [vmem:[#allocation2 + $0x1f8] sm:$0xff] %vm1523_vm15, %v1490_v8  ;;  %3806 = vmatpush1.bf16.msra.mxu1 %v3221_v29  ;;  %3841 = vmatpush1.bf16.msra.mxu0 %v8130_v41  ;;  %vm1668_vm13 = vcmask 891908   ;;  %v927_v53 = vadd.s32 18, %v507_v3  ;;  %v35_v15 = vadd.s32 768, %v9840_v20  ;;  %vm10014_vm15 = vmand %vm863_vm12, %vm831_vm11 }
 0x16d   :  { %v8162_v50 = vcombine.low %v1343_v10, %v1489_v51  ;;  %v8163_v33 = vcombine.high %v1343_v10, %v1489_v51  ;;  %vm1814_vm3 = vcmask 883716   ;;  %vm1960_vm1 = vcmask 752644   ;;  %vm1669_vm2 = vmor %vm1668_vm13, %vm1165_vm0 }
 0x16e   :  { %v957_v18 = vsel %vm10009_vm14, %v925_v11, %v485_v7  ;;  %v10026_v22 = vmul.u32.u64.low 3817748708, %v10007_v19  ;;  %v10027_v38 = vmul.u32.u64.high 3817748708, %v10007_v19, %v10026_v22  ;;  %v959_v36 = vsel %vm10014_vm15, %v927_v53, %v507_v3  ;;  %vm10051_vm11 = vmor %vm1814_vm3, %vm1165_vm0 }
 0x16f   :  { %8289 = vmatmul.mubr.msk.bf16.vlgmr.msra.gmra.mrb[24].mxu1 %vm13131_vm9, %v9603_v57  ;;  %3842 = vmatprep.subr.bf16.mxu0 %v8163_v33  ;;  %v2304_v59 = vld [vmem:[#allocation2 + $0x178] sm:$0xff]  ;;  %v527_v1 = vshrl.u32 %v10000_v17, 4  ;;  %v10035_v10 = vand.u32 511, %v35_v15  ;;  %vm2106_vm12 = vcmask 744452   ;;  %vm2252_vm13 = vcmask 736260  }
 0x170   :  { %v2288_v46 = vld [vmem:[#allocation2 + $0xf8] sm:$0xff]  ;;  %3843 = vmatpush1.bf16.msra.mxu0 %v8162_v50  ;;  %3915 = vmatprep.mubr.bf16.mxu1 %v9928_v9  ;;  %v10005_v9 = vsub.s32 %v9926_v16, %v495_v49  ;;  %vm10055_vm14 = vcmp.lt.s32.totalorder %v957_v18, 16  ;;  %vm447_vm3 = vcmp.lt.s32.totalorder %v9885_v39, 288  ;;  %vm10106_vm15 = vmor %vm2252_vm13, %vm1165_vm0 }
 0x171   :  { %v8132_v55 = vcombine.low %v8423_v58, %v2288_v46  ;;  %v8133_v32 = vcombine.high %v8423_v58, %v2288_v46  ;;  %v10074_v48 = vmul.u32 18, %v527_v1 }
 0x172   :  { %vm830_vm9 = vcmp.ne.s32.totalorder %v10005_v9, 0  ;;  %vm862_vm8 = vcmp.lt.s32.totalorder %v10005_v9, 0  ;;  %v10032_v26 = vadd.s32 18, %v10005_v9 }
 0x173   :  { %3883 = vmatprep.subr.bf16.mxu1 %v8133_v32  ;;  %v2320_v57 = vld [vmem:[#allocation2 + $0x1f8] sm:$0xff]  ;;  %vm10041_vm10 = vmand %vm862_vm8, %vm830_vm9  ;;  %vm10066_vm9 = vcmp.lt.s32.totalorder %v959_v36, 16  ;;  %v10077_v50 = vmul.u32.u64.low 3817748708, %v10035_v10  ;;  %v10078_v33 = vmul.u32.u64.high 3817748708, %v10035_v10, %v10077_v50 }
 0x174   :  { %3884 = vmatpush1.bf16.msra.mxu1 %v8132_v55  ;;  %v8164_v43 = vcombine.low %v2304_v59, %v2320_v57  ;;  %v8165_v44 = vcombine.high %v2304_v59, %v2320_v57  ;;  %vm10061_vm8 = vmor %vm1960_vm1, %vm1165_vm0  ;;  %v958_v51 = vsel %vm10041_vm10, %v10032_v26, %v10005_v9  ;;  %v538_v9 = vshrl.u32 %v10027_v38, 4 }
 0x175   :  { %v10002_v40 = vpop.permute.xlu1 %2405  ;;  %vm10090_vm1 = vmor %vm2106_vm12, %vm1165_vm0 }
 0x176   :  { %3885 = vmatprep.subr.bf16.mxu1 %v8165_v44  ;;  %v539_v25 = vmul.u32 18, %v538_v9 }
 0x178   :  { %3886 = vmatpush1.bf16.msra.mxu1 %v8164_v43 }
 0x179   :  { %v1588_v24 = vpop.permute.xlu1 %1587  ;;  %v10018_v16 = vpop.permute.xlu0 %2410 }
 0x17a   :  { %v1604_v27 = vrot.slane %v1588_v24, 4 }
 0x17c   :  { %v1634_v12 = vsel %vm1165_vm0, %v1603_v61, %v1604_v27  ;;  %v1636_v23 = vsel %vm1606_vm4, %v1588_v24, %v1604_v27 }
 0x17d   :  { %v10047_v5 = vsel %vm1606_vm4, %v9864_v34, %v1634_v12  ;;  %1670 = vst.msk [vmem:[#allocation2 + $0x278] sm:$0xff] %vm1669_vm2, %v1636_v23  ;;  %v1734_v41 = vpop.permute.xlu1 %1733  ;;  %v1880_v63 = vpop.permute.xlu0 %1879 }
 0x17e   :  { %v1750_v45 = vrot.slane %v1734_v41, 4  ;;  %v1896_v54 = vrot.slane %v1880_v63, 4 }
 0x17f   :  { %v3272_v29 = vpop.f32.mrb[0].mxu0  ;;  %v3315_v42 = vpop.f32.mrb[0].mxu1 }
 0x180   :  { %v1780_v14 = vsel %vm1165_vm0, %v1749_v28, %v1750_v45  ;;  %v1782_v37 = vsel %vm1752_vm5, %v1734_v41, %v1750_v45  ;;  %v1926_v46 = vsel %vm1165_vm0, %v1895_v31, %v1896_v54  ;;  %v1928_v58 = vsel %vm1898_vm6, %v1880_v63, %v1896_v54  ;;  %v3274_v32 = vpop.f32.mrb[1].mxu0  ;;  %v3317_v7 = vpop.f32.mrb[1].mxu1 }
 0x181   :  { %v1781_v59 = vsel %vm1752_vm5, %v9893_v47, %v1780_v14  ;;  %1816 = vst.msk [vmem:[#allocation2 + $0x2f8] sm:$0xff] %vm10051_vm11, %v1782_v37  ;;  %v10100_v28 = vsel %vm1898_vm6, %v9891_v30, %v1926_v46  ;;  %v2026_v31 = vpop.permute.xlu1 %2025  ;;  %v2172_v49 = vpop.permute.xlu0 %2171  ;;  %v3273_v47 = vadd.f32 %v3272_v29, %v10002_v40  ;;  %v3316_v52 = vadd.f32 %v3315_v42, %v10002_v40  ;;  %vm10116_vm5 = vmand %vm447_vm3, %vm10066_vm9 }
 0x182   :  { %1962 = vst.msk [vmem:[#allocation2 + $0x378] sm:$0xff] %vm10061_vm8, %v1928_v58  ;;  %v2042_v57 = vrot.slane %v2026_v31, 4  ;;  %v2188_v21 = vrot.slane %v2172_v49, 4  ;;  %v3275_v17 = vadd.f32 %v3274_v32, %v10002_v40  ;;  %v3276_v43 = vpop.f32.mrb[2].mxu0  ;;  %v3319_v44 = vpop.f32.mrb[2].mxu1  ;;  %vm13166_vm6 = vcmask 736256  }
 0x183   :  { %v3926_v11 = vmax.f32 %v3273_v47, 0.0  ;;  %v3928_v4 = vmax.f32 %v3316_v52, 0.0  ;;  %v3277_v53 = vadd.f32 %v3276_v43, %v10018_v16  ;;  %v3320_v15 = vadd.f32 %v3319_v44, %v10018_v16  ;;  %v3278_v0 = vpop.f32.mrb[3].mxu0  ;;  %v3321_v24 = vpop.f32.mrb[3].mxu1  ;;  %vm13167_vm2 = vmmov %vm13166_vm6 }
 0x184   :  { %v2072_v39 = vsel %vm1165_vm0, %v2041_v13, %v2042_v57  ;;  %v2074_v27 = vsel %vm2044_vm7, %v2026_v31, %v2042_v57  ;;  %v2218_v18 = vsel %vm1165_vm0, %v2187_v62, %v2188_v21  ;;  %v2220_v22 = vsel %vm13166_vm6, %v2172_v49, %v2188_v21  ;;  %v2336_v23 = vld [vmem:[#allocation2 + $0x278] sm:$0xff] }
 0x185   :  { %v2073_v38 = vsel %vm2044_vm7, %v9924_v6, %v2072_v39  ;;  %2108 = vst.msk [vmem:[#allocation2 + $0x3f8] sm:$0xff] %vm10090_vm1, %v2074_v27  ;;  %v10138_v36 = vsel %vm13167_vm2, %v9922_v60, %v2218_v18  ;;  %v4056_v13 = vsel %vm10116_vm5, %v3928_v4, 0.0  ;;  %v8194_v62 = vcombine.low %v10047_v5, %v1781_v59 }
 0x186   :  { %2254 = vst.msk [vmem:[#allocation2 + $0x478] sm:$0xff] %vm10106_vm15, %v2220_v22  ;;  %v3927_v26 = vmax.f32 %v3275_v17, 0.0  ;;  %v3958_v1 = vmax.f32 %v3277_v53, 0.0  ;;  %v3960_v12 = vmax.f32 %v3320_v15, 0.0  ;;  %v3279_v6 = vadd.f32 %v3278_v0, %v10018_v16  ;;  %v8424_v53 = vld [vmem:[%s13122_s1] sm:$0xff]  }
 0x187   :  { %v4054_v35 = vsel %vm10055_vm14, %v3926_v11, 0.0  ;;  %vm990_vm7 = vcmp.lt.s32.totalorder %v958_v51, 16  ;;  %v8195_v60 = vcombine.high %v10047_v5, %v1781_v59  ;;  %v8227_v54 = vcombine.high %v10100_v28, %v2073_v38 }
 0x188   :  { %v4086_v41 = vsel %vm10055_vm14, %v3958_v1, 0.0  ;;  %v4088_v63 = vsel %vm10116_vm5, %v3960_v12, 0.0  ;;  %v3959_v45 = vmax.f32 %v3279_v6, 0.0  ;;  %v2352_v34 = vld [vmem:[#allocation2 + $0x2f8] sm:$0xff]  ;;  %v4055_v51 = vsel %vm990_vm7, %v3927_v26, 0.0 }
 0x189   :  { %v10154_v8 = vpack.c.bf16 %v4086_v41, %v4054_v35  ;;  %v10156_v29 = vpack.c.bf16 %v4088_v63, %v4056_v13  ;;  %v8196_v42 = vcombine.low %v2336_v23, %v2352_v34  ;;  %v8197_v50 = vcombine.high %v2336_v23, %v2352_v34  ;;  %3844 = vmatprep.subr.bf16.mxu0 %v8195_v60  ;;  %v2368_v14 = vld [vmem:[#allocation2 + $0x378] sm:$0xff] }
 0x18a   :  { %v4087_v5 = vsel %vm990_vm7, %v3959_v45, 0.0  ;;  %3845 = vmatpush1.bf16.msra.mxu0 %v8194_v62  ;;  %v8226_v61 = vcombine.low %v10100_v28, %v2073_v38  ;;  %v529_v37 = vsub.s32 %v9992_v56, %v10074_v48  ;;  %v540_v58 = vsub.s32 %v10007_v19, %v539_v25 }
 0x18b   :  { %5118 = vst [vmem:[#allocation4 + $0x400] sm:$0xff] %v10154_v8  ;;  %5120 = vst [vmem:[#allocation4 + $0x410] sm:$0xff] %v10156_v29  ;;  %v10163_v46 = vpack.c.bf16 %v4087_v5, %v4055_v51  ;;  %3887 = vmatprep.subr.bf16.mxu1 %v8197_v50  ;;  %5218 = vrot.lane.b32.xlu0 %v10156_v29, %s8453_s30  ;;  %v8259_v32 = vcombine.high %v10138_v36, %v10138_v36  ;;  %v549_v48 = vshrl.u32 %v10078_v33, 4 }
 0x18c   :  { %3888 = vmatpush1.bf16.msra.mxu1 %v8196_v42  ;;  %v2384_v55 = vld [vmem:[#allocation2 + $0x3f8] sm:$0xff]  ;;  %3846 = vmatprep.subr.bf16.mxu0 %v8227_v54  ;;  %v8258_v56 = vcombine.low %v10138_v36, %v10138_v36  ;;  %vm833_vm10 = vcmp.ne.s32.totalorder %v529_v37, 0  ;;  %vm865_vm11 = vcmp.lt.s32.totalorder %v529_v37, 0  ;;  %vm834_vm12 = vcmp.ne.s32.totalorder %v540_v58, 0 }
 0x18d   :  { %v2400_v7 = vld [vmem:[#allocation2 + $0x478] sm:$0xff]  ;;  %5119 = vst [vmem:[#allocation4 + $0x408] sm:$0xff] %v10163_v46  ;;  %v8228_v59 = vcombine.low %v2368_v14, %v2384_v55  ;;  %v8229_v28 = vcombine.high %v2368_v14, %v2384_v55  ;;  %4250 = vrot.lane.b32.xlu1 %v10154_v8, %s8463_s2  ;;  %vm866_vm13 = vcmp.lt.s32.totalorder %v540_v58, 0  ;;  %v929_v33 = vadd.s32 18, %v529_v37  ;;  %vm10184_vm14 = vmand %vm865_vm11, %vm833_vm10 }
 0x18e   :  { %v8261_v19 = vcombine.high %v2400_v7, %v2400_v7  ;;  %v8260_v31 = vcombine.low %v2400_v7, %v2400_v7  ;;  %3847 = vmatpush1.bf16.msra.mxu0 %v8226_v61  ;;  %v550_v3 = vmul.u32 18, %v549_v48  ;;  %v3227_v47 = vsel %vm1165_vm0, %v8258_v56, 0  ;;  %vm10189_vm8 = vmand %vm866_vm13, %vm834_vm12 }
 0x18f   :  { %3889 = vmatprep.subr.bf16.mxu1 %v8229_v28  ;;  %8290 = vmatprep.subr.msk.bf16.mxu0 %vm1165_vm0, %v8259_v32  ;;  %v930_v57 = vadd.s32 18, %v540_v58  ;;  %v37_v21 = vadd.s32 1024, %v9840_v20  ;;  %v38_v17 = vadd.s32 1152, %v9840_v20  ;;  %v961_v44 = vsel %vm10184_vm14, %v929_v33, %v529_v37 }
 0x190   :  { %3890 = vmatpush1.bf16.msra.mxu1 %v8228_v59  ;;  %5438 = vrot.lane.b32.xlu0 %v10154_v8, %s8467_s16  ;;  %v3233_v49 = vsel %vm1165_vm0, %v8260_v31, 0  ;;  %v551_v4 = vsub.s32 %v10035_v10, %v550_v3  ;;  %vm993_vm9 = vcmp.lt.s32.totalorder %v961_v44, 16  ;;  %v39_v54 = vadd.s32 1280, %v9840_v20 }
 0x191   :  { %8292 = vmatprep.subr.msk.bf16.mxu1 %vm1165_vm0, %v8261_v19  ;;  %4254 = vrot.lane.b32.xlu1 %v10156_v29, %s8463_s2  ;;  %vm13172_vm0 = vcmask 588800   ;;  %v962_v15 = vsel %vm10189_vm8, %v930_v57, %v540_v58  ;;  %v121_v39 = vand.u32 511, %v37_v21  ;;  %v128_v38 = vand.u32 511, %v38_v17 }
 0x192   :  { %3849 = vmatpush1.bf16.msra.mxu0 %v3227_v47  ;;  %vm13173_vm3 = vmmov %vm13172_vm0  ;;  %vm994_vm1 = vcmp.lt.s32.totalorder %v962_v15, 16  ;;  %vm835_vm15 = vcmp.ne.s32.totalorder %v551_v4, 0  ;;  %vm867_vm5 = vcmp.lt.s32.totalorder %v551_v4, 0  ;;  %v931_v34 = vadd.s32 18, %v551_v4 }
 0x193   :  { %v3358_v43 = vpop.f32.mrb[4].mxu0  ;;  %v10216_v1 = vmul.u32.u64.low 3817748708, %v121_v39  ;;  %v10217_v12 = vmul.u32.u64.high 3817748708, %v121_v39, %v10216_v1  ;;  %v10219_v35 = vmul.u32.u64.low 3817748708, %v128_v38  ;;  %v10220_v60 = vmul.u32.u64.high 3817748708, %v128_v38, %v10219_v35  ;;  %vm899_vm6 = vmand %vm867_vm5, %vm835_vm15 }
 0x194   :  { %3892 = vmatpush1.bf16.msra.mxu1 %v3233_v49  ;;  %5667 = vrot.lane.b32.xlu0 %v10156_v29, %s8455_s11  ;;  %v3359_v9 = vadd.f32 %v3358_v43, %v10002_v40  ;;  %v3360_v11 = vpop.f32.mrb[5].mxu0  ;;  %v963_v42 = vsel %vm899_vm6, %v931_v34, %v551_v4  ;;  %v10236_v50 = vand.u32 511, %v39_v54  ;;  %vm451_vm2 = vcmp.lt.s32.totalorder %v10035_v10, 288 }
 0x195   :  { %8291 = vmatmul.mubr.msk.bf16.vlgmr.msra.gmra.mrb[28].mxu0 %vm13172_vm0, %v8424_v53  ;;  %4475 = vrot.lane.b32.xlu1 %v10154_v8, %s8464_s13  ;;  %v3361_v0 = vadd.f32 %v3360_v11, %v10002_v40  ;;  %v3362_v24 = vpop.f32.mrb[6].mxu0  ;;  %v571_v51 = vshrl.u32 %v10217_v12, 4  ;;  %v582_v14 = vshrl.u32 %v10220_v60, 4  ;;  %vm995_vm7 = vcmp.lt.s32.totalorder %v963_v42, 16 }
 0x196   :  { %v3930_v27 = vmax.f32 %v3359_v9, 0.0  ;;  %v3363_v18 = vadd.f32 %v3362_v24, %v10018_v16  ;;  %v3364_v22 = vpop.f32.mrb[7].mxu0  ;;  %v10247_v55 = vmul.u32.u64.low 3817748708, %v10236_v50  ;;  %v10248_v32 = vmul.u32.u64.high 3817748708, %v10236_v50, %v10247_v55  ;;  %vm1027_vm10 = vmand %vm451_vm2, %vm995_vm7 }
 0x197   :  { %8293 = vmatmul.mubr.msk.bf16.vlgmr.msra.gmra.mrb[28].mxu1 %vm13173_vm3, %v8424_v53  ;;  %v3931_v36 = vmax.f32 %v3361_v0, 0.0  ;;  %v3365_v13 = vadd.f32 %v3364_v22, %v10018_v16  ;;  %v572_v48 = vmul.u32 18, %v571_v51  ;;  %v583_v59 = vmul.u32 18, %v582_v14 }
 0x198   :  { %v3962_v62 = vmax.f32 %v3363_v18, 0.0  ;;  %5887 = vrot.lane.b32.xlu0 %v10154_v8, %s8456_s12  ;;  %v4058_v6 = vsel %vm993_vm9, %v3930_v27, 0.0  ;;  %v593_v47 = vshrl.u32 %v10248_v32, 4  ;;  %v41_v17 = vadd.s32 1536, %v9840_v20 }
 0x199   :  { %4479 = vrot.lane.b32.xlu1 %v10156_v29, %s8464_s13  ;;  %v3963_v26 = vmax.f32 %v3365_v13, 0.0  ;;  %v4059_v25 = vsel %vm994_vm1, %v3931_v36, 0.0  ;;  %v573_v33 = vsub.s32 %v121_v39, %v572_v48  ;;  %v584_v49 = vsub.s32 %v128_v38, %v583_v59  ;;  %v10293_v36 = vpop.permute.xlu0 %4256 }
 0x19a   :  { %v4090_v23 = vsel %vm993_vm9, %v3962_v62, 0.0  ;;  %v594_v30 = vmul.u32 18, %v593_v47  ;;  %v42_v44 = vadd.s32 1664, %v9840_v20  ;;  %v10288_v27 = vand.u32 511, %v41_v17 }
 0x19b   :  { %v10222_v41 = vpack.c.bf16 %v4090_v23, %v4058_v6  ;;  %v4091_v63 = vsel %vm994_vm1, %v3963_v26, 0.0  ;;  %vm837_vm11 = vcmp.ne.s32.totalorder %v573_v33, 0  ;;  %vm869_vm12 = vcmp.lt.s32.totalorder %v573_v33, 0 }
 0x19c   :  { %v10224_v45 = vpack.c.bf16 %v4091_v63, %v4059_v25  ;;  %4252 = vrot.lane.b32.xlu0 %v10163_v46, %s8463_s2  ;;  %vm838_vm13 = vcmp.ne.s32.totalorder %v584_v49, 0  ;;  %vm870_vm14 = vcmp.lt.s32.totalorder %v584_v49, 0  ;;  %v933_v52 = vadd.s32 18, %v573_v33  ;;  %vm10267_vm8 = vmand %vm869_vm12, %vm837_vm11 }
 0x19d   :  { %5122 = vst [vmem:[#allocation4 + $0x420] sm:$0xff] %v10222_v41  ;;  %4700 = vrot.lane.b32.xlu1 %v10154_v8, %s8465_s14  ;;  %v934_v21 = vadd.s32 18, %v584_v49  ;;  %vm10274_vm0 = vmand %vm870_vm14, %vm838_vm13  ;;  %v595_v39 = vsub.s32 %v10236_v50, %v594_v30  ;;  %v10295_v13 = vand.u32 511, %v42_v44  ;;  %v10314_v51 = vpop.permute.xlu0 %4481  ;;  %vm6381_vm6 = vcmask 130048  }
 0x19e   :  { %5123 = vst [vmem:[#allocation4 + $0x428] sm:$0xff] %v10224_v45  ;;  %v965_v11 = vsel %vm10267_vm8, %v933_v52, %v573_v33  ;;  %vm455_vm2 = vcmp.lt.s32.totalorder %v10236_v50, 288 }
 0x19f   :  { %v966_v15 = vsel %vm10274_vm0, %v934_v21, %v584_v49  ;;  %vm997_vm3 = vcmp.lt.s32.totalorder %v965_v11, 16  ;;  %vm839_vm1 = vcmp.ne.s32.totalorder %v595_v39, 0  ;;  %vm871_vm15 = vcmp.lt.s32.totalorder %v595_v39, 0 }
 0x1a0   :  { %4477 = vrot.lane.b32.xlu0 %v10163_v46, %s8464_s13  ;;  %vm998_vm9 = vcmp.lt.s32.totalorder %v966_v15, 16  ;;  %v10307_v60 = vmul.u32.u64.low 3817748708, %v10295_v13  ;;  %v10308_v25 = vmul.u32.u64.high 3817748708, %v10295_v13, %v10307_v60  ;;  %vm10324_vm5 = vmand %vm871_vm15, %vm839_vm1 }
 0x1a1   :  { %4704 = vrot.lane.b32.xlu1 %v10156_v29, %s8465_s14  ;;  %v10339_v55 = vpop.permute.xlu0 %4706 }
 0x1a2   :  { %v3401_v5 = vpop.f32.mrb[4].mxu1 }
 0x1a3   :  { %v3402_v61 = vadd.f32 %v3401_v5, %v10002_v40  ;;  %v3403_v37 = vpop.f32.mrb[5].mxu1  ;;  %v935_v5 = vadd.s32 18, %v595_v39 }
 0x1a4   :  { %4702 = vrot.lane.b32.xlu0 %v10163_v46, %s8465_s14  ;;  %v3405_v58 = vpop.f32.mrb[6].mxu1 }
 0x1a5   :  { %4925 = vrot.lane.b32.xlu1 %v10154_v8, %s8466_s15  ;;  %v3932_v7 = vmax.f32 %v3402_v61, 0.0  ;;  %v3406_v56 = vadd.f32 %v3405_v58, %v10018_v16  ;;  %v3407_v10 = vpop.f32.mrb[7].mxu1  ;;  %v8406_v61 = vld [vmem:[%s13124_s3 + $0x4] ss:$8 sps:$4 sm:$0xff]   ;;  %v967_v37 = vsel %vm10324_vm5, %v935_v5, %v595_v39  ;;  %v10356_v52 = vpop.permute.xlu0 %4931  ;;  %v46_v39 = vadd.s32 2176, %v9840_v20 }
 0x1a6   :  { %8298 = vmatprep.mubr.msk.bf16.mxu0 %vm6381_vm6, %v8406_v61  ;;  %8300 = vmatprep.mubr.msk.bf16.mxu1 %vm6381_vm6, %v8406_v61  ;;  %vm999_vm7 = vcmp.lt.s32.totalorder %v967_v37, 16 }
 0x1a7   :  { %v3964_v28 = vmax.f32 %v3406_v56, 0.0  ;;  %v4060_v19 = vsel %vm1027_vm10, %v3932_v7, 0.0  ;;  %v626_v56 = vshrl.u32 %v10308_v25, 4  ;;  %v10404_v60 = vand.u32 511, %v46_v39 }
 0x1a8   :  { %4927 = vrot.lane.b32.xlu0 %v10163_v46, %s8466_s15 }
 0x1a9   :  { %v4092_v31 = vsel %vm1027_vm10, %v3964_v28, 0.0  ;;  %4929 = vrot.lane.b32.xlu1 %v10156_v29, %s8466_s15  ;;  %vm1031_vm10 = vmand %vm455_vm2, %vm999_vm7  ;;  %v627_v49 = vmul.u32 18, %v626_v56 }
 0x1aa   :  { %v10257_v3 = vpack.c.bf16 %v4092_v31, %v4060_v19 }
 0x1ab   :  { %v628_v43 = vsub.s32 %v10295_v13, %v627_v49 }
 0x1ac   :  { %5124 = vst [vmem:[#allocation4 + $0x430] sm:$0xff] %v10257_v3  ;;  %5440 = vrot.lane.b32.xlu0 %v10163_v46, %s8467_s16 }
 0x1ad   :  { %5214 = vrot.lane.b32.xlu1 %v10154_v8, %s8453_s30  ;;  %vm842_vm13 = vcmp.ne.s32.totalorder %v628_v43, 0  ;;  %vm874_vm14 = vcmp.lt.s32.totalorder %v628_v43, 0 }
 0x1ae   :  { %vm10383_vm0 = vmand %vm874_vm14, %vm842_vm13 }
 0x1b0   :  { %5889 = vrot.lane.b32.xlu0 %v10163_v46, %s8456_s12 }
 0x1b1   :  { %5442 = vrot.lane.b32.xlu1 %v10156_v29, %s8467_s16 }
 0x1b2   :  { %v3444_v9 = vpop.f32.mrb[8].mxu0 }
 0x1b3   :  { %v3445_v4 = vadd.f32 %v3444_v9, %v10002_v40  ;;  %v3446_v53 = vpop.f32.mrb[9].mxu0  ;;  %v10372_v9 = vpop.permute.xlu0 %5444 }
 0x1b4   :  { %5222 = vrot.lane.b32.xlu0 %v10222_v41, %s8453_s30  ;;  %v3447_v0 = vadd.f32 %v3446_v53, %v10002_v40  ;;  %v3448_v24 = vpop.f32.mrb[10].mxu0  ;;  %v938_v53 = vadd.s32 18, %v628_v43 }
 0x1b5   :  { %5663 = vrot.lane.b32.xlu1 %v10154_v8, %s8455_s11  ;;  %v3934_v18 = vmax.f32 %v3445_v4, 0.0  ;;  %v3449_v22 = vadd.f32 %v3448_v24, %v10018_v16  ;;  %v3450_v38 = vpop.f32.mrb[11].mxu0  ;;  %v10301_v8 = vmul.u32.u64.low 3817748708, %v10288_v27  ;;  %v10302_v6 = vmul.u32.u64.high 3817748708, %v10288_v27, %v10301_v8 }
 0x1b6   :  { %v3935_v62 = vmax.f32 %v3447_v0, 0.0  ;;  %v3451_v26 = vadd.f32 %v3450_v38, %v10018_v16  ;;  %v45_v0 = vadd.s32 2048, %v9840_v20 }
 0x1b7   :  { %v3966_v1 = vmax.f32 %v3449_v22, 0.0  ;;  %v4062_v23 = vsel %vm997_vm3, %v3934_v18, 0.0  ;;  %v615_v32 = vshrl.u32 %v10302_v6, 4  ;;  %v10391_v13 = vpop.permute.xlu0 %5893 }
 0x1b8   :  { %5671 = vrot.lane.b32.xlu0 %v10222_v41, %s8455_s11  ;;  %v3967_v12 = vmax.f32 %v3451_v26, 0.0  ;;  %v4063_v63 = vsel %vm998_vm9, %v3935_v62, 0.0  ;;  %v970_v62 = vsel %vm10383_vm0, %v938_v53, %v628_v43  ;;  %v10399_v8 = vand.u32 511, %v45_v0 }
 0x1b9   :  { %v4094_v35 = vsel %vm997_vm3, %v3966_v1, 0.0  ;;  %5891 = vrot.lane.b32.xlu1 %v10156_v29, %s8456_s12  ;;  %v43_v29 = vadd.s32 1792, %v9840_v20  ;;  %v616_v33 = vmul.u32 18, %v615_v32 }
 0x1ba   :  { %v10310_v34 = vpack.c.bf16 %v4094_v35, %v4062_v23  ;;  %v4095_v54 = vsel %vm998_vm9, %v3967_v12, 0.0  ;;  %vm1002_vm9 = vcmp.lt.s32.totalorder %v970_v62, 16 }
 0x1bb   :  { %v10312_v42 = vpack.c.bf16 %v4095_v54, %v4063_v63  ;;  %v10335_v58 = vand.u32 511, %v43_v29  ;;  %v617_v30 = vsub.s32 %v10288_v27, %v616_v33  ;;  %v10415_v32 = vpop.permute.xlu0 %4264 }
 0x1bc   :  { %5126 = vst [vmem:[#allocation4 + $0x440] sm:$0xff] %v10310_v34  ;;  %5226 = vrot.lane.b32.xlu0 %v10257_v3, %s8453_s30  ;;  %v10410_v29 = vmul.u32.u64.low 3817748708, %v10399_v8  ;;  %v10411_v14 = vmul.u32.u64.high 3817748708, %v10399_v8, %v10410_v29 }
 0x1bd   :  { %5127 = vst [vmem:[#allocation4 + $0x448] sm:$0xff] %v10312_v42  ;;  %5216 = vrot.lane.b32.xlu1 %v10163_v46, %s8453_s30  ;;  %v10350_v59 = vmul.u32.u64.low 3817748708, %v10335_v58  ;;  %v10351_v28 = vmul.u32.u64.high 3817748708, %v10335_v58, %v10350_v59  ;;  %vm841_vm11 = vcmp.ne.s32.totalorder %v617_v30, 0  ;;  %vm873_vm12 = vcmp.lt.s32.totalorder %v617_v30, 0 }
 0x1be   :  { %v937_v11 = vadd.s32 18, %v617_v30  ;;  %vm10376_vm8 = vmand %vm873_vm12, %vm841_vm11  ;;  %v659_v49 = vshrl.u32 %v10411_v14, 4  ;;  %vm459_vm2 = vcmp.lt.s32.totalorder %v10335_v58, 288 }
 0x1bf   :  { %v637_v44 = vshrl.u32 %v10351_v28, 4  ;;  %v10425_v28 = vpop.permute.xlu1 %5220  ;;  %v10435_v33 = vpop.permute.xlu0 %4489 }
 0x1c0   :  { %5450 = vrot.lane.b32.xlu0 %v10257_v3, %s8467_s16  ;;  %v969_v18 = vsel %vm10376_vm8, %v937_v11, %v617_v30  ;;  %v660_v4 = vmul.u32 18, %v659_v49 }
 0x1c1   :  { %5665 = vrot.lane.b32.xlu1 %v10163_v46, %s8455_s11  ;;  %v638_v15 = vmul.u32 18, %v637_v44  ;;  %vm1001_vm3 = vcmp.lt.s32.totalorder %v969_v18, 16 }
 0x1c2   :  { %v3487_v7 = vpop.f32.mrb[8].mxu1  ;;  %v661_v62 = vsub.s32 %v10399_v8, %v660_v4 }
 0x1c3   :  { %v3488_v48 = vadd.f32 %v3487_v7, %v10002_v40  ;;  %v3489_v10 = vpop.f32.mrb[9].mxu1  ;;  %v639_v12 = vsub.s32 %v10335_v58, %v638_v15  ;;  %v10418_v7 = vmul.u32.u64.low 3817748708, %v10404_v60  ;;  %v10419_v56 = vmul.u32.u64.high 3817748708, %v10404_v60, %v10418_v7  ;;  %v10454_v0 = vpop.permute.xlu0 %4714 }
 0x1c4   :  { %5675 = vrot.lane.b32.xlu0 %v10257_v3, %s8455_s11  ;;  %v3491_v46 = vpop.f32.mrb[10].mxu1  ;;  %vm845_vm11 = vcmp.ne.s32.totalorder %v661_v62, 0  ;;  %vm877_vm12 = vcmp.lt.s32.totalorder %v661_v62, 0  ;;  %v941_v8 = vadd.s32 18, %v661_v62 }
 0x1c5   :  { %5446 = vrot.lane.b32.xlu1 %v10222_v41, %s8467_s16  ;;  %v3936_v19 = vmax.f32 %v3488_v48, 0.0  ;;  %v3492_v31 = vadd.f32 %v3491_v46, %v10018_v16  ;;  %v3493_v50 = vpop.f32.mrb[11].mxu1  ;;  %vm843_vm1 = vcmp.ne.s32.totalorder %v639_v12, 0  ;;  %vm875_vm15 = vcmp.lt.s32.totalorder %v639_v12, 0  ;;  %vm10483_vm8 = vmand %vm877_vm12, %vm845_vm11 }
 0x1c6   :  { %vm907_vm5 = vmand %vm875_vm15, %vm843_vm1  ;;  %v670_v30 = vshrl.u32 %v10419_v56, 4 }
 0x1c7   :  { %v3968_v47 = vmax.f32 %v3492_v31, 0.0  ;;  %v4064_v57 = vsel %vm1031_vm10, %v3936_v19, 0.0  ;;  %v939_v19 = vadd.s32 18, %v639_v12  ;;  %v47_v31 = vadd.s32 2304, %v9840_v20 }
 0x1c8   :  { %5899 = vrot.lane.b32.xlu0 %v10257_v3, %s8456_s12 }
 0x1c9   :  { %v4096_v21 = vsel %vm1031_vm10, %v3968_v47, 0.0  ;;  %5895 = vrot.lane.b32.xlu1 %v10222_v41, %s8456_s12  ;;  %v971_v50 = vsel %vm907_vm5, %v939_v19, %v639_v12  ;;  %v10442_v47 = vpop.permute.xlu1 %5669  ;;  %v10470_v12 = vpop.permute.xlu0 %4939  ;;  %vm4378_vm5 = vcmask 1047704  }
 0x1ca   :  { %v10363_v17 = vpack.c.bf16 %v4096_v21, %v4064_v57  ;;  %v10444_v57 = vand.u32 511, %v47_v31  ;;  %vm1003_vm7 = vcmp.lt.s32.totalorder %v971_v50, 16 }
 0x1cb   :  { %vm1035_vm10 = vmand %vm459_vm2, %vm1003_vm7  ;;  %vm13190_vm7 = vcmask 1039360  }
 0x1cc   :  { %5128 = vst [vmem:[#allocation4 + $0x450] sm:$0xff] %v10363_v17  ;;  %4260 = vrot.lane.b32.xlu0 %v10224_v45, %s8463_s2  ;;  %v10457_v58 = vmul.u32.u64.low 3817748708, %v10444_v57  ;;  %v10458_v39 = vmul.u32.u64.high 3817748708, %v10444_v57, %v10457_v58  ;;  %vm463_vm11 = vcmp.lt.s32.totalorder %v10444_v57, 288 }
 0x1cd   :  { %4258 = vrot.lane.b32.xlu1 %v10222_v41, %s8463_s2 }
 0x1d0   :  { %4485 = vrot.lane.b32.xlu0 %v10224_v45, %s8464_s13 }
 0x1d1   :  { %4262 = vrot.lane.b32.xlu1 %v10257_v3, %s8463_s2 }
 0x1d2   :  { %v3530_v27 = vpop.f32.mrb[12].mxu0 }
 0x1d3   :  { %v3531_v22 = vadd.f32 %v3530_v27, %v10002_v40  ;;  %v3532_v38 = vpop.f32.mrb[13].mxu0  ;;  %v671_v27 = vmul.u32 18, %v670_v30 }
 0x1d4   :  { %4710 = vrot.lane.b32.xlu0 %v10224_v45, %s8465_s14  ;;  %v3533_v26 = vadd.f32 %v3532_v38, %v10002_v40  ;;  %v3534_v1 = vpop.f32.mrb[14].mxu0 }
 0x1d5   :  { %4483 = vrot.lane.b32.xlu1 %v10222_v41, %s8464_s13  ;;  %v3938_v6 = vmax.f32 %v3531_v22, 0.0  ;;  %v3535_v23 = vadd.f32 %v3534_v1, %v10018_v16  ;;  %v3536_v35 = vpop.f32.mrb[15].mxu0  ;;  %v10460_v22 = vpop.permute.xlu1 %5228  ;;  %v672_v1 = vsub.s32 %v10404_v60, %v671_v27 }
 0x1d6   :  { %v3939_v25 = vmax.f32 %v3533_v26, 0.0  ;;  %v3537_v63 = vadd.f32 %v3536_v35, %v10018_v16  ;;  %v51_v35 = vadd.s32 2816, %v9840_v20 }
 0x1d7   :  { %v3970_v54 = vmax.f32 %v3535_v23, 0.0  ;;  %v4066_v61 = vsel %vm1001_vm3, %v3938_v6, 0.0  ;;  %vm846_vm13 = vcmp.ne.s32.totalorder %v672_v1, 0  ;;  %vm878_vm14 = vcmp.lt.s32.totalorder %v672_v1, 0 }
 0x1d8   :  { %4935 = vrot.lane.b32.xlu0 %v10224_v45, %s8466_s15  ;;  %v3971_v5 = vmax.f32 %v3537_v63, 0.0  ;;  %v4067_v48 = vsel %vm1002_vm9, %v3939_v25, 0.0  ;;  %v49_v23 = vadd.s32 2560, %v9840_v20  ;;  %v942_v60 = vadd.s32 18, %v672_v1  ;;  %v10490_v63 = vpop.permute.xlu0 %4272  ;;  %vm10492_vm0 = vmand %vm878_vm14, %vm846_vm13 }
 0x1d9   :  { %v4098_v37 = vsel %vm1001_vm3, %v3970_v54, 0.0  ;;  %4487 = vrot.lane.b32.xlu1 %v10257_v3, %s8464_s13  ;;  %v10477_v6 = vpop.permute.xlu1 %5452  ;;  %v50_v25 = vadd.s32 2688, %v9840_v20  ;;  %vm4603_vm13 = vcmask 1047696  }
 0x1da   :  { %v10421_v10 = vpack.c.bf16 %v4098_v37, %v4066_v61  ;;  %v4099_v46 = vsel %vm1002_vm9, %v3971_v5, 0.0  ;;  %v973_v61 = vsel %vm10483_vm8, %v941_v8, %v661_v62  ;;  %v10501_v56 = vand.u32 511, %v49_v23 }
 0x1db   :  { %v10423_v59 = vpack.c.bf16 %v4099_v46, %v4067_v48  ;;  %v974_v48 = vsel %vm10492_vm0, %v942_v60, %v672_v1  ;;  %v10508_v31 = vand.u32 511, %v50_v25  ;;  %vm1005_vm3 = vcmp.lt.s32.totalorder %v973_v61, 16 }
 0x1dc   :  { %5130 = vst [vmem:[#allocation4 + $0x460] sm:$0xff] %v10421_v10  ;;  %5230 = vrot.lane.b32.xlu0 %v10310_v34, %s8453_s30  ;;  %vm1006_vm9 = vcmp.lt.s32.totalorder %v974_v48, 16  ;;  %v10515_v4 = vpop.permute.xlu0 %4497  ;;  %v10561_v61 = vand.u32 511, %v51_v35  ;;  %vm13193_vm8 = vcmask 900096   ;;  %vm4539_vm0 = vcmask 146432  }
 0x1dd   :  { %5131 = vst [vmem:[#allocation4 + $0x468] sm:$0xff] %v10423_v59  ;;  %4708 = vrot.lane.b32.xlu1 %v10222_v41, %s8465_s14  ;;  %v10496_v14 = vpop.permute.xlu1 %5677 }
 0x1e0   :  { %5454 = vrot.lane.b32.xlu0 %v10310_v34, %s8467_s16 }
 0x1e1   :  { %4712 = vrot.lane.b32.xlu1 %v10257_v3, %s8465_s14 }
 0x1e2   :  { %v3573_v21 = vpop.f32.mrb[12].mxu1 }
 0x1e3   :  { %v3574_v43 = vadd.f32 %v3573_v21, %v10002_v40  ;;  %v3575_v44 = vpop.f32.mrb[13].mxu1 }
 0x1e4   :  { %5679 = vrot.lane.b32.xlu0 %v10310_v34, %s8455_s11  ;;  %v3577_v11 = vpop.f32.mrb[14].mxu1 }
 0x1e5   :  { %4933 = vrot.lane.b32.xlu1 %v10222_v41, %s8466_s15  ;;  %v3940_v53 = vmax.f32 %v3574_v43, 0.0  ;;  %v3578_v15 = vadd.f32 %v3577_v11, %v10018_v16  ;;  %v3579_v24 = vpop.f32.mrb[15].mxu1 }
 0x1e6   :  { %v10521_v24 = vld [vmem:[#allocation4 + $0x418] sm:$0xff] }
 0x1e7   :  { %v3972_v18 = vmax.f32 %v3578_v15, 0.0  ;;  %v4068_v38 = vsel %vm1035_vm10, %v3940_v53, 0.0  ;;  %v10518_v53 = vmul.u32.u64.low 3817748708, %v10501_v56  ;;  %v10519_v15 = vmul.u32.u64.high 3817748708, %v10501_v56, %v10518_v53 }
 0x1e8   :  { %5903 = vrot.lane.b32.xlu0 %v10310_v34, %s8456_s12 }
 0x1e9   :  { %v4100_v41 = vsel %vm1035_vm10, %v3972_v18, 0.0  ;;  %4937 = vrot.lane.b32.xlu1 %v10257_v3, %s8466_s15  ;;  %v681_v3 = vshrl.u32 %v10458_v39, 4  ;;  %v10526_v39 = vmul.u32.u64.low 3817748708, %v10508_v31  ;;  %v10527_v27 = vmul.u32.u64.high 3817748708, %v10508_v31, %v10526_v39 }
 0x1ea   :  { %v10467_v26 = vpack.c.bf16 %v4100_v41, %v4068_v38  ;;  %v10531_v41 = vpop.permute.xlu1 %5901  ;;  %vm4314_vm10 = vcmask 154624  }
 0x1eb   :  { %v682_v5 = vmul.u32 18, %v681_v3 }
 0x1ec   :  { %5132 = vst [vmem:[#allocation4 + $0x470] sm:$0xff] %v10467_v26  ;;  %4268 = vrot.lane.b32.xlu0 %v10312_v42, %s8463_s2 }
 0x1ed   :  { %5224 = vrot.lane.b32.xlu1 %v10224_v45, %s8453_s30  ;;  %v683_v30 = vsub.s32 %v10444_v57, %v682_v5 }
 0x1ef   :  { %vm847_vm1 = vcmp.ne.s32.totalorder %v683_v30, 0  ;;  %vm879_vm15 = vcmp.lt.s32.totalorder %v683_v30, 0  ;;  %v943_v23 = vadd.s32 18, %v683_v30 }
 0x1f0   :  { %4493 = vrot.lane.b32.xlu0 %v10312_v42, %s8464_s13  ;;  %vm10547_vm2 = vmand %vm879_vm15, %vm847_vm1  ;;  %vm4828_vm1 = vcmask 1047688  }
 0x1f1   :  { %5448 = vrot.lane.b32.xlu1 %v10224_v45, %s8467_s16  ;;  %v975_v5 = vsel %vm10547_vm2, %v943_v23, %v683_v30 }
 0x1f2   :  { %v3616_v29 = vpop.f32.mrb[16].mxu0  ;;  %vm10569_vm12 = vcmp.lt.s32.totalorder %v975_v5, 16 }
 0x1f3   :  { %v3617_v37 = vadd.f32 %v3616_v29, %v10002_v40  ;;  %v3618_v7 = vpop.f32.mrb[17].mxu0  ;;  %v703_v29 = vshrl.u32 %v10519_v15, 4  ;;  %vm1039_vm14 = vmand %vm463_vm11, %vm10569_vm12  ;;  %vm4764_vm11 = vcmask 138240   ;;  %vm5053_vm12 = vcmask 1047560  }
 0x1f4   :  { %4718 = vrot.lane.b32.xlu0 %v10312_v42, %s8465_s14  ;;  %v3619_v46 = vadd.f32 %v3618_v7, %v10002_v40  ;;  %v3620_v19 = vpop.f32.mrb[18].mxu0 }
 0x1f5   :  { %5673 = vrot.lane.b32.xlu1 %v10224_v45, %s8455_s11  ;;  %v3942_v50 = vmax.f32 %v3617_v37, 0.0  ;;  %v3621_v49 = vadd.f32 %v3620_v19, %v10018_v16  ;;  %v3622_v21 = vpop.f32.mrb[19].mxu0  ;;  %v714_v37 = vshrl.u32 %v10527_v27, 4 }
 0x1f6   :  { %v3943_v43 = vmax.f32 %v3619_v46, 0.0  ;;  %v3623_v44 = vadd.f32 %v3622_v21, %v10018_v16 }
 0x1f7   :  { %v3974_v11 = vmax.f32 %v3621_v49, 0.0  ;;  %v4070_v18 = vsel %vm1005_vm3, %v3942_v50, 0.0 }
 0x1f8   :  { %4722 = vrot.lane.b32.xlu0 %v10521_v24, %s8465_s14  ;;  %v3975_v58 = vmax.f32 %v3623_v44, 0.0  ;;  %v4071_v62 = vsel %vm1006_vm9, %v3943_v43, 0.0  ;;  %v704_v43 = vmul.u32 18, %v703_v29 }
 0x1f9   :  { %v4102_v38 = vsel %vm1005_vm3, %v3974_v11, 0.0  ;;  %5897 = vrot.lane.b32.xlu1 %v10224_v45, %s8456_s12  ;;  %v10579_v44 = vmul.u32.u64.low 3817748708, %v10561_v61  ;;  %v10580_v11 = vmul.u32.u64.high 3817748708, %v10561_v61, %v10579_v44 }
 0x1fa   :  { %v10533_v1 = vpack.c.bf16 %v4102_v38, %v4070_v18  ;;  %v4103_v3 = vsel %vm1006_vm9, %v3975_v58, 0.0  ;;  %v715_v58 = vmul.u32 18, %v714_v37 }
 0x1fb   :  { %v10535_v8 = vpack.c.bf16 %v4103_v3, %v4071_v62  ;;  %v10599_v3 = vsub.s32 %v10501_v56, %v704_v43  ;;  %v725_v56 = vshrl.u32 %v10580_v11, 4  ;;  %v54_v11 = vadd.s32 3200, %v9840_v20 }
 0x1fc   :  { %5134 = vst [vmem:[#allocation4 + $0x480] sm:$0xff] %v10533_v1  ;;  %4943 = vrot.lane.b32.xlu0 %v10312_v42, %s8466_s15  ;;  %v10604_v57 = vsub.s32 %v10508_v31, %v715_v58 }
 0x1fd   :  { %5135 = vst [vmem:[#allocation4 + $0x488] sm:$0xff] %v10535_v8  ;;  %4266 = vrot.lane.b32.xlu1 %v10310_v34, %s8463_s2  ;;  %v10544_v45 = vpop.permute.xlu0 %5218  ;;  %vm849_vm3 = vcmp.ne.s32.totalorder %v10599_v3, 0  ;;  %vm881_vm9 = vcmp.lt.s32.totalorder %v10599_v3, 0  ;;  %v726_v44 = vmul.u32 18, %v725_v56 }
 0x1fe   :  { %v10554_v25 = vsel %vm13190_vm7, %v10544_v45, %v10425_v28  ;;  %vm850_vm15 = vcmp.ne.s32.totalorder %v10604_v57, 0  ;;  %vm10622_vm2 = vmand %vm881_vm9, %vm849_vm3 }
 0x1ff   :  { %v4251_v54 = vpop.permute.xlu1 %4250 }
 0x200   :  { %4379 = vst.msk [vmem:[#allocation4] sm:$0xff] %vm4378_vm5, %v4251_v54  ;;  %4947 = vrot.lane.b32.xlu0 %v10521_v24, %s8466_s15  ;;  %vm882_vm5 = vcmp.lt.s32.totalorder %v10604_v57, 0 }
 0x201   :  { %4270 = vrot.lane.b32.xlu1 %v10363_v17, %s8463_s2  ;;  %vm10629_vm7 = vmand %vm882_vm5, %vm850_vm15  ;;  %vm467_vm5 = vcmp.lt.s32.totalorder %v10561_v61, 288 }
 0x202   :  { %v10566_v7 = vpop.permute.xlu0 %5438  ;;  %v3659_v48 = vpop.f32.mrb[16].mxu1 }
 0x203   :  { %v4255_v46 = vpop.permute.xlu1 %4254  ;;  %v3660_v50 = vadd.f32 %v3659_v48, %v10002_v40  ;;  %v3661_v49 = vpop.f32.mrb[17].mxu1  ;;  %v945_v48 = vadd.s32 18, %v10599_v3 }
 0x204   :  { %v4317_v21 = vsel %vm4314_vm10, %v4255_v46, %v10293_v36  ;;  %5234 = vrot.lane.b32.xlu0 %v10363_v17, %s8453_s30  ;;  %v3663_v30 = vpop.f32.mrb[18].mxu1 }
 0x205   :  { %4491 = vrot.lane.b32.xlu1 %v10310_v34, %s8464_s13  ;;  %v3944_v53 = vmax.f32 %v3660_v50, 0.0  ;;  %v3664_v15 = vadd.f32 %v3663_v30, %v10018_v16  ;;  %6441 = vmatprep.subr.bf16.mxu1 %v4317_v21  ;;  %v3665_v39 = vpop.f32.mrb[19].mxu1  ;;  %v946_v30 = vadd.s32 18, %v10604_v57  ;;  %v10659_v21 = vand.u32 511, %v54_v11 }
 0x206   :  { %v10589_v27 = vpop.permute.xlu0 %5667 }
 0x207   :  { %v10594_v18 = vsel %vm13193_vm8, %v10589_v27, %v10442_v47  ;;  %v4476_v38 = vpop.permute.xlu1 %4475  ;;  %v3976_v62 = vmax.f32 %v3664_v15, 0.0  ;;  %v4072_v23 = vsel %vm1039_vm14, %v3944_v53, 0.0  ;;  %v977_v15 = vsel %vm10622_vm2, %v945_v48, %v10599_v3 }
 0x208   :  { %4604 = vst.msk [vmem:[#allocation4 + $0x100] sm:$0xff] %vm4603_vm13, %v4476_v38  ;;  %5238 = vrot.lane.b32.xlu0 %v10421_v10, %s8453_s30  ;;  %vm10661_vm13 = vcmp.lt.s32.totalorder %v977_v15, 16 }
 0x209   :  { %v4104_v35 = vsel %vm1039_vm14, %v3976_v62, 0.0  ;;  %4495 = vrot.lane.b32.xlu1 %v10363_v17, %s8464_s13  ;;  %vm4989_vm14 = vcmask 7168  }
 0x20a   :  { %v4136_v60 = vpack.c.bf16 %v4104_v35, %v4072_v23  ;;  %v10606_v5 = vpop.permute.xlu0 %5887 }
 0x20b   :  { %v4480_v29 = vpop.permute.xlu1 %4479 }
 0x20c   :  { %5136 = vst [vmem:[#allocation4 + $0x490] sm:$0xff] %v4136_v60  ;;  %v4542_v37 = vsel %vm4539_vm0, %v4480_v29, %v10314_v51  ;;  %5458 = vrot.lane.b32.xlu0 %v10363_v17, %s8467_s16  ;;  %v978_v60 = vsel %vm10629_vm7, %v946_v30, %v10604_v57 }
 0x20d   :  { %4716 = vrot.lane.b32.xlu1 %v10310_v34, %s8465_s14  ;;  %vm10668_vm8 = vcmp.lt.s32.totalorder %v978_v60, 16 }
 0x20e   :  { %v4253_v31 = vpop.permute.xlu0 %4252 }
 0x20f   :  { %v4315_v19 = vsel %vm4314_vm10, %v4251_v54, %v4253_v31  ;;  %v4316_v50 = vsel %vm4314_vm10, %v4253_v31, %v4255_v46  ;;  %v4701_v49 = vpop.permute.xlu1 %4700  ;;  %v53_v54 = vadd.s32 3072, %v9840_v20  ;;  %v6051_v46 = vld [vmem:[#allocation4] sm:$0xff] }
 0x210   :  { %4829 = vst.msk [vmem:[#allocation4 + $0x200] sm:$0xff] %vm4828_vm1, %v4701_v49  ;;  %5462 = vrot.lane.b32.xlu0 %v10421_v10, %s8467_s16  ;;  %6388 = vmatprep.subr.bf16.mxu0 %v4315_v19  ;;  %vm5502_vm1 = vcmask 908288  }
 0x211   :  { %4720 = vrot.lane.b32.xlu1 %v10363_v17, %s8465_s14  ;;  %6442 = vmatpush1.bf16.msra.mxu1 %v4316_v50  ;;  %v6083_v50 = vld [vmem:[#allocation4 + $0x100] sm:$0xff] }
 0x212   :  { %v4478_v53 = vpop.permute.xlu0 %4477  ;;  %v3702_v58 = vpop.f32.mrb[20].mxu0  ;;  %6389 = vmatpush1.bf16.msra.mxu0 %v6051_v46  ;;  %6443 = vmatprep.subr.bf16.mxu1 %v4542_v37 }
 0x213   :  { %v4540_v39 = vsel %vm4539_vm0, %v4476_v38, %v4478_v53  ;;  %v4541_v62 = vsel %vm4539_vm0, %v4478_v53, %v4480_v29  ;;  %v4705_v23 = vpop.permute.xlu1 %4704  ;;  %v3703_v35 = vadd.f32 %v3702_v58, %v10002_v40  ;;  %v3704_v56 = vpop.f32.mrb[21].mxu0  ;;  %v10652_v38 = vsub.s32 %v10561_v61, %v726_v44 }
 0x214   :  { %v4767_v31 = vsel %vm4764_vm11, %v4705_v23, %v10339_v55  ;;  %5683 = vrot.lane.b32.xlu0 %v10363_v17, %s8455_s11  ;;  %v3705_v3 = vadd.f32 %v3704_v56, %v10002_v40  ;;  %v3706_v37 = vpop.f32.mrb[22].mxu0  ;;  %6390 = vmatprep.subr.bf16.mxu0 %v4540_v39  ;;  %v10654_v29 = vand.u32 511, %v53_v54 }
 0x215   :  { %4941 = vrot.lane.b32.xlu1 %v10310_v34, %s8466_s15  ;;  %v3946_v57 = vmax.f32 %v3703_v35, 0.0  ;;  %v3707_v48 = vadd.f32 %v3706_v37, %v10018_v16  ;;  %v3708_v19 = vpop.f32.mrb[23].mxu0  ;;  %6444 = vmatpush1.bf16.msra.mxu1 %v4541_v62  ;;  %vm851_vm3 = vcmp.ne.s32.totalorder %v10652_v38, 0  ;;  %vm883_vm9 = vcmp.lt.s32.totalorder %v10652_v38, 0 }
 0x216   :  { %v4703_v43 = vpop.permute.xlu0 %4702  ;;  %v3947_v44 = vmax.f32 %v3705_v3, 0.0  ;;  %v3709_v54 = vadd.f32 %v3708_v19, %v10018_v16  ;;  %6391 = vmatpush1.bf16.msra.mxu0 %v6083_v50  ;;  %6445 = vmatprep.subr.bf16.mxu1 %v4767_v31  ;;  %v10687_v60 = vmul.u32.u64.low 3817748708, %v10659_v21  ;;  %v10688_v56 = vmul.u32.u64.high 3817748708, %v10659_v21, %v10687_v60  ;;  %vm10711_vm15 = vmand %vm883_vm9, %vm851_vm3 }
 0x217   :  { %v4765_v34 = vsel %vm4764_vm11, %v4701_v49, %v4703_v43  ;;  %v4766_v46 = vsel %vm4764_vm11, %v4703_v43, %v4705_v23  ;;  %v4926_v53 = vpop.permute.xlu1 %4925  ;;  %v3978_v11 = vmax.f32 %v3707_v48, 0.0  ;;  %v4074_v62 = vsel %vm10661_vm13, %v3946_v57, 0.0  ;;  %v6115_v35 = vld [vmem:[#allocation4 + $0x200] sm:$0xff] }
 0x218   :  { %5054 = vst.msk [vmem:[#allocation4 + $0x300] sm:$0xff] %vm5053_vm12, %v4926_v53  ;;  %5687 = vrot.lane.b32.xlu0 %v10421_v10, %s8455_s11  ;;  %v3979_v15 = vmax.f32 %v3709_v54, 0.0  ;;  %6392 = vmatprep.subr.bf16.mxu0 %v4765_v34  ;;  %v10677_v39 = vmul.u32.u64.low 3817748708, %v10654_v29  ;;  %v10678_v49 = vmul.u32.u64.high 3817748708, %v10654_v29, %v10677_v39  ;;  %v4075_v31 = vsel %vm10668_vm8, %v3947_v44, 0.0 }
 0x219   :  { %v4106_v23 = vsel %vm10661_vm13, %v3978_v11, 0.0  ;;  %4945 = vrot.lane.b32.xlu1 %v10363_v17, %s8466_s15  ;;  %6446 = vmatpush1.bf16.msra.mxu1 %v4766_v46  ;;  %v947_v44 = vadd.s32 18, %v10652_v38  ;;  %v55_v34 = vadd.s32 3328, %v9840_v20  ;;  %v758_v60 = vshrl.u32 %v10688_v56, 4 }
 0x21a   :  { %v10692_v3 = vpack.c.bf16 %v4106_v23, %v4074_v62  ;;  %v4107_v37 = vsel %vm10668_vm8, %v3979_v15, 0.0  ;;  %v4928_v57 = vpop.permute.xlu0 %4927  ;;  %6393 = vmatpush1.bf16.msra.mxu0 %v6115_v35  ;;  %v6180_v15 = vld [vmem:[#allocation4 + $0x408] sm:$0xff]  ;;  %v747_v39 = vshrl.u32 %v10678_v49, 4  ;;  %vm13206_vm12 = vcmask 1039360  }
 0x21b   :  { %v4139_v48 = vpack.c.bf16 %v4107_v37, %v4075_v31  ;;  %v4990_v19 = vsel %vm4989_vm14, %v4926_v53, %v4928_v57  ;;  %v4930_v50 = vpop.permute.xlu1 %4929  ;;  %v979_v11 = vsel %vm10711_vm15, %v947_v44, %v10652_v38  ;;  %v10731_v62 = vand.u32 511, %v55_v34 }
 0x21c   :  { %5138 = vst [vmem:[#allocation4 + $0x4a0] sm:$0xff] %v10692_v3  ;;  %v4991_v30 = vsel %vm4989_vm14, %v4928_v57, %v4930_v50  ;;  %v4992_v43 = vsel %vm4989_vm14, %v4930_v50, %v10356_v52  ;;  %5907 = vrot.lane.b32.xlu0 %v10363_v17, %s8456_s12  ;;  %6394 = vmatprep.subr.bf16.mxu0 %v4990_v19  ;;  %vm10739_vm2 = vcmp.lt.s32.totalorder %v979_v11, 16  ;;  %v748_v50 = vmul.u32 18, %v747_v39 }
 0x21d   :  { %5139 = vst [vmem:[#allocation4 + $0x4a8] sm:$0xff] %v4139_v48  ;;  %5232 = vrot.lane.b32.xlu1 %v10312_v42, %s8453_s30  ;;  %6447 = vmatprep.subr.bf16.mxu1 %v4992_v43  ;;  %v6179_v48 = vld [vmem:[#allocation4 + $0x400] sm:$0xff]  ;;  %v10755_v54 = vmul.u32.u64.low 3817748708, %v10731_v62  ;;  %v10756_v34 = vmul.u32.u64.high 3817748708, %v10731_v62, %v10755_v54  ;;  %vm1043_vm7 = vmand %vm467_vm5, %vm10739_vm2  ;;  %vm13207_vm13 = vcmask 900096  }
 0x21e   :  { %v5441_v17 = vpop.permute.xlu0 %5440  ;;  %6448 = vmatpush1.bf16.msra.mxu1 %v4991_v30  ;;  %v749_v61 = vsub.s32 %v10654_v29, %v748_v50  ;;  %vm13208_vm5 = vmmov %vm13206_vm12 }
 0x21f   :  { %v10718_v46 = vsel %vm5502_vm1, %v10566_v7, %v5441_v17  ;;  %v10720_v53 = vpop.permute.xlu1 %5214  ;;  %v6147_v58 = vld [vmem:[#allocation4 + $0x300] sm:$0xff]  ;;  %6449 = vmatprep.subr.bf16.mxu1 %v10521_v24  ;;  %v6181_v7 = vld [vmem:[#allocation4 + $0x410] sm:$0xff]  ;;  %vm13209_vm2 = vmmov %vm13208_vm5 }
 0x220   :  { %5911 = vrot.lane.b32.xlu0 %v10421_v10, %s8456_s12  ;;  %6395 = vmatpush1.bf16.msra.mxu0 %v6147_v58  ;;  %v759_v58 = vmul.u32 18, %v758_v60  ;;  %vm853_vm8 = vcmp.ne.s32.totalorder %v749_v61, 0  ;;  %vm885_vm3 = vcmp.lt.s32.totalorder %v749_v61, 0 }
 0x221   :  { %5236 = vrot.lane.b32.xlu1 %v10521_v24, %s8453_s30  ;;  %6396 = vmatprep.subr.bf16.mxu0 %v6180_v15 }
 0x222   :  { %v5890_v23 = vpop.permute.xlu0 %5889  ;;  %v3745_v35 = vpop.f32.mrb[20].mxu1  ;;  %6450 = vmatpush1.bf16.msra.mxu1 %v6181_v7 }
 0x223   :  { %v10736_v31 = vsel %vm1606_vm4, %v10606_v5, %v5890_v23  ;;  %v5443_v38 = vpop.permute.xlu1 %5442  ;;  %v3746_v37 = vadd.f32 %v3745_v35, %v10002_v40  ;;  %v3747_v57 = vpop.f32.mrb[21].mxu1 }
 0x224   :  { %v5504_v19 = vsel %vm5502_vm1, %v5441_v17, %v5443_v38  ;;  %v10747_v56 = vsel %vm5502_vm1, %v5443_v38, %v10372_v9  ;;  %4276 = vrot.lane.b32.xlu0 %v10423_v59, %s8463_s2  ;;  %v3749_v5 = vpop.f32.mrb[22].mxu1  ;;  %6397 = vmatpush1.bf16.msra.mxu0 %v6179_v48  ;;  %v949_v48 = vadd.s32 18, %v749_v61 }
 0x225   :  { %5456 = vrot.lane.b32.xlu1 %v10312_v42, %s8467_s16  ;;  %v3948_v30 = vmax.f32 %v3746_v37, 0.0  ;;  %v3750_v43 = vadd.f32 %v3749_v5, %v10018_v16  ;;  %v3751_v44 = vpop.f32.mrb[23].mxu1 }
 0x226   :  { %v10762_v17 = vpop.permute.xlu0 %5222 }
 0x227   :  { %v5281_v11 = vsel %vm13206_vm12, %v10425_v28, %v10762_v17  ;;  %v5664_v15 = vpop.permute.xlu1 %5663  ;;  %v3980_v39 = vmax.f32 %v3750_v43, 0.0  ;;  %v4076_v7 = vsel %vm1043_vm7, %v3948_v30, 0.0  ;;  %v760_v28 = vsub.s32 %v10659_v21, %v759_v58  ;;  %vm10806_vm12 = vmand %vm885_vm3, %vm853_vm8 }
 0x228   :  { %4280 = vrot.lane.b32.xlu0 %v10521_v24, %s8463_s2  ;;  %6451 = vmatprep.subr.bf16.mxu1 %v5281_v11  ;;  %v981_v11 = vsel %vm10806_vm12, %v949_v48, %v749_v61  ;;  %vm13215_vm8 = vcmask 900096  }
 0x229   :  { %v4108_v35 = vsel %vm1043_vm7, %v3980_v39, 0.0  ;;  %5460 = vrot.lane.b32.xlu1 %v10521_v24, %s8467_s16  ;;  %6452 = vmatpush1.bf16.msra.mxu1 %v10554_v25  ;;  %vm854_vm9 = vcmp.ne.s32.totalorder %v760_v28, 0  ;;  %vm886_vm15 = vcmp.lt.s32.totalorder %v760_v28, 0  ;;  %vm13210_vm7 = vmmov %vm13209_vm2  ;;  %v950_v43 = vadd.s32 18, %v760_v28 }
 0x22a   :  { %v4140_v60 = vpack.c.bf16 %v4108_v35, %v4076_v7  ;;  %v10773_v38 = vpop.permute.xlu0 %5671  ;;  %vm13216_vm3 = vmmov %vm13215_vm8 }
 0x22b   :  { %v10779_v49 = vsel %vm13207_vm13, %v10442_v47, %v10773_v38  ;;  %v5892_v37 = vpop.permute.xlu1 %5891  ;;  %v769_v47 = vshrl.u32 %v10756_v34, 4  ;;  %vm10812_vm13 = vmand %vm886_vm15, %vm854_vm9  ;;  %vm1013_vm9 = vcmp.lt.s32.totalorder %v981_v11, 16 }
 0x22c   :  { %5140 = vst [vmem:[#allocation4 + $0x4b0] sm:$0xff] %v4140_v60  ;;  %v10782_v57 = vsel %vm1606_vm4, %v5890_v23, %v5892_v37  ;;  %v10786_v25 = vsel %vm1606_vm4, %v5892_v37, %v10391_v13  ;;  %4501 = vrot.lane.b32.xlu0 %v10423_v59, %s8464_s13  ;;  %v982_v37 = vsel %vm10812_vm13, %v950_v43, %v760_v28  ;;  %vm13217_vm15 = vmmov %vm13216_vm3  ;;  %vm471_vm13 = vcmp.lt.s32.totalorder %v10731_v62, 288 }
 0x22d   :  { %5681 = vrot.lane.b32.xlu1 %v10312_v42, %s8455_s11 }
 0x22e   :  { %v10793_v29 = vpop.permute.xlu0 %5226 }
 0x22f   :  { %v10798_v21 = vsel %vm13208_vm5, %v10793_v29, %v10460_v22  ;;  %v5217_v23 = vpop.permute.xlu1 %5216  ;;  %vm1014_vm5 = vcmp.lt.s32.totalorder %v982_v37, 16 }
 0x230   :  { %v5278_v5 = vsel %vm13209_vm2, %v10720_v53, %v5217_v23  ;;  %v5279_v50 = vsel %vm13210_vm7, %v5217_v23, %v10544_v45  ;;  %4505 = vrot.lane.b32.xlu0 %v10521_v24, %s8464_s13  ;;  %v770_v53 = vmul.u32 18, %v769_v47 }
 0x231   :  { %5685 = vrot.lane.b32.xlu1 %v10521_v24, %s8455_s11  ;;  %6398 = vmatprep.subr.bf16.mxu0 %v5279_v50 }
 0x232   :  { %v10816_v54 = vpop.permute.xlu0 %5450  ;;  %v3788_v45 = vpop.f32.mrb[24].mxu0  ;;  %6399 = vmatpush1.bf16.msra.mxu0 %v5278_v5 }
 0x233   :  { %v10821_v34 = vsel %vm5502_vm1, %v10816_v54, %v10477_v6  ;;  %v5666_v58 = vpop.permute.xlu1 %5665  ;;  %v3789_v39 = vadd.f32 %v3788_v45, %v10002_v40  ;;  %v3790_v7 = vpop.f32.mrb[25].mxu0  ;;  %6400 = vmatprep.subr.bf16.mxu0 %v5504_v19 }
 0x234   :  { %v5727_v35 = vsel %vm13215_vm8, %v5664_v15, %v5666_v58  ;;  %v5728_v60 = vsel %vm13216_vm3, %v5666_v58, %v10589_v27  ;;  %4726 = vrot.lane.b32.xlu0 %v10423_v59, %s8465_s14  ;;  %v3791_v47 = vadd.f32 %v3790_v7, %v10002_v40  ;;  %v3792_v23 = vpop.f32.mrb[26].mxu0  ;;  %v771_v15 = vsub.s32 %v10731_v62, %v770_v53 }
 0x235   :  { %5905 = vrot.lane.b32.xlu1 %v10312_v42, %s8456_s12  ;;  %v3950_v61 = vmax.f32 %v3789_v39, 0.0  ;;  %v3793_v19 = vadd.f32 %v3792_v23, %v10018_v16  ;;  %v3794_v48 = vpop.f32.mrb[27].mxu0 }
 0x236   :  { %v10838_v27 = vpop.permute.xlu0 %5675  ;;  %v3951_v5 = vmax.f32 %v3791_v47, 0.0  ;;  %v3795_v50 = vadd.f32 %v3794_v48, %v10018_v16  ;;  %6401 = vmatpush1.bf16.msra.mxu0 %v10718_v46  ;;  %vm855_vm2 = vcmp.ne.s32.totalorder %v771_v15, 0  ;;  %vm887_vm7 = vcmp.lt.s32.totalorder %v771_v15, 0 }
 0x237   :  { %v10845_v28 = vsel %vm13217_vm15, %v10838_v27, %v10496_v14  ;;  %v10847_v42 = vpop.permute.xlu1 %5446  ;;  %v3982_v30 = vmax.f32 %v3793_v19, 0.0  ;;  %6402 = vmatprep.subr.bf16.mxu0 %v5728_v60  ;;  %v4078_v53 = vsel %vm1013_vm9, %v3950_v61, 0.0  ;;  %vm10879_vm12 = vmand %vm887_vm7, %vm855_vm2 }
 0x238   :  { %v5506_v43 = vsel %vm5502_vm1, %v10372_v9, %v10847_v42  ;;  %4730 = vrot.lane.b32.xlu0 %v10521_v24, %s8465_s14  ;;  %v3983_v44 = vmax.f32 %v3795_v50, 0.0  ;;  %v4079_v45 = vsel %vm1014_vm5, %v3951_v5, 0.0 }
 0x239   :  { %v4110_v46 = vsel %vm1013_vm9, %v3982_v30, 0.0  ;;  %5909 = vrot.lane.b32.xlu1 %v10521_v24, %s8456_s12  ;;  %6453 = vmatprep.subr.bf16.mxu1 %v5506_v43  ;;  %vm13220_vm9 = vcmask 1039360  }
 0x23a   :  { %v10856_v58 = vpack.c.bf16 %v4110_v46, %v4078_v53  ;;  %v4111_v11 = vsel %vm1014_vm5, %v3983_v44, 0.0  ;;  %v10858_v39 = vpop.permute.xlu0 %5899  ;;  %6403 = vmatpush1.bf16.msra.mxu0 %v5727_v35  ;;  %6454 = vmatpush1.bf16.msra.mxu1 %v10747_v56  ;;  %v951_v56 = vadd.s32 18, %v771_v15  ;;  %v59_v53 = vadd.s32 3840, %v9840_v20  ;;  %vm13221_vm5 = vmmov %vm13220_vm9 }
 0x23b   :  { %v4143_v9 = vpack.c.bf16 %v4111_v11, %v4079_v45  ;;  %v10864_v7 = vsel %vm1606_vm4, %v10858_v39, %v10531_v41  ;;  %v10866_v60 = vpop.permute.xlu1 %5895  ;;  %6455 = vmatprep.subr.bf16.mxu1 %v10779_v49  ;;  %6404 = vmatprep.subr.bf16.mxu0 %v10782_v57  ;;  %v10893_v57 = vld [vmem:[%s13124_s3 + $0x14] ss:$8 sps:$4 sm:$0xff]   ;;  %v57_v46 = vadd.s32 3584, %v9840_v20  ;;  %vm13222_vm2 = vmmov %vm13221_vm5 }
 0x23c   :  { %5142 = vst [vmem:[#allocation4 + $0x4c0] sm:$0xff] %v10856_v58  ;;  %v5954_v35 = vsel %vm1606_vm4, %v10391_v13, %v10866_v60  ;;  %4951 = vrot.lane.b32.xlu0 %v10423_v59, %s8466_s15  ;;  %v10888_v13 = vld [vmem:[%s13124_s3] ss:$8 sps:$4 sm:$0xff]  }
 0x23d   :  { %5143 = vst [vmem:[#allocation4 + $0x4c8] sm:$0xff] %v4143_v9  ;;  %4274 = vrot.lane.b32.xlu1 %v10421_v10, %s8463_s2  ;;  %v58_v9 = vadd.s32 3712, %v9840_v20 }
 0x23e   :  { %v4261_v49 = vpop.permute.xlu0 %4260  ;;  %6405 = vmatpush1.bf16.msra.mxu0 %v10736_v31  ;;  %6456 = vmatpush1.bf16.msra.mxu1 %v10594_v18  ;;  %v983_v18 = vsel %vm10879_vm12, %v951_v56, %v771_v15 }
 0x23f   :  { %v4259_v59 = vpop.permute.xlu1 %4258  ;;  %6457 = vmatprep.subr.bf16.mxu1 %v5954_v35  ;;  %vm1015_vm8 = vcmp.lt.s32.totalorder %v983_v18, 16  ;;  %v10927_v35 = vld [vmem:[%s13124_s3 + $0x10] ss:$8 sps:$4 sm:$0xff]   ;;  %v10944_v18 = vand.u32 511, %v58_v9 }
 0x240   :  { %v4318_v47 = vsel %vm4314_vm10, %v10293_v36, %v4259_v59  ;;  %v4319_v23 = vsel %vm4314_vm10, %v4259_v59, %v4261_v49  ;;  %4955 = vrot.lane.b32.xlu0 %v10521_v24, %s8466_s15  ;;  %vm1047_vm3 = vmand %vm471_vm13, %vm1015_vm8 }
 0x241   :  { %4278 = vrot.lane.b32.xlu1 %v10467_v26, %s8463_s2  ;;  %6494 = vmatprep.subr.bf16.mxu0 %v4319_v23  ;;  %v10942_v23 = vand.u32 511, %v57_v46 }
 0x242   :  { %v4486_v31 = vpop.permute.xlu0 %4485  ;;  %v3831_v61 = vpop.f32.mrb[24].mxu1  ;;  %6421 = vmatmul.mubr.bf16.vlgmr.msra.gmra.mrb[32].mxu0 %v10888_v13  ;;  %6458 = vmatpush1.bf16.msra.mxu1 %v10786_v25 }
 0x243   :  { %v4263_v19 = vpop.permute.xlu1 %4262  ;;  %v3832_v36 = vadd.f32 %v3831_v61, %v10002_v40  ;;  %v3833_v48 = vpop.f32.mrb[25].mxu1  ;;  %6495 = vmatpush1.bf16.msra.mxu0 %v4318_v47  ;;  %8299 = vmatprep.mubr.msk.bf16.mxu0 %vm6381_vm6, %v10893_v57  ;;  %v10940_v47 = vand.u32 511, %v59_v53 }
 0x244   :  { %v4320_v15 = vsel %vm4314_vm10, %v4261_v49, %v4263_v19  ;;  %v4321_v5 = vsel %vm4314_vm10, %v4263_v19, %v10415_v32  ;;  %5242 = vrot.lane.b32.xlu0 %v10467_v26, %s8453_s30  ;;  %v3835_v25 = vpop.f32.mrb[26].mxu1 }
 0x245   :  { %4499 = vrot.lane.b32.xlu1 %v10421_v10, %s8464_s13  ;;  %v3952_v50 = vmax.f32 %v3832_v36, 0.0  ;;  %v3836_v30 = vadd.f32 %v3835_v25, %v10018_v16  ;;  %6547 = vmatprep.subr.bf16.mxu1 %v4321_v5  ;;  %v3837_v43 = vpop.f32.mrb[27].mxu1  ;;  %v10955_v36 = vld [vmem:[%s13124_s3 + $0x4] ss:$8 sps:$4 sm:$0xff]   ;;  %v10968_v5 = vmul.u32.u64.low 3817748708, %v10942_v23  ;;  %v10969_v25 = vmul.u32.u64.high 3817748708, %v10942_v23, %v10968_v5 }
 0x246   :  { %v4711_v44 = vpop.permute.xlu0 %4710  ;;  %6474 = vmatmul.mubr.bf16.vlgmr.msra.gmra.mrb[32].mxu1 %v10888_v13 }
 0x247   :  { %v4484_v45 = vpop.permute.xlu1 %4483  ;;  %v3984_v11 = vmax.f32 %v3836_v30, 0.0  ;;  %6548 = vmatpush1.bf16.msra.mxu1 %v4320_v15  ;;  %8301 = vmatprep.mubr.msk.bf16.mxu1 %vm6381_vm6, %v10893_v57  ;;  %v4080_v37 = vsel %vm1047_vm3, %v3952_v50, 0.0 }
 0x248   :  { %v4543_v62 = vsel %vm4539_vm0, %v10314_v51, %v4484_v45  ;;  %v4544_v56 = vsel %vm4539_vm0, %v4484_v45, %v4486_v31  ;;  %5246 = vrot.lane.b32.xlu0 %v10533_v1, %s8453_s30 }
 0x249   :  { %v4112_v49 = vsel %vm1047_vm3, %v3984_v11, 0.0  ;;  %4503 = vrot.lane.b32.xlu1 %v10467_v26, %s8464_s13  ;;  %6496 = vmatprep.subr.bf16.mxu0 %v4544_v56 }
 0x24a   :  { %v4144_v20 = vpack.c.bf16 %v4112_v49, %v4080_v37  ;;  %v10938_v59 = vpop.permute.xlu0 %4935  ;;  %6497 = vmatpush1.bf16.msra.mxu0 %v4543_v62  ;;  %v8427_v62 = vld [vmem:[#allocation4 + $0x460] sm:$0xff]  ;;  %v791_v49 = vshrl.u32 %v10969_v25, 4 }
 0x24b   :  { %v4488_v51 = vpop.permute.xlu1 %4487  ;;  %6431 = vmatmul.mubr.bf16.gmra.mrb[36].mxu0 %v10927_v35 }
 0x24c   :  { %5144 = vst [vmem:[#allocation4 + $0x4d0] sm:$0xff] %v4144_v20  ;;  %v4545_v61 = vsel %vm4539_vm0, %v4486_v31, %v4488_v51  ;;  %v4546_v19 = vsel %vm4539_vm0, %v4488_v51, %v10435_v33  ;;  %5466 = vrot.lane.b32.xlu0 %v10467_v26, %s8467_s16  ;;  %8302 = vmatprep.mubr.msk.bf16.mxu0 %vm6381_vm6, %v10955_v36  ;;  %v10964_v31 = vmul.u32.u64.low 3817748708, %v10940_v47  ;;  %v10965_v15 = vmul.u32.u64.high 3817748708, %v10940_v47, %v10964_v31 }
 0x24d   :  { %4724 = vrot.lane.b32.xlu1 %v10421_v10, %s8465_s14  ;;  %6549 = vmatprep.subr.bf16.mxu1 %v4546_v19  ;;  %v10977_v10 = vmul.u32.u64.low 3817748708, %v10944_v18  ;;  %v10978_v43 = vmul.u32.u64.high 3817748708, %v10944_v18, %v10977_v10  ;;  %v6184_v19 = vld [vmem:[#allocation4 + $0x428] sm:$0xff]  ;;  %v792_v5 = vmul.u32 18, %v791_v49 }
 0x24e   :  { %v10961_v48 = vpop.permute.xlu0 %5230  ;;  %6550 = vmatpush1.bf16.msra.mxu1 %v4545_v61  ;;  %v813_v37 = vshrl.u32 %v10965_v15, 4  ;;  %v8428_v10 = vld [vmem:[#allocation4 + $0x470] sm:$0xff] }
 0x24f   :  { %v10974_v50 = vsel %vm13220_vm9, %v10460_v22, %v10961_v48  ;;  %v4709_v30 = vpop.permute.xlu1 %4708  ;;  %6484 = vmatmul.mubr.bf16.gmra.mrb[36].mxu1 %v10927_v35  ;;  %v802_v20 = vshrl.u32 %v10978_v43, 4  ;;  %v11033_v43 = vld [vmem:[#allocation4 + $0x468] sm:$0xff] }
 0x250   :  { %v4768_v53 = vsel %vm4764_vm11, %v10339_v55, %v4709_v30  ;;  %v4769_v46 = vsel %vm4764_vm11, %v4709_v30, %v4711_v44  ;;  %5470 = vrot.lane.b32.xlu0 %v10533_v1, %s8467_s16  ;;  %8304 = vmatprep.mubr.msk.bf16.mxu1 %vm6381_vm6, %v10955_v36  ;;  %v814_v31 = vmul.u32 18, %v813_v37  ;;  %v6185_v37 = vld [vmem:[#allocation4 + $0x430] sm:$0xff] }
 0x251   :  { %4728 = vrot.lane.b32.xlu1 %v10467_v26, %s8465_s14  ;;  %6498 = vmatprep.subr.bf16.mxu0 %v4769_v46  ;;  %v803_v25 = vmul.u32 18, %v802_v20 }
 0x252   :  { %v10990_v22 = vpop.permute.xlu0 %5454  ;;  %6499 = vmatpush1.bf16.msra.mxu0 %v4768_v53  ;;  %v815_v46 = vsub.s32 %v10940_v47, %v814_v31 }
 0x253   :  { %v10995_v45 = vsel %vm5502_vm1, %v10477_v6, %v10990_v22  ;;  %v4713_v55 = vpop.permute.xlu1 %4712 }
 0x254   :  { %v4770_v11 = vsel %vm4764_vm11, %v4711_v44, %v4713_v55  ;;  %v4771_v9 = vsel %vm4764_vm11, %v4713_v55, %v10454_v0  ;;  %5691 = vrot.lane.b32.xlu0 %v10467_v26, %s8455_s11  ;;  %v793_v55 = vsub.s32 %v10942_v23, %v792_v5  ;;  %vm859_vm7 = vcmp.ne.s32.totalorder %v815_v46, 0 }
 0x255   :  { %4949 = vrot.lane.b32.xlu1 %v8427_v62, %s8466_s15  ;;  %6551 = vmatprep.subr.bf16.mxu1 %v4771_v9  ;;  %vm891_vm12 = vcmp.lt.s32.totalorder %v815_v46, 0 }
 0x256   :  { %v11003_v56 = vpop.permute.xlu0 %5679  ;;  %6552 = vmatpush1.bf16.msra.mxu1 %v4770_v11  ;;  %v11042_v11 = vsub.s32 %v10944_v18, %v803_v25  ;;  %vm857_vm13 = vcmp.ne.s32.totalorder %v793_v55, 0  ;;  %vm889_vm8 = vcmp.lt.s32.totalorder %v793_v55, 0 }
 0x257   :  { %v11009_v6 = vsel %vm13217_vm15, %v10496_v14, %v11003_v56  ;;  %v4934_v44 = vpop.permute.xlu1 %4933  ;;  %vm11067_vm15 = vmand %vm891_vm12, %vm859_vm7  ;;  %vm13229_vm7 = vcmask 900096  }
 0x258   :  { %v4993_v51 = vsel %vm4989_vm14, %v10356_v52, %v4934_v44  ;;  %v4994_v61 = vsel %vm4989_vm14, %v4934_v44, %v10938_v59  ;;  %5695 = vrot.lane.b32.xlu0 %v10533_v1, %s8455_s11  ;;  %vm858_vm3 = vcmp.ne.s32.totalorder %v11042_v11, 0  ;;  %vm890_vm9 = vcmp.lt.s32.totalorder %v11042_v11, 0  ;;  %vm13230_vm12 = vmmov %vm13229_vm7 }
 0x259   :  { %4953 = vrot.lane.b32.xlu1 %v10467_v26, %s8466_s15  ;;  %6500 = vmatprep.subr.bf16.mxu0 %v4994_v61 }
 0x25a   :  { %v11021_v14 = vpop.permute.xlu0 %5903  ;;  %6501 = vmatpush1.bf16.msra.mxu0 %v4993_v51 }
 0x25b   :  { %v11026_v15 = vsel %vm1606_vm4, %v10531_v41, %v11021_v14  ;;  %v4938_v52 = vpop.permute.xlu1 %4937  ;;  %6502 = vmatprep.subr.bf16.mxu0 %v6184_v19  ;;  %v6183_v41 = vld [vmem:[#allocation4 + $0x420] sm:$0xff] }
 0x25c   :  { %v4995_v30 = vsel %vm4989_vm14, %v10938_v59, %v4938_v52  ;;  %v4996_v26 = vsel %vm4989_vm14, %v4938_v52, %v10470_v12  ;;  %5915 = vrot.lane.b32.xlu0 %v8428_v10, %s8456_s12 }
 0x25d   :  { %5240 = vrot.lane.b32.xlu1 %v11033_v43, %s8453_s30  ;;  %6553 = vmatprep.subr.bf16.mxu1 %v4996_v26 }
 0x25e   :  { %v11037_v53 = vpop.permute.xlu0 %4268  ;;  %6503 = vmatpush1.bf16.msra.mxu0 %v6183_v41  ;;  %6554 = vmatpush1.bf16.msra.mxu1 %v4995_v30 }
 0x25f   :  { %v5225_v59 = vpop.permute.xlu1 %5224  ;;  %6555 = vmatprep.subr.bf16.mxu1 %v10521_v24 }
 0x260   :  { %v5282_v9 = vsel %vm13221_vm5, %v10762_v17, %v5225_v59  ;;  %v5283_v62 = vsel %vm13222_vm2, %v5225_v59, %v10793_v29  ;;  %5919 = vrot.lane.b32.xlu0 %v10533_v1, %s8456_s12  ;;  %v955_v17 = vadd.s32 18, %v815_v46  ;;  %vm11073_vm5 = vmand %vm889_vm8, %vm857_vm13  ;;  %vm475_vm13 = vcmp.lt.s32.totalorder %v10940_v47, 288 }
 0x261   :  { %5244 = vrot.lane.b32.xlu1 %v10521_v24, %s8453_s30  ;;  %6504 = vmatprep.subr.bf16.mxu0 %v5283_v62  ;;  %vm11081_vm2 = vmand %vm890_vm9, %vm858_vm3 }
 0x262   :  { %v11053_v23 = vpop.permute.xlu0 %4493  ;;  %6505 = vmatpush1.bf16.msra.mxu0 %v5282_v9  ;;  %6556 = vmatpush1.bf16.msra.mxu1 %v6185_v37  ;;  %v987_v20 = vsel %vm11067_vm15, %v955_v17, %v815_v46  ;;  %v11121_v37 = vld [vmem:[#allocation4 + $0x488] sm:$0xff] }
 0x263   :  { %v5449_v18 = vpop.permute.xlu1 %5448  ;;  %6557 = vmatprep.subr.bf16.mxu1 %v10974_v50  ;;  %v953_v50 = vadd.s32 18, %v793_v55  ;;  %vm11107_vm8 = vcmp.lt.s32.totalorder %v987_v20, 16 }
 0x264   :  { %v5507_v1 = vsel %vm5502_vm1, %v10847_v42, %v5449_v18  ;;  %v5508_v24 = vsel %vm5502_vm1, %v5449_v18, %v10816_v54  ;;  %4284 = vrot.lane.b32.xlu0 %v10535_v8, %s8463_s2  ;;  %v954_v8 = vadd.s32 18, %v11042_v11  ;;  %vm11136_vm15 = vmand %vm475_vm13, %vm11107_vm8  ;;  %vm13243_vm13 = vcmask 900096  }
 0x265   :  { %5464 = vrot.lane.b32.xlu1 %v11033_v43, %s8467_s16  ;;  %6506 = vmatprep.subr.bf16.mxu0 %v5508_v24  ;;  %v985_v31 = vsel %vm11073_vm5, %v953_v50, %v793_v55  ;;  %vm13239_vm5 = vcmask 1039360   ;;  %vm13244_vm8 = vmmov %vm13243_vm13 }
 0x266   :  { %v11071_v42 = vpop.permute.xlu0 %4718  ;;  %6507 = vmatpush1.bf16.msra.mxu0 %v5507_v1  ;;  %6558 = vmatpush1.bf16.msra.mxu1 %v10798_v21  ;;  %v11092_v21 = vld [vmem:[#allocation4 + $0x418] sm:$0xff]  ;;  %vm11114_vm3 = vcmp.lt.s32.totalorder %v985_v31, 16 }
 0x267   :  { %v5674_v44 = vpop.permute.xlu1 %5673  ;;  %6559 = vmatprep.subr.bf16.mxu1 %v10995_v45 }
 0x268   :  { %v5731_v51 = vsel %vm13229_vm7, %v10773_v38, %v5674_v44  ;;  %v5732_v61 = vsel %vm13230_vm12, %v5674_v44, %v10838_v27  ;;  %v3874_v19 = vpop.f32.mrb[28].mxu0  ;;  %4288 = vrot.lane.b32.xlu0 %v11092_v21, %s8463_s2  ;;  %v986_v27 = vsel %vm11081_vm2, %v954_v8, %v11042_v11  ;;  %vm13240_vm2 = vmmov %vm13239_vm5 }
 0x269   :  { %v3875_v45 = vadd.f32 %v3874_v19, %v10002_v40  ;;  %v3876_v52 = vpop.f32.mrb[29].mxu0  ;;  %5468 = vrot.lane.b32.xlu1 %v11092_v21, %s8467_s16  ;;  %6508 = vmatprep.subr.bf16.mxu0 %v5732_v61  ;;  %vm11125_vm9 = vcmp.lt.s32.totalorder %v986_v27, 16  ;;  %vm13241_vm7 = vmmov %vm13240_vm2 }
 0x26a   :  { %v3917_v38 = vpop.f32.mrb[28].mxu1  ;;  %v3877_v5 = vadd.f32 %v3876_v52, %v10002_v40  ;;  %v3878_v25 = vpop.f32.mrb[30].mxu0  ;;  %6509 = vmatpush1.bf16.msra.mxu0 %v5731_v51  ;;  %6560 = vmatpush1.bf16.msra.mxu1 %v10821_v34  ;;  %vm13242_vm12 = vmmov %vm13240_vm2 }
 0x26b   :  { %v3918_v26 = vadd.f32 %v3917_v38, %v10002_v40  ;;  %v3954_v10 = vmax.f32 %v3875_v45, 0.0  ;;  %v3919_v41 = vpop.f32.mrb[29].mxu1  ;;  %v3879_v46 = vadd.f32 %v3878_v25, %v10018_v16  ;;  %v3880_v59 = vpop.f32.mrb[31].mxu0  ;;  %6561 = vmatprep.subr.bf16.mxu1 %v11009_v6 }
 0x26c   :  { %v3955_v11 = vmax.f32 %v3877_v5, 0.0  ;;  %v3921_v9 = vpop.f32.mrb[30].mxu1  ;;  %v3881_v34 = vadd.f32 %v3880_v59, %v10018_v16  ;;  %v11119_v62 = vpop.permute.xlu0 %4722  ;;  %4509 = vrot.lane.b32.xlu0 %v11121_v37, %s8464_s13  ;;  %v8433_v59 = vld [vmem:[#allocation4 + $0x490] sm:$0xff] }
 0x26d   :  { %v3956_v40 = vmax.f32 %v3918_v26, 0.0  ;;  %v3922_v6 = vadd.f32 %v3921_v9, %v10018_v16  ;;  %v3986_v1 = vmax.f32 %v3879_v46, 0.0  ;;  %v5898_v24 = vpop.permute.xlu1 %5897  ;;  %5689 = vrot.lane.b32.xlu1 %v11033_v43, %s8455_s11  ;;  %v3923_v17 = vpop.f32.mrb[31].mxu1  ;;  %v4082_v8 = vsel %vm11114_vm3, %v3954_v10, 0.0  ;;  %v8432_v26 = vld [vmem:[#allocation4 + $0x480] sm:$0xff] }
 0x26e   :  { %v3987_v50 = vmax.f32 %v3881_v34, 0.0  ;;  %v5955_v54 = vsel %vm1606_vm4, %v10866_v60, %v5898_v24  ;;  %v5956_v16 = vsel %vm1606_vm4, %v5898_v24, %v10858_v39  ;;  %6562 = vmatpush1.bf16.msra.mxu1 %v10845_v28  ;;  %v4083_v49 = vsel %vm11125_vm9, %v3955_v11, 0.0  ;;  %v6188_v24 = vld [vmem:[#allocation4 + $0x448] sm:$0xff] }
 0x26f   :  { %v3988_v44 = vmax.f32 %v3922_v6, 0.0  ;;  %v4114_v47 = vsel %vm11114_vm3, %v3986_v1, 0.0  ;;  %6510 = vmatprep.subr.bf16.mxu0 %v5956_v16  ;;  %6563 = vmatprep.subr.bf16.mxu1 %v11026_v15  ;;  %v4084_v28 = vsel %vm11136_vm15, %v3956_v40, 0.0  ;;  %vm13245_vm3 = vmmov %vm13244_vm8 }
 0x270   :  { %v11152_v20 = vpack.c.bf16 %v4114_v47, %v4082_v8  ;;  %v4115_v39 = vsel %vm11125_vm9, %v3987_v50, 0.0  ;;  %v11156_v60 = vpop.permute.xlu0 %4943  ;;  %4513 = vrot.lane.b32.xlu0 %v11092_v21, %s8464_s13  ;;  %6511 = vmatpush1.bf16.msra.mxu0 %v5955_v54  ;;  %v6187_v50 = vld [vmem:[#allocation4 + $0x440] sm:$0xff]  ;;  %vm13246_vm9 = vmmov %vm13245_vm3 }
 0x271   :  { %v4116_v15 = vsel %vm11136_vm15, %v3988_v44, 0.0  ;;  %v11164_v51 = vpack.c.bf16 %v4115_v39, %v4083_v49  ;;  %v4267_v61 = vpop.permute.xlu1 %4266  ;;  %5693 = vrot.lane.b32.xlu1 %v11092_v21, %s8455_s11  ;;  %vm13247_vm15 = vmmov %vm13240_vm2 }
 0x272   :  { %v4148_v19 = vpack.c.bf16 %v4116_v15, %v4084_v28  ;;  %5146 = vst [vmem:[#allocation4 + $0x4e0] sm:$0xff] %v11152_v20  ;;  %v4322_v31 = vsel %vm4314_vm10, %v10415_v32, %v4267_v61  ;;  %v4323_v45 = vsel %vm4314_vm10, %v4267_v61, %v11037_v53  ;;  %6564 = vmatpush1.bf16.msra.mxu1 %v10864_v7  ;;  %v11270_v28 = vld [vmem:[#allocation4 + $0x4a0] sm:$0xff] }
 0x273   :  { %5147 = vst [vmem:[#allocation4 + $0x4e8] sm:$0xff] %v11164_v51  ;;  %6600 = vmatprep.subr.bf16.mxu0 %v4323_v45  ;;  %6527 = vmatmul.mubr.bf16.vlgmr.msra.gmra.mrb[40].mxu0 %v10888_v13 }
 0x274   :  { %5148 = vst [vmem:[#allocation4 + $0x4f0] sm:$0xff] %v4148_v19  ;;  %v11176_v52 = vpop.permute.xlu0 %4947  ;;  %4734 = vrot.lane.b32.xlu0 %v11121_v37, %s8465_s14  ;;  %6601 = vmatpush1.bf16.msra.mxu0 %v4322_v31 }
 0x275   :  { %v4271_v38 = vpop.permute.xlu1 %4270  ;;  %5913 = vrot.lane.b32.xlu1 %v11033_v43, %s8456_s12  ;;  %6580 = vmatmul.mubr.bf16.vlgmr.msra.gmra.mrb[40].mxu1 %v10888_v13 }
 0x276   :  { %v4324_v32 = vsel %vm4314_vm10, %v11037_v53, %v4271_v38  ;;  %v4325_v7 = vsel %vm4314_vm10, %v4271_v38, %v10490_v63  ;;  %8303 = vmatprep.mubr.msk.bf16.mxu0 %vm6381_vm6, %v10893_v57  ;;  %8305 = vmatprep.mubr.msk.bf16.mxu1 %vm6381_vm6, %v10893_v57 }
 0x277   :  { %6653 = vmatprep.subr.bf16.mxu1 %v4325_v7 }
 0x278   :  { %v11191_v27 = vpop.permute.xlu0 %5234  ;;  %4738 = vrot.lane.b32.xlu0 %v11092_v21, %s8465_s14  ;;  %6654 = vmatpush1.bf16.msra.mxu1 %v4324_v32 }
 0x279   :  { %v4492_v43 = vpop.permute.xlu1 %4491  ;;  %5917 = vrot.lane.b32.xlu1 %v11092_v21, %s8456_s12 }
 0x27a   :  { %v4547_v53 = vsel %vm4539_vm0, %v10435_v33, %v4492_v43  ;;  %v4548_v5 = vsel %vm4539_vm0, %v4492_v43, %v11053_v23 }
 0x27b   :  { %6602 = vmatprep.subr.bf16.mxu0 %v4548_v5  ;;  %6537 = vmatmul.mubr.bf16.gmra.mrb[44].mxu0 %v10927_v35  ;;  %v11300_v5 = vld [vmem:[#allocation4 + $0x4a8] sm:$0xff] }
 0x27c   :  { %v11202_v25 = vpop.permute.xlu0 %5238  ;;  %4959 = vrot.lane.b32.xlu0 %v11121_v37, %s8466_s15  ;;  %6603 = vmatpush1.bf16.msra.mxu0 %v4547_v53 }
 0x27d   :  { %v4496_v30 = vpop.permute.xlu1 %4495  ;;  %4282 = vrot.lane.b32.xlu1 %v8432_v26, %s8463_s2  ;;  %6590 = vmatmul.mubr.bf16.gmra.mrb[44].mxu1 %v10927_v35 }
 0x27e   :  { %v4549_v33 = vsel %vm4539_vm0, %v11053_v23, %v4496_v30  ;;  %v4550_v10 = vsel %vm4539_vm0, %v4496_v30, %v10515_v4  ;;  %8306 = vmatprep.mubr.msk.bf16.mxu0 %vm6381_vm6, %v10955_v36  ;;  %8308 = vmatprep.mubr.msk.bf16.mxu1 %vm6381_vm6, %v10955_v36 }
 0x27f   :  { %6655 = vmatprep.subr.bf16.mxu1 %v4550_v10 }
 0x280   :  { %v11216_v41 = vpop.permute.xlu0 %5458  ;;  %4963 = vrot.lane.b32.xlu0 %v11092_v21, %s8466_s15  ;;  %6656 = vmatpush1.bf16.msra.mxu1 %v4549_v33 }
 0x281   :  { %v4717_v46 = vpop.permute.xlu1 %4716  ;;  %4286 = vrot.lane.b32.xlu1 %v8433_v59, %s8463_s2 }
 0x282   :  { %v4772_v23 = vsel %vm4764_vm11, %v10454_v0, %v4717_v46  ;;  %v4773_v55 = vsel %vm4764_vm11, %v4717_v46, %v11071_v42 }
 0x283   :  { %6604 = vmatprep.subr.bf16.mxu0 %v4773_v55 }
 0x284   :  { %v11225_v11 = vpop.permute.xlu0 %5462  ;;  %5250 = vrot.lane.b32.xlu0 %v8433_v59, %s8453_s30  ;;  %6605 = vmatpush1.bf16.msra.mxu0 %v4772_v23 }
 0x285   :  { %v4721_v9 = vpop.permute.xlu1 %4720  ;;  %4507 = vrot.lane.b32.xlu1 %v8432_v26, %s8464_s13 }
 0x286   :  { %v4774_v34 = vsel %vm4764_vm11, %v11071_v42, %v4721_v9  ;;  %v4775_v40 = vsel %vm4764_vm11, %v4721_v9, %v11119_v62 }
 0x287   :  { %6657 = vmatprep.subr.bf16.mxu1 %v4775_v40 }
 0x288   :  { %v11233_v0 = vpop.permute.xlu0 %5683  ;;  %5254 = vrot.lane.b32.xlu0 %v10692_v3, %s8453_s30  ;;  %6658 = vmatpush1.bf16.msra.mxu1 %v4774_v34 }
 0x289   :  { %v4942_v18 = vpop.permute.xlu1 %4941  ;;  %4511 = vrot.lane.b32.xlu1 %v8433_v59, %s8464_s13 }
 0x28a   :  { %v4997_v6 = vsel %vm4989_vm14, %v10470_v12, %v4942_v18  ;;  %v4998_v1 = vsel %vm4989_vm14, %v4942_v18, %v11156_v60 }
 0x28b   :  { %6606 = vmatprep.subr.bf16.mxu0 %v4998_v1 }
 0x28c   :  { %v11242_v42 = vpop.permute.xlu0 %5687  ;;  %5474 = vrot.lane.b32.xlu0 %v8433_v59, %s8467_s16  ;;  %6607 = vmatpush1.bf16.msra.mxu0 %v4997_v6 }
 0x28d   :  { %v4946_v17 = vpop.permute.xlu1 %4945  ;;  %4732 = vrot.lane.b32.xlu1 %v8432_v26, %s8465_s14  ;;  %6608 = vmatprep.subr.bf16.mxu0 %v6188_v24 }
 0x28e   :  { %v4999_v29 = vsel %vm4989_vm14, %v11156_v60, %v4946_v17  ;;  %v5000_v12 = vsel %vm4989_vm14, %v4946_v17, %v11176_v52 }
 0x28f   :  { %6659 = vmatprep.subr.bf16.mxu1 %v5000_v12 }
 0x290   :  { %v11250_v54 = vpop.permute.xlu0 %5907  ;;  %5478 = vrot.lane.b32.xlu0 %v10692_v3, %s8467_s16  ;;  %6609 = vmatpush1.bf16.msra.mxu0 %v6187_v50  ;;  %v6189_v3 = vld [vmem:[#allocation4 + $0x450] sm:$0xff] }
 0x291   :  { %v5233_v16 = vpop.permute.xlu1 %5232  ;;  %4736 = vrot.lane.b32.xlu1 %v8433_v59, %s8465_s14  ;;  %6660 = vmatpush1.bf16.msra.mxu1 %v4999_v29 }
 0x292   :  { %v5286_v8 = vsel %vm13239_vm5, %v10961_v48, %v5233_v16  ;;  %v5287_v44 = vsel %vm13240_vm2, %v5233_v16, %v11191_v27  ;;  %6661 = vmatprep.subr.bf16.mxu1 %v11092_v21  ;;  %vm13248_vm5 = vmmov %vm13240_vm2 }
 0x293   :  { %6610 = vmatprep.subr.bf16.mxu0 %v5287_v44 }
 0x294   :  { %v11260_v47 = vpop.permute.xlu0 %5911  ;;  %5699 = vrot.lane.b32.xlu0 %v8433_v59, %s8455_s11  ;;  %6611 = vmatpush1.bf16.msra.mxu0 %v5286_v8 }
 0x295   :  { %v5237_v49 = vpop.permute.xlu1 %5236  ;;  %4957 = vrot.lane.b32.xlu1 %v8432_v26, %s8466_s15  ;;  %6662 = vmatpush1.bf16.msra.mxu1 %v6189_v3 }
 0x296   :  { %v5288_v39 = vsel %vm13241_vm7, %v11191_v27, %v5237_v49  ;;  %v5289_v48 = vsel %vm13242_vm12, %v5237_v49, %v11202_v25  ;;  %vm13249_vm7 = vmmov %vm13240_vm2 }
 0x297   :  { %6663 = vmatprep.subr.bf16.mxu1 %v5289_v48  ;;  %vm13250_vm12 = vmmov %vm13245_vm3 }
 0x298   :  { %v11268_v60 = vpop.permute.xlu0 %4276  ;;  %5703 = vrot.lane.b32.xlu0 %v11270_v28, %s8455_s11 }
 0x299   :  { %v5457_v15 = vpop.permute.xlu1 %5456  ;;  %4961 = vrot.lane.b32.xlu1 %v8433_v59, %s8466_s15  ;;  %6664 = vmatpush1.bf16.msra.mxu1 %v5288_v39 }
 0x29a   :  { %v5511_v61 = vsel %vm5502_vm1, %v10990_v22, %v5457_v15  ;;  %v5512_v19 = vsel %vm5502_vm1, %v5457_v15, %v11216_v41 }
 0x29b   :  { %6612 = vmatprep.subr.bf16.mxu0 %v5512_v19 }
 0x29c   :  { %v11279_v31 = vpop.permute.xlu0 %4280  ;;  %5923 = vrot.lane.b32.xlu0 %v8433_v59, %s8456_s12  ;;  %6613 = vmatpush1.bf16.msra.mxu0 %v5511_v61  ;;  %v6192_v61 = vld [vmem:[#allocation4 + $0x468] sm:$0xff] }
 0x29d   :  { %v5461_v45 = vpop.permute.xlu1 %5460  ;;  %5248 = vrot.lane.b32.xlu1 %v11121_v37, %s8453_s30 }
 0x29e   :  { %v5513_v38 = vsel %vm5502_vm1, %v11216_v41, %v5461_v45  ;;  %v5514_v32 = vsel %vm5502_vm1, %v5461_v45, %v11225_v11  ;;  %v6191_v45 = vld [vmem:[#allocation4 + $0x460] sm:$0xff] }
 0x29f   :  { %6665 = vmatprep.subr.bf16.mxu1 %v5514_v32  ;;  %v11420_v32 = vld [vmem:[#allocation4 + $0x4c0] sm:$0xff] }
 0x2a0   :  { %v11288_v22 = vpop.permute.xlu0 %4501  ;;  %5927 = vrot.lane.b32.xlu0 %v11270_v28, %s8456_s12  ;;  %6666 = vmatpush1.bf16.msra.mxu1 %v5513_v38 }
 0x2a1   :  { %v5682_v7 = vpop.permute.xlu1 %5681  ;;  %5252 = vrot.lane.b32.xlu1 %v11092_v21, %s8453_s30 }
 0x2a2   :  { %v5735_v27 = vsel %vm13243_vm13, %v11003_v56, %v5682_v7  ;;  %v5736_v43 = vsel %vm13244_vm8, %v5682_v7, %v11233_v0  ;;  %vm13251_vm13 = vmmov %vm13245_vm3 }
 0x2a3   :  { %6614 = vmatprep.subr.bf16.mxu0 %v5736_v43  ;;  %vm13252_vm8 = vmmov %vm13245_vm3 }
 0x2a4   :  { %v11298_v53 = vpop.permute.xlu0 %4505  ;;  %4292 = vrot.lane.b32.xlu0 %v11300_v5, %s8463_s2  ;;  %6615 = vmatpush1.bf16.msra.mxu0 %v5735_v27 }
 0x2a5   :  { %v5686_v30 = vpop.permute.xlu1 %5685  ;;  %5472 = vrot.lane.b32.xlu1 %v11121_v37, %s8467_s16 }
 0x2a6   :  { %v5737_v26 = vsel %vm13245_vm3, %v11233_v0, %v5686_v30  ;;  %v5738_v56 = vsel %vm13246_vm9, %v5686_v30, %v11242_v42  ;;  %v6193_v30 = vld [vmem:[#allocation4 + $0x470] sm:$0xff]  ;;  %vm13253_vm9 = vmmov %vm13240_vm2 }
 0x2a7   :  { %6667 = vmatprep.subr.bf16.mxu1 %v5738_v56 }
 0x2a8   :  { %v11310_v33 = vpop.permute.xlu0 %4726  ;;  %4296 = vrot.lane.b32.xlu0 %v11092_v21, %s8463_s2  ;;  %6668 = vmatpush1.bf16.msra.mxu1 %v5737_v26 }
 0x2a9   :  { %v5906_v10 = vpop.permute.xlu1 %5905  ;;  %5476 = vrot.lane.b32.xlu1 %v11092_v21, %s8467_s16 }
 0x2aa   :  { %v5959_v41 = vsel %vm1606_vm4, %v11021_v14, %v5906_v10  ;;  %v5960_v46 = vsel %vm1606_vm4, %v5906_v10, %v11250_v54 }
 0x2ab   :  { %6616 = vmatprep.subr.bf16.mxu0 %v5960_v46 }
 0x2ac   :  { %v11320_v59 = vpop.permute.xlu0 %4730  ;;  %4517 = vrot.lane.b32.xlu0 %v11300_v5, %s8464_s13  ;;  %6617 = vmatpush1.bf16.msra.mxu0 %v5959_v41 }
 0x2ad   :  { %v5910_v23 = vpop.permute.xlu1 %5909  ;;  %5697 = vrot.lane.b32.xlu1 %v11121_v37, %s8455_s11 }
 0x2ae   :  { %v5961_v55 = vsel %vm1606_vm4, %v11250_v54, %v5910_v23  ;;  %v5962_v14 = vsel %vm1606_vm4, %v5910_v23, %v11260_v47  ;;  %v8436_v54 = vld [vmem:[#allocation4 + $0x4b0] sm:$0xff] }
 0x2af   :  { %6669 = vmatprep.subr.bf16.mxu1 %v5962_v14  ;;  %6633 = vmatmul.mubr.bf16.vlgmr.msra.gmra.mrb[48].mxu0 %v10888_v13 }
 0x2b0   :  { %v11331_v9 = vpop.permute.xlu0 %4951  ;;  %4521 = vrot.lane.b32.xlu0 %v11092_v21, %s8464_s13  ;;  %6670 = vmatpush1.bf16.msra.mxu1 %v5961_v55 }
 0x2b1   :  { %v4275_v34 = vpop.permute.xlu1 %4274  ;;  %5701 = vrot.lane.b32.xlu1 %v11092_v21, %s8455_s11  ;;  %8307 = vmatprep.mubr.msk.bf16.mxu0 %vm6381_vm6, %v10893_v57 }
 0x2b2   :  { %v4326_v40 = vsel %vm4314_vm10, %v10490_v63, %v4275_v34  ;;  %v4327_v0 = vsel %vm4314_vm10, %v4275_v34, %v11268_v60 }
 0x2b3   :  { %6706 = vmatprep.subr.bf16.mxu0 %v4327_v0  ;;  %6686 = vmatmul.mubr.bf16.vlgmr.msra.gmra.mrb[48].mxu1 %v10888_v13 }
 0x2b4   :  { %v11344_v18 = vpop.permute.xlu0 %4955  ;;  %4742 = vrot.lane.b32.xlu0 %v11300_v5, %s8465_s14  ;;  %6707 = vmatpush1.bf16.msra.mxu0 %v4326_v40 }
 0x2b5   :  { %v4279_v6 = vpop.permute.xlu1 %4278  ;;  %5921 = vrot.lane.b32.xlu1 %v11121_v37, %s8456_s12  ;;  %8309 = vmatprep.mubr.msk.bf16.mxu1 %vm6381_vm6, %v10893_v57 }
 0x2b6   :  { %v4328_v63 = vsel %vm4314_vm10, %v11268_v60, %v4279_v6  ;;  %v4329_v1 = vsel %vm4314_vm10, %v4279_v6, %v11279_v31  ;;  %v11469_v6 = vld [vmem:[#allocation4 + $0x4c8] sm:$0xff] }
 0x2b7   :  { %6759 = vmatprep.subr.bf16.mxu1 %v4329_v1  ;;  %6643 = vmatmul.mubr.bf16.gmra.mrb[52].mxu0 %v10927_v35 }
 0x2b8   :  { %v11357_v13 = vpop.permute.xlu0 %5242  ;;  %4746 = vrot.lane.b32.xlu0 %v11092_v21, %s8465_s14  ;;  %6760 = vmatpush1.bf16.msra.mxu1 %v4328_v63 }
 0x2b9   :  { %v4500_v24 = vpop.permute.xlu1 %4499  ;;  %5925 = vrot.lane.b32.xlu1 %v11092_v21, %s8456_s12  ;;  %8310 = vmatprep.mubr.msk.bf16.mxu0 %vm6381_vm6, %v10955_v36 }
 0x2ba   :  { %v4551_v57 = vsel %vm4539_vm0, %v10515_v4, %v4500_v24  ;;  %v4552_v37 = vsel %vm4539_vm0, %v4500_v24, %v11288_v22 }
 0x2bb   :  { %6708 = vmatprep.subr.bf16.mxu0 %v4552_v37  ;;  %6696 = vmatmul.mubr.bf16.gmra.mrb[52].mxu1 %v10927_v35 }
 0x2bc   :  { %v11370_v17 = vpop.permute.xlu0 %5246  ;;  %4967 = vrot.lane.b32.xlu0 %v11300_v5, %s8466_s15  ;;  %6709 = vmatpush1.bf16.msra.mxu0 %v4551_v57 }
 0x2bd   :  { %v4504_v29 = vpop.permute.xlu1 %4503  ;;  %4290 = vrot.lane.b32.xlu1 %v11270_v28, %s8463_s2  ;;  %8312 = vmatprep.mubr.msk.bf16.mxu1 %vm6381_vm6, %v10955_v36 }
 0x2be   :  { %v4553_v4 = vsel %vm4539_vm0, %v11288_v22, %v4504_v29  ;;  %v4554_v12 = vsel %vm4539_vm0, %v4504_v29, %v11298_v53 }
 0x2bf   :  { %6761 = vmatprep.subr.bf16.mxu1 %v4554_v12 }
 0x2c0   :  { %v11382_v35 = vpop.permute.xlu0 %5466  ;;  %4971 = vrot.lane.b32.xlu0 %v11092_v21, %s8466_s15  ;;  %6762 = vmatpush1.bf16.msra.mxu1 %v4553_v4 }
 0x2c1   :  { %v4725_v50 = vpop.permute.xlu1 %4724  ;;  %4294 = vrot.lane.b32.xlu1 %v8436_v54, %s8463_s2 }
 0x2c2   :  { %v4776_v36 = vsel %vm4764_vm11, %v11119_v62, %v4725_v50  ;;  %v4777_v16 = vsel %vm4764_vm11, %v4725_v50, %v11310_v33 }
 0x2c3   :  { %6710 = vmatprep.subr.bf16.mxu0 %v4777_v16 }
 0x2c4   :  { %v11391_v8 = vpop.permute.xlu0 %5470  ;;  %5258 = vrot.lane.b32.xlu0 %v8436_v54, %s8453_s30  ;;  %6711 = vmatpush1.bf16.msra.mxu0 %v4776_v36  ;;  %v11514_v36 = vld [vmem:[%s13124_s3 + $0x14] ss:$8 sps:$4 sm:$0xff]  }
 0x2c5   :  { %v4729_v44 = vpop.permute.xlu1 %4728  ;;  %4515 = vrot.lane.b32.xlu1 %v11270_v28, %s8464_s13 }
 0x2c6   :  { %v4778_v3 = vsel %vm4764_vm11, %v11310_v33, %v4729_v44  ;;  %v4779_v49 = vsel %vm4764_vm11, %v4729_v44, %v11320_v59 }
 0x2c7   :  { %6763 = vmatprep.subr.bf16.mxu1 %v4779_v49 }
 0x2c8   :  { %v11400_v62 = vpop.permute.xlu0 %5691  ;;  %5262 = vrot.lane.b32.xlu0 %v10856_v58, %s8453_s30  ;;  %6764 = vmatpush1.bf16.msra.mxu1 %v4778_v3 }
 0x2c9   :  { %v4950_v39 = vpop.permute.xlu1 %4949  ;;  %4519 = vrot.lane.b32.xlu1 %v8436_v54, %s8464_s13 }
 0x2ca   :  { %v5001_v48 = vsel %vm4989_vm14, %v11176_v52, %v4950_v39  ;;  %v5002_v60 = vsel %vm4989_vm14, %v4950_v39, %v11331_v9  ;;  %v11538_v39 = vld [vmem:[%s13124_s3 + $0x10] ss:$8 sps:$4 sm:$0xff]  }
 0x2cb   :  { %6712 = vmatprep.subr.bf16.mxu0 %v5002_v60  ;;  %v11550_v60 = vld [vmem:[%s13124_s3 + $0x4] ss:$8 sps:$4 sm:$0xff]  }
 0x2cc   :  { %v11409_v15 = vpop.permute.xlu0 %5695  ;;  %5482 = vrot.lane.b32.xlu0 %v8436_v54, %s8467_s16  ;;  %6713 = vmatpush1.bf16.msra.mxu0 %v5001_v48 }
 0x2cd   :  { %v4954_v19 = vpop.permute.xlu1 %4953  ;;  %4740 = vrot.lane.b32.xlu1 %v11270_v28, %s8465_s14  ;;  %6714 = vmatprep.subr.bf16.mxu0 %v6192_v61 }
 0x2ce   :  { %v5003_v58 = vsel %vm4989_vm14, %v11331_v9, %v4954_v19  ;;  %v5004_v52 = vsel %vm4989_vm14, %v4954_v19, %v11344_v18 }
 0x2cf   :  { %6765 = vmatprep.subr.bf16.mxu1 %v5004_v52 }
 0x2d0   :  { %v11418_v38 = vpop.permute.xlu0 %5915  ;;  %5486 = vrot.lane.b32.xlu0 %v11420_v32, %s8467_s16  ;;  %6715 = vmatpush1.bf16.msra.mxu0 %v6191_v45 }
 0x2d1   :  { %v5241_v22 = vpop.permute.xlu1 %5240  ;;  %4744 = vrot.lane.b32.xlu1 %v8436_v54, %s8465_s14  ;;  %6766 = vmatpush1.bf16.msra.mxu1 %v5003_v58 }
 0x2d2   :  { %v5290_v7 = vsel %vm13247_vm15, %v11202_v25, %v5241_v22  ;;  %v5291_v27 = vsel %vm13248_vm5, %v5241_v22, %v11357_v13  ;;  %6767 = vmatprep.subr.bf16.mxu1 %v11092_v21  ;;  %vm13254_vm15 = vmmov %vm13240_vm2 }
 0x2d3   :  { %6716 = vmatprep.subr.bf16.mxu0 %v5291_v27  ;;  %vm13255_vm5 = vmmov %vm13240_vm2 }
 0x2d4   :  { %v11430_v43 = vpop.permute.xlu0 %5919  ;;  %5707 = vrot.lane.b32.xlu0 %v8436_v54, %s8455_s11  ;;  %6717 = vmatpush1.bf16.msra.mxu0 %v5290_v7  ;;  %v8443_v7 = vld [vmem:[#allocation4 + $0x4d0] sm:$0xff] }
 0x2d5   :  { %v5245_v26 = vpop.permute.xlu1 %5244  ;;  %4965 = vrot.lane.b32.xlu1 %v11270_v28, %s8466_s15  ;;  %6768 = vmatpush1.bf16.msra.mxu1 %v6193_v30 }
 0x2d6   :  { %v5292_v25 = vsel %vm13240_vm2, %v11357_v13, %v5245_v26  ;;  %v5293_v56 = vsel %vm13249_vm7, %v5245_v26, %v11370_v17  ;;  %vm13256_vm7 = vmmov %vm13245_vm3 }
 0x2d7   :  { %6769 = vmatprep.subr.bf16.mxu1 %v5293_v56 }
 0x2d8   :  { %v11439_v33 = vpop.permute.xlu0 %4284  ;;  %5711 = vrot.lane.b32.xlu0 %v11420_v32, %s8455_s11 }
 0x2d9   :  { %v5465_v10 = vpop.permute.xlu1 %5464  ;;  %4969 = vrot.lane.b32.xlu1 %v8436_v54, %s8466_s15  ;;  %6770 = vmatpush1.bf16.msra.mxu1 %v5292_v25 }
 0x2da   :  { %v5515_v28 = vsel %vm5502_vm1, %v11225_v11, %v5465_v10  ;;  %v5516_v41 = vsel %vm5502_vm1, %v5465_v10, %v11382_v35 }
 0x2db   :  { %6718 = vmatprep.subr.bf16.mxu0 %v5516_v41 }
 0x2dc   :  { %v11448_v46 = vpop.permute.xlu0 %4288  ;;  %5931 = vrot.lane.b32.xlu0 %v8436_v54, %s8456_s12  ;;  %6719 = vmatpush1.bf16.msra.mxu0 %v5515_v28 }
 0x2dd   :  { %v5469_v23 = vpop.permute.xlu1 %5468  ;;  %5256 = vrot.lane.b32.xlu1 %v11300_v5, %s8453_s30 }
 0x2de   :  { %v5517_v55 = vsel %vm5502_vm1, %v11382_v35, %v5469_v23  ;;  %v5518_v14 = vsel %vm5502_vm1, %v5469_v23, %v11391_v8  ;;  %v11502_v35 = vld [vmem:[%s13124_s3] ss:$8 sps:$4 sm:$0xff]  }
 0x2df   :  { %6771 = vmatprep.subr.bf16.mxu1 %v5518_v14 }
 0x2e0   :  { %v11457_v11 = vpop.permute.xlu0 %4509  ;;  %5935 = vrot.lane.b32.xlu0 %v11420_v32, %s8456_s12  ;;  %6772 = vmatpush1.bf16.msra.mxu1 %v5517_v55  ;;  %v6196_v55 = vld [vmem:[#allocation4 + $0x488] sm:$0xff] }
 0x2e1   :  { %v5690_v9 = vpop.permute.xlu1 %5689  ;;  %5260 = vrot.lane.b32.xlu1 %v11092_v21, %s8453_s30 }
 0x2e2   :  { %v5739_v34 = vsel %vm13250_vm12, %v11242_v42, %v5690_v9  ;;  %v5740_v40 = vsel %vm13251_vm13, %v5690_v9, %v11400_v62  ;;  %v6195_v9 = vld [vmem:[#allocation4 + $0x480] sm:$0xff]  ;;  %vm13257_vm12 = vmmov %vm13245_vm3 }
 0x2e3   :  { %6720 = vmatprep.subr.bf16.mxu0 %v5740_v40  ;;  %vm13258_vm13 = vmmov %vm13245_vm3 }
 0x2e4   :  { %v11467_v0 = vpop.permute.xlu0 %4513  ;;  %4300 = vrot.lane.b32.xlu0 %v11469_v6, %s8463_s2  ;;  %6721 = vmatpush1.bf16.msra.mxu0 %v5739_v34 }
 0x2e5   :  { %v5694_v63 = vpop.permute.xlu1 %5693  ;;  %5480 = vrot.lane.b32.xlu1 %v11300_v5, %s8467_s16 }
 0x2e6   :  { %v5741_v1 = vsel %vm13252_vm8, %v11400_v62, %v5694_v63  ;;  %v5742_v42 = vsel %vm13245_vm3, %v5694_v63, %v11409_v15  ;;  %vm13259_vm8 = vmmov %vm13245_vm3 }
 0x2e7   :  { %6773 = vmatprep.subr.bf16.mxu1 %v5742_v42  ;;  %vm13265_vm3 = vmmov %vm13240_vm2 }
 0x2e8   :  { %v11479_v13 = vpop.permute.xlu0 %4734  ;;  %4304 = vrot.lane.b32.xlu0 %v11092_v21, %s8463_s2  ;;  %6774 = vmatpush1.bf16.msra.mxu1 %v5741_v1 }
 0x2e9   :  { %v5914_v24 = vpop.permute.xlu1 %5913  ;;  %5484 = vrot.lane.b32.xlu1 %v11092_v21, %s8467_s16 }
 0x2ea   :  { %v5963_v57 = vsel %vm1606_vm4, %v11260_v47, %v5914_v24  ;;  %v5964_v37 = vsel %vm1606_vm4, %v5914_v24, %v11418_v38 }
 0x2eb   :  { %6722 = vmatprep.subr.bf16.mxu0 %v5964_v37 }
 0x2ec   :  { %v11489_v29 = vpop.permute.xlu0 %4738  ;;  %4525 = vrot.lane.b32.xlu0 %v11469_v6, %s8464_s13  ;;  %6723 = vmatpush1.bf16.msra.mxu0 %v5963_v57 }
 0x2ed   :  { %v5918_v4 = vpop.permute.xlu1 %5917  ;;  %5705 = vrot.lane.b32.xlu1 %v11300_v5, %s8455_s11 }
 0x2ee   :  { %v5965_v12 = vsel %vm1606_vm4, %v11418_v38, %v5918_v4  ;;  %v5966_v47 = vsel %vm1606_vm4, %v5918_v4, %v11430_v43 }
 0x2ef   :  { %6775 = vmatprep.subr.bf16.mxu1 %v5966_v47  ;;  %6739 = vmatmul.mubr.bf16.vlgmr.msra.gmra.mrb[56].mxu0 %v11502_v35 }
 0x2f0   :  { %v11505_v50 = vpop.permute.xlu0 %4959  ;;  %4529 = vrot.lane.b32.xlu0 %v11092_v21, %s8464_s13  ;;  %6776 = vmatpush1.bf16.msra.mxu1 %v5965_v12 }
 0x2f1   :  { %v4283_v54 = vpop.permute.xlu1 %4282  ;;  %5709 = vrot.lane.b32.xlu1 %v11092_v21, %s8455_s11  ;;  %8311 = vmatprep.mubr.msk.bf16.mxu0 %vm6381_vm6, %v11514_v36 }
 0x2f2   :  { %v4330_v16 = vsel %vm4314_vm10, %v11279_v31, %v4283_v54  ;;  %v4331_v44 = vsel %vm4314_vm10, %v4283_v54, %v11439_v33 }
 0x2f3   :  { %6812 = vmatprep.subr.bf16.mxu0 %v4331_v44  ;;  %6792 = vmatmul.mubr.bf16.vlgmr.msra.gmra.mrb[56].mxu1 %v11502_v35  ;;  %v11648_v44 = vld [vmem:[#allocation4 + $0x418] sm:$0xff] }
 0x2f4   :  { %v11523_v3 = vpop.permute.xlu0 %4963  ;;  %4750 = vrot.lane.b32.xlu0 %v11469_v6, %s8465_s14  ;;  %6813 = vmatpush1.bf16.msra.mxu0 %v4330_v16 }
 0x2f5   :  { %v4287_v49 = vpop.permute.xlu1 %4286  ;;  %5929 = vrot.lane.b32.xlu1 %v11300_v5, %s8456_s12  ;;  %8313 = vmatprep.mubr.msk.bf16.mxu1 %vm6381_vm6, %v11514_v36 }
 0x2f6   :  { %v4332_v31 = vsel %vm4314_vm10, %v11439_v33, %v4287_v49  ;;  %v4333_v62 = vsel %vm4314_vm10, %v4287_v49, %v11448_v46 }
 0x2f7   :  { %6865 = vmatprep.subr.bf16.mxu1 %v4333_v62  ;;  %6749 = vmatmul.mubr.bf16.gmra.mrb[60].mxu0 %v11538_v39 }
 0x2f8   :  { %v11541_v48 = vpop.permute.xlu0 %5250  ;;  %4754 = vrot.lane.b32.xlu0 %v11092_v21, %s8465_s14  ;;  %6866 = vmatpush1.bf16.msra.mxu1 %v4332_v31 }
 0x2f9   :  { %v4508_v5 = vpop.permute.xlu1 %4507  ;;  %5933 = vrot.lane.b32.xlu1 %v11092_v21, %s8456_s12  ;;  %8314 = vmatprep.mubr.msk.bf16.mxu0 %vm6381_vm6, %v11550_v60 }
 0x2fa   :  { %v4555_v61 = vsel %vm4539_vm0, %v11298_v53, %v4508_v5  ;;  %v4556_v19 = vsel %vm4539_vm0, %v4508_v5, %v11457_v11 }
 0x2fb   :  { %6814 = vmatprep.subr.bf16.mxu0 %v4556_v19  ;;  %6802 = vmatmul.mubr.bf16.gmra.mrb[60].mxu1 %v11538_v39 }
 0x2fc   :  { %v11559_v58 = vpop.permute.xlu0 %5254  ;;  %4975 = vrot.lane.b32.xlu0 %v11469_v6, %s8466_s15  ;;  %6815 = vmatpush1.bf16.msra.mxu0 %v4555_v61 }
 0x2fd   :  { %v4512_v52 = vpop.permute.xlu1 %4511  ;;  %4298 = vrot.lane.b32.xlu1 %v11420_v32, %s8463_s2  ;;  %8316 = vmatprep.mubr.msk.bf16.mxu1 %vm6381_vm6, %v11550_v60 }
 0x2fe   :  { %v4557_v53 = vsel %vm4539_vm0, %v11457_v11, %v4512_v52  ;;  %v4558_v45 = vsel %vm4539_vm0, %v4512_v52, %v11467_v0 }
 0x2ff   :  { %6867 = vmatprep.subr.bf16.mxu1 %v4558_v45 }
 0x300   :  { %v11571_v38 = vpop.permute.xlu0 %5474  ;;  %4979 = vrot.lane.b32.xlu0 %v11092_v21, %s8466_s15  ;;  %6868 = vmatpush1.bf16.msra.mxu1 %v4557_v53 }
 0x301   :  { %v4733_v22 = vpop.permute.xlu1 %4732  ;;  %4302 = vrot.lane.b32.xlu1 %v8443_v7, %s8463_s2 }
 0x302   :  { %v4780_v27 = vsel %vm4764_vm11, %v11320_v59, %v4733_v22  ;;  %v4781_v30 = vsel %vm4764_vm11, %v4733_v22, %v11479_v13 }
 0x303   :  { %6816 = vmatprep.subr.bf16.mxu0 %v4781_v30 }
 0x304   :  { %v11580_v26 = vpop.permute.xlu0 %5478  ;;  %5266 = vrot.lane.b32.xlu0 %v8443_v7, %s8453_s30  ;;  %6817 = vmatpush1.bf16.msra.mxu0 %v4780_v27 }
 0x305   :  { %v4737_v25 = vpop.permute.xlu1 %4736  ;;  %4523 = vrot.lane.b32.xlu1 %v11420_v32, %s8464_s13 }
 0x306   :  { %v4782_v56 = vsel %vm4764_vm11, %v11479_v13, %v4737_v25  ;;  %v4783_v33 = vsel %vm4764_vm11, %v4737_v25, %v11489_v29  ;;  %v6197_v13 = vld [vmem:[#allocation4 + $0x490] sm:$0xff]  ;;  %v11702_v25 = vld [vmem:[#allocation4 + $0x4e8] sm:$0xff] }
 0x307   :  { %6869 = vmatprep.subr.bf16.mxu1 %v4783_v33 }
 0x308   :  { %v11589_v59 = vpop.permute.xlu0 %5699  ;;  %5270 = vrot.lane.b32.xlu0 %v11152_v20, %s8453_s30  ;;  %6870 = vmatpush1.bf16.msra.mxu1 %v4782_v56 }
 0x309   :  { %v4958_v10 = vpop.permute.xlu1 %4957  ;;  %4527 = vrot.lane.b32.xlu1 %v8443_v7, %s8464_s13 }
 0x30a   :  { %v5005_v28 = vsel %vm4989_vm14, %v11344_v18, %v4958_v10  ;;  %v5006_v41 = vsel %vm4989_vm14, %v4958_v10, %v11505_v50 }
 0x30b   :  { %6818 = vmatprep.subr.bf16.mxu0 %v5006_v41 }
 0x30c   :  { %v11598_v23 = vpop.permute.xlu0 %5703  ;;  %5490 = vrot.lane.b32.xlu0 %v8443_v7, %s8467_s16  ;;  %6819 = vmatpush1.bf16.msra.mxu0 %v5005_v28 }
 0x30d   :  { %v4962_v14 = vpop.permute.xlu1 %4961  ;;  %4748 = vrot.lane.b32.xlu1 %v11420_v32, %s8465_s14  ;;  %6820 = vmatprep.subr.bf16.mxu0 %v6196_v55 }
 0x30e   :  { %v5007_v11 = vsel %vm4989_vm14, %v11505_v50, %v4962_v14  ;;  %v5008_v18 = vsel %vm4989_vm14, %v4962_v14, %v11523_v3  ;;  %v11732_v14 = vld [vmem:[#allocation4 + $0x4e0] sm:$0xff] }
 0x30f   :  { %6871 = vmatprep.subr.bf16.mxu1 %v5008_v18 }
 0x310   :  { %v11607_v34 = vpop.permute.xlu0 %5923  ;;  %5494 = vrot.lane.b32.xlu0 %v11152_v20, %s8467_s16  ;;  %6821 = vmatpush1.bf16.msra.mxu0 %v6195_v9 }
 0x311   :  { %v5249_v40 = vpop.permute.xlu1 %5248  ;;  %4752 = vrot.lane.b32.xlu1 %v8443_v7, %s8465_s14  ;;  %6872 = vmatpush1.bf16.msra.mxu1 %v5007_v11 }
 0x312   :  { %v5294_v63 = vsel %vm13253_vm9, %v11370_v17, %v5249_v40  ;;  %v5295_v1 = vsel %vm13254_vm15, %v5249_v40, %v11541_v48  ;;  %6873 = vmatprep.subr.bf16.mxu1 %v11092_v21  ;;  %vm13266_vm9 = vmmov %vm13240_vm2 }
 0x313   :  { %6822 = vmatprep.subr.bf16.mxu0 %v5295_v1  ;;  %vm13271_vm15 = vmmov %vm13240_vm2 }
 0x314   :  { %v11617_v42 = vpop.permute.xlu0 %5927  ;;  %5715 = vrot.lane.b32.xlu0 %v8443_v7, %s8455_s11  ;;  %6823 = vmatpush1.bf16.msra.mxu0 %v5294_v63 }
 0x315   :  { %v5253_v24 = vpop.permute.xlu1 %5252  ;;  %4973 = vrot.lane.b32.xlu1 %v11420_v32, %s8466_s15  ;;  %6874 = vmatpush1.bf16.msra.mxu1 %v6197_v13  ;;  %v11754_v1 = vpop.f32.mrb[32].mxu0 }
 0x316   :  { %v5296_v17 = vsel %vm13255_vm5, %v11541_v48, %v5253_v24  ;;  %v5297_v57 = vsel %vm13240_vm2, %v5253_v24, %v11559_v58  ;;  %vm13272_vm5 = vmmov %vm13240_vm2 }
 0x317   :  { %6875 = vmatprep.subr.bf16.mxu1 %v5297_v57  ;;  %vm13273_vm2 = vmmov %vm13256_vm7 }
 0x318   :  { %v11626_v21 = vpop.permute.xlu0 %4292  ;;  %5719 = vrot.lane.b32.xlu0 %v11152_v20, %s8455_s11 }
 0x319   :  { %v5473_v37 = vpop.permute.xlu1 %5472  ;;  %4977 = vrot.lane.b32.xlu1 %v8443_v7, %s8466_s15  ;;  %6876 = vmatpush1.bf16.msra.mxu1 %v5296_v17  ;;  %v11756_v13 = vpop.f32.mrb[32].mxu1 }
 0x31a   :  { %v5519_v32 = vsel %vm5502_vm1, %v11391_v8, %v5473_v37  ;;  %v5520_v4 = vsel %vm5502_vm1, %v5473_v37, %v11571_v38  ;;  %v11762_v17 = vpop.f32.mrb[33].mxu0 }
 0x31b   :  { %6824 = vmatprep.subr.bf16.mxu0 %v5520_v4  ;;  %v11774_v4 = vpop.f32.mrb[34].mxu0 }
 0x31c   :  { %v11635_v12 = vpop.permute.xlu0 %4296  ;;  %5939 = vrot.lane.b32.xlu0 %v8443_v7, %s8456_s12  ;;  %6825 = vmatpush1.bf16.msra.mxu0 %v5519_v32 }
 0x31d   :  { %v5477_v47 = vpop.permute.xlu1 %5476  ;;  %5264 = vrot.lane.b32.xlu1 %v11469_v6, %s8453_s30 }
 0x31e   :  { %v5521_v50 = vsel %vm5502_vm1, %v11571_v38, %v5477_v47  ;;  %v5522_v54 = vsel %vm5502_vm1, %v5477_v47, %v11580_v26  ;;  %v11776_v47 = vpop.f32.mrb[35].mxu0 }
 0x31f   :  { %6877 = vmatprep.subr.bf16.mxu1 %v5522_v54 }
 0x320   :  { %v11644_v8 = vpop.permute.xlu0 %4517  ;;  %5943 = vrot.lane.b32.xlu0 %v11152_v20, %s8456_s12  ;;  %6878 = vmatpush1.bf16.msra.mxu1 %v5521_v50 }
 0x321   :  { %v5698_v16 = vpop.permute.xlu1 %5697  ;;  %5268 = vrot.lane.b32.xlu1 %v11648_v44, %s8453_s30 }
 0x322   :  { %v5743_v49 = vsel %vm13256_vm7, %v11409_v15, %v5698_v16  ;;  %v5744_v31 = vsel %vm13257_vm12, %v5698_v16, %v11589_v59  ;;  %vm13274_vm7 = vmmov %vm13273_vm2 }
 0x323   :  { %6826 = vmatprep.subr.bf16.mxu0 %v5744_v31  ;;  %vm13275_vm12 = vmmov %vm13273_vm2 }
 0x324   :  { %v11656_v62 = vpop.permute.xlu0 %4521  ;;  %4308 = vrot.lane.b32.xlu0 %v11164_v51, %s8463_s2  ;;  %6827 = vmatpush1.bf16.msra.mxu0 %v5743_v49 }
 0x325   :  { %v5702_v20 = vpop.permute.xlu1 %5701  ;;  %5488 = vrot.lane.b32.xlu1 %v11469_v6, %s8467_s16 }
 0x326   :  { %v5745_v48 = vsel %vm13258_vm13, %v11589_v59, %v5702_v20  ;;  %v5746_v15 = vsel %vm13259_vm8, %v5702_v20, %v11598_v23  ;;  %vm13276_vm13 = vmmov %vm13273_vm2 }
 0x327   :  { %6879 = vmatprep.subr.bf16.mxu1 %v5746_v15  ;;  %vm13285_vm8 = vmmov %vm13265_vm3 }
 0x328   :  { %v11666_v5 = vpop.permute.xlu0 %4742  ;;  %4312 = vrot.lane.b32.xlu0 %v11648_v44, %s8463_s2  ;;  %6880 = vmatpush1.bf16.msra.mxu1 %v5745_v48 }
 0x329   :  { %v5922_v61 = vpop.permute.xlu1 %5921  ;;  %5492 = vrot.lane.b32.xlu1 %v11648_v44, %s8467_s16 }
 0x32a   :  { %v5967_v19 = vsel %vm1606_vm4, %v11430_v43, %v5922_v61  ;;  %v5968_v52 = vsel %vm1606_vm4, %v5922_v61, %v11607_v34 }
 0x32b   :  { %6828 = vmatprep.subr.bf16.mxu0 %v5968_v52  ;;  %v6200_v52 = vld [vmem:[#allocation4 + $0x4a8] sm:$0xff] }
 0x32c   :  { %v11676_v53 = vpop.permute.xlu0 %4746  ;;  %4533 = vrot.lane.b32.xlu0 %v11164_v51, %s8464_s13  ;;  %6829 = vmatpush1.bf16.msra.mxu0 %v5967_v19 }
 0x32d   :  { %v5926_v45 = vpop.permute.xlu1 %5925  ;;  %5713 = vrot.lane.b32.xlu1 %v11469_v6, %s8455_s11 }
 0x32e   :  { %v5969_v38 = vsel %vm1606_vm4, %v11607_v34, %v5926_v45  ;;  %v5970_v43 = vsel %vm1606_vm4, %v5926_v45, %v11617_v42  ;;  %v11746_v34 = vld [vmem:[#allocation4 + $0x4f0] sm:$0xff] }
 0x32f   :  { %6845 = vmatmul.mubr.bf16.vlgmr.msra.gmra.mrb[64].mxu0 %v11502_v35  ;;  %6881 = vmatprep.subr.bf16.mxu1 %v5970_v43 }
 0x330   :  { %v11687_v22 = vpop.permute.xlu0 %4967  ;;  %4537 = vrot.lane.b32.xlu0 %v11648_v44, %s8464_s13  ;;  %6882 = vmatpush1.bf16.msra.mxu1 %v5969_v38 }
 0x331   :  { %v4291_v51 = vpop.permute.xlu1 %4290  ;;  %5717 = vrot.lane.b32.xlu1 %v11648_v44, %s8455_s11  ;;  %8315 = vmatprep.mubr.msk.bf16.mxu0 %vm6381_vm6, %v11514_v36 }
 0x332   :  { %v4334_v7 = vsel %vm4314_vm10, %v11448_v46, %v4291_v51  ;;  %v4335_v27 = vsel %vm4314_vm10, %v4291_v51, %v11626_v21 }
 0x333   :  { %6898 = vmatmul.mubr.bf16.vlgmr.msra.gmra.mrb[64].mxu1 %v11502_v35  ;;  %6918 = vmatprep.subr.bf16.mxu0 %v4335_v27 }
 0x334   :  { %v11700_v30 = vpop.permute.xlu0 %4971  ;;  %4758 = vrot.lane.b32.xlu0 %v11702_v25, %s8465_s14  ;;  %6919 = vmatpush1.bf16.msra.mxu0 %v4334_v7 }
 0x335   :  { %v4295_v56 = vpop.permute.xlu1 %4294  ;;  %5937 = vrot.lane.b32.xlu1 %v11469_v6, %s8456_s12  ;;  %8317 = vmatprep.mubr.msk.bf16.mxu1 %vm6381_vm6, %v11514_v36 }
 0x336   :  { %v4336_v46 = vsel %vm4314_vm10, %v11626_v21, %v4295_v56  ;;  %v4337_v33 = vsel %vm4314_vm10, %v4295_v56, %v11635_v12  ;;  %v6199_v56 = vld [vmem:[#allocation4 + $0x4a0] sm:$0xff] }
 0x337   :  { %6855 = vmatmul.mubr.bf16.gmra.mrb[68].mxu0 %v11538_v39  ;;  %6971 = vmatprep.subr.bf16.mxu1 %v4337_v33 }
 0x338   :  { %v11715_v59 = vpop.permute.xlu0 %5258  ;;  %4762 = vrot.lane.b32.xlu0 %v11648_v44, %s8465_s14  ;;  %6972 = vmatpush1.bf16.msra.mxu1 %v4336_v46 }
 0x339   :  { %v4516_v10 = vpop.permute.xlu1 %4515  ;;  %5941 = vrot.lane.b32.xlu1 %v11648_v44, %s8456_s12  ;;  %8318 = vmatprep.mubr.msk.bf16.mxu0 %vm6381_vm6, %v11550_v60 }
 0x33a   :  { %v4559_v6 = vsel %vm4539_vm0, %v11467_v0, %v4516_v10  ;;  %v4560_v28 = vsel %vm4539_vm0, %v4516_v10, %v11644_v8 }
 0x33b   :  { %6908 = vmatmul.mubr.bf16.gmra.mrb[68].mxu1 %v11538_v39  ;;  %6920 = vmatprep.subr.bf16.mxu0 %v4560_v28 }
 0x33c   :  { %v11728_v41 = vpop.permute.xlu0 %5262  ;;  %4983 = vrot.lane.b32.xlu0 %v11702_v25, %s8466_s15  ;;  %6921 = vmatpush1.bf16.msra.mxu0 %v4559_v6 }
 0x33d   :  { %v4520_v55 = vpop.permute.xlu1 %4519  ;;  %4306 = vrot.lane.b32.xlu1 %v11732_v14, %s8463_s2  ;;  %8320 = vmatprep.mubr.msk.bf16.mxu1 %vm6381_vm6, %v11550_v60 }
 0x33e   :  { %v4561_v0 = vsel %vm4539_vm0, %v11644_v8, %v4520_v55  ;;  %v4562_v11 = vsel %vm4539_vm0, %v4520_v55, %v11656_v62  ;;  %v11784_v8 = vpop.f32.mrb[36].mxu0 }
 0x33f   :  { %6973 = vmatprep.subr.bf16.mxu1 %v4562_v11  ;;  %13260 = vst [vmem:[#allocation6_spill] sm:$0xff] %v11784_v8  ;;  %v11794_v48 = vpop.f32.mrb[37].mxu0 }
 0x340   :  { %v11742_v18 = vpop.permute.xlu0 %5482  ;;  %4987 = vrot.lane.b32.xlu0 %v11648_v44, %s8466_s15  ;;  %6974 = vmatpush1.bf16.msra.mxu1 %v4561_v0  ;;  %13262 = vst [vmem:[#allocation8_spill] sm:$0xff] %v11794_v48  ;;  %v11800_v61 = vpop.f32.mrb[38].mxu0 }
 0x341   :  { %v4741_v9 = vpop.permute.xlu1 %4740  ;;  %4310 = vrot.lane.b32.xlu1 %v11746_v34, %s8463_s2 }
 0x342   :  { %v4784_v40 = vsel %vm4764_vm11, %v11489_v29, %v4741_v9  ;;  %v4785_v63 = vsel %vm4764_vm11, %v4741_v9, %v11666_v5  ;;  %v11766_v29 = vpop.f32.mrb[33].mxu1 }
 0x343   :  { %6922 = vmatprep.subr.bf16.mxu0 %v4785_v63  ;;  %v11772_v32 = vpop.f32.mrb[34].mxu1 }
 0x344   :  { %v11758_v24 = vpop.permute.xlu0 %5486  ;;  %5274 = vrot.lane.b32.xlu0 %v11746_v34, %s8453_s30  ;;  %6923 = vmatpush1.bf16.msra.mxu0 %v4784_v40  ;;  %v11778_v50 = vpop.f32.mrb[35].mxu1 }
 0x345   :  { %v4745_v57 = vpop.permute.xlu1 %4744  ;;  %4531 = vrot.lane.b32.xlu1 %v11732_v14, %s8464_s13  ;;  %v11788_v49 = vpop.f32.mrb[36].mxu1 }
 0x346   :  { %v4786_v21 = vsel %vm4764_vm11, %v11666_v5, %v4745_v57  ;;  %v4787_v37 = vsel %vm4764_vm11, %v4745_v57, %v11676_v53  ;;  %13261 = vst [vmem:[#allocation7_spill] sm:$0xff] %v11788_v49  ;;  %v11796_v15 = vpop.f32.mrb[37].mxu1 }
 0x347   :  { %6975 = vmatprep.subr.bf16.mxu1 %v4787_v37  ;;  %13263 = vst [vmem:[#allocation9_spill] sm:$0xff] %v11796_v15  ;;  %v11798_v5 = vpop.f32.mrb[38].mxu1 }
 0x348   :  { %v11780_v54 = vpop.permute.xlu0 %5707  ;;  %5496 = vrot.lane.b32.xlu0 %v11702_v25, %s8467_s16  ;;  %6976 = vmatpush1.bf16.msra.mxu1 %v4786_v21  ;;  %v11810_v38 = vpop.f32.mrb[39].mxu1 }
 0x349   :  { %v4966_v16 = vpop.permute.xlu1 %4965  ;;  %4535 = vrot.lane.b32.xlu1 %v11746_v34, %s8464_s13  ;;  %v11818_v27 = vpop.f32.mrb[40].mxu1 }
 0x34a   :  { %v5009_v31 = vsel %vm4989_vm14, %v11523_v3, %v4966_v16  ;;  %v5010_v20 = vsel %vm4989_vm14, %v4966_v16, %v11687_v22  ;;  %v11806_v3 = vpop.f32.mrb[39].mxu0  ;;  %v11822_v33 = vpop.f32.mrb[41].mxu1 }
 0x34b   :  { %6924 = vmatprep.subr.bf16.mxu0 %v5010_v20  ;;  %v11816_v7 = vpop.f32.mrb[40].mxu0  ;;  %13264 = vst [vmem:[#allocation10_spill] sm:$0xff] %v11822_v33 }
 0x34c   :  { %v11802_v19 = vpop.permute.xlu0 %5711  ;;  %5500 = vrot.lane.b32.xlu0 %v11648_v44, %s8467_s16  ;;  %6925 = vmatpush1.bf16.msra.mxu0 %v5009_v31  ;;  %v11820_v46 = vpop.f32.mrb[41].mxu0 }
 0x34d   :  { %v4970_v45 = vpop.permute.xlu1 %4969  ;;  %4756 = vrot.lane.b32.xlu1 %v11732_v14, %s8465_s14  ;;  %6926 = vmatprep.subr.bf16.mxu0 %v6200_v52  ;;  %v11832_v28 = vpop.f32.mrb[42].mxu0 }
 0x34e   :  { %v5011_v43 = vsel %vm4989_vm14, %v11687_v22, %v4970_v45  ;;  %v5012_v51 = vsel %vm4989_vm14, %v4970_v45, %v11700_v30  ;;  %v11828_v22 = vpop.f32.mrb[42].mxu1  ;;  %v11839_v11 = vpop.f32.mrb[43].mxu0 }
 0x34f   :  { %6977 = vmatprep.subr.bf16.mxu1 %v5012_v51  ;;  %v11841_v9 = vpop.f32.mrb[43].mxu1  ;;  %v11843_v40 = vpop.f32.mrb[44].mxu0 }
 0x350   :  { %v11824_v10 = vpop.permute.xlu0 %5931  ;;  %5723 = vrot.lane.b32.xlu0 %v11746_v34, %s8455_s11  ;;  %6927 = vmatpush1.bf16.msra.mxu0 %v6199_v56  ;;  %13267 = vst [vmem:[#allocation11_spill] sm:$0xff] %v11843_v40  ;;  %v11845_v63 = vpop.f32.mrb[44].mxu1 }
 0x351   :  { %v5257_v6 = vpop.permute.xlu1 %5256  ;;  %4760 = vrot.lane.b32.xlu1 %v11746_v34, %s8465_s14  ;;  %6978 = vmatpush1.bf16.msra.mxu1 %v5011_v43  ;;  %13268 = vst [vmem:[#allocation12_spill] sm:$0xff] %v11845_v63  ;;  %v11851_v21 = vpop.f32.mrb[45].mxu0 }
 0x352   :  { %v5298_v55 = vsel %vm13265_vm3, %v11559_v58, %v5257_v6  ;;  %v5299_v0 = vsel %vm13266_vm9, %v5257_v6, %v11715_v59  ;;  %6979 = vmatprep.subr.bf16.mxu1 %v11648_v44  ;;  %v6201_v58 = vld [vmem:[#allocation4 + $0x4b0] sm:$0xff]  ;;  %13269 = vst [vmem:[#allocation13_spill] sm:$0xff] %v11851_v21  ;;  %v11855_v16 = vpop.f32.mrb[45].mxu1  ;;  %v11863_v45 = vpop.f32.mrb[46].mxu0  ;;  %vm13286_vm9 = vmmov %vm13265_vm3 }
 0x353   :  { %6928 = vmatprep.subr.bf16.mxu0 %v5299_v0  ;;  %13270 = vst [vmem:[#allocation14_spill] sm:$0xff] %v11855_v16  ;;  %v11861_v52 = vpop.f32.mrb[46].mxu1  ;;  %v11865_v43 = vpop.f32.mrb[47].mxu0 }
 0x354   :  { %v11847_v57 = vpop.permute.xlu0 %5935  ;;  %5945 = vrot.lane.b32.xlu0 %v11702_v25, %s8456_s12  ;;  %6929 = vmatpush1.bf16.msra.mxu0 %v5298_v55  ;;  %v11867_v51 = vpop.f32.mrb[47].mxu1 }
 0x355   :  { %v5261_v37 = vpop.permute.xlu1 %5260  ;;  %4981 = vrot.lane.b32.xlu1 %v11732_v14, %s8466_s15  ;;  %6980 = vmatpush1.bf16.msra.mxu1 %v6201_v58 }
 0x356   :  { %v5300_v31 = vsel %vm13271_vm15, %v11715_v59, %v5261_v37  ;;  %v5301_v20 = vsel %vm13272_vm5, %v5261_v37, %v11728_v41  ;;  %v6340_v59 = vld [vmem:[%s13125_s4 + $0x8] sm:$0xff]  ;;  %v6342_v37 = vld [vmem:[%s13125_s4 + $0x18] sm:$0xff]  ;;  %vm13287_vm15 = vmmov %vm13265_vm3 }
 0x357   :  { %6981 = vmatprep.subr.bf16.mxu1 %v5301_v20  ;;  %vm13288_vm5 = vmmov %vm13273_vm2 }
 0x358   :  { %v11869_v56 = vpop.permute.xlu0 %4300  ;;  %5949 = vrot.lane.b32.xlu0 %v11648_v44, %s8456_s12 }
 0x359   :  { %v5481_v14 = vpop.permute.xlu1 %5480  ;;  %4985 = vrot.lane.b32.xlu1 %v11746_v34, %s8466_s15  ;;  %6982 = vmatpush1.bf16.msra.mxu1 %v5300_v31 }
 0x35a   :  { %v5523_v6 = vsel %vm5502_vm1, %v11580_v26, %v5481_v14  ;;  %v5524_v55 = vsel %vm5502_vm1, %v5481_v14, %v11742_v18 }
 0x35b   :  { %6930 = vmatprep.subr.bf16.mxu0 %v5524_v55 }
 0x35c   :  { %v11882_v0 = vpop.permute.xlu0 %4304  ;;  %6350 = vperm.xlu0 %8402, %v6340_v59   ;;  %6931 = vmatpush1.bf16.msra.mxu0 %v5523_v6  ;;  %v7365_v59 = vld [vmem:[%s13126_s5 + $0x8] sm:$0xff] }
 0x35d   :  { %v5485_v58 = vpop.permute.xlu1 %5484  ;;  %5272 = vrot.lane.b32.xlu1 %v11702_v25, %s8453_s30 }
 0x35e   :  { %v5525_v31 = vsel %vm5502_vm1, %v11742_v18, %v5485_v58  ;;  %v5526_v26 = vsel %vm5502_vm1, %v5485_v58, %v11758_v24 }
 0x35f   :  { %6983 = vmatprep.subr.bf16.mxu1 %v5526_v26 }
 0x360   :  { %v11893_v20 = vpop.permute.xlu0 %4525  ;;  %6360 = vperm.xlu0 %8402, %v6342_v37   ;;  %6984 = vmatpush1.bf16.msra.mxu1 %v5525_v31  ;;  %v7367_v37 = vld [vmem:[%s13126_s5 + $0x18] sm:$0xff] }
 0x361   :  { %v5706_v14 = vpop.permute.xlu1 %5705  ;;  %5276 = vrot.lane.b32.xlu1 %v11648_v44, %s8453_s30 }
 0x362   :  { %v5747_v6 = vsel %vm13273_vm2, %v11598_v23, %v5706_v14  ;;  %v5748_v18 = vsel %vm13274_vm7, %v5706_v14, %v11780_v54  ;;  %vm13289_vm7 = vmmov %vm13273_vm2 }
 0x363   :  { %6932 = vmatprep.subr.bf16.mxu0 %v5748_v18 }
 0x364   :  { %v11904_v55 = vpop.permute.xlu0 %4529  ;;  %7375 = vperm.xlu0 %8402, %v7365_v59   ;;  %6933 = vmatpush1.bf16.msra.mxu0 %v5747_v6 }
 0x365   :  { %v5710_v58 = vpop.permute.xlu1 %5709  ;;  %5498 = vrot.lane.b32.xlu1 %v11746_v34, %s8467_s16 }
 0x366   :  { %v5749_v31 = vsel %vm13275_vm12, %v11780_v54, %v5710_v58  ;;  %v5750_v23 = vsel %vm13276_vm13, %v5710_v58, %v11802_v19  ;;  %vm13290_vm12 = vmmov %vm13273_vm2 }
 0x367   :  { %6985 = vmatprep.subr.bf16.mxu1 %v5750_v23  ;;  %v6339_v23 = vld [vmem:[%s13125_s4] sm:$0xff] }
 0x368   :  { %v11915_v26 = vpop.permute.xlu0 %4750  ;;  %7385 = vperm.xlu0 %8402, %v7367_v37   ;;  %6986 = vmatpush1.bf16.msra.mxu1 %v5749_v31 }
 0x369   :  { %v5930_v14 = vpop.permute.xlu1 %5929  ;;  %5721 = vrot.lane.b32.xlu1 %v11702_v25, %s8455_s11 }
 0x36a   :  { %v5971_v59 = vsel %vm1606_vm4, %v11617_v42, %v5930_v14  ;;  %v5972_v6 = vsel %vm1606_vm4, %v5930_v14, %v11824_v10 }
 0x36b   :  { %6934 = vmatprep.subr.bf16.mxu0 %v5972_v6  ;;  %v6341_v6 = vld [vmem:[%s13125_s4 + $0x10] sm:$0xff] }
 0x36c   :  { %v11923_v54 = vpop.permute.xlu0 %4754  ;;  %6935 = vmatpush1.bf16.msra.mxu0 %v5971_v59 }
 0x36d   :  { %v5934_v18 = vpop.permute.xlu1 %5933  ;;  %5725 = vrot.lane.b32.xlu1 %v11648_v44, %s8455_s11 }
 0x36e   :  { %v5973_v58 = vsel %vm1606_vm4, %v11824_v10, %v5934_v18  ;;  %v5974_v25 = vsel %vm1606_vm4, %v5934_v18, %v11847_v57 }
 0x36f   :  { %6951 = vmatmul.mubr.bf16.vlgmr.msra.gmra.mrb[72].mxu0 %v11502_v35  ;;  %6987 = vmatprep.subr.bf16.mxu1 %v5974_v25 }
 0x370   :  { %v11932_v42 = vpop.permute.xlu0 %4975  ;;  %6988 = vmatpush1.bf16.msra.mxu1 %v5973_v58  ;;  %8319 = vmatprep.mubr.msk.bf16.mxu0 %vm6381_vm6, %v11514_v36  ;;  %v7364_v58 = vld [vmem:[%s13126_s5] sm:$0xff] }
 0x371   :  { %v4299_v37 = vpop.permute.xlu1 %4298  ;;  %5947 = vrot.lane.b32.xlu1 %v11746_v34, %s8456_s12 }
 0x372   :  { %v4338_v31 = vsel %vm4314_vm10, %v11635_v12, %v4299_v37  ;;  %v4339_v10 = vsel %vm4314_vm10, %v4299_v37, %v11869_v56 }
 0x373   :  { %7004 = vmatmul.mubr.bf16.vlgmr.msra.gmra.mrb[72].mxu1 %v11502_v35  ;;  %7024 = vmatprep.subr.bf16.mxu0 %v4339_v10  ;;  %v7366_v10 = vld [vmem:[%s13126_s5 + $0x10] sm:$0xff] }
 0x374   :  { %v11946_v14 = vpop.permute.xlu0 %4979  ;;  %7025 = vmatpush1.bf16.msra.mxu0 %v4338_v31  ;;  %8321 = vmatprep.mubr.msk.bf16.mxu1 %vm6381_vm6, %v11514_v36 }
 0x375   :  { %v4303_v34 = vpop.permute.xlu1 %4302  ;;  %6345 = vperm.xlu1 %8401, %v6339_v23  }
 0x376   :  { %v4340_v12 = vsel %vm4314_vm10, %v11869_v56, %v4303_v34  ;;  %v4341_v59 = vsel %vm4314_vm10, %v4303_v34, %v11882_v0 }
 0x377   :  { %6961 = vmatmul.mubr.bf16.gmra.mrb[76].mxu0 %v11538_v39  ;;  %7077 = vmatprep.subr.bf16.mxu1 %v4341_v59 }
 0x378   :  { %v11958_v35 = vpop.permute.xlu0 %5266  ;;  %7078 = vmatpush1.bf16.msra.mxu1 %v4340_v12  ;;  %8322 = vmatprep.mubr.msk.bf16.mxu0 %vm6381_vm6, %v11550_v60 }
 0x379   :  { %v4524_v36 = vpop.permute.xlu1 %4523  ;;  %6355 = vperm.xlu1 %8401, %v6341_v6  }
 0x37a   :  { %v4563_v56 = vsel %vm4539_vm0, %v11656_v62, %v4524_v36  ;;  %v4564_v18 = vsel %vm4539_vm0, %v4524_v36, %v11893_v20 }
 0x37b   :  { %7014 = vmatmul.mubr.bf16.gmra.mrb[76].mxu1 %v11538_v39  ;;  %7026 = vmatprep.subr.bf16.mxu0 %v4564_v18 }
 0x37c   :  { %v11970_v25 = vpop.permute.xlu0 %5270  ;;  %7027 = vmatpush1.bf16.msra.mxu0 %v4563_v56  ;;  %8324 = vmatprep.mubr.msk.bf16.mxu1 %vm6381_vm6, %v11550_v60 }
 0x37d   :  { %v4528_v37 = vpop.permute.xlu1 %4527  ;;  %7370 = vperm.xlu1 %8401, %v7364_v58  }
 0x37e   :  { %v4565_v62 = vsel %vm4539_vm0, %v11893_v20, %v4528_v37  ;;  %v4566_v31 = vsel %vm4539_vm0, %v4528_v37, %v11904_v55 }
 0x37f   :  { %7079 = vmatprep.subr.bf16.mxu1 %v4566_v31 }
 0x380   :  { %v11981_v39 = vpop.permute.xlu0 %5490  ;;  %7080 = vmatpush1.bf16.msra.mxu1 %v4565_v62 }
 0x381   :  { %v4749_v23 = vpop.permute.xlu1 %4748  ;;  %7380 = vperm.xlu1 %8401, %v7366_v10  }
 0x382   :  { %v4788_v60 = vsel %vm4764_vm11, %v11676_v53, %v4749_v23  ;;  %v4789_v34 = vsel %vm4764_vm11, %v4749_v23, %v11915_v26  ;;  %v11987_v20 = vpop.f32.mrb[48].mxu0 }
 0x383   :  { %13277 = vst [vmem:[#allocation15_spill] sm:$0xff] %v11987_v20  ;;  %7028 = vmatprep.subr.bf16.mxu0 %v4789_v34  ;;  %v11989_v12 = vpop.f32.mrb[49].mxu0 }
 0x384   :  { %13278 = vst [vmem:[#allocation16_spill] sm:$0xff] %v11989_v12  ;;  %v11991_v59 = vpop.permute.xlu0 %5494  ;;  %7029 = vmatpush1.bf16.msra.mxu0 %v4788_v60  ;;  %v11993_v6 = vpop.f32.mrb[50].mxu0 }
 0x385   :  { %v4753_v36 = vpop.permute.xlu1 %4752  ;;  %v11995_v56 = vpop.f32.mrb[51].mxu0 }
 0x386   :  { %v4790_v18 = vsel %vm4764_vm11, %v11915_v26, %v4753_v36  ;;  %v4791_v53 = vsel %vm4764_vm11, %v4753_v36, %v11923_v54  ;;  %v12001_v58 = vpop.f32.mrb[48].mxu1 }
 0x387   :  { %13279 = vst [vmem:[#allocation17_spill] sm:$0xff] %v12001_v58  ;;  %7081 = vmatprep.subr.bf16.mxu1 %v4791_v53  ;;  %v12003_v37 = vpop.f32.mrb[49].mxu1  ;;  %v8452_v58 = vld [vmem:[#allocation4 + $0x418] sm:$0xff] }
 0x388   :  { %13280 = vst [vmem:[#allocation18_spill] sm:$0xff] %v12003_v37  ;;  %v12005_v62 = vpop.permute.xlu0 %5715  ;;  %7082 = vmatpush1.bf16.msra.mxu1 %v4790_v18  ;;  %v12007_v31 = vpop.f32.mrb[50].mxu1  ;;  %v6204_v18 = vld [vmem:[#allocation4 + $0x4c8] sm:$0xff] }
 0x389   :  { %v4974_v10 = vpop.permute.xlu1 %4973  ;;  %v12009_v23 = vpop.f32.mrb[51].mxu1 }
 0x38a   :  { %v5013_v60 = vsel %vm4989_vm14, %v11700_v30, %v4974_v10  ;;  %v5014_v26 = vsel %vm4989_vm14, %v4974_v10, %v11932_v42  ;;  %v12015_v34 = vpop.f32.mrb[52].mxu0 }
 0x38b   :  { %13281 = vst [vmem:[#allocation19_spill] sm:$0xff] %v12015_v34  ;;  %7030 = vmatprep.subr.bf16.mxu0 %v5014_v26  ;;  %v12017_v36 = vpop.f32.mrb[53].mxu0  ;;  %v6203_v26 = vld [vmem:[#allocation4 + $0x4c0] sm:$0xff] }
 0x38c   :  { %13282 = vst [vmem:[#allocation20_spill] sm:$0xff] %v12017_v36  ;;  %v12019_v53 = vpop.permute.xlu0 %5719  ;;  %7031 = vmatpush1.bf16.msra.mxu0 %v5013_v60  ;;  %v12021_v2 = vpop.f32.mrb[54].mxu0 }
 0x38d   :  { %v4978_v16 = vpop.permute.xlu1 %4977  ;;  %7032 = vmatprep.subr.bf16.mxu0 %v6204_v18  ;;  %v12023_v63 = vpop.f32.mrb[55].mxu0 }
 0x38e   :  { %v5015_v30 = vsel %vm4989_vm14, %v11932_v42, %v4978_v16  ;;  %v5016_v10 = vsel %vm4989_vm14, %v4978_v16, %v11946_v14  ;;  %v12029_v34 = vpop.f32.mrb[52].mxu1 }
 0x38f   :  { %13283 = vst [vmem:[#allocation21_spill] sm:$0xff] %v12029_v34  ;;  %7083 = vmatprep.subr.bf16.mxu1 %v5016_v10  ;;  %v12031_v36 = vpop.f32.mrb[53].mxu1  ;;  %v6205_v10 = vld [vmem:[#allocation4 + $0x4d0] sm:$0xff] }
 0x390   :  { %13284 = vst [vmem:[#allocation22_spill] sm:$0xff] %v12031_v36  ;;  %v5940_v60 = vpop.permute.xlu0 %5939  ;;  %7033 = vmatpush1.bf16.msra.mxu0 %v6203_v26  ;;  %7084 = vmatpush1.bf16.msra.mxu1 %v5015_v30  ;;  %v12033_v21 = vpop.f32.mrb[54].mxu1 }
 0x391   :  { %v5265_v18 = vpop.permute.xlu1 %5264  ;;  %7085 = vmatprep.subr.bf16.mxu1 %v11648_v44  ;;  %v12036_v40 = vpop.f32.mrb[55].mxu1 }
 0x392   :  { %v5302_v42 = vsel %vm13285_vm8, %v11728_v41, %v5265_v18  ;;  %v5303_v16 = vsel %vm13265_vm3, %v5265_v18, %v11958_v35 }
 0x393   :  { %7034 = vmatprep.subr.bf16.mxu0 %v5303_v16 }
 0x394   :  { %v12042_v34 = vpop.permute.xlu0 %5943  ;;  %7035 = vmatpush1.bf16.msra.mxu0 %v5302_v42  ;;  %7086 = vmatpush1.bf16.msra.mxu1 %v6205_v10 }
 0x395   :  { %v5269_v30 = vpop.permute.xlu1 %5268 }
 0x396   :  { %v5304_v26 = vsel %vm13286_vm9, %v11958_v35, %v5269_v30  ;;  %v5305_v44 = vsel %vm13287_vm15, %v5269_v30, %v11970_v25 }
 0x397   :  { %7087 = vmatprep.subr.bf16.mxu1 %v5305_v44 }
 0x398   :  { %v4309_v36 = vpop.permute.xlu0 %4308  ;;  %7088 = vmatpush1.bf16.msra.mxu1 %v5304_v26 }
 0x399   :  { %v5489_v41 = vpop.permute.xlu1 %5488 }
 0x39a   :  { %v5527_v18 = vsel %vm5502_vm1, %v11758_v24, %v5489_v41  ;;  %v5528_v16 = vsel %vm5502_vm1, %v5489_v41, %v11981_v39 }
 0x39b   :  { %7036 = vmatprep.subr.bf16.mxu0 %v5528_v16 }
 0x39c   :  { %v4313_v42 = vpop.permute.xlu0 %4312  ;;  %7037 = vmatpush1.bf16.msra.mxu0 %v5527_v18 }
 0x39d   :  { %v5493_v10 = vpop.permute.xlu1 %5492 }
 0x39e   :  { %v5529_v35 = vsel %vm5502_vm1, %v11981_v39, %v5493_v10  ;;  %v5530_v30 = vsel %vm5502_vm1, %v5493_v10, %v11991_v59 }
 0x39f   :  { %7089 = vmatprep.subr.bf16.mxu1 %v5530_v30 }
 0x3a0   :  { %v4534_v44 = vpop.permute.xlu0 %4533  ;;  %7090 = vmatpush1.bf16.msra.mxu1 %v5529_v35 }
 0x3a1   :  { %v5714_v26 = vpop.permute.xlu1 %5713 }
 0x3a2   :  { %v5751_v24 = vsel %vm13288_vm5, %v11802_v19, %v5714_v26  ;;  %v5752_v41 = vsel %vm13273_vm2, %v5714_v26, %v12005_v62 }
 0x3a3   :  { %7038 = vmatprep.subr.bf16.mxu0 %v5752_v41 }
 0x3a4   :  { %v4538_v16 = vpop.permute.xlu0 %4537  ;;  %7039 = vmatpush1.bf16.msra.mxu0 %v5751_v24 }
 0x3a5   :  { %v5718_v18 = vpop.permute.xlu1 %5717 }
 0x3a6   :  { %v5753_v39 = vsel %vm13289_vm7, %v12005_v62, %v5718_v18  ;;  %v5754_v10 = vsel %vm13290_vm12, %v5718_v18, %v12019_v53  ;;  %v12075_v18 = vld [vmem:[%s13124_s3] ss:$8 sps:$4 sm:$0xff]  }
 0x3a7   :  { %7091 = vmatprep.subr.bf16.mxu1 %v5754_v10 }
 0x3a8   :  { %v12064_v30 = vpop.permute.xlu0 %4758  ;;  %7092 = vmatpush1.bf16.msra.mxu1 %v5753_v39  ;;  %v12083_v39 = vld [vmem:[%s13124_s3 + $0x14] ss:$8 sps:$4 sm:$0xff]  }
 0x3a9   :  { %v5938_v35 = vpop.permute.xlu1 %5937 }
 0x3aa   :  { %v5975_v19 = vsel %vm1606_vm4, %v11847_v57, %v5938_v35  ;;  %v5976_v26 = vsel %vm1606_vm4, %v5938_v35, %v5940_v60 }
 0x3ab   :  { %7040 = vmatprep.subr.bf16.mxu0 %v5976_v26 }
 0x3ac   :  { %v4763_v41 = vpop.permute.xlu0 %4762  ;;  %7041 = vmatpush1.bf16.msra.mxu0 %v5975_v19 }
 0x3ad   :  { %v5942_v24 = vpop.permute.xlu1 %5941 }
 0x3ae   :  { %v5977_v15 = vsel %vm1606_vm4, %v5940_v60, %v5942_v24  ;;  %v5978_v62 = vsel %vm1606_vm4, %v5942_v24, %v12042_v34 }
 0x3af   :  { %7057 = vmatmul.mubr.bf16.vlgmr.msra.gmra.mrb[80].mxu0 %v12075_v18  ;;  %7093 = vmatprep.subr.bf16.mxu1 %v5978_v62 }
 0x3b0   :  { %v12078_v57 = vpop.permute.xlu0 %4983  ;;  %7094 = vmatpush1.bf16.msra.mxu1 %v5977_v15  ;;  %8323 = vmatprep.mubr.msk.bf16.mxu0 %vm6381_vm6, %v12083_v39 }
 0x3b1   :  { %v4307_v60 = vpop.permute.xlu1 %4306 }
 0x3b2   :  { %v4342_v10 = vsel %vm4314_vm10, %v11882_v0, %v4307_v60  ;;  %v4343_v35 = vsel %vm4314_vm10, %v4307_v60, %v4309_v36  ;;  %v12100_v0 = vld [vmem:[%s13124_s3 + $0x10] ss:$8 sps:$4 sm:$0xff]   ;;  %v8451_v60 = vld [vmem:[%s13124_s3 + $0x4] ss:$8 sps:$4 sm:$0xff]  }
 0x3b3   :  { %7110 = vmatmul.mubr.bf16.vlgmr.msra.gmra.mrb[80].mxu1 %v12075_v18  ;;  %7130 = vmatprep.subr.bf16.mxu0 %v4343_v35 }
 0x3b4   :  { %v12091_v19 = vpop.permute.xlu0 %4987  ;;  %7131 = vmatpush1.bf16.msra.mxu0 %v4342_v10  ;;  %8325 = vmatprep.mubr.msk.bf16.mxu1 %vm6381_vm6, %v12083_v39 }
 0x3b5   :  { %v4311_v15 = vpop.permute.xlu1 %4310 }
 0x3b6   :  { %v4344_v26 = vsel %vm4314_vm10, %v4309_v36, %v4311_v15  ;;  %v4345_v24 = vsel %vm4314_vm10, %v4311_v15, %v4313_v42  ;;  %vm13299_vm10 = vmmov %vm13265_vm3 }
 0x3b7   :  { %7067 = vmatmul.mubr.bf16.gmra.mrb[84].mxu0 %v12100_v0  ;;  %7183 = vmatprep.subr.bf16.mxu1 %v4345_v24 }
 0x3b8   :  { %v12103_v62 = vpop.permute.xlu0 %5274  ;;  %7184 = vmatpush1.bf16.msra.mxu1 %v4344_v26  ;;  %8326 = vmatprep.mubr.msk.bf16.mxu0 %vm6381_vm6, %v8451_v60 }
 0x3b9   :  { %v4532_v36 = vpop.permute.xlu1 %4531 }
 0x3ba   :  { %v4567_v42 = vsel %vm4539_vm0, %v11904_v55, %v4532_v36  ;;  %v4568_v10 = vsel %vm4539_vm0, %v4532_v36, %v4534_v44 }
 0x3bb   :  { %7120 = vmatmul.mubr.bf16.gmra.mrb[84].mxu1 %v12100_v0  ;;  %7132 = vmatprep.subr.bf16.mxu0 %v4568_v10 }
 0x3bc   :  { %v12113_v35 = vpop.permute.xlu0 %5496  ;;  %7133 = vmatpush1.bf16.msra.mxu0 %v4567_v42  ;;  %8328 = vmatprep.mubr.msk.bf16.mxu1 %vm6381_vm6, %v8451_v60 }
 0x3bd   :  { %v12119_v15 = vsel %vm5502_vm1, %v11991_v59, %v12113_v35  ;;  %v4536_v26 = vpop.permute.xlu1 %4535 }
 0x3be   :  { %v4569_v24 = vsel %vm4539_vm0, %v4534_v44, %v4536_v26  ;;  %v4570_v55 = vsel %vm4539_vm0, %v4536_v26, %v4538_v16  ;;  %vm13300_vm0 = vmmov %vm13265_vm3 }
 0x3bf   :  { %7185 = vmatprep.subr.bf16.mxu1 %v4570_v55 }
 0x3c0   :  { %v12123_v36 = vpop.permute.xlu0 %5500  ;;  %7186 = vmatpush1.bf16.msra.mxu1 %v4569_v24 }
 0x3c1   :  { %5598 = vst.msk [vmem:[#allocation4 + $0x6f8] sm:$0xff] %vm5502_vm1, %v12123_v36  ;;  %v4757_v42 = vpop.permute.xlu1 %4756 }
 0x3c2   :  { %v4792_v60 = vsel %vm4764_vm11, %v11923_v54, %v4757_v42  ;;  %v4793_v59 = vsel %vm4764_vm11, %v4757_v42, %v12064_v30  ;;  %v12131_v10 = vpop.f32.mrb[56].mxu0 }
 0x3c3   :  { %13291 = vst [vmem:[#allocation23_spill] sm:$0xff] %v12131_v10  ;;  %7134 = vmatprep.subr.bf16.mxu0 %v4793_v59  ;;  %v12133_v44 = vpop.f32.mrb[57].mxu0 }
 0x3c4   :  { %13292 = vst [vmem:[#allocation24_spill] sm:$0xff] %v12133_v44  ;;  %v12135_v16 = vpop.permute.xlu0 %5723  ;;  %7135 = vmatpush1.bf16.msra.mxu0 %v4792_v60  ;;  %v12137_v26 = vpop.f32.mrb[58].mxu0 }
 0x3c5   :  { %v4761_v24 = vpop.permute.xlu1 %4760  ;;  %v6746_v55 = vpop.f32.mrb[59].mxu0 }
 0x3c6   :  { %v4794_v49 = vsel %vm4764_vm11, %v12064_v30, %v4761_v24  ;;  %v4795_v54 = vsel %vm4764_vm11, %v4761_v24, %v4763_v41  ;;  %v12142_v48 = vpop.f32.mrb[56].mxu1  ;;  %vm13301_vm11 = vmmov %vm13300_vm0 }
 0x3c7   :  { %13293 = vst [vmem:[#allocation25_spill] sm:$0xff] %v12142_v48  ;;  %7187 = vmatprep.subr.bf16.mxu1 %v4795_v54  ;;  %v12144_v42 = vpop.f32.mrb[57].mxu1 }
 0x3c8   :  { %13294 = vst [vmem:[#allocation26_spill] sm:$0xff] %v12144_v42  ;;  %v12146_v59 = vpop.permute.xlu0 %5945  ;;  %7188 = vmatpush1.bf16.msra.mxu1 %v4794_v49  ;;  %v12148_v8 = vpop.f32.mrb[58].mxu1  ;;  %v6208_v49 = vld [vmem:[#allocation4 + $0x4e8] sm:$0xff] }
 0x3c9   :  { %v12153_v60 = vsel %vm1606_vm4, %v12042_v34, %v12146_v59  ;;  %v4982_v44 = vpop.permute.xlu1 %4981  ;;  %v6799_v10 = vpop.f32.mrb[59].mxu1 }
 0x3ca   :  { %v5017_v30 = vsel %vm4989_vm14, %v11946_v14, %v4982_v44  ;;  %v5018_v41 = vsel %vm4989_vm14, %v4982_v44, %v12078_v57  ;;  %v12159_v24 = vpop.f32.mrb[60].mxu0 }
 0x3cb   :  { %13295 = vst [vmem:[#allocation27_spill] sm:$0xff] %v12159_v24  ;;  %7136 = vmatprep.subr.bf16.mxu0 %v5018_v41  ;;  %v12161_v54 = vpop.f32.mrb[61].mxu0 }
 0x3cc   :  { %13296 = vst [vmem:[#allocation28_spill] sm:$0xff] %v12161_v54  ;;  %7137 = vmatpush1.bf16.msra.mxu0 %v5017_v30  ;;  %v12163_v42 = vpop.permute.xlu0 %5949  ;;  %v12165_v48 = vpop.f32.mrb[62].mxu0  ;;  %v6207_v30 = vld [vmem:[#allocation4 + $0x4e0] sm:$0xff] }
 0x3cd   :  { %v4986_v34 = vpop.permute.xlu1 %4985  ;;  %7138 = vmatprep.subr.bf16.mxu0 %v6208_v49  ;;  %6046 = vst.msk [vmem:[#allocation4 + $0x8f8] sm:$0xff] %vm1606_vm4, %v12163_v42  ;;  %v6756_v14 = vpop.f32.mrb[63].mxu0 }
 0x3ce   :  { %v5019_v44 = vsel %vm4989_vm14, %v12078_v57, %v4986_v34  ;;  %v5020_v41 = vsel %vm4989_vm14, %v4986_v34, %v12091_v19  ;;  %v12173_v24 = vpop.f32.mrb[60].mxu1  ;;  %v6209_v34 = vld [vmem:[#allocation4 + $0x4f0] sm:$0xff]  ;;  %vm13302_vm14 = vmmov %vm13300_vm0 }
 0x3cf   :  { %13297 = vst [vmem:[#allocation29_spill] sm:$0xff] %v12173_v24  ;;  %7189 = vmatprep.subr.bf16.mxu1 %v5020_v41  ;;  %v12175_v54 = vpop.f32.mrb[61].mxu1  ;;  %v8468_v41 = vmov 1966171168   ;;  %v13303_v24 = vlaneseq }
 0x3d0   :  { %13298 = vst [vmem:[#allocation30_spill] sm:$0xff] %v12175_v54  ;;  %7139 = vmatpush1.bf16.msra.mxu0 %v6207_v30  ;;  %7190 = vmatpush1.bf16.msra.mxu1 %v5019_v44  ;;  %v12177_v37 = vpop.f32.mrb[62].mxu1  ;;  %v7845_v54 = vunpack.c.l.s4 %v8468_v41  ;;  %v6274_v41 = vld [vmem:[#allocation4 + $0x6f8] sm:$0xff] }
 0x3d1   :  { %v5273_v49 = vpop.permute.xlu1 %5272  ;;  %7191 = vmatprep.subr.bf16.mxu1 %v8452_v58  ;;  %v6809_v12 = vpop.f32.mrb[63].mxu1  ;;  %v7848_v20 = vshrl.u32 %v13303_v24, 7  ;;  %v13352_v24 = vld [vmem:[#allocation8_spill] sm:$0xff] }
 0x3d2   :  { %v5306_v57 = vsel %vm13299_vm10, %v11970_v25, %v5273_v49  ;;  %v5307_v19 = vsel %vm13300_vm0, %v5273_v49, %v12103_v62  ;;  %v7846_v58 = vunpack.c.0.s8 %v7845_v54 }
 0x3d3   :  { %7140 = vmatprep.subr.bf16.mxu0 %v5307_v19  ;;  %v12196_v19 = vstv %s13127_s6 }
 0x3d4   :  { %7141 = vmatpush1.bf16.msra.mxu0 %v5306_v57  ;;  %7192 = vmatpush1.bf16.msra.mxu1 %v6209_v34 }
 0x3d5   :  { %v5277_v30 = vpop.permute.xlu1 %5276 }
 0x3d6   :  { %v5308_v44 = vsel %vm13301_vm11, %v12103_v62, %v5277_v30  ;;  %5373 = vst.msk [vmem:[#allocation4 + $0x5f8] sm:$0xff] %vm13302_vm14, %v5277_v30 }
 0x3d9   :  { %v5499_v33 = vpop.permute.xlu1 %5498 }
 0x3da   :  { %v5532_v25 = vsel %vm5502_vm1, %v12113_v35, %v5499_v33  ;;  %v5533_v49 = vsel %vm5502_vm1, %v5499_v33, %v12123_v36  ;;  %v12205_v35 = vsub.s32 %v7846_v58, %v7848_v20  ;;  %vm13306_vm1 = vmmov %vm13273_vm2 }
 0x3db   :  { %v12191_v57 = vpop.permute.xlu0 %6350  ;;  %7142 = vmatprep.subr.bf16.mxu0 %v5532_v25  ;;  %vm13307_vm13 = vmmov %vm13306_vm1 }
 0x3dc   :  { %13304 = vst [vmem:[#allocation31_spill] sm:$0xff] %v12191_v57  ;;  %v12199_v62 = vadd.f32 %v6746_v55, %v12191_v57  ;;  %v12202_v54 = vadd.f32 %v6799_v10, %v12191_v57  ;;  %7143 = vmatpush1.bf16.msra.mxu0 %v12119_v15  ;;  %13305 = vst [vmem:[#allocation32_spill] sm:$0xff] %v12205_v35  ;;  %v12209_v33 = vadd.f32 %v11774_v4, %v12191_v57 }
 0x3dd   :  { %v5722_v36 = vpop.permute.xlu1 %5721  ;;  %v6242_v34 = vld [vmem:[#allocation4 + $0x5f8] sm:$0xff]  ;;  %v12213_v30 = vadd.f32 %v11776_v47, %v12191_v57  ;;  %v12217_v55 = vadd.f32 %v11772_v32, %v12191_v57  ;;  %v12221_v15 = vadd.f32 %v11778_v50, %v12191_v57  ;;  %v12225_v20 = vadd.f32 %v11832_v28, %v12191_v57  ;;  %vm13308_vm8 = vmmov %vm13306_vm1 }
 0x3de   :  { %v5755_v4 = vsel %vm13306_vm1, %v12019_v53, %v5722_v36  ;;  %v5756_v10 = vsel %vm13307_vm13, %v5722_v36, %v12135_v16  ;;  %7193 = vmatprep.subr.bf16.mxu1 %v6242_v34  ;;  %v12234_v32 = vadd.f32 %v11839_v11, %v12191_v57  ;;  %v12241_v28 = vadd.f32 %v11828_v22, %v12191_v57  ;;  %vm13309_vm3 = vmmov %vm13306_vm1 }
 0x3df   :  { %7194 = vmatpush1.bf16.msra.mxu1 %v5308_v44  ;;  %v12237_v58 = vpop.permute.xlu0 %6360  ;;  %7144 = vmatprep.subr.bf16.mxu0 %v5756_v10  ;;  %v12245_v53 = vadd.f32 %v11841_v9, %v12191_v57  ;;  %v12249_v25 = vadd.f32 %v11993_v6, %v12191_v57  ;;  %v7268_v36 = vmax.f32 %v12209_v33, 0.0 }
 0x3e0   :  { %v12252_v11 = vadd.f32 %v6756_v14, %v12237_v58  ;;  %v12255_v44 = vadd.f32 %v6809_v12, %v12237_v58  ;;  %7195 = vmatprep.subr.bf16.mxu1 %v6274_v41  ;;  %7145 = vmatpush1.bf16.msra.mxu0 %v5755_v4  ;;  %v12259_v22 = vadd.f32 %v11800_v61, %v12237_v58  ;;  %v7269_v14 = vmax.f32 %v12213_v30, 0.0  ;;  %v6338_v41 = vld [vmem:[#allocation4 + $0x8f8] sm:$0xff] }
 0x3e1   :  { %v5726_v9 = vpop.permute.xlu1 %5725  ;;  %v12264_v34 = vadd.f32 %v11806_v3, %v12237_v58  ;;  %v12268_v6 = vadd.f32 %v11798_v5, %v12237_v58  ;;  %v12272_v12 = vadd.f32 %v11810_v38, %v12237_v58  ;;  %v12282_v4 = vadd.f32 %v11863_v45, %v12237_v58 }
 0x3e2   :  { %v5757_v61 = vsel %vm13308_vm8, %v12135_v16, %v5726_v9  ;;  %5822 = vst.msk [vmem:[#allocation4 + $0x7f8] sm:$0xff] %vm13309_vm3, %v5726_v9  ;;  %v12286_v5 = vadd.f32 %v11865_v43, %v12237_v58  ;;  %v12290_v38 = vadd.f32 %v11861_v52, %v12237_v58  ;;  %v12294_v16 = vadd.f32 %v11867_v51, %v12237_v58 }
 0x3e3   :  { %7196 = vmatpush1.bf16.msra.mxu1 %v5533_v49  ;;  %v6641_v30 = vadd.f32 %v11995_v56, %v12191_v57  ;;  %v12300_v45 = vadd.f32 %v12021_v2, %v12237_v58  ;;  %v12304_v49 = vadd.f32 %v12023_v63, %v12237_v58  ;;  %v6692_v43 = vadd.f32 %v12007_v31, %v12191_v57  ;;  %v12338_v3 = vpop.permute.xlu0 %7375 }
 0x3e4   :  { %v6694_v52 = vadd.f32 %v12009_v23, %v12191_v57  ;;  %v12312_v51 = vadd.f32 %v12033_v21, %v12237_v58  ;;  %v12316_v56 = vadd.f32 %v12036_v40, %v12237_v58  ;;  %v6745_v2 = vadd.f32 %v12137_v26, %v12191_v57  ;;  %13310 = vst [vmem:[#allocation33_spill] sm:$0xff] %v12338_v3 }
 0x3e5   :  { %v5948_v10 = vpop.permute.xlu1 %5947  ;;  %v6798_v63 = vadd.f32 %v12148_v8, %v12191_v57  ;;  %v12328_v21 = vadd.f32 %v12165_v48, %v12237_v58  ;;  %v12332_v40 = vadd.f32 %v12177_v37, %v12237_v58  ;;  %v7270_v26 = vmax.f32 %v12217_v55, 0.0 }
 0x3e6   :  { %v5980_v31 = vsel %vm1606_vm4, %v12146_v59, %v5948_v10  ;;  %v5981_v23 = vsel %vm1606_vm4, %v5948_v10, %v12163_v42  ;;  %v7271_v9 = vmax.f32 %v12221_v15, 0.0  ;;  %v7272_v8 = vmax.f32 %v12225_v20, 0.0 }
 0x3e7   :  { %7146 = vmatprep.subr.bf16.mxu0 %v5980_v31  ;;  %v7273_v59 = vmax.f32 %v12234_v32, 0.0  ;;  %v7274_v48 = vmax.f32 %v12241_v28, 0.0  ;;  %v7275_v42 = vmax.f32 %v12245_v53, 0.0  ;;  %v7276_v37 = vmax.f32 %v12249_v25, 0.0 }
 0x3e8   :  { %7147 = vmatpush1.bf16.msra.mxu0 %v12153_v60  ;;  %v7277_v10 = vmax.f32 %v6641_v30, 0.0  ;;  %v7278_v55 = vmax.f32 %v6692_v43, 0.0  ;;  %v7279_v50 = vmax.f32 %v6694_v52, 0.0  ;;  %v7280_v15 = vmax.f32 %v6745_v2, 0.0 }
 0x3e9   :  { %v6306_v31 = vld [vmem:[#allocation4 + $0x7f8] sm:$0xff]  ;;  %v7282_v47 = vmax.f32 %v6798_v63, 0.0  ;;  %v7332_v20 = vmax.f32 %v12259_v22, 0.0  ;;  %v7333_v32 = vmax.f32 %v12264_v34, 0.0  ;;  %v7334_v60 = vmax.f32 %v12268_v6, 0.0 }
 0x3ea   :  { %7197 = vmatprep.subr.bf16.mxu1 %v6306_v31  ;;  %v7335_v28 = vmax.f32 %v12272_v12, 0.0  ;;  %v7336_v53 = vmax.f32 %v12282_v4, 0.0  ;;  %v7337_v25 = vmax.f32 %v12286_v5, 0.0  ;;  %v7338_v30 = vmax.f32 %v12290_v38, 0.0  ;;  %v12371_v38 = vpop.permute.xlu0 %7385 }
 0x3eb   :  { %7198 = vmatpush1.bf16.msra.mxu1 %v5757_v61  ;;  %7163 = vmatmul.mubr.bf16.vlgmr.msra.gmra.mrb[88].mxu0 %v12075_v18  ;;  %v7339_v43 = vmax.f32 %v12294_v16, 0.0  ;;  %v7340_v22 = vmax.f32 %v12300_v45, 0.0  ;;  %v7341_v34 = vmax.f32 %v12304_v49, 0.0  ;;  %v7342_v6 = vmax.f32 %v12312_v51, 0.0 }
 0x3ec   :  { %7199 = vmatprep.subr.bf16.mxu1 %v6338_v41  ;;  %8327 = vmatprep.mubr.msk.bf16.mxu0 %vm6381_vm6, %v12083_v39  ;;  %v7343_v12 = vmax.f32 %v12316_v56, 0.0  ;;  %v7344_v61 = vmax.f32 %v12328_v21, 0.0  ;;  %v12363_v4 = vmul.f32 %v12338_v3, %v7268_v36  ;;  %v12366_v41 = vmul.f32 %v12338_v3, %v7269_v14 }
 0x3ed   :  { %v12369_v5 = vmul.f32 %v12338_v3, %v7270_v26  ;;  %v12374_v16 = vmul.f32 %v12338_v3, %v7271_v9  ;;  %v12377_v45 = vmul.f32 %v12338_v3, %v7272_v8  ;;  %v12380_v49 = vmul.f32 %v12338_v3, %v7273_v59 }
 0x3ee   :  { %v12383_v33 = vmul.f32 %v12338_v3, %v7274_v48  ;;  %v12386_v36 = vmul.f32 %v12338_v3, %v7275_v42  ;;  %v12389_v14 = vmul.f32 %v12338_v3, %v7276_v37  ;;  %v12392_v52 = vmul.f32 %v12338_v3, %v7277_v10 }
 0x3ef   :  { %13311 = vst [vmem:[#allocation34_spill] sm:$0xff] %v12374_v16  ;;  %13312 = vst [vmem:[#allocation35_spill] sm:$0xff] %v12377_v45  ;;  %7200 = vmatpush1.bf16.msra.mxu1 %v5981_v23  ;;  %v12395_v51 = vmul.f32 %v12338_v3, %v7278_v55  ;;  %v12398_v56 = vmul.f32 %v12338_v3, %v7279_v50  ;;  %v12401_v2 = vmul.f32 %v12338_v3, %v7280_v15 }
 0x3f0   :  { %13313 = vst [vmem:[#allocation36_spill] sm:$0xff] %v12380_v49  ;;  %13314 = vst [vmem:[#allocation37_spill] sm:$0xff] %v12383_v33  ;;  %v13321_v63 = vmax.f32 %v12199_v62, 0.0  ;;  %v12409_v21 = vmul.f32 %v12338_v3, %v7282_v47  ;;  %v13324_v26 = vmax.f32 %v12202_v54, 0.0  ;;  %v12417_v8 = vmul.f32 %v12371_v38, %v7332_v20 }
 0x3f1   :  { %13315 = vst [vmem:[#allocation38_spill] sm:$0xff] %v12386_v36  ;;  %13316 = vst [vmem:[#allocation39_spill] sm:$0xff] %v12389_v14  ;;  %v12420_v50 = vmul.f32 %v12371_v38, %v7333_v32  ;;  %v12423_v59 = vmul.f32 %v12371_v38, %v7334_v60  ;;  %v12427_v62 = vmul.f32 %v12371_v38, %v7335_v28  ;;  %v13340_v20 = vmax.f32 %v12252_v11, 0.0 }
 0x3f2   :  { %13317 = vst [vmem:[#allocation40_spill] sm:$0xff] %v12392_v52  ;;  %13318 = vst [vmem:[#allocation41_spill] sm:$0xff] %v12395_v51  ;;  %v12406_v23 = vmul.f32 %v12338_v3, %v13321_v63  ;;  %v12414_v9 = vmul.f32 %v12338_v3, %v13324_v26  ;;  %7216 = vmatmul.mubr.bf16.vlgmr.msra.gmra.mrb[88].mxu1 %v12075_v18  ;;  %v12430_v47 = vmul.f32 %v12371_v38, %v7336_v53  ;;  %v13348_v26 = vld [vmem:[#allocation24_spill] sm:$0xff]  ;;  %v13365_v51 = vld [vmem:[#allocation29_spill] sm:$0xff] }
 0x3f3   :  { %13319 = vst [vmem:[#allocation42_spill] sm:$0xff] %v12398_v56  ;;  %13320 = vst [vmem:[#allocation43_spill] sm:$0xff] %v12401_v2  ;;  %v12433_v54 = vmul.f32 %v12371_v38, %v7337_v25  ;;  %v12436_v48 = vmul.f32 %v12371_v38, %v7338_v30  ;;  %8329 = vmatprep.mubr.msk.bf16.mxu1 %vm6381_vm6, %v12083_v39  ;;  %7173 = vmatmul.mubr.bf16.gmra.mrb[92].mxu0 %v12100_v0  ;;  %v13342_v30 = vld [vmem:[#allocation10_spill] sm:$0xff]  ;;  %v13363_v2 = vld [vmem:[#allocation27_spill] sm:$0xff] }
 0x3f4   :  { %13322 = vst [vmem:[#allocation44_spill] sm:$0xff] %v12406_v23  ;;  %13323 = vst [vmem:[#allocation45_spill] sm:$0xff] %v12409_v21  ;;  %v12443_v18 = vmul.f32 %v12371_v38, %v7339_v43  ;;  %v12446_v37 = vmul.f32 %v12371_v38, %v7340_v22  ;;  %v12449_v10 = vmul.f32 %v12371_v38, %v7341_v34  ;;  %v12451_v31 = vpop.permute.xlu1 %6345  ;;  %v13343_v43 = vld [vmem:[#allocation15_spill] sm:$0xff]  ;;  %v13344_v22 = vld [vmem:[#allocation16_spill] sm:$0xff] }
 0x3f5   :  { %13325 = vst [vmem:[#allocation46_spill] sm:$0xff] %v12414_v9  ;;  %13326 = vst [vmem:[#allocation47_spill] sm:$0xff] %v12417_v8  ;;  %v12454_v55 = vmul.f32 %v12371_v38, %v7342_v6  ;;  %v12457_v39 = vmul.f32 %v12371_v38, %v7343_v12  ;;  %v12460_v15 = vmul.f32 %v12371_v38, %v7344_v61  ;;  %v13345_v34 = vld [vmem:[#allocation17_spill] sm:$0xff]  ;;  %v13346_v6 = vld [vmem:[#allocation18_spill] sm:$0xff] }
 0x3f6   :  { %13327 = vst [vmem:[#allocation48_spill] sm:$0xff] %v12420_v50  ;;  %13328 = vst [vmem:[#allocation49_spill] sm:$0xff] %v12423_v59  ;;  %v12465_v32 = vmul.f32 %v12371_v38, %v13340_v20  ;;  %v12469_v60 = vadd.f32 %v11754_v1, %v12451_v31  ;;  %v12473_v28 = vadd.f32 %v11762_v17, %v12451_v31  ;;  %v13347_v61 = vld [vmem:[#allocation23_spill] sm:$0xff]  ;;  %v13354_v21 = vld [vmem:[#allocation9_spill] sm:$0xff] }
 0x3f7   :  { %13329 = vst [vmem:[#allocation50_spill] sm:$0xff] %v12427_v62  ;;  %13330 = vst [vmem:[#allocation51_spill] sm:$0xff] %v12430_v47  ;;  %v12477_v53 = vadd.f32 %v11756_v13, %v12451_v31  ;;  %v12481_v25 = vadd.f32 %v11766_v29, %v12451_v31  ;;  %v12485_v11 = vadd.f32 %v11816_v7, %v12451_v31  ;;  %v13353_v9 = vld [vmem:[#allocation7_spill] sm:$0xff]  ;;  %v13362_v23 = vld [vmem:[#allocation22_spill] sm:$0xff] }
 0x3f8   :  { %13331 = vst [vmem:[#allocation52_spill] sm:$0xff] %v12433_v54  ;;  %13332 = vst [vmem:[#allocation53_spill] sm:$0xff] %v12436_v48  ;;  %v12489_v1 = vadd.f32 %v11820_v46, %v12451_v31  ;;  %v12493_v17 = vadd.f32 %v11818_v27, %v12451_v31  ;;  %v12497_v13 = vadd.f32 %v13342_v30, %v12451_v31  ;;  %v12515_v12 = vpop.permute.xlu1 %6355  ;;  %v13349_v30 = vld [vmem:[#allocation25_spill] sm:$0xff]  ;;  %v13364_v56 = vld [vmem:[#allocation28_spill] sm:$0xff]  ;;  %v7236_v14 = vmax.f32 %v12469_v60, 0.0 }
 0x3f9   :  { %13333 = vst [vmem:[#allocation54_spill] sm:$0xff] %v12443_v18  ;;  %13334 = vst [vmem:[#allocation55_spill] sm:$0xff] %v12446_v37  ;;  %v12501_v29 = vadd.f32 %v13343_v43, %v12451_v31  ;;  %v12505_v7 = vadd.f32 %v13344_v22, %v12451_v31  ;;  %v12509_v46 = vadd.f32 %v13345_v34, %v12451_v31  ;;  %v13350_v22 = vld [vmem:[#allocation26_spill] sm:$0xff]  ;;  %v13361_v37 = vld [vmem:[#allocation21_spill] sm:$0xff]  ;;  %v7238_v18 = vmax.f32 %v12477_v53, 0.0 }
 0x3fa   :  { %13335 = vst [vmem:[#allocation56_spill] sm:$0xff] %v12449_v10  ;;  %13336 = vst [vmem:[#allocation57_spill] sm:$0xff] %v12451_v31  ;;  %v12513_v27 = vadd.f32 %v13346_v6, %v12451_v31  ;;  %v12519_v63 = vadd.f32 %v13347_v61, %v12451_v31  ;;  %v12523_v20 = vadd.f32 %v13348_v26, %v12451_v31  ;;  %v13351_v6 = vld [vmem:[#allocation6_spill] sm:$0xff]  ;;  %7226 = vmatmul.mubr.bf16.gmra.mrb[92].mxu1 %v12100_v0  ;;  %v13360_v0 = vld [vmem:[#allocation20_spill] sm:$0xff] }
 0x3fb   :  { %13337 = vst [vmem:[#allocation58_spill] sm:$0xff] %v12454_v55  ;;  %13338 = vst [vmem:[#allocation59_spill] sm:$0xff] %v12457_v39  ;;  %v12527_v43 = vadd.f32 %v13349_v30, %v12451_v31  ;;  %v12531_v34 = vadd.f32 %v13350_v22, %v12451_v31  ;;  %v12535_v42 = vadd.f32 %v13351_v6, %v12515_v12  ;;  %v13355_v22 = vld [vmem:[#allocation11_spill] sm:$0xff]  ;;  %v13356_v6 = vld [vmem:[#allocation13_spill] sm:$0xff]  ;;  %v7240_v48 = vmax.f32 %v12485_v11, 0.0 }
 0x3fc   :  { %13339 = vst [vmem:[#allocation60_spill] sm:$0xff] %v12460_v15  ;;  %13341 = vst [vmem:[#allocation61_spill] sm:$0xff] %v12465_v32  ;;  %v12539_v61 = vadd.f32 %v13352_v24, %v12515_v12  ;;  %v12543_v26 = vadd.f32 %v13353_v9, %v12515_v12  ;;  %v12547_v30 = vadd.f32 %v13354_v21, %v12515_v12  ;;  %v13357_v24 = vld [vmem:[#allocation12_spill] sm:$0xff]  ;;  %v13358_v9 = vld [vmem:[#allocation14_spill] sm:$0xff]  ;;  %v12622_v11 = vpop.permute.xlu1 %7370 }
 0x3fd   :  { %v12552_v32 = vadd.f32 %v13355_v22, %v12515_v12  ;;  %v12556_v15 = vadd.f32 %v13356_v6, %v12515_v12  ;;  %v12560_v39 = vadd.f32 %v13357_v24, %v12515_v12  ;;  %v12564_v55 = vadd.f32 %v13358_v9, %v12515_v12  ;;  %v13359_v21 = vld [vmem:[#allocation19_spill] sm:$0xff]  ;;  %v13366_v52 = vld [vmem:[#allocation30_spill] sm:$0xff] }
 0x3fe   :  { %v12568_v10 = vadd.f32 %v13359_v21, %v12515_v12  ;;  %v12572_v22 = vadd.f32 %v13360_v0, %v12515_v12  ;;  %v12576_v6 = vadd.f32 %v13361_v37, %v12515_v12  ;;  %v12580_v24 = vadd.f32 %v13362_v23, %v12515_v12 }
 0x3ff   :  { %v12584_v9 = vadd.f32 %v13363_v2, %v12515_v12  ;;  %v12588_v21 = vadd.f32 %v13364_v56, %v12515_v12  ;;  %v12592_v0 = vadd.f32 %v13365_v51, %v12515_v12  ;;  %v12596_v37 = vadd.f32 %v13366_v52, %v12515_v12 }
 0x400   :  { %v7237_v23 = vmax.f32 %v12473_v28, 0.0  ;;  %v7239_v2 = vmax.f32 %v12481_v25, 0.0  ;;  %v7241_v56 = vmax.f32 %v12489_v1, 0.0  ;;  %v12645_v59 = vmul.f32 %v12622_v11, %v7238_v18 }
 0x402   :  { %v6846_v54 = vpop.f32.mrb[64].mxu0  ;;  %v12640_v28 = vmul.f32 %v12622_v11, %v7237_v23 }
 0x403   :  { %v6847_v1 = vadd.f32 %v6846_v54, %v12451_v31  ;;  %v6848_v36 = vpop.f32.mrb[65].mxu0 }
 0x404   :  { %v6849_v35 = vadd.f32 %v6848_v36, %v12451_v31  ;;  %v6850_v60 = vpop.f32.mrb[66].mxu0  ;;  %v12637_v36 = vmul.f32 %v12622_v11, %v7236_v14  ;;  %v12650_v14 = vmul.f32 %v12622_v11, %v7239_v2 }
 0x405   :  { %v7252_v47 = vmax.f32 %v6847_v1, 0.0  ;;  %v6851_v62 = vadd.f32 %v6850_v60, %v12191_v57  ;;  %v6852_v54 = vpop.f32.mrb[67].mxu0 }
 0x406   :  { %v7253_v33 = vmax.f32 %v6849_v35, 0.0  ;;  %v6853_v52 = vadd.f32 %v6852_v54, %v12191_v57  ;;  %v6899_v50 = vpop.f32.mrb[64].mxu1  ;;  %13367 = vst [vmem:[#allocation10_spill] sm:$0xff] %v12650_v14 }
 0x407   :  { %v7404_v25 = vmul.f32 %v12622_v11, %v7252_v47  ;;  %v7284_v1 = vmax.f32 %v6851_v62, 0.0  ;;  %v6900_v60 = vadd.f32 %v6899_v50, %v12451_v31  ;;  %v6901_v53 = vpop.f32.mrb[65].mxu1  ;;  %v12655_v50 = vmul.f32 %v12622_v11, %v7240_v48 }
 0x408   :  { %v7405_v35 = vmul.f32 %v12622_v11, %v7253_v33  ;;  %v7285_v51 = vmax.f32 %v6853_v52, 0.0  ;;  %v6902_v54 = vadd.f32 %v6901_v53, %v12451_v31  ;;  %v6903_v8 = vpop.f32.mrb[66].mxu1  ;;  %v12660_v53 = vmul.f32 %v12622_v11, %v7241_v56 }
 0x409   :  { %v7436_v23 = vmul.f32 %v12338_v3, %v7284_v1  ;;  %v7254_v49 = vmax.f32 %v6900_v60, 0.0  ;;  %v6904_v62 = vadd.f32 %v6903_v8, %v12191_v57  ;;  %v6905_v47 = vpop.f32.mrb[67].mxu1  ;;  %13368 = vst [vmem:[#allocation15_spill] sm:$0xff] %v12655_v50 }
 0x40a   :  { %v7437_v18 = vmul.f32 %v12338_v3, %v7285_v51  ;;  %v7255_v45 = vmax.f32 %v6902_v54, 0.0  ;;  %v6906_v33 = vadd.f32 %v6905_v47, %v12191_v57  ;;  %v6856_v52 = vpop.f32.mrb[68].mxu0  ;;  %13369 = vst [vmem:[#allocation16_spill] sm:$0xff] %v12660_v53 }
 0x40b   :  { %v7660_v2 = vadd.f32 %v7436_v23, %v7404_v25  ;;  %v7406_v31 = vmul.f32 %v12622_v11, %v7254_v49  ;;  %v7286_v1 = vmax.f32 %v6904_v62, 0.0  ;;  %v6857_v60 = vadd.f32 %v6856_v52, %v12515_v12  ;;  %v6858_v8 = vpop.f32.mrb[69].mxu0  ;;  %v12673_v23 = vpop.permute.xlu1 %7380 }
 0x40c   :  { %v7669_v16 = vadd.f32 %v7437_v18, %v7405_v35  ;;  %v7407_v48 = vmul.f32 %v12622_v11, %v7255_v45  ;;  %v7287_v50 = vmax.f32 %v6906_v33, 0.0  ;;  %v6859_v51 = vadd.f32 %v6858_v8, %v12515_v12  ;;  %v6860_v54 = vpop.f32.mrb[70].mxu0 }
 0x40d   :  { %v7438_v47 = vmul.f32 %v12338_v3, %v7286_v1  ;;  %v7316_v57 = vmax.f32 %v6857_v60, 0.0  ;;  %v6861_v56 = vadd.f32 %v6860_v54, %v12237_v58  ;;  %v6862_v53 = vpop.f32.mrb[71].mxu0  ;;  %v13370_v25 = vmax.f32 %v12493_v17, 0.0 }
 0x40e   :  { %v7439_v35 = vmul.f32 %v12338_v3, %v7287_v50  ;;  %v7317_v45 = vmax.f32 %v6859_v51, 0.0  ;;  %v6863_v62 = vadd.f32 %v6862_v53, %v12237_v58  ;;  %v6909_v18 = vpop.f32.mrb[68].mxu1  ;;  %v13372_v33 = vmax.f32 %v12497_v13, 0.0 }
 0x40f   :  { %v12671_v49 = vmul.f32 %v12622_v11, %v13370_v25  ;;  %v7678_v1 = vadd.f32 %v7438_v47, %v7406_v31  ;;  %v7468_v60 = vmul.f32 %v12673_v23, %v7316_v57  ;;  %v7348_v17 = vmax.f32 %v6861_v56, 0.0  ;;  %v6911_v54 = vpop.f32.mrb[69].mxu1 }
 0x410   :  { %v12680_v52 = vmul.f32 %v12622_v11, %v13372_v33  ;;  %v6910_v8 = vadd.f32 %v6909_v18, %v12515_v12  ;;  %v7687_v25 = vadd.f32 %v7439_v35, %v7407_v48  ;;  %v7349_v50 = vmax.f32 %v6863_v62, 0.0  ;;  %v6913_v53 = vpop.f32.mrb[70].mxu1 }
 0x411   :  { %13371 = vst [vmem:[#allocation17_spill] sm:$0xff] %v12671_v49  ;;  %v7469_v49 = vmul.f32 %v12673_v23, %v7317_v45  ;;  %v6912_v51 = vadd.f32 %v6911_v54, %v12515_v12  ;;  %v7661_v3 = vadd.f32 %v7660_v2, %v7468_v60  ;;  %v7500_v13 = vmul.f32 %v12371_v38, %v7348_v17  ;;  %v6915_v31 = vpop.f32.mrb[71].mxu1 }
 0x412   :  { %v7318_v14 = vmax.f32 %v6910_v8, 0.0  ;;  %v6914_v33 = vadd.f32 %v6913_v53, %v12237_v58  ;;  %v7501_v57 = vmul.f32 %v12371_v38, %v7349_v50  ;;  %v6916_v18 = vadd.f32 %v6915_v31, %v12237_v58 }
 0x413   :  { %v7670_v47 = vadd.f32 %v7669_v16, %v7469_v49  ;;  %v7319_v56 = vmax.f32 %v6912_v51, 0.0  ;;  %v7662_v48 = vadd.f32 %v7661_v3, %v7500_v13  ;;  %v13373_v62 = vmax.f32 %v12501_v29, 0.0 }
 0x414   :  { %v7470_v35 = vmul.f32 %v12673_v23, %v7318_v14  ;;  %v7350_v45 = vmax.f32 %v6914_v33, 0.0  ;;  %v7351_v8 = vmax.f32 %v6916_v18, 0.0  ;;  %v13374_v16 = vmax.f32 %v12505_v7, 0.0 }
 0x415   :  { %v12694_v2 = vmul.f32 %v12622_v11, %v13373_v62  ;;  %v7671_v60 = vadd.f32 %v7670_v47, %v7501_v57  ;;  %v7471_v17 = vmul.f32 %v12673_v23, %v7319_v56  ;;  %v7663_v54 = vrot.slane %v7662_v48, 4 }
 0x416   :  { %v12700_v49 = vmul.f32 %v12622_v11, %v13374_v16  ;;  %v7679_v50 = vadd.f32 %v7678_v1, %v7470_v35  ;;  %v7502_v3 = vmul.f32 %v12371_v38, %v7350_v45  ;;  %v13375_v14 = vmax.f32 %v12509_v46, 0.0 }
 0x417   :  { %v7672_v51 = vrot.slane %v7671_v60, 4  ;;  %v12708_v53 = vadd.f32 %v7687_v25, %v7471_v17  ;;  %v13376_v13 = vmax.f32 %v12513_v27, 0.0  ;;  %v13377_v7 = vmax.f32 %v12519_v63, 0.0 }
 0x418   :  { %v12706_v29 = vmul.f32 %v12622_v11, %v13375_v14  ;;  %v7664_v1 = vadd.f32 %v7663_v54, %v7662_v48  ;;  %v7680_v47 = vadd.f32 %v7679_v50, %v7502_v3  ;;  %v13378_v46 = vmax.f32 %v12523_v20, 0.0 }
 0x419   :  { %v12713_v33 = vmul.f32 %v12622_v11, %v13376_v13  ;;  %v12718_v31 = vmul.f32 %v12622_v11, %v13377_v7  ;;  %v13379_v25 = vmax.f32 %v12527_v43, 0.0  ;;  %v7673_v27 = vadd.f32 %v7672_v51, %v7671_v60 }
 0x41a   :  { %v12723_v57 = vmul.f32 %v12622_v11, %v13378_v46  ;;  %v13380_v18 = vmax.f32 %v12531_v34, 0.0  ;;  %v13381_v35 = vmax.f32 %v12535_v42, 0.0  ;;  %v13382_v20 = vmax.f32 %v12539_v61, 0.0 }
 0x41b   :  { %v12728_v56 = vmul.f32 %v12622_v11, %v13379_v25  ;;  %v7665_v62 = vrot.slane %v7664_v1, 2  ;;  %v7681_v17 = vrot.slane %v7680_v47, 4  ;;  %v13383_v43 = vmax.f32 %v12543_v26, 0.0 }
 0x41c   :  { %v12733_v63 = vmul.f32 %v12622_v11, %v13380_v18  ;;  %v7452_v48 = vmul.f32 %v12673_v23, %v13381_v35  ;;  %v7453_v45 = vmul.f32 %v12673_v23, %v13382_v20  ;;  %v13384_v60 = vmax.f32 %v12547_v30, 0.0 }
 0x41d   :  { %v7454_v16 = vmul.f32 %v12673_v23, %v13383_v43  ;;  %v7674_v54 = vrot.slane %v7673_v27, 2  ;;  %v13385_v50 = vmax.f32 %v12552_v32, 0.0  ;;  %v13386_v3 = vmax.f32 %v12556_v15, 0.0 }
 0x41e   :  { %v7455_v34 = vmul.f32 %v12673_v23, %v13384_v60  ;;  %v13387_v14 = vmax.f32 %v12560_v39, 0.0  ;;  %v7666_v26 = vadd.f32 %v7665_v62, %v7664_v1  ;;  %v7682_v13 = vadd.f32 %v7681_v17, %v7680_v47 }
 0x41f   :  { %v7456_v42 = vmul.f32 %v12673_v23, %v13385_v50  ;;  %v7457_v61 = vmul.f32 %v12673_v23, %v13386_v3  ;;  %v13388_v7 = vmax.f32 %v12564_v55, 0.0  ;;  %v13389_v46 = vmax.f32 %v12568_v10, 0.0 }
 0x420   :  { %v7458_v51 = vmul.f32 %v12673_v23, %v13387_v14  ;;  %v7675_v25 = vadd.f32 %v7674_v54, %v7673_v27  ;;  %v13390_v15 = vmax.f32 %v12572_v22, 0.0  ;;  %v13391_v39 = vmax.f32 %v12576_v6, 0.0 }
 0x421   :  { %v7459_v30 = vmul.f32 %v12673_v23, %v13388_v7  ;;  %v12762_v32 = vmul.f32 %v12673_v23, %v13389_v46  ;;  %v13392_v55 = vmax.f32 %v12580_v24, 0.0  ;;  %v7667_v10 = vrot.slane %v7666_v26, 1 }
 0x422   :  { %v12767_v18 = vmul.f32 %v12673_v23, %v13390_v15  ;;  %v12772_v1 = vmul.f32 %v12673_v23, %v13391_v39  ;;  %v7683_v35 = vrot.slane %v7682_v13, 2  ;;  %v13393_v20 = vmax.f32 %v12584_v9, 0.0  ;;  %v13400_v15 = vld [vmem:[#allocation34_spill] sm:$0xff] }
 0x423   :  { %v12777_v47 = vmul.f32 %v12673_v23, %v13392_v55  ;;  %v13394_v22 = vmax.f32 %v12588_v21, 0.0  ;;  %v7676_v6 = vrot.slane %v7675_v25, 1  ;;  %v13395_v17 = vmax.f32 %v12592_v0, 0.0  ;;  %v13401_v55 = vld [vmem:[#allocation15_spill] sm:$0xff] }
 0x424   :  { %v12782_v27 = vmul.f32 %v12673_v23, %v13393_v20  ;;  %v13396_v43 = vmax.f32 %v12596_v37, 0.0  ;;  %v13397_v9 = vmax.f32 %v12332_v40, 0.0  ;;  %v7668_v21 = vadd.f32 %v7667_v10, %v7666_v26  ;;  %v13402_v10 = vld [vmem:[#allocation35_spill] sm:$0xff] }
 0x425   :  { %v12787_v62 = vmul.f32 %v12673_v23, %v13394_v22  ;;  %v12792_v24 = vmul.f32 %v12673_v23, %v13395_v17  ;;  %v7684_v50 = vadd.f32 %v7683_v35, %v7682_v13  ;;  %v13398_v3 = vmax.f32 %v12255_v44, 0.0  ;;  %v13399_v44 = vld [vmem:[#allocation10_spill] sm:$0xff]  ;;  %v13405_v17 = vld [vmem:[#allocation47_spill] sm:$0xff] }
 0x426   :  { %v12797_v60 = vmul.f32 %v12673_v23, %v13396_v43  ;;  %v12802_v54 = vmul.f32 %v12371_v38, %v13397_v9  ;;  %v12810_v0 = vmul.f32 %v12371_v38, %v7351_v8  ;;  %v7677_v7 = vadd.f32 %v7676_v6, %v7675_v25  ;;  %v13404_v6 = vld [vmem:[#allocation36_spill] sm:$0xff] }
 0x427   :  { %v12807_v14 = vmul.f32 %v12371_v38, %v13398_v3  ;;  %v7516_v37 = vadd.f32 %v12363_v4, %v12637_v36  ;;  %v7525_v40 = vadd.f32 %v12366_v41, %v12640_v28  ;;  %v7534_v46 = vadd.f32 %v12369_v5, %v12645_v59  ;;  %v13403_v28 = vld [vmem:[#allocation16_spill] sm:$0xff]  ;;  %v13407_v3 = vld [vmem:[#allocation49_spill] sm:$0xff] }
 0x428   :  { %v7822_v26 = vadd.f32 %v12196_v19, %v7668_v21  ;;  %v7685_v13 = vrot.slane %v7684_v50, 1  ;;  %v7543_v39 = vadd.f32 %v13400_v15, %v13399_v44  ;;  %v7552_v8 = vadd.f32 %v13402_v10, %v13401_v55  ;;  %v13406_v9 = vld [vmem:[#allocation48_spill] sm:$0xff]  ;;  %v13412_v10 = vld [vmem:[#allocation17_spill] sm:$0xff] }
 0x429   :  { %v7823_v25 = vadd.f32 %v12196_v19, %v7677_v7  ;;  %v7517_v35 = vadd.f32 %v7516_v37, %v7452_v48  ;;  %v7526_v20 = vadd.f32 %v7525_v40, %v7453_v45  ;;  %v7535_v4 = vadd.f32 %v7534_v46, %v7454_v16  ;;  %v13408_v7 = vld [vmem:[#allocation50_spill] sm:$0xff]  ;;  %v13409_v45 = vld [vmem:[#allocation51_spill] sm:$0xff] }
 0x42a   :  { %v7686_v36 = vadd.f32 %v7685_v13, %v7684_v50  ;;  %v7544_v22 = vadd.f32 %v7543_v39, %v7455_v34  ;;  %v7553_v41 = vadd.f32 %v7552_v8, %v7456_v42  ;;  %v7561_v5 = vadd.f32 %v13404_v6, %v13403_v28  ;;  %v13410_v34 = vld [vmem:[#allocation32_spill] sm:$0xff]  ;;  %v13413_v8 = vld [vmem:[#allocation37_spill] sm:$0xff] }
 0x42b   :  { %v7973_v59 = vcombine.low %v7822_v26, %v7823_v25  ;;  %v7518_v43 = vadd.f32 %v7517_v35, %v13405_v17  ;;  %v7527_v21 = vadd.f32 %v7526_v20, %v13406_v9  ;;  %v7536_v44 = vadd.f32 %v7535_v4, %v13407_v3  ;;  %v13411_v39 = vld [vmem:[#allocation52_spill] sm:$0xff] }
 0x42c   :  { %v12830_v15 = vadd.f32 %v12196_v19, %v7686_v36  ;;  %v7545_v48 = vadd.f32 %v7544_v22, %v13408_v7  ;;  %v7554_v16 = vadd.f32 %v7553_v41, %v13409_v45  ;;  %v7562_v50 = vadd.f32 %v7561_v5, %v7457_v61  ;;  %v13414_v36 = vld [vmem:[#allocation38_spill] sm:$0xff] }
 0x42d   :  { %v12835_v42 = vrot.slane %v7973_v59, %v13410_v34  ;;  %v7519_v37 = vrot.slane %v7518_v43, 4  ;;  %v7528_v40 = vrot.slane %v7527_v21, 4  ;;  %v7537_v46 = vrot.slane %v7536_v44, 4 }
 0x42e   :  { %v7546_v26 = vrot.slane %v7545_v48, 4  ;;  %v7555_v13 = vrot.slane %v7554_v16, 4  ;;  %v7563_v55 = vadd.f32 %v7562_v50, %v13411_v39  ;;  %v7570_v25 = vadd.f32 %v13413_v8, %v13412_v10  ;;  %v13415_v50 = vld [vmem:[#allocation53_spill] sm:$0xff] }
 0x42f   :  { %v7520_v35 = vadd.f32 %v7519_v37, %v7518_v43  ;;  %v7529_v20 = vadd.f32 %v7528_v40, %v7527_v21  ;;  %v7538_v4 = vadd.f32 %v7537_v46, %v7536_v44  ;;  %v7579_v22 = vadd.f32 %v13414_v36, %v12680_v52  ;;  %v13416_v44 = vld [vmem:[#allocation54_spill] sm:$0xff] }
 0x430   :  { %v7547_v61 = vadd.f32 %v7546_v26, %v7545_v48  ;;  %v7556_v41 = vadd.f32 %v7555_v13, %v7554_v16  ;;  %v7564_v28 = vrot.slane %v7563_v55, 4  ;;  %v7571_v6 = vadd.f32 %v7570_v25, %v7458_v51 }
 0x431   :  { %v7521_v5 = vrot.slane %v7520_v35, 2  ;;  %v7530_v59 = vrot.slane %v7529_v20, 2  ;;  %v7539_v17 = vrot.slane %v7538_v4, 2  ;;  %v7580_v9 = vadd.f32 %v7579_v22, %v7459_v30 }
 0x432   :  { %v7548_v3 = vrot.slane %v7547_v61, 2  ;;  %v7557_v7 = vrot.slane %v7556_v41, 2  ;;  %v7565_v45 = vadd.f32 %v7564_v28, %v7563_v55  ;;  %v7572_v39 = vadd.f32 %v7571_v6, %v13415_v50 }
 0x433   :  { %v7522_v10 = vadd.f32 %v7521_v5, %v7520_v35  ;;  %v7531_v43 = vadd.f32 %v7530_v59, %v7529_v20  ;;  %v7540_v21 = vadd.f32 %v7539_v17, %v7538_v4  ;;  %v7581_v37 = vadd.f32 %v7580_v9, %v13416_v44  ;;  %v13417_v5 = vld [vmem:[#allocation39_spill] sm:$0xff]  ;;  %v13418_v17 = vld [vmem:[#allocation40_spill] sm:$0xff] }
 0x434   :  { %v7549_v40 = vadd.f32 %v7548_v3, %v7547_v61  ;;  %v7558_v52 = vadd.f32 %v7557_v7, %v7556_v41  ;;  %v7566_v48 = vrot.slane %v7565_v45, 2  ;;  %v7573_v16 = vrot.slane %v7572_v39, 4  ;;  %v13419_v3 = vld [vmem:[#allocation41_spill] sm:$0xff] }
 0x435   :  { %v7523_v46 = vrot.slane %v7522_v10, 1  ;;  %v7532_v51 = vrot.slane %v7531_v43, 1  ;;  %v7541_v26 = vrot.slane %v7540_v21, 1  ;;  %v7582_v13 = vrot.slane %v7581_v37, 4 }
 0x436   :  { %v7550_v8 = vrot.slane %v7549_v40, 1  ;;  %v7559_v30 = vrot.slane %v7558_v52, 1  ;;  %v7567_v25 = vadd.f32 %v7566_v48, %v7565_v45  ;;  %v7574_v36 = vadd.f32 %v7573_v16, %v7572_v39  ;;  %v13420_v39 = vld [vmem:[#allocation42_spill] sm:$0xff]  ;;  %v13422_v48 = vld [vmem:[#allocation44_spill] sm:$0xff] }
 0x437   :  { %v12844_v55 = vadd.f32 %v7523_v46, %v7522_v10  ;;  %v12846_v22 = vadd.f32 %v7532_v51, %v7531_v43  ;;  %v12848_v35 = vadd.f32 %v7541_v26, %v7540_v21  ;;  %v7583_v20 = vadd.f32 %v7582_v13, %v7581_v37  ;;  %v13421_v43 = vld [vmem:[#allocation43_spill] sm:$0xff]  ;;  %v13424_v26 = vld [vmem:[#allocation56_spill] sm:$0xff]  ;;  %v13425_v13 = vld [vmem:[#allocation58_spill] sm:$0xff] }
 0x438   :  { %v12850_v4 = vadd.f32 %v7550_v8, %v7549_v40  ;;  %v12852_v61 = vadd.f32 %v7559_v30, %v7558_v52  ;;  %v7568_v41 = vrot.slane %v7567_v25, 1  ;;  %v7575_v28 = vrot.slane %v7574_v36, 2 }
 0x439   :  { %v7584_v6 = vrot.slane %v7583_v20, 2  ;;  %v7588_v59 = vadd.f32 %v13417_v5, %v12694_v2  ;;  %v7597_v9 = vadd.f32 %v13418_v17, %v12700_v49  ;;  %v7606_v7 = vadd.f32 %v13419_v3, %v12706_v29 }
 0x43a   :  { %v12860_v45 = vadd.f32 %v7568_v41, %v7567_v25  ;;  %v7576_v50 = vadd.f32 %v7575_v28, %v7574_v36  ;;  %v7615_v10 = vadd.f32 %v13420_v39, %v12713_v33  ;;  %v7624_v21 = vadd.f32 %v13421_v43, %v12718_v31  ;;  %v13423_v33 = vld [vmem:[#allocation55_spill] sm:$0xff] }
 0x43b   :  { %v7585_v44 = vadd.f32 %v7584_v6, %v7583_v20  ;;  %v7589_v37 = vadd.f32 %v7588_v59, %v12762_v32  ;;  %v7598_v2 = vadd.f32 %v7597_v9, %v12767_v18  ;;  %v7607_v40 = vadd.f32 %v7606_v7, %v12772_v1  ;;  %v13426_v18 = vld [vmem:[#allocation59_spill] sm:$0xff]  ;;  %v13427_v1 = vld [vmem:[#allocation60_spill] sm:$0xff]  ;;  %v13428_v6 = vld [vmem:[#allocation61_spill] sm:$0xff] }
 0x43c   :  { %v7577_v49 = vrot.slane %v7576_v50, 1  ;;  %v7616_v52 = vadd.f32 %v7615_v10, %v12777_v47  ;;  %v7625_v29 = vadd.f32 %v7624_v21, %v12782_v27  ;;  %v7633_v16 = vadd.f32 %v13422_v48, %v12723_v57  ;;  %v13429_v59 = vld [vmem:[#allocation45_spill] sm:$0xff] }
 0x43d   :  { %v7586_v46 = vrot.slane %v7585_v44, 1  ;;  %v7590_v51 = vadd.f32 %v7589_v37, %v13423_v33  ;;  %v7599_v31 = vadd.f32 %v7598_v2, %v13424_v26  ;;  %v7608_v8 = vadd.f32 %v7607_v40, %v13425_v13 }
 0x43e   :  { %v12876_v32 = vadd.f32 %v7577_v49, %v7576_v50  ;;  %v7617_v30 = vadd.f32 %v7616_v52, %v13426_v18  ;;  %v7626_v25 = vadd.f32 %v7625_v29, %v13427_v1  ;;  %v7634_v47 = vadd.f32 %v7633_v16, %v12787_v62  ;;  %v13430_v50 = vld [vmem:[#allocation46_spill] sm:$0xff] }
 0x43f   :  { %v12881_v36 = vadd.f32 %v7586_v46, %v7585_v44  ;;  %v7591_v27 = vrot.slane %v7590_v51, 4  ;;  %v7600_v20 = vrot.slane %v7599_v31, 4  ;;  %v7609_v57 = vrot.slane %v7608_v8, 4 }
 0x440   :  { %v7618_v41 = vrot.slane %v7617_v30, 4  ;;  %v7627_v28 = vrot.slane %v7626_v25, 4  ;;  %v7635_v5 = vadd.f32 %v7634_v47, %v13428_v6  ;;  %v7642_v17 = vadd.f32 %v13429_v59, %v12728_v56 }
 0x441   :  { %v7592_v9 = vadd.f32 %v7591_v27, %v7590_v51  ;;  %v7601_v3 = vadd.f32 %v7600_v20, %v7599_v31  ;;  %v7610_v7 = vadd.f32 %v7609_v57, %v7608_v8  ;;  %v7651_v39 = vadd.f32 %v13430_v50, %v12733_v63 }
 0x442   :  { %v7619_v10 = vadd.f32 %v7618_v41, %v7617_v30  ;;  %v7628_v62 = vadd.f32 %v7627_v28, %v7626_v25  ;;  %v7636_v43 = vrot.slane %v7635_v5, 4  ;;  %v7643_v21 = vadd.f32 %v7642_v17, %v12792_v24  ;;  %v12892_v57 = vpop.f32.mrb[72].mxu0 }
 0x443   :  { %v7593_v44 = vrot.slane %v7592_v9, 2  ;;  %v7602_v37 = vrot.slane %v7601_v3, 2  ;;  %v7611_v2 = vrot.slane %v7610_v7, 2  ;;  %v7652_v40 = vadd.f32 %v7651_v39, %v12797_v60 }
 0x444   :  { %v7620_v49 = vrot.slane %v7619_v10, 2  ;;  %v7629_v52 = vrot.slane %v7628_v62, 2  ;;  %v7637_v29 = vadd.f32 %v7636_v43, %v7635_v5  ;;  %v7644_v56 = vadd.f32 %v7643_v21, %v12802_v54  ;;  %v6954_v5 = vpop.f32.mrb[73].mxu0 }
 0x445   :  { %v7594_v48 = vadd.f32 %v7593_v44, %v7592_v9  ;;  %v7603_v16 = vadd.f32 %v7602_v37, %v7601_v3  ;;  %v7612_v46 = vadd.f32 %v7611_v2, %v7610_v7  ;;  %v7653_v63 = vadd.f32 %v7652_v40, %v12807_v14  ;;  %v12900_v7 = vpop.f32.mrb[74].mxu0 }
 0x446   :  { %v7621_v33 = vadd.f32 %v7620_v49, %v7619_v10  ;;  %v7630_v51 = vadd.f32 %v7629_v52, %v7628_v62  ;;  %v7638_v26 = vrot.slane %v7637_v29, 2  ;;  %v7645_v31 = vrot.slane %v7644_v56, 4  ;;  %v12906_v43 = vpop.f32.mrb[75].mxu0 }
 0x447   :  { %v7595_v24 = vrot.slane %v7594_v48, 1  ;;  %v7604_v13 = vrot.slane %v7603_v16, 1  ;;  %v7613_v8 = vrot.slane %v7612_v46, 1  ;;  %v7654_v18 = vrot.slane %v7653_v63, 4 }
 0x448   :  { %v7622_v30 = vrot.slane %v7621_v33, 1  ;;  %v7631_v60 = vrot.slane %v7630_v51, 1  ;;  %v7639_v1 = vadd.f32 %v7638_v26, %v7637_v29  ;;  %v7646_v25 = vadd.f32 %v7645_v31, %v7644_v56 }
 0x449   :  { %v7596_v47 = vadd.f32 %v7595_v24, %v7594_v48  ;;  %v7605_v27 = vadd.f32 %v7604_v13, %v7603_v16  ;;  %v7614_v54 = vadd.f32 %v7613_v8, %v7612_v46  ;;  %v7655_v20 = vadd.f32 %v7654_v18, %v7653_v63 }
 0x44a   :  { %v7623_v41 = vadd.f32 %v7622_v30, %v7621_v33  ;;  %v7632_v14 = vadd.f32 %v7631_v60, %v7630_v51  ;;  %v7640_v28 = vrot.slane %v7639_v1, 1  ;;  %v7647_v6 = vrot.slane %v7646_v25, 2  ;;  %v6962_v31 = vpop.f32.mrb[76].mxu0 }
 0x44b   :  { %v7656_v59 = vrot.slane %v7655_v20, 2  ;;  %v7689_v17 = vadd.f32 %v12708_v53, %v12810_v0  ;;  %v7806_v9 = vadd.f32 %v12196_v19, %v12844_v55  ;;  %v7807_v3 = vadd.f32 %v12196_v19, %v12846_v22  ;;  %v12912_v22 = vpop.f32.mrb[72].mxu1  ;;  %v12934_v30 = vpop.f32.mrb[77].mxu0 }
 0x44c   :  { %v7641_v50 = vadd.f32 %v7640_v28, %v7639_v1  ;;  %v7648_v39 = vadd.f32 %v7647_v6, %v7646_v25  ;;  %v7808_v10 = vadd.f32 %v12196_v19, %v12848_v35  ;;  %v7809_v62 = vadd.f32 %v12196_v19, %v12850_v4 }
 0x44d   :  { %v7657_v21 = vadd.f32 %v7656_v59, %v7655_v20  ;;  %v7690_v53 = vrot.slane %v7689_v17, 4  ;;  %v7810_v0 = vadd.f32 %v12196_v19, %v12852_v61  ;;  %v7811_v55 = vadd.f32 %v12196_v19, %v12860_v45  ;;  %v12924_v61 = vpop.f32.mrb[73].mxu1 }
 0x44e   :  { %v7649_v44 = vrot.slane %v7648_v39, 1  ;;  %v7812_v37 = vadd.f32 %v12196_v19, %v12876_v32  ;;  %v7813_v35 = vadd.f32 %v12196_v19, %v12881_v36  ;;  %v7814_v4 = vadd.f32 %v12196_v19, %v7596_v47  ;;  %v12928_v56 = vpop.f32.mrb[74].mxu1 }
 0x44f   :  { %v13431_v2 = vlaneseq  ;;  %v7658_v49 = vrot.slane %v7657_v21, 1  ;;  %v7691_v45 = vadd.f32 %v7690_v53, %v7689_v17  ;;  %v7815_v52 = vadd.f32 %v12196_v19, %v7605_v27  ;;  %v7011_v46 = vpop.f32.mrb[75].mxu1  ;;  %v12939_v27 = vpop.f32.mrb[78].mxu0 }
 0x450   :  { %v7816_v29 = vadd.f32 %v12196_v19, %v7614_v54  ;;  %v7650_v32 = vadd.f32 %v7649_v44, %v7648_v39  ;;  %v7817_v36 = vadd.f32 %v12196_v19, %v7623_v41  ;;  %v7818_v48 = vadd.f32 %v12196_v19, %v7632_v14  ;;  %v6968_v28 = vpop.f32.mrb[79].mxu0 }
 0x451   :  { %vm12920_vm4 = vcmp.lt.s32.totalorder %v13431_v2, 512  ;;  %v7819_v16 = vadd.f32 %v12196_v19, %v7641_v50  ;;  %v7659_v63 = vadd.f32 %v7658_v49, %v7657_v21  ;;  %v7692_v33 = vrot.slane %v7691_v45, 2 }
 0x452   :  { %v7842_v51 = vcombine.low %v7806_v9, %v7807_v3  ;;  %v7843_v26 = vcombine.low %v7808_v10, %v7809_v62  ;;  %v7820_v24 = vadd.f32 %v12196_v19, %v7650_v32  ;;  %v7877_v13 = vcombine.low %v7810_v0, %v7811_v55  ;;  %v7015_v3 = vpop.f32.mrb[76].mxu1  ;;  %v13434_v10 = vld [vmem:[#allocation57_spill] sm:$0xff] }
 0x453   :  { %v7878_v8 = vcombine.low %v7812_v37, %v7813_v35  ;;  %v7909_v18 = vcombine.low %v7814_v4, %v7815_v52  ;;  %v7693_v60 = vadd.f32 %v7692_v33, %v7691_v45  ;;  %v7821_v1 = vadd.f32 %v12196_v19, %v7659_v63  ;;  %v7017_v53 = vpop.f32.mrb[77].mxu1 }
 0x454   :  { %v7850_v25 = vrot.slane %v7842_v51, %v13410_v34  ;;  %v7857_v47 = vrot.slane %v7843_v26, %v13410_v34  ;;  %v7885_v54 = vrot.slane %v7877_v13, %v13410_v34  ;;  %v7910_v41 = vcombine.low %v7816_v29, %v7817_v36  ;;  %v7019_v35 = vpop.f32.mrb[78].mxu1 }
 0x455   :  { %v7892_v20 = vrot.slane %v7878_v8, %v13410_v34  ;;  %v7917_v14 = vrot.slane %v7909_v18, %v13410_v34  ;;  %v7694_v6 = vrot.slane %v7693_v60, 1  ;;  %v7941_v17 = vcombine.low %v7818_v48, %v7819_v16  ;;  %v7021_v52 = vpop.f32.mrb[79].mxu1  ;;  %v13436_v18 = vld [vmem:[#allocation33_spill] sm:$0xff] }
 0x456   :  { %v7858_v59 = vcombine.low %v7850_v25, %v7857_v47  ;;  %v7942_v9 = vcombine.low %v7820_v24, %v7821_v1  ;;  %v7924_v39 = vrot.slane %v7910_v41, %v13410_v34  ;;  %v6953_v62 = vadd.f32 %v12892_v57, %v13434_v10 }
 0x457   :  { %v7893_v50 = vcombine.low %v7885_v54, %v7892_v20  ;;  %v6955_v21 = vadd.f32 %v6954_v5, %v13434_v10  ;;  %v7695_v0 = vadd.f32 %v7694_v6, %v7693_v60  ;;  %v7949_v44 = vrot.slane %v7941_v17, %v13410_v34  ;;  %v13435_v5 = vld [vmem:[#allocation31_spill] sm:$0xff] }
 0x458   :  { %v7865_v55 = vrot.slane %v7858_v59, %v13410_v34  ;;  %v7956_v37 = vrot.slane %v7942_v9, %v13410_v34  ;;  %v7925_v2 = vcombine.low %v7917_v14, %v7924_v39  ;;  %v7256_v49 = vmax.f32 %v6953_v62, 0.0 }
 0x459   :  { %v7900_v4 = vrot.slane %v7893_v50, %v13410_v34  ;;  %v7257_v45 = vmax.f32 %v6955_v21, 0.0  ;;  %v7825_v29 = vadd.f32 %v12196_v19, %v7695_v0  ;;  %v6957_v32 = vadd.f32 %v12900_v7, %v13435_v5 }
 0x45a   :  { %7871 = vst.msk [vmem:[%s13128_s7] ss:$8 sm:$0xf] %vm12920_vm4, %v7865_v55  ;;  %v7957_v57 = vcombine.low %v7949_v44, %v7956_v37  ;;  %v6959_v36 = vadd.f32 %v12906_v43, %v13435_v5  ;;  %v7932_v48 = vrot.slane %v7925_v2, %v13410_v34  ;;  %v7408_v16 = vmul.f32 %v12622_v11, %v7256_v49 }
 0x45b   :  { %8330 = vst.msk [vmem:[%s13128_s7 + $0x1] ss:$8 sm:$0xf] %vm12920_vm4, %v7900_v4  ;;  %v7409_v63 = vmul.f32 %v12622_v11, %v7257_v45  ;;  %v7006_v33 = vadd.f32 %v12912_v22, %v13434_v10  ;;  %v7974_v51 = vcombine.low %v12830_v15, %v7825_v29  ;;  %v7288_v43 = vmax.f32 %v6957_v32, 0.0 }
 0x45c   :  { %v7964_v7 = vrot.slane %v7957_v57, %v13410_v34  ;;  %v7289_v26 = vmax.f32 %v6959_v36, 0.0  ;;  %8331 = vst.msk [vmem:[%s13128_s7 + $0x2] ss:$8 sm:$0xf] %vm12920_vm4, %v7932_v48  ;;  %v7008_v13 = vadd.f32 %v12924_v61, %v13434_v10  ;;  %v7010_v8 = vadd.f32 %v12928_v56, %v13435_v5 }
 0x45d   :  { %v7258_v24 = vmax.f32 %v7006_v33, 0.0  ;;  %v7012_v22 = vadd.f32 %v7011_v46, %v13435_v5  ;;  %v7988_v15 = vrot.slane %v7974_v51, %v13410_v34  ;;  %v7440_v60 = vmul.f32 %v13436_v18, %v7288_v43 }
 0x45e   :  { %8332 = vst.msk [vmem:[%s13128_s7 + $0x3] ss:$8 sm:$0xf] %vm12920_vm4, %v7964_v7  ;;  %v7441_v1 = vmul.f32 %v13436_v18, %v7289_v26  ;;  %v6963_v25 = vadd.f32 %v6962_v31, %v12515_v12  ;;  %v7259_v47 = vmax.f32 %v7008_v13, 0.0  ;;  %v7290_v56 = vmax.f32 %v7010_v8, 0.0 }
 0x45f   :  { %v7410_v61 = vmul.f32 %v12622_v11, %v7258_v24  ;;  %v7291_v54 = vmax.f32 %v7012_v22, 0.0  ;;  %v7989_v46 = vcombine.low %v12835_v42, %v7988_v15  ;;  %v7696_v20 = vadd.f32 %v7440_v60, %v7408_v16 }
 0x460   :  { %v7705_v41 = vadd.f32 %v7441_v1, %v7409_v63  ;;  %v7320_v14 = vmax.f32 %v6963_v25, 0.0  ;;  %v7411_v6 = vmul.f32 %v12622_v11, %v7259_v47  ;;  %v7442_v59 = vmul.f32 %v13436_v18, %v7290_v56 }
 0x461   :  { %v7443_v17 = vmul.f32 %v13436_v18, %v7291_v54  ;;  %v6965_v9 = vadd.f32 %v12934_v30, %v12515_v12  ;;  %v7996_v31 = vrot.slane %v7989_v46, %v13410_v34  ;;  %v6967_v39 = vadd.f32 %v12939_v27, %v12237_v58 }
 0x462   :  { %v7472_v50 = vmul.f32 %v12673_v23, %v7320_v14  ;;  %v6969_v42 = vadd.f32 %v6968_v28, %v12237_v58  ;;  %v7714_v62 = vadd.f32 %v7442_v59, %v7410_v61  ;;  %v7016_v55 = vadd.f32 %v7015_v3, %v12515_v12 }
 0x463   :  { %v7723_v21 = vadd.f32 %v7443_v17, %v7411_v6  ;;  %v7321_v0 = vmax.f32 %v6965_v9, 0.0  ;;  %8333 = vst.msk [vmem:[%s13128_s7 + $0x4] ss:$8 sm:$0xf] %vm12920_vm4, %v7996_v31  ;;  %v7352_v44 = vmax.f32 %v6967_v39, 0.0  ;;  %v7018_v4 = vadd.f32 %v7017_v53, %v12515_v12 }
 0x464   :  { %v7697_v30 = vadd.f32 %v7696_v20, %v7472_v50  ;;  %v7353_v37 = vmax.f32 %v6969_v42, 0.0  ;;  %v7322_v2 = vmax.f32 %v7016_v55, 0.0  ;;  %v7020_v28 = vadd.f32 %v7019_v35, %v12237_v58 }
 0x465   :  { %v7473_v27 = vmul.f32 %v12673_v23, %v7321_v0  ;;  %v7022_v49 = vadd.f32 %v7021_v52, %v12237_v58  ;;  %v7504_v3 = vmul.f32 %v12371_v38, %v7352_v44  ;;  %v7323_v29 = vmax.f32 %v7018_v4, 0.0 }
 0x466   :  { %v7505_v45 = vmul.f32 %v12371_v38, %v7353_v37  ;;  %v7474_v32 = vmul.f32 %v12673_v23, %v7322_v2  ;;  %v7354_v36 = vmax.f32 %v7020_v28, 0.0 }
 0x467   :  { %v7706_v57 = vadd.f32 %v7705_v41, %v7473_v27  ;;  %v7355_v48 = vmax.f32 %v7022_v49, 0.0  ;;  %v7698_v16 = vadd.f32 %v7697_v30, %v7504_v3  ;;  %v7475_v53 = vmul.f32 %v12673_v23, %v7323_v29 }
 0x468   :  { %v7715_v33 = vadd.f32 %v7714_v62, %v7474_v32  ;;  %v7506_v7 = vmul.f32 %v12371_v38, %v7354_v36 }
 0x469   :  { %v7707_v63 = vadd.f32 %v7706_v57, %v7505_v45  ;;  %v7507_v35 = vmul.f32 %v12371_v38, %v7355_v48  ;;  %v7699_v52 = vrot.slane %v7698_v16, 4  ;;  %v7724_v51 = vadd.f32 %v7723_v21, %v7475_v53 }
 0x46a   :  { %v7716_v26 = vadd.f32 %v7715_v33, %v7506_v7 }
 0x46b   :  { %v7708_v43 = vrot.slane %v7707_v63, 4  ;;  %v7700_v24 = vadd.f32 %v7699_v52, %v7698_v16  ;;  %v7725_v13 = vadd.f32 %v7724_v51, %v7507_v35 }
 0x46c   :  { %v7717_v22 = vrot.slane %v7716_v26, 4 }
 0x46d   :  { %v7709_v8 = vadd.f32 %v7708_v43, %v7707_v63  ;;  %v7701_v15 = vrot.slane %v7700_v24, 2  ;;  %v7726_v60 = vrot.slane %v7725_v13, 4 }
 0x46e   :  { %v7718_v25 = vadd.f32 %v7717_v22, %v7716_v26 }
 0x46f   :  { %v7710_v1 = vrot.slane %v7709_v8, 2  ;;  %v7702_v61 = vadd.f32 %v7701_v15, %v7700_v24  ;;  %v7727_v47 = vadd.f32 %v7726_v60, %v7725_v13 }
 0x470   :  { %v7719_v54 = vrot.slane %v7718_v25, 2 }
 0x471   :  { %v7711_v56 = vadd.f32 %v7710_v1, %v7709_v8  ;;  %v7703_v46 = vrot.slane %v7702_v61, 1  ;;  %v7728_v20 = vrot.slane %v7727_v47, 2 }
 0x472   :  { %v7720_v14 = vadd.f32 %v7719_v54, %v7718_v25 }
 0x473   :  { %v7712_v41 = vrot.slane %v7711_v56, 1  ;;  %v7704_v6 = vadd.f32 %v7703_v46, %v7702_v61  ;;  %v7729_v59 = vadd.f32 %v7728_v20, %v7727_v47 }
 0x474   :  { %v7721_v9 = vrot.slane %v7720_v14, 1 }
 0x475   :  { %v7713_v17 = vadd.f32 %v7712_v41, %v7711_v56  ;;  %v7826_v31 = vadd.f32 %v12196_v19, %v7704_v6  ;;  %v7730_v50 = vrot.slane %v7729_v59, 1 }
 0x476   :  { %v7722_v42 = vadd.f32 %v7721_v9, %v7720_v14 }
 0x477   :  { %v7827_v39 = vadd.f32 %v12196_v19, %v7713_v17  ;;  %v7731_v62 = vadd.f32 %v7730_v50, %v7729_v59 }
 0x478   :  { %v7828_v0 = vadd.f32 %v12196_v19, %v7722_v42 }
 0x479   :  { %v8005_v21 = vcombine.low %v7826_v31, %v7827_v39  ;;  %v7829_v55 = vadd.f32 %v12196_v19, %v7731_v62 }
 0x47b   :  { %v8006_v30 = vcombine.low %v7828_v0, %v7829_v55  ;;  %v8013_v44 = vrot.slane %v8005_v21, %v13410_v34 }
 0x47d   :  { %v8020_v37 = vrot.slane %v8006_v30, %v13410_v34 }
 0x47f   :  { %v8021_v4 = vcombine.low %v8013_v44, %v8020_v37 }
 0x481   :  { %v8028_v27 = vrot.slane %v8021_v4, %v13410_v34 }
 0x482   :  { %v7058_v2 = vpop.f32.mrb[80].mxu0 }
 0x483   :  { %8334 = vst.msk [vmem:[%s13128_s7 + $0x5] ss:$8 sm:$0xf] %vm12920_vm4, %v8028_v27  ;;  %v7059_v28 = vadd.f32 %v7058_v2, %v13434_v10  ;;  %v7060_v49 = vpop.f32.mrb[81].mxu0 }
 0x484   :  { %v7061_v3 = vadd.f32 %v7060_v49, %v13434_v10  ;;  %v7062_v45 = vpop.f32.mrb[82].mxu0 }
 0x485   :  { %v7260_v29 = vmax.f32 %v7059_v28, 0.0  ;;  %v7063_v57 = vadd.f32 %v7062_v45, %v13435_v5  ;;  %v7064_v32 = vpop.f32.mrb[83].mxu0 }
 0x486   :  { %v7261_v36 = vmax.f32 %v7061_v3, 0.0  ;;  %v7065_v48 = vadd.f32 %v7064_v32, %v13435_v5  ;;  %v7111_v16 = vpop.f32.mrb[80].mxu1 }
 0x487   :  { %v7292_v53 = vmax.f32 %v7063_v57, 0.0  ;;  %v7112_v63 = vadd.f32 %v7111_v16, %v13434_v10  ;;  %v7113_v33 = vpop.f32.mrb[81].mxu1  ;;  %v7412_v51 = vmul.f32 %v12622_v11, %v7260_v29 }
 0x488   :  { %v7293_v7 = vmax.f32 %v7065_v48, 0.0  ;;  %v7114_v35 = vadd.f32 %v7113_v33, %v13434_v10  ;;  %v7115_v52 = vpop.f32.mrb[82].mxu1  ;;  %v7413_v8 = vmul.f32 %v12622_v11, %v7261_v36 }
 0x489   :  { %v7444_v43 = vmul.f32 %v13436_v18, %v7292_v53  ;;  %v7262_v26 = vmax.f32 %v7112_v63, 0.0  ;;  %v7116_v24 = vadd.f32 %v7115_v52, %v13435_v5  ;;  %v7117_v13 = vpop.f32.mrb[83].mxu1 }
 0x48a   :  { %v7445_v22 = vmul.f32 %v13436_v18, %v7293_v7  ;;  %v7263_v15 = vmax.f32 %v7114_v35, 0.0  ;;  %v7118_v60 = vadd.f32 %v7117_v13, %v13435_v5  ;;  %v7068_v1 = vpop.f32.mrb[84].mxu0 }
 0x48b   :  { %v7732_v25 = vadd.f32 %v7444_v43, %v7412_v51  ;;  %v7294_v61 = vmax.f32 %v7116_v24, 0.0  ;;  %v7069_v47 = vadd.f32 %v7068_v1, %v12515_v12  ;;  %v7070_v56 = vpop.f32.mrb[85].mxu0  ;;  %v7414_v14 = vmul.f32 %v12622_v11, %v7262_v26 }
 0x48c   :  { %v7741_v54 = vadd.f32 %v7445_v22, %v7413_v8  ;;  %v7295_v46 = vmax.f32 %v7118_v60, 0.0  ;;  %v7071_v20 = vadd.f32 %v7070_v56, %v12515_v12  ;;  %v7072_v41 = vpop.f32.mrb[86].mxu0  ;;  %v7415_v31 = vmul.f32 %v12622_v11, %v7263_v15 }
 0x48d   :  { %v7446_v6 = vmul.f32 %v13436_v18, %v7294_v61  ;;  %v7324_v59 = vmax.f32 %v7069_v47, 0.0  ;;  %v7073_v17 = vadd.f32 %v7072_v41, %v12237_v58  ;;  %v7074_v9 = vpop.f32.mrb[87].mxu0 }
 0x48e   :  { %v7447_v50 = vmul.f32 %v13436_v18, %v7295_v46  ;;  %v7325_v39 = vmax.f32 %v7071_v20, 0.0  ;;  %v7075_v42 = vadd.f32 %v7074_v9, %v12237_v58  ;;  %v7121_v62 = vpop.f32.mrb[84].mxu1 }
 0x48f   :  { %v7750_v21 = vadd.f32 %v7446_v6, %v7414_v14  ;;  %v7476_v0 = vmul.f32 %v12673_v23, %v7324_v59  ;;  %v7356_v55 = vmax.f32 %v7073_v17, 0.0  ;;  %v7122_v30 = vadd.f32 %v7121_v62, %v12515_v12  ;;  %v7123_v44 = vpop.f32.mrb[85].mxu1 }
 0x490   :  { %v7759_v37 = vadd.f32 %v7447_v50, %v7415_v31  ;;  %v7477_v4 = vmul.f32 %v12673_v23, %v7325_v39  ;;  %v7357_v27 = vmax.f32 %v7075_v42, 0.0  ;;  %v7124_v2 = vadd.f32 %v7123_v44, %v12515_v12  ;;  %v7125_v28 = vpop.f32.mrb[86].mxu1 }
 0x491   :  { %v7733_v49 = vadd.f32 %v7732_v25, %v7476_v0  ;;  %v7508_v3 = vmul.f32 %v12371_v38, %v7356_v55  ;;  %v7326_v45 = vmax.f32 %v7122_v30, 0.0  ;;  %v7126_v29 = vadd.f32 %v7125_v28, %v12237_v58  ;;  %v7127_v57 = vpop.f32.mrb[87].mxu1 }
 0x492   :  { %v7742_v32 = vadd.f32 %v7741_v54, %v7477_v4  ;;  %v7509_v36 = vmul.f32 %v12371_v38, %v7357_v27  ;;  %v7327_v48 = vmax.f32 %v7124_v2, 0.0  ;;  %v7128_v16 = vadd.f32 %v7127_v57, %v12237_v58 }
 0x493   :  { %v7734_v53 = vadd.f32 %v7733_v49, %v7508_v3  ;;  %v7478_v63 = vmul.f32 %v12673_v23, %v7326_v45  ;;  %v7358_v33 = vmax.f32 %v7126_v29, 0.0 }
 0x494   :  { %v7743_v7 = vadd.f32 %v7742_v32, %v7509_v36  ;;  %v7479_v35 = vmul.f32 %v12673_v23, %v7327_v48  ;;  %v7359_v52 = vmax.f32 %v7128_v16, 0.0 }
 0x495   :  { %v7735_v51 = vrot.slane %v7734_v53, 4  ;;  %v7751_v43 = vadd.f32 %v7750_v21, %v7478_v63  ;;  %v7510_v26 = vmul.f32 %v12371_v38, %v7358_v33 }
 0x496   :  { %v7744_v24 = vrot.slane %v7743_v7, 4  ;;  %v7760_v13 = vadd.f32 %v7759_v37, %v7479_v35  ;;  %v7511_v8 = vmul.f32 %v12371_v38, %v7359_v52 }
 0x497   :  { %v7736_v22 = vadd.f32 %v7735_v51, %v7734_v53  ;;  %v7752_v15 = vadd.f32 %v7751_v43, %v7510_v26 }
 0x498   :  { %v7745_v60 = vadd.f32 %v7744_v24, %v7743_v7  ;;  %v7761_v1 = vadd.f32 %v7760_v13, %v7511_v8 }
 0x499   :  { %v7737_v25 = vrot.slane %v7736_v22, 2  ;;  %v7753_v61 = vrot.slane %v7752_v15, 4 }
 0x49a   :  { %v7746_v47 = vrot.slane %v7745_v60, 2  ;;  %v7762_v56 = vrot.slane %v7761_v1, 4 }
 0x49b   :  { %v7738_v54 = vadd.f32 %v7737_v25, %v7736_v22  ;;  %v7754_v46 = vadd.f32 %v7753_v61, %v7752_v15 }
 0x49c   :  { %v7747_v20 = vadd.f32 %v7746_v47, %v7745_v60  ;;  %v7763_v41 = vadd.f32 %v7762_v56, %v7761_v1 }
 0x49d   :  { %v7739_v14 = vrot.slane %v7738_v54, 1  ;;  %v7755_v6 = vrot.slane %v7754_v46, 2 }
 0x49e   :  { %v7748_v59 = vrot.slane %v7747_v20, 1  ;;  %v7764_v17 = vrot.slane %v7763_v41, 2 }
 0x49f   :  { %v7740_v9 = vadd.f32 %v7739_v14, %v7738_v54  ;;  %v7756_v31 = vadd.f32 %v7755_v6, %v7754_v46 }
 0x4a0   :  { %v7749_v50 = vadd.f32 %v7748_v59, %v7747_v20  ;;  %v7765_v39 = vadd.f32 %v7764_v17, %v7763_v41 }
 0x4a1   :  { %v7830_v42 = vadd.f32 %v12196_v19, %v7740_v9  ;;  %v7757_v62 = vrot.slane %v7756_v31, 1 }
 0x4a2   :  { %v7831_v21 = vadd.f32 %v12196_v19, %v7749_v50  ;;  %v7766_v0 = vrot.slane %v7765_v39, 1 }
 0x4a3   :  { %v7758_v55 = vadd.f32 %v7757_v62, %v7756_v31 }
 0x4a4   :  { %v8037_v30 = vcombine.low %v7830_v42, %v7831_v21  ;;  %v7767_v44 = vadd.f32 %v7766_v0, %v7765_v39 }
 0x4a5   :  { %v7832_v37 = vadd.f32 %v12196_v19, %v7758_v55 }
 0x4a6   :  { %v7833_v4 = vadd.f32 %v12196_v19, %v7767_v44  ;;  %v8045_v2 = vrot.slane %v8037_v30, %v13410_v34 }
 0x4a8   :  { %v8038_v27 = vcombine.low %v7832_v37, %v7833_v4 }
 0x4aa   :  { %v8052_v28 = vrot.slane %v8038_v27, %v13410_v34 }
 0x4ac   :  { %v8053_v49 = vcombine.low %v8045_v2, %v8052_v28 }
 0x4ae   :  { %v8060_v3 = vrot.slane %v8053_v49, %v13410_v34 }
 0x4b0   :  { %8335 = vst.msk [vmem:[%s13128_s7 + $0x6] ss:$8 sm:$0xf] %vm12920_vm4, %v8060_v3 }
 0x4be   :  { %v7164_v45 = vpop.f32.mrb[88].mxu0 }
 0x4bf   :  { %v7165_v29 = vadd.f32 %v7164_v45, %v13434_v10  ;;  %v7166_v57 = vpop.f32.mrb[89].mxu0 }
 0x4c0   :  { %v7167_v32 = vadd.f32 %v7166_v57, %v13434_v10  ;;  %v7168_v36 = vpop.f32.mrb[90].mxu0 }
 0x4c1   :  { %v7264_v48 = vmax.f32 %v7165_v29, 0.0  ;;  %v7169_v16 = vadd.f32 %v7168_v36, %v13435_v5  ;;  %v7170_v53 = vpop.f32.mrb[91].mxu0 }
 0x4c2   :  { %v7265_v63 = vmax.f32 %v7167_v32, 0.0  ;;  %v7171_v33 = vadd.f32 %v7170_v53, %v13435_v5 }
 0x4c3   :  { %v7296_v7 = vmax.f32 %v7169_v16, 0.0  ;;  %v7416_v51 = vmul.f32 %v12622_v11, %v7264_v48 }
 0x4c4   :  { %v7297_v35 = vmax.f32 %v7171_v33, 0.0  ;;  %v7417_v13 = vmul.f32 %v12622_v11, %v7265_v63 }
 0x4c5   :  { %v7217_v52 = vpop.f32.mrb[88].mxu1  ;;  %v7448_v43 = vmul.f32 %v13436_v18, %v7296_v7 }
 0x4c6   :  { %v7218_v26 = vadd.f32 %v7217_v52, %v13434_v10  ;;  %v7219_v24 = vpop.f32.mrb[89].mxu1  ;;  %v7449_v8 = vmul.f32 %v13436_v18, %v7297_v35  ;;  %v7174_v22 = vpop.f32.mrb[92].mxu0 }
 0x4c7   :  { %v7220_v15 = vadd.f32 %v7219_v24, %v13434_v10  ;;  %v7221_v60 = vpop.f32.mrb[90].mxu1  ;;  %v7768_v1 = vadd.f32 %v7448_v43, %v7416_v51  ;;  %v7175_v25 = vadd.f32 %v7174_v22, %v12515_v12  ;;  %v7176_v61 = vpop.f32.mrb[93].mxu0 }
 0x4c8   :  { %v7266_v47 = vmax.f32 %v7218_v26, 0.0  ;;  %v7222_v56 = vadd.f32 %v7221_v60, %v13435_v5  ;;  %v7223_v54 = vpop.f32.mrb[91].mxu1  ;;  %v7777_v46 = vadd.f32 %v7449_v8, %v7417_v13  ;;  %v7177_v20 = vadd.f32 %v7176_v61, %v12515_v12  ;;  %v7178_v41 = vpop.f32.mrb[94].mxu0 }
 0x4c9   :  { %v7267_v14 = vmax.f32 %v7220_v15, 0.0  ;;  %v7224_v6 = vadd.f32 %v7223_v54, %v13435_v5  ;;  %v7328_v59 = vmax.f32 %v7175_v25, 0.0  ;;  %v7179_v17 = vadd.f32 %v7178_v41, %v12237_v58  ;;  %v7180_v10 = vpop.f32.mrb[95].mxu0 }
 0x4ca   :  { %v7298_v9 = vmax.f32 %v7222_v56, 0.0  ;;  %v7329_v31 = vmax.f32 %v7177_v20, 0.0  ;;  %v7181_v50 = vadd.f32 %v7180_v10, %v12237_v58  ;;  %v7418_v21 = vmul.f32 %v12622_v11, %v7266_v47 }
 0x4cb   :  { %v7299_v39 = vmax.f32 %v7224_v6, 0.0  ;;  %v7480_v42 = vmul.f32 %v12673_v23, %v7328_v59  ;;  %v7360_v62 = vmax.f32 %v7179_v17, 0.0  ;;  %v7419_v5 = vmul.f32 %v12622_v11, %v7267_v14 }
 0x4cc   :  { %v7450_v0 = vmul.f32 %v13436_v18, %v7298_v9  ;;  %v7481_v55 = vmul.f32 %v12673_v23, %v7329_v31  ;;  %v7361_v30 = vmax.f32 %v7181_v50, 0.0 }
 0x4cd   :  { %v7451_v44 = vmul.f32 %v13436_v18, %v7299_v39  ;;  %v7227_v37 = vpop.f32.mrb[92].mxu1  ;;  %v7769_v4 = vadd.f32 %v7768_v1, %v7480_v42  ;;  %v7512_v27 = vmul.f32 %v12371_v38, %v7360_v62 }
 0x4ce   :  { %v7786_v2 = vadd.f32 %v7450_v0, %v7418_v21  ;;  %v7228_v28 = vadd.f32 %v7227_v37, %v12515_v12  ;;  %v7229_v49 = vpop.f32.mrb[93].mxu1  ;;  %v7778_v3 = vadd.f32 %v7777_v46, %v7481_v55  ;;  %v7513_v45 = vmul.f32 %v12371_v38, %v7361_v30 }
 0x4cf   :  { %v7795_v29 = vadd.f32 %v7451_v44, %v7419_v5  ;;  %v7230_v57 = vadd.f32 %v7229_v49, %v12515_v12  ;;  %v7231_v32 = vpop.f32.mrb[94].mxu1  ;;  %v7770_v36 = vadd.f32 %v7769_v4, %v7512_v27 }
 0x4d0   :  { %v7330_v48 = vmax.f32 %v7228_v28, 0.0  ;;  %v7232_v11 = vadd.f32 %v7231_v32, %v12237_v58  ;;  %v7233_v18 = vpop.f32.mrb[95].mxu1  ;;  %v7779_v16 = vadd.f32 %v7778_v3, %v7513_v45 }
 0x4d1   :  { %v7331_v53 = vmax.f32 %v7230_v57, 0.0  ;;  %v7771_v63 = vrot.slane %v7770_v36, 4  ;;  %v7234_v33 = vadd.f32 %v7233_v18, %v12237_v58 }
 0x4d2   :  { %v7482_v7 = vmul.f32 %v12673_v23, %v7330_v48  ;;  %v7362_v35 = vmax.f32 %v7232_v11, 0.0  ;;  %v7780_v52 = vrot.slane %v7779_v16, 4 }
 0x4d3   :  { %v7483_v51 = vmul.f32 %v12673_v23, %v7331_v53  ;;  %v7772_v43 = vadd.f32 %v7771_v63, %v7770_v36  ;;  %v7363_v26 = vmax.f32 %v7234_v33, 0.0 }
 0x4d4   :  { %v7787_v12 = vadd.f32 %v7786_v2, %v7482_v7  ;;  %v7514_v24 = vmul.f32 %v12371_v38, %v7362_v35  ;;  %v7781_v13 = vadd.f32 %v7780_v52, %v7779_v16 }
 0x4d5   :  { %v7796_v8 = vadd.f32 %v7795_v29, %v7483_v51  ;;  %v7773_v22 = vrot.slane %v7772_v43, 2  ;;  %v7515_v15 = vmul.f32 %v12371_v38, %v7363_v26 }
 0x4d6   :  { %v7788_v60 = vadd.f32 %v7787_v12, %v7514_v24  ;;  %v7782_v1 = vrot.slane %v7781_v13, 2 }
 0x4d7   :  { %v7774_v25 = vadd.f32 %v7773_v22, %v7772_v43  ;;  %v7797_v58 = vadd.f32 %v7796_v8, %v7515_v15 }
 0x4d8   :  { %v7789_v61 = vrot.slane %v7788_v60, 4  ;;  %v7783_v47 = vadd.f32 %v7782_v1, %v7781_v13 }
 0x4d9   :  { %v7775_v56 = vrot.slane %v7774_v25, 1  ;;  %v7798_v54 = vrot.slane %v7797_v58, 4 }
 0x4da   :  { %v7790_v46 = vadd.f32 %v7789_v61, %v7788_v60  ;;  %v7784_v23 = vrot.slane %v7783_v47, 1 }
 0x4db   :  { %v7776_v20 = vadd.f32 %v7775_v56, %v7774_v25  ;;  %v7799_v41 = vadd.f32 %v7798_v54, %v7797_v58 }
 0x4dc   :  { %v7791_v14 = vrot.slane %v7790_v46, 2  ;;  %v7785_v6 = vadd.f32 %v7784_v23, %v7783_v47 }
 0x4dd   :  { %v7834_v59 = vadd.f32 %v12196_v19, %v7776_v20  ;;  %v7800_v17 = vrot.slane %v7799_v41, 2 }
 0x4de   :  { %v7792_v10 = vadd.f32 %v7791_v14, %v7790_v46  ;;  %v7835_v38 = vadd.f32 %v12196_v19, %v7785_v6 }
 0x4df   :  { %v7801_v9 = vadd.f32 %v7800_v17, %v7799_v41 }
 0x4e0   :  { %v7793_v31 = vrot.slane %v7792_v10, 1  ;;  %v8069_v50 = vcombine.low %v7834_v59, %v7835_v38 }
 0x4e1   :  { %v7802_v39 = vrot.slane %v7801_v9, 1 }
 0x4e2   :  { %v7794_v42 = vadd.f32 %v7793_v31, %v7792_v10  ;;  %v8077_v5 = vrot.slane %v8069_v50, %v13410_v34 }
 0x4e3   :  { %v7803_v62 = vadd.f32 %v7802_v39, %v7801_v9 }
 0x4e4   :  { %v7836_v21 = vadd.f32 %v12196_v19, %v7794_v42 }
 0x4e5   :  { %v7837_v0 = vadd.f32 %v12196_v19, %v7803_v62 }
 0x4e7   :  { %v8070_v55 = vcombine.low %v7836_v21, %v7837_v0 }
 0x4e9   :  { %v8084_v30 = vrot.slane %v8070_v55, %v13410_v34 }
 0x4eb   :  { %v8085_v44 = vcombine.low %v8077_v5, %v8084_v30 }
 0x4ed   :  { %v8092_v37 = vrot.slane %v8085_v44, %v13410_v34 }
 0x4ef   :  { %8336 = vst.msk [vmem:[%s13128_s7 + $0x7] ss:$8 sm:$0xf] %vm12920_vm4, %v8092_v37 }

</bundles_post_ra>
